<compile_context>
chip_gen: v5e
topology: v5e:2x2
jax: 0.10.0
libtpu: 0.0.40
codegen_flags: <defaults>
</compile_context>

<pallas_src>
import jax
import jax.numpy as jnp
from jax.experimental import pallas as pl
from jax.experimental.pallas import tpu as pltpu

K = 3          # dense-block conv kernel size
GROWTH = 32    # dense-block growth (hard-coded in the PyTorch source)


def _round_up(v, m):
    return (v + m - 1) // m * m


# ------------------------------------------------------------------
# Fused RCAB kernel
# ------------------------------------------------------------------

def _make_rcab_kernel(H, W, C):
    HW = H * W
    Wp = _round_up(W + 2, 16)          # bf16 sublane tile = 16 rows
    SLAB_C = 4 * GROWTH                # only c1..c4 are ever re-read
    inv_hw = 1.0 / float(HW)
    taps = [(dy, dx) for dy in range(K) for dx in range(K)]

    def kernel(x_ref, bnscale_ref, bnshift_ref,
               w1_ref, b1_ref, w2_ref, b2_ref, w3_ref, b3_ref,
               w4_ref, b4_ref, w5_ref, b5_ref,
               tw_ref, caw1_ref, cab1_ref, caw2_ref, cab2_ref,
               o_ref, xpad_ref, slab_ref):
        # --- Border-only zeroing ('same' padding).  The interior is fully
        # overwritten each grid step before it is read, so only the 1-pixel
        # border needs zeros.  Per-step zeroing is cheap (O((H+W)*C)) and
        # megacore-safe (scratch is per-core).
        for ref, cc in ((xpad_ref, C), (slab_ref, SLAB_C)):
            zrow = jnp.zeros((1, Wp, cc), jnp.bfloat16)
            zcol = jnp.zeros((H + 2, 1, cc), jnp.bfloat16)
            ref[0:1, :, :] = zrow
            ref[H + 1:H + 2, :, :] = zrow
            ref[:, 0:1, :] = zcol
            ref[:, W + 1:W + 2, :] = zcol
            # columns W+2..Wp-1 are never read -> no need to zero them.

        # --- Eval-mode BatchNorm folded into the conv1 input load: per-channel
        # affine in f32, cast once to bf16 into the padded input slab.
        xpad_ref[1:H + 1, 1:W + 1, :] = (
            x_ref[0] * bnscale_ref[...] + bnshift_ref[...]).astype(jnp.bfloat16)

        def conv3x3_relu(src_ref, cin, w_ref, b_ref):
            # 9 per-tap MXU matmuls accumulated in f32 (no im2col scatter):
            # the shifted bf16 windows feed the MXU directly.
            acc = jnp.zeros((HW, GROWTH), jnp.float32)
            for t, (dy, dx) in enumerate(taps):
                win = src_ref[dy:dy + H, dx:dx + W, 0:cin].reshape(HW, cin)
                acc = acc + jnp.dot(win, w_ref[t * cin:(t + 1) * cin, :],
                                    preferred_element_type=jnp.float32)
            return jnp.maximum(acc + b_ref[...], 0.0)        # (HW, 32) f32

        # --- Dense_Block with the 1x1 transition conv fused in: each conv's
        # 32 channels are (a) written bf16 at a channel offset of the padded
        # dense slab iff a later conv reads them, and (b) immediately folded
        # into the transition accumulator via a stripe matmul.  The
        # torch.cat's are free (channel prefixes of the slab) and
        # relu(cat(...)) == cat(...) since every piece is post-ReLU.
        t_acc = jnp.zeros((HW, C), jnp.float32)

        def emit(i, c_f32, store):
            nonlocal t_acc
            c_bf = c_f32.astype(jnp.bfloat16)
            if store:                     # c5 is never re-read by a conv
                slab_ref[1:H + 1, 1:W + 1, i * GROWTH:(i + 1) * GROWTH] = (
                    c_bf.reshape(H, W, GROWTH))
            t_acc = t_acc + jnp.dot(
                c_bf, tw_ref[i * GROWTH:(i + 1) * GROWTH, :],
                preferred_element_type=jnp.float32)

        emit(0, conv3x3_relu(xpad_ref, C, w1_ref, b1_ref), store=True)
        emit(1, conv3x3_relu(slab_ref, 1 * GROWTH, w2_ref, b2_ref), store=True)
        emit(2, conv3x3_relu(slab_ref, 2 * GROWTH, w3_ref, b3_ref), store=True)
        emit(3, conv3x3_relu(slab_ref, 3 * GROWTH, w4_ref, b4_ref), store=True)
        emit(4, conv3x3_relu(slab_ref, 4 * GROWTH, w5_ref, b5_ref), store=False)

        # --- Transition_Layer: 1x1 conv (no bias, fused above) + ReLU.
        # TODO(synk): AvgPool2d(2) omitted — source module is not shape-
        # consistent with the following residual add; spatial dims kept.
        t = jnp.maximum(t_acc, 0.0)                          # (HW, C) f32

        # --- CALayer: global avg pool -> 1x1 conv/ReLU -> 1x1 conv/sigmoid
        # -> channel rescale.  The two tiny M=1 "convs" run on the VPU/XLU
        # (broadcast-multiply + reduce), not the MXU.
        pooled = jnp.sum(t, axis=0, keepdims=True) * inv_hw            # (1, C)
        z = jnp.maximum(
            jnp.sum(pooled * caw1_ref[...], axis=1, keepdims=True)
            + cab1_ref[...], 0.0)                                      # (Cr, 1)
        s = jax.nn.sigmoid(
            jnp.sum(z * caw2_ref[...], axis=0, keepdims=True)
            + cab2_ref[...])                                           # (1, C)

        # --- Channel attention + RCAB residual add (res += x), all fused.
        out = t * s + x_ref[0].reshape(HW, C)
        o_ref[0] = out.reshape(H, W, C).astype(o_ref.dtype)

    return kernel


# ------------------------------------------------------------------
# Wrapper: weight preprocessing + single pallas_call
# ------------------------------------------------------------------

def rcab(x, p, eps=1e-5):
    """RCAB forward pass.  x: (N, H, W, C) NHWC activations with C == 160."""
    N, H, W, C = x.shape
    assert C == GROWTH * 5, "Dense_Block hard-codes 32-ch growth -> C must be 160"
    Cr = p["ca_w1"].shape[-1]
    Wp = _round_up(W + 2, 16)

    # eval-mode BatchNorm2d as a per-channel affine (applied in-kernel).
    bn_scale = (p["bn_gamma"] / jnp.sqrt(p["bn_var"] + eps)).astype(jnp.float32)
    bn_shift = (p["bn_beta"] - p["bn_mean"] * bn_scale).astype(jnp.float32)

    def im2col_w(w):
        # (3, 3, Cin, 32) -> tap-major im2col layout (9*Cin, 32); bf16 for MXU.
        k, _, cin, cout = w.shape
        return w.reshape(k * k * cin, cout).astype(jnp.bfloat16)

    def row_b(b):
        return b.reshape(1, -1).astype(jnp.float32)

    inputs = [
        x,
        bn_scale.reshape(1, 1, C), bn_shift.reshape(1, 1, C),
        im2col_w(p["w1"]), row_b(p["b1"]),
        im2col_w(p["w2"]), row_b(p["b2"]),
        im2col_w(p["w3"]), row_b(p["b3"]),
        im2col_w(p["w4"]), row_b(p["b4"]),
        im2col_w(p["w5"]), row_b(p["b5"]),
        p["tw"].reshape(C, C).astype(jnp.bfloat16),      # 1x1 transition conv
        p["ca_w1"].T.astype(jnp.float32),                # (Cr, C)
        p["ca_b1"].reshape(Cr, 1).astype(jnp.float32),
        p["ca_w2"].astype(jnp.float32),                  # (Cr, C)
        p["ca_b2"].reshape(1, C).astype(jnp.float32),
    ]

    def bcast_spec(a):
        zeros = (0,) * a.ndim
        return pl.BlockSpec(a.shape, lambda n, _z=zeros: _z)

    in_specs = ([pl.BlockSpec((1, H, W, C), lambda n: (n, 0, 0, 0))]
                + [bcast_spec(a) for a in inputs[1:]])

    # Size the scoped-VMEM limit from the actual footprint (bf16 scratch slabs
    # + double-buffered I/O blocks + broadcast weights), with headroom.  The
    # scoped default (16/32 MiB) would otherwise throttle the fused kernel for
    # non-toy H, W on v5e/v6e.
    scratch_bytes = ((H + 2) * Wp * C + (H + 2) * Wp * 4 * GROWTH) * 2   # bf16
    io_bytes = 2 * 2 * H * W * C * x.dtype.itemsize                     # x + out, 2-deep
    w_bytes = 2 * int(sum(int(a.size) * a.dtype.itemsize for a in inputs[1:]))
    vmem_limit = min(int(1.5 * (scratch_bytes + io_bytes + w_bytes)) + (8 << 20),
                     100 << 20)

    return pl.pallas_call(
        _make_rcab_kernel(H, W, C),
        out_shape=jax.ShapeDtypeStruct((N, H, W, C), x.dtype),
        grid=(N,),
        in_specs=in_specs,
        out_specs=pl.BlockSpec((1, H, W, C), lambda n: (n, 0, 0, 0)),
        scratch_shapes=[
            pltpu.VMEM((H + 2, Wp, C), jnp.bfloat16),           # padded BN(x)
            pltpu.VMEM((H + 2, Wp, 4 * GROWTH), jnp.bfloat16),  # padded c1..c4
        ],
        compiler_params=pltpu.CompilerParams(
            dimension_semantics=("parallel",),
            vmem_limit_bytes=vmem_limit),
    )(*inputs)


# ------------------------------------------------------------------
# Deterministic parameter initialization
# ------------------------------------------------------------------

def _normal(key, shape, scale=0.05):
    return scale * jax.random.normal(key, shape, jnp.float32)


def init_rcab_params(key, n_feat=160, reduction=16):
    assert n_feat == GROWTH * 5
    cr = n_feat // reduction
    ks = jax.random.split(key, 21)
    p = {
        # eval-mode BatchNorm statistics / affine (non-trivial so the
        # in-kernel BN affine is exercised).
        "bn_gamma": 1.0 + _normal(ks[1], (n_feat,)),
        "bn_beta": _normal(ks[2], (n_feat,)),
        "bn_mean": _normal(ks[3], (n_feat,)),
        "bn_var": 1.0 + 0.1 * jax.random.uniform(ks[4], (n_feat,), jnp.float32),
        "w1": _normal(ks[5], (3, 3, n_feat, 32)),  "b1": _normal(ks[6], (32,)),
        "w2": _normal(ks[7], (3, 3, 32, 32)),      "b2": _normal(ks[8], (32,)),
        "w3": _normal(ks[9], (3, 3, 64, 32)),      "b3": _normal(ks[10], (32,)),
        "w4": _normal(ks[11], (3, 3, 96, 32)),     "b4": _normal(ks[12], (32,)),
        "w5": _normal(ks[13], (3, 3, 128, 32)),    "b5": _normal(ks[14], (32,)),
        "tw": _normal(ks[15], (1, 1, n_feat, n_feat)),
        "ca_w1": _normal(ks[16], (n_feat, cr)),    "ca_b1": _normal(ks[17], (cr,)),
        "ca_w2": _normal(ks[18], (cr, n_feat)),    "ca_b2": _normal(ks[19], (n_feat,)),
    }
    return p, ks[20]


# ------------------------------------------------------------------

if __name__ == "__main__":
    key = jax.random.PRNGKey(0)
    N, H, W = 2, 8, 8
    n_feat, reduction = 160, 16

    params, key = init_rcab_params(key, n_feat, reduction)
    key, xk = jax.random.split(key)
    # NHWC input; PyTorch NCHW equivalent shape is (2, 160, 8, 8).
    x = jax.random.normal(xk, (N, H, W, n_feat), jnp.float32)

    out = jax.jit(rcab)(x, params)
    out = jax.block_until_ready(out)
    assert out.shape == x.shape and out.dtype == x.dtype
    assert bool(jnp.all(jnp.isfinite(out)))
    print("KERNEL_OK")
</pallas_src>

<mosaic_0001>
module attributes {stable_mosaic.version = 11 : i64} {
  func.func @kernel(%arg0: i32, %arg1: memref<1x8x8x160xf32, #tpu.memory_space<vmem>>, %arg2: memref<1x1x160xf32, #tpu.memory_space<vmem>>, %arg3: memref<1x1x160xf32, #tpu.memory_space<vmem>>, %arg4: memref<1440x32xbf16, #tpu.memory_space<vmem>>, %arg5: memref<1x32xf32, #tpu.memory_space<vmem>>, %arg6: memref<288x32xbf16, #tpu.memory_space<vmem>>, %arg7: memref<1x32xf32, #tpu.memory_space<vmem>>, %arg8: memref<576x32xbf16, #tpu.memory_space<vmem>>, %arg9: memref<1x32xf32, #tpu.memory_space<vmem>>, %arg10: memref<864x32xbf16, #tpu.memory_space<vmem>>, %arg11: memref<1x32xf32, #tpu.memory_space<vmem>>, %arg12: memref<1152x32xbf16, #tpu.memory_space<vmem>>, %arg13: memref<1x32xf32, #tpu.memory_space<vmem>>, %arg14: memref<160x160xbf16, #tpu.memory_space<vmem>>, %arg15: memref<10x160xf32, #tpu.memory_space<vmem>>, %arg16: memref<10x1xf32, #tpu.memory_space<vmem>>, %arg17: memref<10x160xf32, #tpu.memory_space<vmem>>, %arg18: memref<1x160xf32, #tpu.memory_space<vmem>>, %arg19: memref<1x8x8x160xf32, #tpu.memory_space<vmem>>, %arg20: memref<10x16x160xbf16, #tpu.memory_space<vmem>>, %arg21: memref<10x16x128xbf16, #tpu.memory_space<vmem>>) attributes {dimension_semantics = [#tpu.dimension_semantics<parallel>], iteration_bounds = array<i64: 2>, scalar_prefetch = 0 : i64, scratch_operands = 2 : i64, tpu.core_type = #tpu.core_type<tc>, window_params = [{transform_indices = @transform_0, window_bounds = array<i64: 1, 8, 8, 160>}, {pipeline_mode = #tpu.pipeline_mode<synchronous>, transform_indices = @transform_1, window_bounds = array<i64: 1, 1, 160>}, {pipeline_mode = #tpu.pipeline_mode<synchronous>, transform_indices = @transform_2, window_bounds = array<i64: 1, 1, 160>}, {pipeline_mode = #tpu.pipeline_mode<synchronous>, transform_indices = @transform_3, window_bounds = array<i64: 1440, 32>}, {pipeline_mode = #tpu.pipeline_mode<synchronous>, transform_indices = @transform_4, window_bounds = array<i64: 1, 32>}, {pipeline_mode = #tpu.pipeline_mode<synchronous>, transform_indices = @transform_5, window_bounds = array<i64: 288, 32>}, {pipeline_mode = #tpu.pipeline_mode<synchronous>, transform_indices = @transform_6, window_bounds = array<i64: 1, 32>}, {pipeline_mode = #tpu.pipeline_mode<synchronous>, transform_indices = @transform_7, window_bounds = array<i64: 576, 32>}, {pipeline_mode = #tpu.pipeline_mode<synchronous>, transform_indices = @transform_8, window_bounds = array<i64: 1, 32>}, {pipeline_mode = #tpu.pipeline_mode<synchronous>, transform_indices = @transform_9, window_bounds = array<i64: 864, 32>}, {pipeline_mode = #tpu.pipeline_mode<synchronous>, transform_indices = @transform_10, window_bounds = array<i64: 1, 32>}, {pipeline_mode = #tpu.pipeline_mode<synchronous>, transform_indices = @transform_11, window_bounds = array<i64: 1152, 32>}, {pipeline_mode = #tpu.pipeline_mode<synchronous>, transform_indices = @transform_12, window_bounds = array<i64: 1, 32>}, {pipeline_mode = #tpu.pipeline_mode<synchronous>, transform_indices = @transform_13, window_bounds = array<i64: 160, 160>}, {pipeline_mode = #tpu.pipeline_mode<synchronous>, transform_indices = @transform_14, window_bounds = array<i64: 10, 160>}, {pipeline_mode = #tpu.pipeline_mode<synchronous>, transform_indices = @transform_15, window_bounds = array<i64: 10, 1>}, {pipeline_mode = #tpu.pipeline_mode<synchronous>, transform_indices = @transform_16, window_bounds = array<i64: 10, 160>}, {pipeline_mode = #tpu.pipeline_mode<synchronous>, transform_indices = @transform_17, window_bounds = array<i64: 1, 160>}, {transform_indices = @transform_18, window_bounds = array<i64: 1, 8, 8, 160>}]} {
    %cst = arith.constant 0.000000e+00 : bf16
    %0 = vector.broadcast %cst : bf16 to vector<1x16x160xbf16>
    %cst_0 = arith.constant 0.000000e+00 : bf16
    %1 = vector.broadcast %cst_0 : bf16 to vector<10x1x160xbf16>
    %c0 = arith.constant 0 : index
    %c0_1 = arith.constant 0 : index
    %c0_2 = arith.constant 0 : index
    %2 = vector.load %arg20[%c0, %c0_1, %c0_2] : memref<10x16x160xbf16, #tpu.memory_space<vmem>>, vector<1x16x160xbf16>
    tpu.vector_store %arg20[%c0, %c0_1, %c0_2], %0 {strides = array<i32>} : memref<10x16x160xbf16, #tpu.memory_space<vmem>>, vector<1x16x160xbf16>,
    %c9 = arith.constant 9 : index
    %c0_3 = arith.constant 0 : index
    %c0_4 = arith.constant 0 : index
    %3 = vector.load %arg20[%c9, %c0_3, %c0_4] : memref<10x16x160xbf16, #tpu.memory_space<vmem>>, vector<1x16x160xbf16>
    tpu.vector_store %arg20[%c9, %c0_3, %c0_4], %0 {strides = array<i32>} : memref<10x16x160xbf16, #tpu.memory_space<vmem>>, vector<1x16x160xbf16>,
    %c0_5 = arith.constant 0 : index
    %c0_6 = arith.constant 0 : index
    %c0_7 = arith.constant 0 : index
    %4 = vector.load %arg20[%c0_5, %c0_6, %c0_7] : memref<10x16x160xbf16, #tpu.memory_space<vmem>>, vector<10x1x160xbf16>
    tpu.vector_store %arg20[%c0_5, %c0_6, %c0_7], %1 {strides = array<i32>} : memref<10x16x160xbf16, #tpu.memory_space<vmem>>, vector<10x1x160xbf16>,
    %c0_8 = arith.constant 0 : index
    %c9_9 = arith.constant 9 : index
    %c0_10 = arith.constant 0 : index
    %5 = vector.load %arg20[%c0_8, %c9_9, %c0_10] : memref<10x16x160xbf16, #tpu.memory_space<vmem>>, vector<10x1x160xbf16>
    tpu.vector_store %arg20[%c0_8, %c9_9, %c0_10], %1 {strides = array<i32>} : memref<10x16x160xbf16, #tpu.memory_space<vmem>>, vector<10x1x160xbf16>,
    %cst_11 = arith.constant 0.000000e+00 : bf16
    %6 = vector.broadcast %cst_11 : bf16 to vector<1x16x128xbf16>
    %cst_12 = arith.constant 0.000000e+00 : bf16
    %7 = vector.broadcast %cst_12 : bf16 to vector<10x1x128xbf16>
    %c0_13 = arith.constant 0 : index
    %c0_14 = arith.constant 0 : index
    %c0_15 = arith.constant 0 : index
    %8 = vector.load %arg21[%c0_13, %c0_14, %c0_15] : memref<10x16x128xbf16, #tpu.memory_space<vmem>>, vector<1x16x128xbf16>
    tpu.vector_store %arg21[%c0_13, %c0_14, %c0_15], %6 {strides = array<i32>} : memref<10x16x128xbf16, #tpu.memory_space<vmem>>, vector<1x16x128xbf16>,
    %c9_16 = arith.constant 9 : index
    %c0_17 = arith.constant 0 : index
    %c0_18 = arith.constant 0 : index
    %9 = vector.load %arg21[%c9_16, %c0_17, %c0_18] : memref<10x16x128xbf16, #tpu.memory_space<vmem>>, vector<1x16x128xbf16>
    tpu.vector_store %arg21[%c9_16, %c0_17, %c0_18], %6 {strides = array<i32>} : memref<10x16x128xbf16, #tpu.memory_space<vmem>>, vector<1x16x128xbf16>,
    %c0_19 = arith.constant 0 : index
    %c0_20 = arith.constant 0 : index
    %c0_21 = arith.constant 0 : index
    %10 = vector.load %arg21[%c0_19, %c0_20, %c0_21] : memref<10x16x128xbf16, #tpu.memory_space<vmem>>, vector<10x1x128xbf16>
    tpu.vector_store %arg21[%c0_19, %c0_20, %c0_21], %7 {strides = array<i32>} : memref<10x16x128xbf16, #tpu.memory_space<vmem>>, vector<10x1x128xbf16>,
    %c0_22 = arith.constant 0 : index
    %c9_23 = arith.constant 9 : index
    %c0_24 = arith.constant 0 : index
    %11 = vector.load %arg21[%c0_22, %c9_23, %c0_24] : memref<10x16x128xbf16, #tpu.memory_space<vmem>>, vector<10x1x128xbf16>
    tpu.vector_store %arg21[%c0_22, %c9_23, %c0_24], %7 {strides = array<i32>} : memref<10x16x128xbf16, #tpu.memory_space<vmem>>, vector<10x1x128xbf16>,
    %c0_25 = arith.constant 0 : index
    %c0_26 = arith.constant 0 : index
    %c0_27 = arith.constant 0 : index
    %c0_28 = arith.constant 0 : index
    %12 = vector.load %arg1[%c0_25, %c0_26, %c0_27, %c0_28] : memref<1x8x8x160xf32, #tpu.memory_space<vmem>>, vector<1x8x8x160xf32>
    %13 = vector.shape_cast %12 : vector<1x8x8x160xf32> to vector<8x8x160xf32>
    %c0_29 = arith.constant 0 : index
    %c0_30 = arith.constant 0 : index
    %c0_31 = arith.constant 0 : index
    %14 = vector.load %arg2[%c0_29, %c0_30, %c0_31] : memref<1x1x160xf32, #tpu.memory_space<vmem>>, vector<1x1x160xf32>
    %15 = vector.broadcast %14 : vector<1x1x160xf32> to vector<8x8x160xf32>
    %16 = arith.mulf %13, %15 : vector<8x8x160xf32>
    %c0_32 = arith.constant 0 : index
    %c0_33 = arith.constant 0 : index
    %c0_34 = arith.constant 0 : index
    %17 = vector.load %arg3[%c0_32, %c0_33, %c0_34] : memref<1x1x160xf32, #tpu.memory_space<vmem>>, vector<1x1x160xf32>
    %18 = vector.broadcast %17 : vector<1x1x160xf32> to vector<8x8x160xf32>
    %19 = arith.addf %16, %18 : vector<8x8x160xf32>
    %20 = arith.truncf %19 : vector<8x8x160xf32> to vector<8x8x160xbf16>
    %c1 = arith.constant 1 : index
    %c1_35 = arith.constant 1 : index
    %c0_36 = arith.constant 0 : index
    %21 = vector.load %arg20[%c1, %c1_35, %c0_36] : memref<10x16x160xbf16, #tpu.memory_space<vmem>>, vector<8x8x160xbf16>
    tpu.vector_store %arg20[%c1, %c1_35, %c0_36], %20 {strides = array<i32>} : memref<10x16x160xbf16, #tpu.memory_space<vmem>>, vector<8x8x160xbf16>,
    %cst_37 = arith.constant 0.000000e+00 : f32
    %22 = vector.broadcast %cst_37 : f32 to vector<64x160xf32>
    %cst_38 = arith.constant 0.000000e+00 : f32
    %23 = vector.broadcast %cst_38 : f32 to vector<64x32xf32>
    %c0_39 = arith.constant 0 : index
    %c0_40 = arith.constant 0 : index
    %c0_41 = arith.constant 0 : index
    %24 = vector.load %arg20[%c0_39, %c0_40, %c0_41] : memref<10x16x160xbf16, #tpu.memory_space<vmem>>, vector<8x8x160xbf16>
    %25 = vector.shape_cast %24 : vector<8x8x160xbf16> to vector<64x160xbf16>
    %c0_42 = arith.constant 0 : index
    %c0_43 = arith.constant 0 : index
    %26 = vector.load %arg4[%c0_42, %c0_43] : memref<1440x32xbf16, #tpu.memory_space<vmem>>, vector<160x32xbf16>
    %cst_44 = arith.constant dense<0.000000e+00> : vector<64x32xf32>
    %27 = tpu.matmul %25, %26, %cst_44 {dimension_numbers = #tpu.dot_dimension_numbers<[1], [0], [0], [1], [0, 0, 1, 1], [], []>} : vector<64x160xbf16>, vector<160x32xbf16>, vector<64x32xf32> -> vector<64x32xf32>
    %28 = arith.addf %23, %27 : vector<64x32xf32>
    %c0_45 = arith.constant 0 : index
    %c1_46 = arith.constant 1 : index
    %c0_47 = arith.constant 0 : index
    %29 = vector.load %arg20[%c0_45, %c1_46, %c0_47] : memref<10x16x160xbf16, #tpu.memory_space<vmem>>, vector<8x8x160xbf16>
    %30 = vector.shape_cast %29 : vector<8x8x160xbf16> to vector<64x160xbf16>
    %c160 = arith.constant 160 : index
    %c0_48 = arith.constant 0 : index
    %31 = vector.load %arg4[%c160, %c0_48] : memref<1440x32xbf16, #tpu.memory_space<vmem>>, vector<160x32xbf16>
    %cst_49 = arith.constant dense<0.000000e+00> : vector<64x32xf32>
    %32 = tpu.matmul %30, %31, %cst_49 {dimension_numbers = #tpu.dot_dimension_numbers<[1], [0], [0], [1], [0, 0, 1, 1], [], []>} : vector<64x160xbf16>, vector<160x32xbf16>, vector<64x32xf32> -> vector<64x32xf32>
    %33 = arith.addf %28, %32 : vector<64x32xf32>
    %c0_50 = arith.constant 0 : index
    %c2 = arith.constant 2 : index
    %c0_51 = arith.constant 0 : index
    %34 = vector.load %arg20[%c0_50, %c2, %c0_51] : memref<10x16x160xbf16, #tpu.memory_space<vmem>>, vector<8x8x160xbf16>
    %35 = vector.shape_cast %34 : vector<8x8x160xbf16> to vector<64x160xbf16>
    %c320 = arith.constant 320 : index
    %c0_52 = arith.constant 0 : index
    %36 = vector.load %arg4[%c320, %c0_52] : memref<1440x32xbf16, #tpu.memory_space<vmem>>, vector<160x32xbf16>
    %cst_53 = arith.constant dense<0.000000e+00> : vector<64x32xf32>
    %37 = tpu.matmul %35, %36, %cst_53 {dimension_numbers = #tpu.dot_dimension_numbers<[1], [0], [0], [1], [0, 0, 1, 1], [], []>} : vector<64x160xbf16>, vector<160x32xbf16>, vector<64x32xf32> -> vector<64x32xf32>
    %38 = arith.addf %33, %37 : vector<64x32xf32>
    %c1_54 = arith.constant 1 : index
    %c0_55 = arith.constant 0 : index
    %c0_56 = arith.constant 0 : index
    %39 = vector.load %arg20[%c1_54, %c0_55, %c0_56] : memref<10x16x160xbf16, #tpu.memory_space<vmem>>, vector<8x8x160xbf16>
    %40 = vector.shape_cast %39 : vector<8x8x160xbf16> to vector<64x160xbf16>
    %c480 = arith.constant 480 : index
    %c0_57 = arith.constant 0 : index
    %41 = vector.load %arg4[%c480, %c0_57] : memref<1440x32xbf16, #tpu.memory_space<vmem>>, vector<160x32xbf16>
    %cst_58 = arith.constant dense<0.000000e+00> : vector<64x32xf32>
    %42 = tpu.matmul %40, %41, %cst_58 {dimension_numbers = #tpu.dot_dimension_numbers<[1], [0], [0], [1], [0, 0, 1, 1], [], []>} : vector<64x160xbf16>, vector<160x32xbf16>, vector<64x32xf32> -> vector<64x32xf32>
    %43 = arith.addf %38, %42 : vector<64x32xf32>
    %c1_59 = arith.constant 1 : index
    %c1_60 = arith.constant 1 : index
    %c0_61 = arith.constant 0 : index
    %44 = vector.load %arg20[%c1_59, %c1_60, %c0_61] : memref<10x16x160xbf16, #tpu.memory_space<vmem>>, vector<8x8x160xbf16>
    %45 = vector.shape_cast %44 : vector<8x8x160xbf16> to vector<64x160xbf16>
    %c640 = arith.constant 640 : index
    %c0_62 = arith.constant 0 : index
    %46 = vector.load %arg4[%c640, %c0_62] : memref<1440x32xbf16, #tpu.memory_space<vmem>>, vector<160x32xbf16>
    %cst_63 = arith.constant dense<0.000000e+00> : vector<64x32xf32>
    %47 = tpu.matmul %45, %46, %cst_63 {dimension_numbers = #tpu.dot_dimension_numbers<[1], [0], [0], [1], [0, 0, 1, 1], [], []>} : vector<64x160xbf16>, vector<160x32xbf16>, vector<64x32xf32> -> vector<64x32xf32>
    %48 = arith.addf %43, %47 : vector<64x32xf32>
    %c1_64 = arith.constant 1 : index
    %c2_65 = arith.constant 2 : index
    %c0_66 = arith.constant 0 : index
    %49 = vector.load %arg20[%c1_64, %c2_65, %c0_66] : memref<10x16x160xbf16, #tpu.memory_space<vmem>>, vector<8x8x160xbf16>
    %50 = vector.shape_cast %49 : vector<8x8x160xbf16> to vector<64x160xbf16>
    %c800 = arith.constant 800 : index
    %c0_67 = arith.constant 0 : index
    %51 = vector.load %arg4[%c800, %c0_67] : memref<1440x32xbf16, #tpu.memory_space<vmem>>, vector<160x32xbf16>
    %cst_68 = arith.constant dense<0.000000e+00> : vector<64x32xf32>
    %52 = tpu.matmul %50, %51, %cst_68 {dimension_numbers = #tpu.dot_dimension_numbers<[1], [0], [0], [1], [0, 0, 1, 1], [], []>} : vector<64x160xbf16>, vector<160x32xbf16>, vector<64x32xf32> -> vector<64x32xf32>
    %53 = arith.addf %48, %52 : vector<64x32xf32>
    %c2_69 = arith.constant 2 : index
    %c0_70 = arith.constant 0 : index
    %c0_71 = arith.constant 0 : index
    %54 = vector.load %arg20[%c2_69, %c0_70, %c0_71] : memref<10x16x160xbf16, #tpu.memory_space<vmem>>, vector<8x8x160xbf16>
    %55 = vector.shape_cast %54 : vector<8x8x160xbf16> to vector<64x160xbf16>
    %c960 = arith.constant 960 : index
    %c0_72 = arith.constant 0 : index
    %56 = vector.load %arg4[%c960, %c0_72] : memref<1440x32xbf16, #tpu.memory_space<vmem>>, vector<160x32xbf16>
    %cst_73 = arith.constant dense<0.000000e+00> : vector<64x32xf32>
    %57 = tpu.matmul %55, %56, %cst_73 {dimension_numbers = #tpu.dot_dimension_numbers<[1], [0], [0], [1], [0, 0, 1, 1], [], []>} : vector<64x160xbf16>, vector<160x32xbf16>, vector<64x32xf32> -> vector<64x32xf32>
    %58 = arith.addf %53, %57 : vector<64x32xf32>
    %c2_74 = arith.constant 2 : index
    %c1_75 = arith.constant 1 : index
    %c0_76 = arith.constant 0 : index
    %59 = vector.load %arg20[%c2_74, %c1_75, %c0_76] : memref<10x16x160xbf16, #tpu.memory_space<vmem>>, vector<8x8x160xbf16>
    %60 = vector.shape_cast %59 : vector<8x8x160xbf16> to vector<64x160xbf16>
    %c1120 = arith.constant 1120 : index
    %c0_77 = arith.constant 0 : index
    %61 = vector.load %arg4[%c1120, %c0_77] : memref<1440x32xbf16, #tpu.memory_space<vmem>>, vector<160x32xbf16>
    %cst_78 = arith.constant dense<0.000000e+00> : vector<64x32xf32>
    %62 = tpu.matmul %60, %61, %cst_78 {dimension_numbers = #tpu.dot_dimension_numbers<[1], [0], [0], [1], [0, 0, 1, 1], [], []>} : vector<64x160xbf16>, vector<160x32xbf16>, vector<64x32xf32> -> vector<64x32xf32>
    %63 = arith.addf %58, %62 : vector<64x32xf32>
    %c2_79 = arith.constant 2 : index
    %c2_80 = arith.constant 2 : index
    %c0_81 = arith.constant 0 : index
    %64 = vector.load %arg20[%c2_79, %c2_80, %c0_81] : memref<10x16x160xbf16, #tpu.memory_space<vmem>>, vector<8x8x160xbf16>
    %65 = vector.shape_cast %64 : vector<8x8x160xbf16> to vector<64x160xbf16>
    %c1280 = arith.constant 1280 : index
    %c0_82 = arith.constant 0 : index
    %66 = vector.load %arg4[%c1280, %c0_82] : memref<1440x32xbf16, #tpu.memory_space<vmem>>, vector<160x32xbf16>
    %cst_83 = arith.constant dense<0.000000e+00> : vector<64x32xf32>
    %67 = tpu.matmul %65, %66, %cst_83 {dimension_numbers = #tpu.dot_dimension_numbers<[1], [0], [0], [1], [0, 0, 1, 1], [], []>} : vector<64x160xbf16>, vector<160x32xbf16>, vector<64x32xf32> -> vector<64x32xf32>
    %68 = arith.addf %63, %67 : vector<64x32xf32>
    %c0_84 = arith.constant 0 : index
    %c0_85 = arith.constant 0 : index
    %69 = vector.load %arg5[%c0_84, %c0_85] : memref<1x32xf32, #tpu.memory_space<vmem>>, vector<1x32xf32>
    %70 = vector.broadcast %69 : vector<1x32xf32> to vector<64x32xf32>
    %71 = arith.addf %68, %70 : vector<64x32xf32>
    %cst_86 = arith.constant 0.000000e+00 : f32
    %72 = vector.broadcast %cst_86 : f32 to vector<64x32xf32>
    %73 = arith.maximumf %71, %72 : vector<64x32xf32>
    %74 = arith.truncf %73 : vector<64x32xf32> to vector<64x32xbf16>
    %75 = vector.shape_cast %74 : vector<64x32xbf16> to vector<8x8x32xbf16>
    %c1_87 = arith.constant 1 : index
    %c1_88 = arith.constant 1 : index
    %c0_89 = arith.constant 0 : index
    %76 = vector.load %arg21[%c1_87, %c1_88, %c0_89] : memref<10x16x128xbf16, #tpu.memory_space<vmem>>, vector<8x8x32xbf16>
    tpu.vector_store %arg21[%c1_87, %c1_88, %c0_89], %75 {strides = array<i32>} : memref<10x16x128xbf16, #tpu.memory_space<vmem>>, vector<8x8x32xbf16>,
    %c0_90 = arith.constant 0 : index
    %c0_91 = arith.constant 0 : index
    %77 = vector.load %arg14[%c0_90, %c0_91] : memref<160x160xbf16, #tpu.memory_space<vmem>>, vector<32x160xbf16>
    %cst_92 = arith.constant dense<0.000000e+00> : vector<64x160xf32>
    %78 = tpu.matmul %74, %77, %cst_92 {dimension_numbers = #tpu.dot_dimension_numbers<[1], [0], [0], [1], [0, 0, 1, 1], [], []>} : vector<64x32xbf16>, vector<32x160xbf16>, vector<64x160xf32> -> vector<64x160xf32>
    %79 = arith.addf %22, %78 : vector<64x160xf32>
    %cst_93 = arith.constant 0.000000e+00 : f32
    %80 = vector.broadcast %cst_93 : f32 to vector<64x32xf32>
    %c0_94 = arith.constant 0 : index
    %c0_95 = arith.constant 0 : index
    %c0_96 = arith.constant 0 : index
    %81 = vector.load %arg21[%c0_94, %c0_95, %c0_96] : memref<10x16x128xbf16, #tpu.memory_space<vmem>>, vector<8x8x32xbf16>
    %82 = vector.shape_cast %81 : vector<8x8x32xbf16> to vector<64x32xbf16>
    %c0_97 = arith.constant 0 : index
    %c0_98 = arith.constant 0 : index
    %83 = vector.load %arg6[%c0_97, %c0_98] : memref<288x32xbf16, #tpu.memory_space<vmem>>, vector<32x32xbf16>
    %cst_99 = arith.constant dense<0.000000e+00> : vector<64x32xf32>
    %84 = tpu.matmul %82, %83, %cst_99 {dimension_numbers = #tpu.dot_dimension_numbers<[1], [0], [0], [1], [0, 0, 1, 1], [], []>} : vector<64x32xbf16>, vector<32x32xbf16>, vector<64x32xf32> -> vector<64x32xf32>
    %85 = arith.addf %80, %84 : vector<64x32xf32>
    %c0_100 = arith.constant 0 : index
    %c1_101 = arith.constant 1 : index
    %c0_102 = arith.constant 0 : index
    %86 = vector.load %arg21[%c0_100, %c1_101, %c0_102] : memref<10x16x128xbf16, #tpu.memory_space<vmem>>, vector<8x8x32xbf16>
    %87 = vector.shape_cast %86 : vector<8x8x32xbf16> to vector<64x32xbf16>
    %c32 = arith.constant 32 : index
    %c0_103 = arith.constant 0 : index
    %88 = vector.load %arg6[%c32, %c0_103] : memref<288x32xbf16, #tpu.memory_space<vmem>>, vector<32x32xbf16>
    %cst_104 = arith.constant dense<0.000000e+00> : vector<64x32xf32>
    %89 = tpu.matmul %87, %88, %cst_104 {dimension_numbers = #tpu.dot_dimension_numbers<[1], [0], [0], [1], [0, 0, 1, 1], [], []>} : vector<64x32xbf16>, vector<32x32xbf16>, vector<64x32xf32> -> vector<64x32xf32>
    %90 = arith.addf %85, %89 : vector<64x32xf32>
    %c0_105 = arith.constant 0 : index
    %c2_106 = arith.constant 2 : index
    %c0_107 = arith.constant 0 : index
    %91 = vector.load %arg21[%c0_105, %c2_106, %c0_107] : memref<10x16x128xbf16, #tpu.memory_space<vmem>>, vector<8x8x32xbf16>
    %92 = vector.shape_cast %91 : vector<8x8x32xbf16> to vector<64x32xbf16>
    %c64 = arith.constant 64 : index
    %c0_108 = arith.constant 0 : index
    %93 = vector.load %arg6[%c64, %c0_108] : memref<288x32xbf16, #tpu.memory_space<vmem>>, vector<32x32xbf16>
    %cst_109 = arith.constant dense<0.000000e+00> : vector<64x32xf32>
    %94 = tpu.matmul %92, %93, %cst_109 {dimension_numbers = #tpu.dot_dimension_numbers<[1], [0], [0], [1], [0, 0, 1, 1], [], []>} : vector<64x32xbf16>, vector<32x32xbf16>, vector<64x32xf32> -> vector<64x32xf32>
    %95 = arith.addf %90, %94 : vector<64x32xf32>
    %c1_110 = arith.constant 1 : index
    %c0_111 = arith.constant 0 : index
    %c0_112 = arith.constant 0 : index
    %96 = vector.load %arg21[%c1_110, %c0_111, %c0_112] : memref<10x16x128xbf16, #tpu.memory_space<vmem>>, vector<8x8x32xbf16>
    %97 = vector.shape_cast %96 : vector<8x8x32xbf16> to vector<64x32xbf16>
    %c96 = arith.constant 96 : index
    %c0_113 = arith.constant 0 : index
    %98 = vector.load %arg6[%c96, %c0_113] : memref<288x32xbf16, #tpu.memory_space<vmem>>, vector<32x32xbf16>
    %cst_114 = arith.constant dense<0.000000e+00> : vector<64x32xf32>
    %99 = tpu.matmul %97, %98, %cst_114 {dimension_numbers = #tpu.dot_dimension_numbers<[1], [0], [0], [1], [0, 0, 1, 1], [], []>} : vector<64x32xbf16>, vector<32x32xbf16>, vector<64x32xf32> -> vector<64x32xf32>
    %100 = arith.addf %95, %99 : vector<64x32xf32>
    %c1_115 = arith.constant 1 : index
    %c1_116 = arith.constant 1 : index
    %c0_117 = arith.constant 0 : index
    %101 = vector.load %arg21[%c1_115, %c1_116, %c0_117] : memref<10x16x128xbf16, #tpu.memory_space<vmem>>, vector<8x8x32xbf16>
    %102 = vector.shape_cast %101 : vector<8x8x32xbf16> to vector<64x32xbf16>
    %c128 = arith.constant 128 : index
    %c0_118 = arith.constant 0 : index
    %103 = vector.load %arg6[%c128, %c0_118] : memref<288x32xbf16, #tpu.memory_space<vmem>>, vector<32x32xbf16>
    %cst_119 = arith.constant dense<0.000000e+00> : vector<64x32xf32>
    %104 = tpu.matmul %102, %103, %cst_119 {dimension_numbers = #tpu.dot_dimension_numbers<[1], [0], [0], [1], [0, 0, 1, 1], [], []>} : vector<64x32xbf16>, vector<32x32xbf16>, vector<64x32xf32> -> vector<64x32xf32>
    %105 = arith.addf %100, %104 : vector<64x32xf32>
    %c1_120 = arith.constant 1 : index
    %c2_121 = arith.constant 2 : index
    %c0_122 = arith.constant 0 : index
    %106 = vector.load %arg21[%c1_120, %c2_121, %c0_122] : memref<10x16x128xbf16, #tpu.memory_space<vmem>>, vector<8x8x32xbf16>
    %107 = vector.shape_cast %106 : vector<8x8x32xbf16> to vector<64x32xbf16>
    %c160_123 = arith.constant 160 : index
    %c0_124 = arith.constant 0 : index
    %108 = vector.load %arg6[%c160_123, %c0_124] : memref<288x32xbf16, #tpu.memory_space<vmem>>, vector<32x32xbf16>
    %cst_125 = arith.constant dense<0.000000e+00> : vector<64x32xf32>
    %109 = tpu.matmul %107, %108, %cst_125 {dimension_numbers = #tpu.dot_dimension_numbers<[1], [0], [0], [1], [0, 0, 1, 1], [], []>} : vector<64x32xbf16>, vector<32x32xbf16>, vector<64x32xf32> -> vector<64x32xf32>
    %110 = arith.addf %105, %109 : vector<64x32xf32>
    %c2_126 = arith.constant 2 : index
    %c0_127 = arith.constant 0 : index
    %c0_128 = arith.constant 0 : index
    %111 = vector.load %arg21[%c2_126, %c0_127, %c0_128] : memref<10x16x128xbf16, #tpu.memory_space<vmem>>, vector<8x8x32xbf16>
    %112 = vector.shape_cast %111 : vector<8x8x32xbf16> to vector<64x32xbf16>
    %c192 = arith.constant 192 : index
    %c0_129 = arith.constant 0 : index
    %113 = vector.load %arg6[%c192, %c0_129] : memref<288x32xbf16, #tpu.memory_space<vmem>>, vector<32x32xbf16>
    %cst_130 = arith.constant dense<0.000000e+00> : vector<64x32xf32>
    %114 = tpu.matmul %112, %113, %cst_130 {dimension_numbers = #tpu.dot_dimension_numbers<[1], [0], [0], [1], [0, 0, 1, 1], [], []>} : vector<64x32xbf16>, vector<32x32xbf16>, vector<64x32xf32> -> vector<64x32xf32>
    %115 = arith.addf %110, %114 : vector<64x32xf32>
    %c2_131 = arith.constant 2 : index
    %c1_132 = arith.constant 1 : index
    %c0_133 = arith.constant 0 : index
    %116 = vector.load %arg21[%c2_131, %c1_132, %c0_133] : memref<10x16x128xbf16, #tpu.memory_space<vmem>>, vector<8x8x32xbf16>
    %117 = vector.shape_cast %116 : vector<8x8x32xbf16> to vector<64x32xbf16>
    %c224 = arith.constant 224 : index
    %c0_134 = arith.constant 0 : index
    %118 = vector.load %arg6[%c224, %c0_134] : memref<288x32xbf16, #tpu.memory_space<vmem>>, vector<32x32xbf16>
    %cst_135 = arith.constant dense<0.000000e+00> : vector<64x32xf32>
    %119 = tpu.matmul %117, %118, %cst_135 {dimension_numbers = #tpu.dot_dimension_numbers<[1], [0], [0], [1], [0, 0, 1, 1], [], []>} : vector<64x32xbf16>, vector<32x32xbf16>, vector<64x32xf32> -> vector<64x32xf32>
    %120 = arith.addf %115, %119 : vector<64x32xf32>
    %c2_136 = arith.constant 2 : index
    %c2_137 = arith.constant 2 : index
    %c0_138 = arith.constant 0 : index
    %121 = vector.load %arg21[%c2_136, %c2_137, %c0_138] : memref<10x16x128xbf16, #tpu.memory_space<vmem>>, vector<8x8x32xbf16>
    %122 = vector.shape_cast %121 : vector<8x8x32xbf16> to vector<64x32xbf16>
    %c256 = arith.constant 256 : index
    %c0_139 = arith.constant 0 : index
    %123 = vector.load %arg6[%c256, %c0_139] : memref<288x32xbf16, #tpu.memory_space<vmem>>, vector<32x32xbf16>
    %cst_140 = arith.constant dense<0.000000e+00> : vector<64x32xf32>
    %124 = tpu.matmul %122, %123, %cst_140 {dimension_numbers = #tpu.dot_dimension_numbers<[1], [0], [0], [1], [0, 0, 1, 1], [], []>} : vector<64x32xbf16>, vector<32x32xbf16>, vector<64x32xf32> -> vector<64x32xf32>
    %125 = arith.addf %120, %124 : vector<64x32xf32>
    %c0_141 = arith.constant 0 : index
    %c0_142 = arith.constant 0 : index
    %126 = vector.load %arg7[%c0_141, %c0_142] : memref<1x32xf32, #tpu.memory_space<vmem>>, vector<1x32xf32>
    %127 = vector.broadcast %126 : vector<1x32xf32> to vector<64x32xf32>
    %128 = arith.addf %125, %127 : vector<64x32xf32>
    %cst_143 = arith.constant 0.000000e+00 : f32
    %129 = vector.broadcast %cst_143 : f32 to vector<64x32xf32>
    %130 = arith.maximumf %128, %129 : vector<64x32xf32>
    %131 = arith.truncf %130 : vector<64x32xf32> to vector<64x32xbf16>
    %132 = vector.shape_cast %131 : vector<64x32xbf16> to vector<8x8x32xbf16>
    %c1_144 = arith.constant 1 : index
    %c1_145 = arith.constant 1 : index
    %c32_146 = arith.constant 32 : index
    %133 = vector.load %arg21[%c1_144, %c1_145, %c32_146] : memref<10x16x128xbf16, #tpu.memory_space<vmem>>, vector<8x8x32xbf16>
    tpu.vector_store %arg21[%c1_144, %c1_145, %c32_146], %132 {strides = array<i32>} : memref<10x16x128xbf16, #tpu.memory_space<vmem>>, vector<8x8x32xbf16>,
    %c32_147 = arith.constant 32 : index
    %c0_148 = arith.constant 0 : index
    %134 = vector.load %arg14[%c32_147, %c0_148] : memref<160x160xbf16, #tpu.memory_space<vmem>>, vector<32x160xbf16>
    %cst_149 = arith.constant dense<0.000000e+00> : vector<64x160xf32>
    %135 = tpu.matmul %131, %134, %cst_149 {dimension_numbers = #tpu.dot_dimension_numbers<[1], [0], [0], [1], [0, 0, 1, 1], [], []>} : vector<64x32xbf16>, vector<32x160xbf16>, vector<64x160xf32> -> vector<64x160xf32>
    %136 = arith.addf %79, %135 : vector<64x160xf32>
    %cst_150 = arith.constant 0.000000e+00 : f32
    %137 = vector.broadcast %cst_150 : f32 to vector<64x32xf32>
    %c0_151 = arith.constant 0 : index
    %c0_152 = arith.constant 0 : index
    %c0_153 = arith.constant 0 : index
    %138 = vector.load %arg21[%c0_151, %c0_152, %c0_153] : memref<10x16x128xbf16, #tpu.memory_space<vmem>>, vector<8x8x64xbf16>
    %139 = vector.shape_cast %138 : vector<8x8x64xbf16> to vector<64x64xbf16>
    %c0_154 = arith.constant 0 : index
    %c0_155 = arith.constant 0 : index
    %140 = vector.load %arg8[%c0_154, %c0_155] : memref<576x32xbf16, #tpu.memory_space<vmem>>, vector<64x32xbf16>
    %cst_156 = arith.constant dense<0.000000e+00> : vector<64x32xf32>
    %141 = tpu.matmul %139, %140, %cst_156 {dimension_numbers = #tpu.dot_dimension_numbers<[1], [0], [0], [1], [0, 0, 1, 1], [], []>} : vector<64x64xbf16>, vector<64x32xbf16>, vector<64x32xf32> -> vector<64x32xf32>
    %142 = arith.addf %137, %141 : vector<64x32xf32>
    %c0_157 = arith.constant 0 : index
    %c1_158 = arith.constant 1 : index
    %c0_159 = arith.constant 0 : index
    %143 = vector.load %arg21[%c0_157, %c1_158, %c0_159] : memref<10x16x128xbf16, #tpu.memory_space<vmem>>, vector<8x8x64xbf16>
    %144 = vector.shape_cast %143 : vector<8x8x64xbf16> to vector<64x64xbf16>
    %c64_160 = arith.constant 64 : index
    %c0_161 = arith.constant 0 : index
    %145 = vector.load %arg8[%c64_160, %c0_161] : memref<576x32xbf16, #tpu.memory_space<vmem>>, vector<64x32xbf16>
    %cst_162 = arith.constant dense<0.000000e+00> : vector<64x32xf32>
    %146 = tpu.matmul %144, %145, %cst_162 {dimension_numbers = #tpu.dot_dimension_numbers<[1], [0], [0], [1], [0, 0, 1, 1], [], []>} : vector<64x64xbf16>, vector<64x32xbf16>, vector<64x32xf32> -> vector<64x32xf32>
    %147 = arith.addf %142, %146 : vector<64x32xf32>
    %c0_163 = arith.constant 0 : index
    %c2_164 = arith.constant 2 : index
    %c0_165 = arith.constant 0 : index
    %148 = vector.load %arg21[%c0_163, %c2_164, %c0_165] : memref<10x16x128xbf16, #tpu.memory_space<vmem>>, vector<8x8x64xbf16>
    %149 = vector.shape_cast %148 : vector<8x8x64xbf16> to vector<64x64xbf16>
    %c128_166 = arith.constant 128 : index
    %c0_167 = arith.constant 0 : index
    %150 = vector.load %arg8[%c128_166, %c0_167] : memref<576x32xbf16, #tpu.memory_space<vmem>>, vector<64x32xbf16>
    %cst_168 = arith.constant dense<0.000000e+00> : vector<64x32xf32>
    %151 = tpu.matmul %149, %150, %cst_168 {dimension_numbers = #tpu.dot_dimension_numbers<[1], [0], [0], [1], [0, 0, 1, 1], [], []>} : vector<64x64xbf16>, vector<64x32xbf16>, vector<64x32xf32> -> vector<64x32xf32>
    %152 = arith.addf %147, %151 : vector<64x32xf32>
    %c1_169 = arith.constant 1 : index
    %c0_170 = arith.constant 0 : index
    %c0_171 = arith.constant 0 : index
    %153 = vector.load %arg21[%c1_169, %c0_170, %c0_171] : memref<10x16x128xbf16, #tpu.memory_space<vmem>>, vector<8x8x64xbf16>
    %154 = vector.shape_cast %153 : vector<8x8x64xbf16> to vector<64x64xbf16>
    %c192_172 = arith.constant 192 : index
    %c0_173 = arith.constant 0 : index
    %155 = vector.load %arg8[%c192_172, %c0_173] : memref<576x32xbf16, #tpu.memory_space<vmem>>, vector<64x32xbf16>
    %cst_174 = arith.constant dense<0.000000e+00> : vector<64x32xf32>
    %156 = tpu.matmul %154, %155, %cst_174 {dimension_numbers = #tpu.dot_dimension_numbers<[1], [0], [0], [1], [0, 0, 1, 1], [], []>} : vector<64x64xbf16>, vector<64x32xbf16>, vector<64x32xf32> -> vector<64x32xf32>
    %157 = arith.addf %152, %156 : vector<64x32xf32>
    %c1_175 = arith.constant 1 : index
    %c1_176 = arith.constant 1 : index
    %c0_177 = arith.constant 0 : index
    %158 = vector.load %arg21[%c1_175, %c1_176, %c0_177] : memref<10x16x128xbf16, #tpu.memory_space<vmem>>, vector<8x8x64xbf16>
    %159 = vector.shape_cast %158 : vector<8x8x64xbf16> to vector<64x64xbf16>
    %c256_178 = arith.constant 256 : index
    %c0_179 = arith.constant 0 : index
    %160 = vector.load %arg8[%c256_178, %c0_179] : memref<576x32xbf16, #tpu.memory_space<vmem>>, vector<64x32xbf16>
    %cst_180 = arith.constant dense<0.000000e+00> : vector<64x32xf32>
    %161 = tpu.matmul %159, %160, %cst_180 {dimension_numbers = #tpu.dot_dimension_numbers<[1], [0], [0], [1], [0, 0, 1, 1], [], []>} : vector<64x64xbf16>, vector<64x32xbf16>, vector<64x32xf32> -> vector<64x32xf32>
    %162 = arith.addf %157, %161 : vector<64x32xf32>
    %c1_181 = arith.constant 1 : index
    %c2_182 = arith.constant 2 : index
    %c0_183 = arith.constant 0 : index
    %163 = vector.load %arg21[%c1_181, %c2_182, %c0_183] : memref<10x16x128xbf16, #tpu.memory_space<vmem>>, vector<8x8x64xbf16>
    %164 = vector.shape_cast %163 : vector<8x8x64xbf16> to vector<64x64xbf16>
    %c320_184 = arith.constant 320 : index
    %c0_185 = arith.constant 0 : index
    %165 = vector.load %arg8[%c320_184, %c0_185] : memref<576x32xbf16, #tpu.memory_space<vmem>>, vector<64x32xbf16>
    %cst_186 = arith.constant dense<0.000000e+00> : vector<64x32xf32>
    %166 = tpu.matmul %164, %165, %cst_186 {dimension_numbers = #tpu.dot_dimension_numbers<[1], [0], [0], [1], [0, 0, 1, 1], [], []>} : vector<64x64xbf16>, vector<64x32xbf16>, vector<64x32xf32> -> vector<64x32xf32>
    %167 = arith.addf %162, %166 : vector<64x32xf32>
    %c2_187 = arith.constant 2 : index
    %c0_188 = arith.constant 0 : index
    %c0_189 = arith.constant 0 : index
    %168 = vector.load %arg21[%c2_187, %c0_188, %c0_189] : memref<10x16x128xbf16, #tpu.memory_space<vmem>>, vector<8x8x64xbf16>
    %169 = vector.shape_cast %168 : vector<8x8x64xbf16> to vector<64x64xbf16>
    %c384 = arith.constant 384 : index
    %c0_190 = arith.constant 0 : index
    %170 = vector.load %arg8[%c384, %c0_190] : memref<576x32xbf16, #tpu.memory_space<vmem>>, vector<64x32xbf16>
    %cst_191 = arith.constant dense<0.000000e+00> : vector<64x32xf32>
    %171 = tpu.matmul %169, %170, %cst_191 {dimension_numbers = #tpu.dot_dimension_numbers<[1], [0], [0], [1], [0, 0, 1, 1], [], []>} : vector<64x64xbf16>, vector<64x32xbf16>, vector<64x32xf32> -> vector<64x32xf32>
    %172 = arith.addf %167, %171 : vector<64x32xf32>
    %c2_192 = arith.constant 2 : index
    %c1_193 = arith.constant 1 : index
    %c0_194 = arith.constant 0 : index
    %173 = vector.load %arg21[%c2_192, %c1_193, %c0_194] : memref<10x16x128xbf16, #tpu.memory_space<vmem>>, vector<8x8x64xbf16>
    %174 = vector.shape_cast %173 : vector<8x8x64xbf16> to vector<64x64xbf16>
    %c448 = arith.constant 448 : index
    %c0_195 = arith.constant 0 : index
    %175 = vector.load %arg8[%c448, %c0_195] : memref<576x32xbf16, #tpu.memory_space<vmem>>, vector<64x32xbf16>
    %cst_196 = arith.constant dense<0.000000e+00> : vector<64x32xf32>
    %176 = tpu.matmul %174, %175, %cst_196 {dimension_numbers = #tpu.dot_dimension_numbers<[1], [0], [0], [1], [0, 0, 1, 1], [], []>} : vector<64x64xbf16>, vector<64x32xbf16>, vector<64x32xf32> -> vector<64x32xf32>
    %177 = arith.addf %172, %176 : vector<64x32xf32>
    %c2_197 = arith.constant 2 : index
    %c2_198 = arith.constant 2 : index
    %c0_199 = arith.constant 0 : index
    %178 = vector.load %arg21[%c2_197, %c2_198, %c0_199] : memref<10x16x128xbf16, #tpu.memory_space<vmem>>, vector<8x8x64xbf16>
    %179 = vector.shape_cast %178 : vector<8x8x64xbf16> to vector<64x64xbf16>
    %c512 = arith.constant 512 : index
    %c0_200 = arith.constant 0 : index
    %180 = vector.load %arg8[%c512, %c0_200] : memref<576x32xbf16, #tpu.memory_space<vmem>>, vector<64x32xbf16>
    %cst_201 = arith.constant dense<0.000000e+00> : vector<64x32xf32>
    %181 = tpu.matmul %179, %180, %cst_201 {dimension_numbers = #tpu.dot_dimension_numbers<[1], [0], [0], [1], [0, 0, 1, 1], [], []>} : vector<64x64xbf16>, vector<64x32xbf16>, vector<64x32xf32> -> vector<64x32xf32>
    %182 = arith.addf %177, %181 : vector<64x32xf32>
    %c0_202 = arith.constant 0 : index
    %c0_203 = arith.constant 0 : index
    %183 = vector.load %arg9[%c0_202, %c0_203] : memref<1x32xf32, #tpu.memory_space<vmem>>, vector<1x32xf32>
    %184 = vector.broadcast %183 : vector<1x32xf32> to vector<64x32xf32>
    %185 = arith.addf %182, %184 : vector<64x32xf32>
    %cst_204 = arith.constant 0.000000e+00 : f32
    %186 = vector.broadcast %cst_204 : f32 to vector<64x32xf32>
    %187 = arith.maximumf %185, %186 : vector<64x32xf32>
    %188 = arith.truncf %187 : vector<64x32xf32> to vector<64x32xbf16>
    %189 = vector.shape_cast %188 : vector<64x32xbf16> to vector<8x8x32xbf16>
    %c1_205 = arith.constant 1 : index
    %c1_206 = arith.constant 1 : index
    %c64_207 = arith.constant 64 : index
    %190 = vector.load %arg21[%c1_205, %c1_206, %c64_207] : memref<10x16x128xbf16, #tpu.memory_space<vmem>>, vector<8x8x32xbf16>
    tpu.vector_store %arg21[%c1_205, %c1_206, %c64_207], %189 {strides = array<i32>} : memref<10x16x128xbf16, #tpu.memory_space<vmem>>, vector<8x8x32xbf16>,
    %c64_208 = arith.constant 64 : index
    %c0_209 = arith.constant 0 : index
    %191 = vector.load %arg14[%c64_208, %c0_209] : memref<160x160xbf16, #tpu.memory_space<vmem>>, vector<32x160xbf16>
    %cst_210 = arith.constant dense<0.000000e+00> : vector<64x160xf32>
    %192 = tpu.matmul %188, %191, %cst_210 {dimension_numbers = #tpu.dot_dimension_numbers<[1], [0], [0], [1], [0, 0, 1, 1], [], []>} : vector<64x32xbf16>, vector<32x160xbf16>, vector<64x160xf32> -> vector<64x160xf32>
    %193 = arith.addf %136, %192 : vector<64x160xf32>
    %cst_211 = arith.constant 0.000000e+00 : f32
    %194 = vector.broadcast %cst_211 : f32 to vector<64x32xf32>
    %c0_212 = arith.constant 0 : index
    %c0_213 = arith.constant 0 : index
    %c0_214 = arith.constant 0 : index
    %195 = vector.load %arg21[%c0_212, %c0_213, %c0_214] : memref<10x16x128xbf16, #tpu.memory_space<vmem>>, vector<8x8x96xbf16>
    %196 = vector.shape_cast %195 : vector<8x8x96xbf16> to vector<64x96xbf16>
    %c0_215 = arith.constant 0 : index
    %c0_216 = arith.constant 0 : index
    %197 = vector.load %arg10[%c0_215, %c0_216] : memref<864x32xbf16, #tpu.memory_space<vmem>>, vector<96x32xbf16>
    %cst_217 = arith.constant dense<0.000000e+00> : vector<64x32xf32>
    %198 = tpu.matmul %196, %197, %cst_217 {dimension_numbers = #tpu.dot_dimension_numbers<[1], [0], [0], [1], [0, 0, 1, 1], [], []>} : vector<64x96xbf16>, vector<96x32xbf16>, vector<64x32xf32> -> vector<64x32xf32>
    %199 = arith.addf %194, %198 : vector<64x32xf32>
    %c0_218 = arith.constant 0 : index
    %c1_219 = arith.constant 1 : index
    %c0_220 = arith.constant 0 : index
    %200 = vector.load %arg21[%c0_218, %c1_219, %c0_220] : memref<10x16x128xbf16, #tpu.memory_space<vmem>>, vector<8x8x96xbf16>
    %201 = vector.shape_cast %200 : vector<8x8x96xbf16> to vector<64x96xbf16>
    %c96_221 = arith.constant 96 : index
    %c0_222 = arith.constant 0 : index
    %202 = vector.load %arg10[%c96_221, %c0_222] : memref<864x32xbf16, #tpu.memory_space<vmem>>, vector<96x32xbf16>
    %cst_223 = arith.constant dense<0.000000e+00> : vector<64x32xf32>
    %203 = tpu.matmul %201, %202, %cst_223 {dimension_numbers = #tpu.dot_dimension_numbers<[1], [0], [0], [1], [0, 0, 1, 1], [], []>} : vector<64x96xbf16>, vector<96x32xbf16>, vector<64x32xf32> -> vector<64x32xf32>
    %204 = arith.addf %199, %203 : vector<64x32xf32>
    %c0_224 = arith.constant 0 : index
    %c2_225 = arith.constant 2 : index
    %c0_226 = arith.constant 0 : index
    %205 = vector.load %arg21[%c0_224, %c2_225, %c0_226] : memref<10x16x128xbf16, #tpu.memory_space<vmem>>, vector<8x8x96xbf16>
    %206 = vector.shape_cast %205 : vector<8x8x96xbf16> to vector<64x96xbf16>
    %c192_227 = arith.constant 192 : index
    %c0_228 = arith.constant 0 : index
    %207 = vector.load %arg10[%c192_227, %c0_228] : memref<864x32xbf16, #tpu.memory_space<vmem>>, vector<96x32xbf16>
    %cst_229 = arith.constant dense<0.000000e+00> : vector<64x32xf32>
    %208 = tpu.matmul %206, %207, %cst_229 {dimension_numbers = #tpu.dot_dimension_numbers<[1], [0], [0], [1], [0, 0, 1, 1], [], []>} : vector<64x96xbf16>, vector<96x32xbf16>, vector<64x32xf32> -> vector<64x32xf32>
    %209 = arith.addf %204, %208 : vector<64x32xf32>
    %c1_230 = arith.constant 1 : index
    %c0_231 = arith.constant 0 : index
    %c0_232 = arith.constant 0 : index
    %210 = vector.load %arg21[%c1_230, %c0_231, %c0_232] : memref<10x16x128xbf16, #tpu.memory_space<vmem>>, vector<8x8x96xbf16>
    %211 = vector.shape_cast %210 : vector<8x8x96xbf16> to vector<64x96xbf16>
    %c288 = arith.constant 288 : index
    %c0_233 = arith.constant 0 : index
    %212 = vector.load %arg10[%c288, %c0_233] : memref<864x32xbf16, #tpu.memory_space<vmem>>, vector<96x32xbf16>
    %cst_234 = arith.constant dense<0.000000e+00> : vector<64x32xf32>
    %213 = tpu.matmul %211, %212, %cst_234 {dimension_numbers = #tpu.dot_dimension_numbers<[1], [0], [0], [1], [0, 0, 1, 1], [], []>} : vector<64x96xbf16>, vector<96x32xbf16>, vector<64x32xf32> -> vector<64x32xf32>
    %214 = arith.addf %209, %213 : vector<64x32xf32>
    %c1_235 = arith.constant 1 : index
    %c1_236 = arith.constant 1 : index
    %c0_237 = arith.constant 0 : index
    %215 = vector.load %arg21[%c1_235, %c1_236, %c0_237] : memref<10x16x128xbf16, #tpu.memory_space<vmem>>, vector<8x8x96xbf16>
    %216 = vector.shape_cast %215 : vector<8x8x96xbf16> to vector<64x96xbf16>
    %c384_238 = arith.constant 384 : index
    %c0_239 = arith.constant 0 : index
    %217 = vector.load %arg10[%c384_238, %c0_239] : memref<864x32xbf16, #tpu.memory_space<vmem>>, vector<96x32xbf16>
    %cst_240 = arith.constant dense<0.000000e+00> : vector<64x32xf32>
    %218 = tpu.matmul %216, %217, %cst_240 {dimension_numbers = #tpu.dot_dimension_numbers<[1], [0], [0], [1], [0, 0, 1, 1], [], []>} : vector<64x96xbf16>, vector<96x32xbf16>, vector<64x32xf32> -> vector<64x32xf32>
    %219 = arith.addf %214, %218 : vector<64x32xf32>
    %c1_241 = arith.constant 1 : index
    %c2_242 = arith.constant 2 : index
    %c0_243 = arith.constant 0 : index
    %220 = vector.load %arg21[%c1_241, %c2_242, %c0_243] : memref<10x16x128xbf16, #tpu.memory_space<vmem>>, vector<8x8x96xbf16>
    %221 = vector.shape_cast %220 : vector<8x8x96xbf16> to vector<64x96xbf16>
    %c480_244 = arith.constant 480 : index
    %c0_245 = arith.constant 0 : index
    %222 = vector.load %arg10[%c480_244, %c0_245] : memref<864x32xbf16, #tpu.memory_space<vmem>>, vector<96x32xbf16>
    %cst_246 = arith.constant dense<0.000000e+00> : vector<64x32xf32>
    %223 = tpu.matmul %221, %222, %cst_246 {dimension_numbers = #tpu.dot_dimension_numbers<[1], [0], [0], [1], [0, 0, 1, 1], [], []>} : vector<64x96xbf16>, vector<96x32xbf16>, vector<64x32xf32> -> vector<64x32xf32>
    %224 = arith.addf %219, %223 : vector<64x32xf32>
    %c2_247 = arith.constant 2 : index
    %c0_248 = arith.constant 0 : index
    %c0_249 = arith.constant 0 : index
    %225 = vector.load %arg21[%c2_247, %c0_248, %c0_249] : memref<10x16x128xbf16, #tpu.memory_space<vmem>>, vector<8x8x96xbf16>
    %226 = vector.shape_cast %225 : vector<8x8x96xbf16> to vector<64x96xbf16>
    %c576 = arith.constant 576 : index
    %c0_250 = arith.constant 0 : index
    %227 = vector.load %arg10[%c576, %c0_250] : memref<864x32xbf16, #tpu.memory_space<vmem>>, vector<96x32xbf16>
    %cst_251 = arith.constant dense<0.000000e+00> : vector<64x32xf32>
    %228 = tpu.matmul %226, %227, %cst_251 {dimension_numbers = #tpu.dot_dimension_numbers<[1], [0], [0], [1], [0, 0, 1, 1], [], []>} : vector<64x96xbf16>, vector<96x32xbf16>, vector<64x32xf32> -> vector<64x32xf32>
    %229 = arith.addf %224, %228 : vector<64x32xf32>
    %c2_252 = arith.constant 2 : index
    %c1_253 = arith.constant 1 : index
    %c0_254 = arith.constant 0 : index
    %230 = vector.load %arg21[%c2_252, %c1_253, %c0_254] : memref<10x16x128xbf16, #tpu.memory_space<vmem>>, vector<8x8x96xbf16>
    %231 = vector.shape_cast %230 : vector<8x8x96xbf16> to vector<64x96xbf16>
    %c672 = arith.constant 672 : index
    %c0_255 = arith.constant 0 : index
    %232 = vector.load %arg10[%c672, %c0_255] : memref<864x32xbf16, #tpu.memory_space<vmem>>, vector<96x32xbf16>
    %cst_256 = arith.constant dense<0.000000e+00> : vector<64x32xf32>
    %233 = tpu.matmul %231, %232, %cst_256 {dimension_numbers = #tpu.dot_dimension_numbers<[1], [0], [0], [1], [0, 0, 1, 1], [], []>} : vector<64x96xbf16>, vector<96x32xbf16>, vector<64x32xf32> -> vector<64x32xf32>
    %234 = arith.addf %229, %233 : vector<64x32xf32>
    %c2_257 = arith.constant 2 : index
    %c2_258 = arith.constant 2 : index
    %c0_259 = arith.constant 0 : index
    %235 = vector.load %arg21[%c2_257, %c2_258, %c0_259] : memref<10x16x128xbf16, #tpu.memory_space<vmem>>, vector<8x8x96xbf16>
    %236 = vector.shape_cast %235 : vector<8x8x96xbf16> to vector<64x96xbf16>
    %c768 = arith.constant 768 : index
    %c0_260 = arith.constant 0 : index
    %237 = vector.load %arg10[%c768, %c0_260] : memref<864x32xbf16, #tpu.memory_space<vmem>>, vector<96x32xbf16>
    %cst_261 = arith.constant dense<0.000000e+00> : vector<64x32xf32>
    %238 = tpu.matmul %236, %237, %cst_261 {dimension_numbers = #tpu.dot_dimension_numbers<[1], [0], [0], [1], [0, 0, 1, 1], [], []>} : vector<64x96xbf16>, vector<96x32xbf16>, vector<64x32xf32> -> vector<64x32xf32>
    %239 = arith.addf %234, %238 : vector<64x32xf32>
    %c0_262 = arith.constant 0 : index
    %c0_263 = arith.constant 0 : index
    %240 = vector.load %arg11[%c0_262, %c0_263] : memref<1x32xf32, #tpu.memory_space<vmem>>, vector<1x32xf32>
    %241 = vector.broadcast %240 : vector<1x32xf32> to vector<64x32xf32>
    %242 = arith.addf %239, %241 : vector<64x32xf32>
    %cst_264 = arith.constant 0.000000e+00 : f32
    %243 = vector.broadcast %cst_264 : f32 to vector<64x32xf32>
    %244 = arith.maximumf %242, %243 : vector<64x32xf32>
    %245 = arith.truncf %244 : vector<64x32xf32> to vector<64x32xbf16>
    %246 = vector.shape_cast %245 : vector<64x32xbf16> to vector<8x8x32xbf16>
    %c1_265 = arith.constant 1 : index
    %c1_266 = arith.constant 1 : index
    %c96_267 = arith.constant 96 : index
    %247 = vector.load %arg21[%c1_265, %c1_266, %c96_267] : memref<10x16x128xbf16, #tpu.memory_space<vmem>>, vector<8x8x32xbf16>
    tpu.vector_store %arg21[%c1_265, %c1_266, %c96_267], %246 {strides = array<i32>} : memref<10x16x128xbf16, #tpu.memory_space<vmem>>, vector<8x8x32xbf16>,
    %c96_268 = arith.constant 96 : index
    %c0_269 = arith.constant 0 : index
    %248 = vector.load %arg14[%c96_268, %c0_269] : memref<160x160xbf16, #tpu.memory_space<vmem>>, vector<32x160xbf16>
    %cst_270 = arith.constant dense<0.000000e+00> : vector<64x160xf32>
    %249 = tpu.matmul %245, %248, %cst_270 {dimension_numbers = #tpu.dot_dimension_numbers<[1], [0], [0], [1], [0, 0, 1, 1], [], []>} : vector<64x32xbf16>, vector<32x160xbf16>, vector<64x160xf32> -> vector<64x160xf32>
    %250 = arith.addf %193, %249 : vector<64x160xf32>
    %cst_271 = arith.constant 0.000000e+00 : f32
    %251 = vector.broadcast %cst_271 : f32 to vector<64x32xf32>
    %c0_272 = arith.constant 0 : index
    %c0_273 = arith.constant 0 : index
    %c0_274 = arith.constant 0 : index
    %252 = vector.load %arg21[%c0_272, %c0_273, %c0_274] : memref<10x16x128xbf16, #tpu.memory_space<vmem>>, vector<8x8x128xbf16>
    %253 = vector.shape_cast %252 : vector<8x8x128xbf16> to vector<64x128xbf16>
    %c0_275 = arith.constant 0 : index
    %c0_276 = arith.constant 0 : index
    %254 = vector.load %arg12[%c0_275, %c0_276] : memref<1152x32xbf16, #tpu.memory_space<vmem>>, vector<128x32xbf16>
    %cst_277 = arith.constant dense<0.000000e+00> : vector<64x32xf32>
    %255 = tpu.matmul %253, %254, %cst_277 {dimension_numbers = #tpu.dot_dimension_numbers<[1], [0], [0], [1], [0, 0, 1, 1], [], []>} : vector<64x128xbf16>, vector<128x32xbf16>, vector<64x32xf32> -> vector<64x32xf32>
    %256 = arith.addf %251, %255 : vector<64x32xf32>
    %c0_278 = arith.constant 0 : index
    %c1_279 = arith.constant 1 : index
    %c0_280 = arith.constant 0 : index
    %257 = vector.load %arg21[%c0_278, %c1_279, %c0_280] : memref<10x16x128xbf16, #tpu.memory_space<vmem>>, vector<8x8x128xbf16>
    %258 = vector.shape_cast %257 : vector<8x8x128xbf16> to vector<64x128xbf16>
    %c128_281 = arith.constant 128 : index
    %c0_282 = arith.constant 0 : index
    %259 = vector.load %arg12[%c128_281, %c0_282] : memref<1152x32xbf16, #tpu.memory_space<vmem>>, vector<128x32xbf16>
    %cst_283 = arith.constant dense<0.000000e+00> : vector<64x32xf32>
    %260 = tpu.matmul %258, %259, %cst_283 {dimension_numbers = #tpu.dot_dimension_numbers<[1], [0], [0], [1], [0, 0, 1, 1], [], []>} : vector<64x128xbf16>, vector<128x32xbf16>, vector<64x32xf32> -> vector<64x32xf32>
    %261 = arith.addf %256, %260 : vector<64x32xf32>
    %c0_284 = arith.constant 0 : index
    %c2_285 = arith.constant 2 : index
    %c0_286 = arith.constant 0 : index
    %262 = vector.load %arg21[%c0_284, %c2_285, %c0_286] : memref<10x16x128xbf16, #tpu.memory_space<vmem>>, vector<8x8x128xbf16>
    %263 = vector.shape_cast %262 : vector<8x8x128xbf16> to vector<64x128xbf16>
    %c256_287 = arith.constant 256 : index
    %c0_288 = arith.constant 0 : index
    %264 = vector.load %arg12[%c256_287, %c0_288] : memref<1152x32xbf16, #tpu.memory_space<vmem>>, vector<128x32xbf16>
    %cst_289 = arith.constant dense<0.000000e+00> : vector<64x32xf32>
    %265 = tpu.matmul %263, %264, %cst_289 {dimension_numbers = #tpu.dot_dimension_numbers<[1], [0], [0], [1], [0, 0, 1, 1], [], []>} : vector<64x128xbf16>, vector<128x32xbf16>, vector<64x32xf32> -> vector<64x32xf32>
    %266 = arith.addf %261, %265 : vector<64x32xf32>
    %c1_290 = arith.constant 1 : index
    %c0_291 = arith.constant 0 : index
    %c0_292 = arith.constant 0 : index
    %267 = vector.load %arg21[%c1_290, %c0_291, %c0_292] : memref<10x16x128xbf16, #tpu.memory_space<vmem>>, vector<8x8x128xbf16>
    %268 = vector.shape_cast %267 : vector<8x8x128xbf16> to vector<64x128xbf16>
    %c384_293 = arith.constant 384 : index
    %c0_294 = arith.constant 0 : index
    %269 = vector.load %arg12[%c384_293, %c0_294] : memref<1152x32xbf16, #tpu.memory_space<vmem>>, vector<128x32xbf16>
    %cst_295 = arith.constant dense<0.000000e+00> : vector<64x32xf32>
    %270 = tpu.matmul %268, %269, %cst_295 {dimension_numbers = #tpu.dot_dimension_numbers<[1], [0], [0], [1], [0, 0, 1, 1], [], []>} : vector<64x128xbf16>, vector<128x32xbf16>, vector<64x32xf32> -> vector<64x32xf32>
    %271 = arith.addf %266, %270 : vector<64x32xf32>
    %c1_296 = arith.constant 1 : index
    %c1_297 = arith.constant 1 : index
    %c0_298 = arith.constant 0 : index
    %272 = vector.load %arg21[%c1_296, %c1_297, %c0_298] : memref<10x16x128xbf16, #tpu.memory_space<vmem>>, vector<8x8x128xbf16>
    %273 = vector.shape_cast %272 : vector<8x8x128xbf16> to vector<64x128xbf16>
    %c512_299 = arith.constant 512 : index
    %c0_300 = arith.constant 0 : index
    %274 = vector.load %arg12[%c512_299, %c0_300] : memref<1152x32xbf16, #tpu.memory_space<vmem>>, vector<128x32xbf16>
    %cst_301 = arith.constant dense<0.000000e+00> : vector<64x32xf32>
    %275 = tpu.matmul %273, %274, %cst_301 {dimension_numbers = #tpu.dot_dimension_numbers<[1], [0], [0], [1], [0, 0, 1, 1], [], []>} : vector<64x128xbf16>, vector<128x32xbf16>, vector<64x32xf32> -> vector<64x32xf32>
    %276 = arith.addf %271, %275 : vector<64x32xf32>
    %c1_302 = arith.constant 1 : index
    %c2_303 = arith.constant 2 : index
    %c0_304 = arith.constant 0 : index
    %277 = vector.load %arg21[%c1_302, %c2_303, %c0_304] : memref<10x16x128xbf16, #tpu.memory_space<vmem>>, vector<8x8x128xbf16>
    %278 = vector.shape_cast %277 : vector<8x8x128xbf16> to vector<64x128xbf16>
    %c640_305 = arith.constant 640 : index
    %c0_306 = arith.constant 0 : index
    %279 = vector.load %arg12[%c640_305, %c0_306] : memref<1152x32xbf16, #tpu.memory_space<vmem>>, vector<128x32xbf16>
    %cst_307 = arith.constant dense<0.000000e+00> : vector<64x32xf32>
    %280 = tpu.matmul %278, %279, %cst_307 {dimension_numbers = #tpu.dot_dimension_numbers<[1], [0], [0], [1], [0, 0, 1, 1], [], []>} : vector<64x128xbf16>, vector<128x32xbf16>, vector<64x32xf32> -> vector<64x32xf32>
    %281 = arith.addf %276, %280 : vector<64x32xf32>
    %c2_308 = arith.constant 2 : index
    %c0_309 = arith.constant 0 : index
    %c0_310 = arith.constant 0 : index
    %282 = vector.load %arg21[%c2_308, %c0_309, %c0_310] : memref<10x16x128xbf16, #tpu.memory_space<vmem>>, vector<8x8x128xbf16>
    %283 = vector.shape_cast %282 : vector<8x8x128xbf16> to vector<64x128xbf16>
    %c768_311 = arith.constant 768 : index
    %c0_312 = arith.constant 0 : index
    %284 = vector.load %arg12[%c768_311, %c0_312] : memref<1152x32xbf16, #tpu.memory_space<vmem>>, vector<128x32xbf16>
    %cst_313 = arith.constant dense<0.000000e+00> : vector<64x32xf32>
    %285 = tpu.matmul %283, %284, %cst_313 {dimension_numbers = #tpu.dot_dimension_numbers<[1], [0], [0], [1], [0, 0, 1, 1], [], []>} : vector<64x128xbf16>, vector<128x32xbf16>, vector<64x32xf32> -> vector<64x32xf32>
    %286 = arith.addf %281, %285 : vector<64x32xf32>
    %c2_314 = arith.constant 2 : index
    %c1_315 = arith.constant 1 : index
    %c0_316 = arith.constant 0 : index
    %287 = vector.load %arg21[%c2_314, %c1_315, %c0_316] : memref<10x16x128xbf16, #tpu.memory_space<vmem>>, vector<8x8x128xbf16>
    %288 = vector.shape_cast %287 : vector<8x8x128xbf16> to vector<64x128xbf16>
    %c896 = arith.constant 896 : index
    %c0_317 = arith.constant 0 : index
    %289 = vector.load %arg12[%c896, %c0_317] : memref<1152x32xbf16, #tpu.memory_space<vmem>>, vector<128x32xbf16>
    %cst_318 = arith.constant dense<0.000000e+00> : vector<64x32xf32>
    %290 = tpu.matmul %288, %289, %cst_318 {dimension_numbers = #tpu.dot_dimension_numbers<[1], [0], [0], [1], [0, 0, 1, 1], [], []>} : vector<64x128xbf16>, vector<128x32xbf16>, vector<64x32xf32> -> vector<64x32xf32>
    %291 = arith.addf %286, %290 : vector<64x32xf32>
    %c2_319 = arith.constant 2 : index
    %c2_320 = arith.constant 2 : index
    %c0_321 = arith.constant 0 : index
    %292 = vector.load %arg21[%c2_319, %c2_320, %c0_321] : memref<10x16x128xbf16, #tpu.memory_space<vmem>>, vector<8x8x128xbf16>
    %293 = vector.shape_cast %292 : vector<8x8x128xbf16> to vector<64x128xbf16>
    %c1024 = arith.constant 1024 : index
    %c0_322 = arith.constant 0 : index
    %294 = vector.load %arg12[%c1024, %c0_322] : memref<1152x32xbf16, #tpu.memory_space<vmem>>, vector<128x32xbf16>
    %cst_323 = arith.constant dense<0.000000e+00> : vector<64x32xf32>
    %295 = tpu.matmul %293, %294, %cst_323 {dimension_numbers = #tpu.dot_dimension_numbers<[1], [0], [0], [1], [0, 0, 1, 1], [], []>} : vector<64x128xbf16>, vector<128x32xbf16>, vector<64x32xf32> -> vector<64x32xf32>
    %296 = arith.addf %291, %295 : vector<64x32xf32>
    %c0_324 = arith.constant 0 : index
    %c0_325 = arith.constant 0 : index
    %297 = vector.load %arg13[%c0_324, %c0_325] : memref<1x32xf32, #tpu.memory_space<vmem>>, vector<1x32xf32>
    %298 = vector.broadcast %297 : vector<1x32xf32> to vector<64x32xf32>
    %299 = arith.addf %296, %298 : vector<64x32xf32>
    %cst_326 = arith.constant 0.000000e+00 : f32
    %300 = vector.broadcast %cst_326 : f32 to vector<64x32xf32>
    %301 = arith.maximumf %299, %300 : vector<64x32xf32>
    %302 = arith.truncf %301 : vector<64x32xf32> to vector<64x32xbf16>
    %c128_327 = arith.constant 128 : index
    %c0_328 = arith.constant 0 : index
    %303 = vector.load %arg14[%c128_327, %c0_328] : memref<160x160xbf16, #tpu.memory_space<vmem>>, vector<32x160xbf16>
    %cst_329 = arith.constant dense<0.000000e+00> : vector<64x160xf32>
    %304 = tpu.matmul %302, %303, %cst_329 {dimension_numbers = #tpu.dot_dimension_numbers<[1], [0], [0], [1], [0, 0, 1, 1], [], []>} : vector<64x32xbf16>, vector<32x160xbf16>, vector<64x160xf32> -> vector<64x160xf32>
    %305 = arith.addf %250, %304 : vector<64x160xf32>
    %cst_330 = arith.constant 0.000000e+00 : f32
    %306 = vector.broadcast %cst_330 : f32 to vector<64x160xf32>
    %307 = arith.maximumf %305, %306 : vector<64x160xf32>
    %cst_331 = arith.constant dense<0.000000e+00> : vector<160xf32>
    %308 = vector.multi_reduction <add>, %307, %cst_331 [0] : vector<64x160xf32> to vector<160xf32>
    %309 = vector.shape_cast %308 : vector<160xf32> to vector<1x160xf32>
    %cst_332 = arith.constant 1.562500e-02 : f32
    %310 = vector.broadcast %cst_332 : f32 to vector<1x160xf32>
    %311 = arith.mulf %309, %310 : vector<1x160xf32>
    %c0_333 = arith.constant 0 : index
    %c0_334 = arith.constant 0 : index
    %312 = vector.load %arg15[%c0_333, %c0_334] : memref<10x160xf32, #tpu.memory_space<vmem>>, vector<10x160xf32>
    %313 = vector.broadcast %311 : vector<1x160xf32> to vector<10x160xf32>
    %314 = arith.mulf %313, %312 : vector<10x160xf32>
    %cst_335 = arith.constant dense<0.000000e+00> : vector<10xf32>
    %315 = vector.multi_reduction <add>, %314, %cst_335 [1] : vector<10x160xf32> to vector<10xf32>
    %316 = vector.shape_cast %315 : vector<10xf32> to vector<10x1xf32>
    %c0_336 = arith.constant 0 : index
    %c0_337 = arith.constant 0 : index
    %317 = vector.load %arg16[%c0_336, %c0_337] : memref<10x1xf32, #tpu.memory_space<vmem>>, vector<10x1xf32>
    %318 = arith.addf %316, %317 : vector<10x1xf32>
    %cst_338 = arith.constant 0.000000e+00 : f32
    %319 = vector.broadcast %cst_338 : f32 to vector<10x1xf32>
    %320 = arith.maximumf %318, %319 : vector<10x1xf32>
    %c0_339 = arith.constant 0 : index
    %c0_340 = arith.constant 0 : index
    %321 = vector.load %arg17[%c0_339, %c0_340] : memref<10x160xf32, #tpu.memory_space<vmem>>, vector<10x160xf32>
    %322 = vector.broadcast %320 : vector<10x1xf32> to vector<10x160xf32>
    %323 = arith.mulf %322, %321 : vector<10x160xf32>
    %cst_341 = arith.constant dense<0.000000e+00> : vector<160xf32>
    %324 = vector.multi_reduction <add>, %323, %cst_341 [0] : vector<10x160xf32> to vector<160xf32>
    %325 = vector.shape_cast %324 : vector<160xf32> to vector<1x160xf32>
    %c0_342 = arith.constant 0 : index
    %c0_343 = arith.constant 0 : index
    %326 = vector.load %arg18[%c0_342, %c0_343] : memref<1x160xf32, #tpu.memory_space<vmem>>, vector<1x160xf32>
    %327 = arith.addf %325, %326 : vector<1x160xf32>
    %328 = arith.negf %327 : vector<1x160xf32>
    %329 = math.exp %328 : vector<1x160xf32>
    %cst_344 = arith.constant 1.000000e+00 : f32
    %330 = vector.broadcast %cst_344 : f32 to vector<1x160xf32>
    %331 = arith.addf %330, %329 : vector<1x160xf32>
    %332 = arith.divf %330, %331 : vector<1x160xf32>
    %333 = vector.broadcast %332 : vector<1x160xf32> to vector<64x160xf32>
    %334 = arith.mulf %307, %333 : vector<64x160xf32>
    %c0_345 = arith.constant 0 : index
    %c0_346 = arith.constant 0 : index
    %c0_347 = arith.constant 0 : index
    %c0_348 = arith.constant 0 : index
    %335 = vector.load %arg1[%c0_345, %c0_346, %c0_347, %c0_348] : memref<1x8x8x160xf32, #tpu.memory_space<vmem>>, vector<1x8x8x160xf32>
    %336 = vector.shape_cast %335 : vector<1x8x8x160xf32> to vector<8x8x160xf32>
    %337 = vector.shape_cast %336 : vector<8x8x160xf32> to vector<64x160xf32>
    %338 = arith.addf %334, %337 : vector<64x160xf32>
    %339 = vector.shape_cast %338 : vector<64x160xf32> to vector<8x8x160xf32>
    %c0_349 = arith.constant 0 : index
    %c0_350 = arith.constant 0 : index
    %c0_351 = arith.constant 0 : index
    %c0_352 = arith.constant 0 : index
    %340 = vector.load %arg19[%c0_349, %c0_350, %c0_351, %c0_352] : memref<1x8x8x160xf32, #tpu.memory_space<vmem>>, vector<1x8x8x160xf32>
    %341 = vector.shape_cast %340 : vector<1x8x8x160xf32> to vector<8x8x160xf32>
    %342 = vector.shape_cast %339 : vector<8x8x160xf32> to vector<1x8x8x160xf32>
    tpu.vector_store %arg19[%c0_349, %c0_350, %c0_351, %c0_352], %342 {strides = array<i32>} : memref<1x8x8x160xf32, #tpu.memory_space<vmem>>, vector<1x8x8x160xf32>,
    return
  }
  func.func @transform_0(%arg0: i32) -> (i32, i32, i32, i32) {
    %c0_i32 = arith.constant 0 : i32
    %c0_i32_0 = arith.constant 0 : i32
    %c0_i32_1 = arith.constant 0 : i32
    %c0_i32_2 = arith.constant 0 : i32
    return %arg0, %c0_i32, %c0_i32_0, %c0_i32_1 : i32, i32, i32, i32
  }
  func.func @transform_1(%arg0: i32) -> (i32, i32, i32) {
    %c0_i32 = arith.constant 0 : i32
    %c0_i32_0 = arith.constant 0 : i32
    %c0_i32_1 = arith.constant 0 : i32
    %c0_i32_2 = arith.constant 0 : i32
    return %c0_i32, %c0_i32_0, %c0_i32_1 : i32, i32, i32
  }
  func.func @transform_2(%arg0: i32) -> (i32, i32, i32) {
    %c0_i32 = arith.constant 0 : i32
    %c0_i32_0 = arith.constant 0 : i32
    %c0_i32_1 = arith.constant 0 : i32
    %c0_i32_2 = arith.constant 0 : i32
    return %c0_i32, %c0_i32_0, %c0_i32_1 : i32, i32, i32
  }
  func.func @transform_3(%arg0: i32) -> (i32, i32) {
    %c0_i32 = arith.constant 0 : i32
    %c0_i32_0 = arith.constant 0 : i32
    %c0_i32_1 = arith.constant 0 : i32
    return %c0_i32, %c0_i32_0 : i32, i32
  }
  func.func @transform_4(%arg0: i32) -> (i32, i32) {
    %c0_i32 = arith.constant 0 : i32
    %c0_i32_0 = arith.constant 0 : i32
    %c0_i32_1 = arith.constant 0 : i32
    return %c0_i32, %c0_i32_0 : i32, i32
  }
  func.func @transform_5(%arg0: i32) -> (i32, i32) {
    %c0_i32 = arith.constant 0 : i32
    %c0_i32_0 = arith.constant 0 : i32
    %c0_i32_1 = arith.constant 0 : i32
    return %c0_i32, %c0_i32_0 : i32, i32
  }
  func.func @transform_6(%arg0: i32) -> (i32, i32) {
    %c0_i32 = arith.constant 0 : i32
    %c0_i32_0 = arith.constant 0 : i32
    %c0_i32_1 = arith.constant 0 : i32
    return %c0_i32, %c0_i32_0 : i32, i32
  }
  func.func @transform_7(%arg0: i32) -> (i32, i32) {
    %c0_i32 = arith.constant 0 : i32
    %c0_i32_0 = arith.constant 0 : i32
    %c0_i32_1 = arith.constant 0 : i32
    return %c0_i32, %c0_i32_0 : i32, i32
  }
  func.func @transform_8(%arg0: i32) -> (i32, i32) {
    %c0_i32 = arith.constant 0 : i32
    %c0_i32_0 = arith.constant 0 : i32
    %c0_i32_1 = arith.constant 0 : i32
    return %c0_i32, %c0_i32_0 : i32, i32
  }
  func.func @transform_9(%arg0: i32) -> (i32, i32) {
    %c0_i32 = arith.constant 0 : i32
    %c0_i32_0 = arith.constant 0 : i32
    %c0_i32_1 = arith.constant 0 : i32
    return %c0_i32, %c0_i32_0 : i32, i32
  }
  func.func @transform_10(%arg0: i32) -> (i32, i32) {
    %c0_i32 = arith.constant 0 : i32
    %c0_i32_0 = arith.constant 0 : i32
    %c0_i32_1 = arith.constant 0 : i32
    return %c0_i32, %c0_i32_0 : i32, i32
  }
  func.func @transform_11(%arg0: i32) -> (i32, i32) {
    %c0_i32 = arith.constant 0 : i32
    %c0_i32_0 = arith.constant 0 : i32
    %c0_i32_1 = arith.constant 0 : i32
    return %c0_i32, %c0_i32_0 : i32, i32
  }
  func.func @transform_12(%arg0: i32) -> (i32, i32) {
    %c0_i32 = arith.constant 0 : i32
    %c0_i32_0 = arith.constant 0 : i32
    %c0_i32_1 = arith.constant 0 : i32
    return %c0_i32, %c0_i32_0 : i32, i32
  }
  func.func @transform_13(%arg0: i32) -> (i32, i32) {
    %c0_i32 = arith.constant 0 : i32
    %c0_i32_0 = arith.constant 0 : i32
    %c0_i32_1 = arith.constant 0 : i32
    return %c0_i32, %c0_i32_0 : i32, i32
  }
  func.func @transform_14(%arg0: i32) -> (i32, i32) {
    %c0_i32 = arith.constant 0 : i32
    %c0_i32_0 = arith.constant 0 : i32
    %c0_i32_1 = arith.constant 0 : i32
    return %c0_i32, %c0_i32_0 : i32, i32
  }
  func.func @transform_15(%arg0: i32) -> (i32, i32) {
    %c0_i32 = arith.constant 0 : i32
    %c0_i32_0 = arith.constant 0 : i32
    %c0_i32_1 = arith.constant 0 : i32
    return %c0_i32, %c0_i32_0 : i32, i32
  }
  func.func @transform_16(%arg0: i32) -> (i32, i32) {
    %c0_i32 = arith.constant 0 : i32
    %c0_i32_0 = arith.constant 0 : i32
    %c0_i32_1 = arith.constant 0 : i32
    return %c0_i32, %c0_i32_0 : i32, i32
  }
  func.func @transform_17(%arg0: i32) -> (i32, i32) {
    %c0_i32 = arith.constant 0 : i32
    %c0_i32_0 = arith.constant 0 : i32
    %c0_i32_1 = arith.constant 0 : i32
    return %c0_i32, %c0_i32_0 : i32, i32
  }
  func.func @transform_18(%arg0: i32) -> (i32, i32, i32, i32) {
    %c0_i32 = arith.constant 0 : i32
    %c0_i32_0 = arith.constant 0 : i32
    %c0_i32_1 = arith.constant 0 : i32
    %c0_i32_2 = arith.constant 0 : i32
    return %arg0, %c0_i32, %c0_i32_0, %c0_i32_1 : i32, i32, i32, i32
  }
}

</mosaic_0001>

<bundles_post_ra>
// kernel: rcab.1
= control target key start
LH: loop header
LB: loop body
LE: loop exit
PB: predicated region body
PF: predicated region fallthrough
CT: control target
= control target key end

     0   :  { %s16800_s0 = inlined_call_operand.vmem [shape: f32[2,8,8,160], index: 0, kind: input, shape index: {}]   ;;  %s16801_s1 = inlined_call_operand.vmem [shape: f32[1,1,160], index: 1, kind: input, shape index: {}]   ;;  %s16802_s2 = inlined_call_operand.vmem [shape: f32[1,1,160], index: 2, kind: input, shape index: {}]   ;;  %s16803_s3 = inlined_call_operand.vmem [shape: bf16[1440,32], index: 3, kind: input, shape index: {}]   ;;  %s16804_s4 = inlined_call_operand.vmem [shape: f32[1,32], index: 4, kind: input, shape index: {}]   ;;  %s16805_s5 = inlined_call_operand.vmem [shape: bf16[288,32], index: 5, kind: input, shape index: {}]   ;;  %s16806_s6 = inlined_call_operand.vmem [shape: f32[1,32], index: 6, kind: input, shape index: {}]   ;;  %s16807_s7 = inlined_call_operand.vmem [shape: bf16[576,32], index: 7, kind: input, shape index: {}]   ;;  %s16808_s8 = inlined_call_operand.vmem [shape: f32[1,32], index: 8, kind: input, shape index: {}]   ;;  %s16809_s9 = inlined_call_operand.vmem [shape: bf16[864,32], index: 9, kind: input, shape index: {}]   ;;  %s16810_s10 = inlined_call_operand.vmem [shape: f32[1,32], index: 10, kind: input, shape index: {}]   ;;  %s16811_s11 = inlined_call_operand.vmem [shape: bf16[1152,32], index: 11, kind: input, shape index: {}]   ;;  %s16812_s12 = inlined_call_operand.vmem [shape: f32[1,32], index: 12, kind: input, shape index: {}]   ;;  %s16813_s13 = inlined_call_operand.vmem [shape: bf16[160,160], index: 13, kind: input, shape index: {}]   ;;  %s16814_s14 = inlined_call_operand.vmem [shape: f32[10,160], index: 14, kind: input, shape index: {}]   ;;  %s16815_s15 = inlined_call_operand.vmem [shape: f32[10,1], index: 15, kind: input, shape index: {}]   ;;  %s16816_s16 = inlined_call_operand.vmem [shape: f32[10,160], index: 16, kind: input, shape index: {}]   ;;  %s16817_s17 = inlined_call_operand.vmem [shape: f32[1,160], index: 17, kind: input, shape index: {}]   ;;  %s16818_s18 = inlined_call_operand.hbm [shape: f32[2,8,8,160], index: 18, kind: output, shape index: {}]  }
   0x1   :  { %16829 = sst [smem:[#allocation36_spill]] %s16800_s0 }
   0x2   :  { %16830 = sst [smem:[#allocation37_spill]] %s16801_s1 }
   0x3   :  { %16831 = sst [smem:[#allocation38_spill]] %s16802_s2 }
   0x4   :  { %16832 = sst [smem:[#allocation39_spill]] %s16803_s3 }
   0x5   :  { %16833 = sst [smem:[#allocation40_spill]] %s16804_s4 }
   0x6   :  { %23 = vsyncpa [#allocation5], 0 }
   0x7   :  { %25 = vsyncpa [#allocation5 + $0x1], 0  ;;  %s13067_s27 = smov 0   ;;  %s13069_s28 = smov 0  }
   0x8   :  { %s13071_s29 = smov 0   ;;  %s13073_s30 = smov 0  }
   0x9 LB: > { %16834 = sst [smem:[#allocation7_spill]] %s12952_s27  ;;  %s13088_s0 = sadd.s32 4294967295, %s12964_s30   ;;  %s12964_s30 = sphi %s13073_s30, %s16964_s30   ;;  %s12960_s29 = sphi %s13071_s29, %s16966_s29   ;;  %s12956_s28 = sphi %s13069_s28, %s16968_s28   ;;  %s12952_s27 = sphi %s13067_s27, %s16967_s27  }
   0xa   : > { %16835 = sst [smem:[#allocation8_spill]] %s12960_s29  ;;  %s10709_s19 = sadd.s32 4294967294, %s12964_s30  }
   0xb   : > { %16836 = sst [smem:[#allocation9_spill]] %s12964_s30  ;;  %s13092_s1 = sadd.s32 1, %s12964_s30  }
   0xc   : > { %16837 = sst [smem:[#allocation10_spill]] %s13092_s1  ;;  %s421_s20 = sadd.s32 1, %s12960_s29 }
   0xd   : > { %s418_s21 = ssub.s32 %s12964_s30, %s13092_s1  ;;  %p431_p0 = scmp.ne.s32.totalorder %s12960_s29, %s12956_s28 }
   0xe   : > { %p419_p1 = scmp.eq.s32.totalorder %s418_s21, 0  ;;  %p432_p2 = scmp.eq.s32.totalorder %s13088_s0, 1 }
   0xf   : > { %p437_p3 = scmp.ne.s32.totalorder %s12956_s28, %s12952_s27  ;;  %p438_p4 = scmp.eq.s32.totalorder %s10709_s19, 1 }
  0x10   : > { %s13103_s22 = scalar_select %p419_p1, %s12960_s29, %s421_s20  }
  0x11   : > { %p13105_p5 = por %p432_p2, %p431_p0  ;;  %p13109_p6 = por %p438_p4, %p437_p3 }
  0x12   : > { %16838 = sst [smem:[#allocation11_spill]] %s13103_s22  ;;  %p10712_p7 = scmp.ge.s32.totalorder %s12964_s30, 1 }
  0x13   : > { %s16840_s23 = scalar_select %p13109_p6, 1, 0 }
  0x14   : > { %p515_p8 = scmp.lt.s32.totalorder %s12964_s30, 3 }
  0x15   : > { %16841 = sst [smem:[#allocation12_spill]] %s16840_s23 }
  0x16   : > { %p516_p9 = pnand %p10712_p7, %p515_p8 }
  0x18   : > { %519 = sbr.rel (%p516_p9) target bundleno = 2511 (0x9cf), region = 92 }
  0x1d   : > { %s16842_s3 = sld [smem:[#allocation39_spill]]  ;;  %p569_p10 = scmp.lt.s32.totalorder %s13088_s0, 1  ;;  %vm575_vm0 = vcmask 1043456   ;;  %vm576_vm1 = vcmask 261124   ;;  %vm583_vm2 = vcmask 1040384   ;;  %v12966_v5 = vmov 0  }
  0x1e   : > { %vm584_vm3 = vsmask.f32 256  ;;  %12884 = vset.pattern.permute.xlu2 %v12966_v5  ;;  %12885 = vset.pattern.permute.xlu0 %v12966_v5  ;;  %vm586_vm4 = vcmask 258052   ;;  %vm587_vm5 = vsmask.f32 4352  ;;  %s16843_s27 = sld [smem:[#allocation36_spill]]  ;;  %vm13150_vm6 = vmor %vm576_vm1, %vm575_vm0 }
  0x1f   : > { %s570_s1 = scalar_select %p569_p10, %s13088_s0, 1  ;;  %v593_v10 = vld [vmem:[#allocation2 + $0x10] sm:$0x11]  ;;  %vm620_vm7 = vsmask.f32 7938  ;;  %578 = vst.msk [vmem:[#allocation2] sm:$0xff] %vm13150_vm6, %v12966_v5  ;;  %vm13162_vm8 = vmand %vm583_vm2, %vm584_vm3 }
  0x20   : > { %s16846_s19 = sld [smem:[#allocation37_spill]]  ;;  %582 = vst.msk [vmem:[#allocation2 + $0x98] sm:$0xff] %vm13150_vm6, %v12966_v5  ;;  %vm588_vm9 = vmand %vm586_vm4, %vm587_vm5  ;;  %vm622_vm10 = vsmask.f32 7954  ;;  %v628_v31 = vld [vmem:[#allocation2 + $0x18] sm:$0x11] }
  0x21   : > { %s12475_s24 = sshll.u32 %s570_s1, 7  ;;  %s16849_s29 = sld [smem:[#allocation38_spill]]  ;;  %vm13182_vm11 = vmor %vm588_vm9, %vm13162_vm8  ;;  %579 = vst.msk [vmem:[#allocation2 + $0x8] sm:$0xff] %vm13150_vm6, %v12966_v5  ;;  %v596_v34 = vld [vmem:[#allocation2 + $0x20] sm:$0x11]  ;;  %vm1442_vm9 = vcmask 1042432  }
  0x22   : > { %v594_v25 = vsel %vm13182_vm11, 0, %v593_v10  ;;  %vm13205_vm12 = vmand %vm583_vm2, %vm620_vm7  ;;  %581 = vst.msk [vmem:[#allocation2 + $0x90] sm:$0xff] %vm13150_vm6, %v12966_v5  ;;  %v597_v44 = vsel %vm13182_vm11, 0, %v596_v34  ;;  %v13263_v50 = vld [vmem:[#allocation2 + $0x30] sm:$0x11]  ;;  %s16878_s4 = sld [smem:[#allocation40_spill]] }
  0x23   : > { %v12491_v0 = vld [vmem:[%s16842_s3 + $0x38] sm:$0xff]  ;;  %v12501_v1 = vld [vmem:[%s16842_s3 + $0x88] sm:$0xff]  ;;  %v12490_v2 = vld [vmem:[%s16842_s3 + $0x30] sm:$0xff]  ;;  %595 = vst [vmem:[#allocation2 + $0x10] sm:$0x11] %v594_v25  ;;  %v600_v9 = vsel %vm13182_vm11, 0, %v13263_v50 }
  0x24   : > { %1360 = vmatpush.bf16.msra.mxu2 %v12491_v0  ;;  %1194 = vmatpush.bf16.msra.mxu0 %v12501_v1  ;;  %v12500_v3 = vld [vmem:[%s16842_s3 + $0x80] sm:$0xff]  ;;  %v12493_v4 = vld [vmem:[%s16842_s3 + $0x48] sm:$0xff]  ;;  %v12499_v7 = vld [vmem:[%s16842_s3 + $0x78] sm:$0xff]  ;;  %s13146_s30 = scalar_lea.vmem %s16843_s27, %s12475_s24  ;;  %655 = vst [vmem:[#allocation3] sm:$0xf] %v12966_v5  ;;  %s12967_s26 = smov 32  }
  0x25   : > { %v12489_v6 = vld [vmem:[%s16842_s3 + $0x28] sm:$0xff]  ;;  %v12492_v8 = vld [vmem:[%s16842_s3 + $0x40] sm:$0xff]  ;;  %1395 = vmatpush.bf16.msra.mxu3 %v12493_v4  ;;  %v12503_v23 = vld [vmem:[%s16842_s3 + $0x98] sm:$0xff]  ;;  %656 = vst [vmem:[#allocation3 + $0x4] sm:$0xf] %v12966_v5  ;;  %s12968_s27 = smov 64  }
  0x26   : > { %v736_v11 = vld [vmem:[%s16846_s19] sm:$0x3]  ;;  %v721_v14 = vld [vmem:[%s13146_s30 + $0x8] sm:$0xff]  ;;  %v12498_v28 = vld [vmem:[%s16842_s3 + $0x70] sm:$0xff]  ;;  %1229 = vmatpush.bf16.msra.mxu1 %v12503_v23  ;;  %658 = vst [vmem:[#allocation3 + $0x48] sm:$0xf] %v12966_v5 }
  0x27   : > { %v720_v13 = vld [vmem:[%s13146_s30] sm:$0xff]  ;;  %v13168_v15 = vperm.slane %v736_v11, 0  ;;  %v13170_v16 = vperm.slane %v736_v11, 1  ;;  %v12513_v27 = vld [vmem:[%s16842_s3 + $0xe8] sm:$0xff]  ;;  %vm623_vm13 = vmand %vm586_vm4, %vm622_vm10  ;;  %659 = vst [vmem:[#allocation3 + $0x4c] sm:$0xf] %v12966_v5 }
  0x28   : > { %1361 = vmatpush.bf16.msra.mxu2 %v12490_v2  ;;  %1195 = vmatpush.bf16.msra.mxu0 %v12500_v3  ;;  %v758_v17 = vld [vmem:[%s16849_s29] sm:$0x3]  ;;  %vm13224_vm14 = vmor %vm623_vm13, %vm13205_vm12  ;;  %v12502_v33 = vld [vmem:[%s16842_s3 + $0x90] sm:$0xff]  ;;  %598 = vst [vmem:[#allocation2 + $0x20] sm:$0x11] %v597_v44  ;;  %s12969_s24 = smov 96  }
  0x29   : > { %v742_v19 = vmul.f32 %v13168_v15, %v720_v13  ;;  %v743_v20 = vmul.f32 %v13170_v16, %v721_v14  ;;  %v13188_v21 = vperm.slane %v758_v17, 0  ;;  %v13190_v22 = vperm.slane %v758_v17, 1  ;;  %v12488_v24 = vld [vmem:[%s16842_s3 + $0x20] sm:$0xff]  ;;  %1396 = vmatpush.bf16.msra.mxu3 %v12492_v8  ;;  %v12487_v35 = vld [vmem:[%s16842_s3 + $0x18] sm:$0xff]  ;;  %v12497_v36 = vld [vmem:[%s16842_s3 + $0x68] sm:$0xff]  ;;  %s566_s21 = sand.u32 1, %s12956_s28  }
  0x2a   : > { %vm13240_vm15 = vmand %vm575_vm0, %vm620_vm7  ;;  %v629_v39 = vsel %vm13224_vm14, 0, %v628_v31  ;;  %v722_v40 = vld [vmem:[%s13146_s30 + $0x10] sm:$0xff]  ;;  %v590_v41 = vld [vmem:[#allocation2] sm:$0x11]  ;;  %1230 = vmatpush.bf16.msra.mxu1 %v12502_v33  ;;  %vm958_vm4 = vsmask.f32 3328 }
  0x2b   : > { %v764_v29 = vadd.f32 %v13188_v21, %v742_v19  ;;  %v765_v30 = vadd.f32 %v13190_v22, %v743_v20  ;;  %vm13250_vm2 = vmand %vm576_vm1, %vm622_vm10  ;;  %v12511_v43 = vld [vmem:[%s16842_s3 + $0xd8] sm:$0xff]  ;;  %v744_v45 = vmul.f32 %v13168_v15, %v722_v40  ;;  %v591_v46 = vsel %vm13182_vm11, 0, %v590_v41  ;;  %v625_v53 = vld [vmem:[#allocation2 + $0x8] sm:$0x11]  ;;  %630 = vst [vmem:[#allocation2 + $0x18] sm:$0x11] %v629_v39 }
  0x2c   : > { %1362 = vmatpush.bf16.msra.mxu2 %v12489_v6  ;;  %1196 = vmatpush.bf16.msra.mxu0 %v12499_v7  ;;  %v652_v47 = vld [vmem:[#allocation2 + $0x98] sm:$0x11]  ;;  %592 = vst [vmem:[#allocation2] sm:$0x11] %v591_v46  ;;  %v724_v54 = vld [vmem:[%s13146_s30 + $0x20] sm:$0xff]  ;;  %vm13277_vm0 = vmor %vm13250_vm2, %vm13240_vm15  ;;  %v626_v59 = vsel %vm13224_vm14, 0, %v625_v53 }
  0x2d   : > { %1632 = vmatpush.bf16.msrb.mxu3 %v12513_v27  ;;  %v780_v37 = vpack.c.bf16 %v765_v30, %v764_v29  ;;  %v723_v51 = vld [vmem:[%s13146_s30 + $0x18] sm:$0xff]  ;;  %v653_v52 = vsel %vm13224_vm14, 0, %v652_v47  ;;  %v766_v56 = vadd.f32 %v13188_v21, %v744_v45  ;;  %v725_v60 = vld [vmem:[%s13146_s30 + $0x28] sm:$0xff]  ;;  %v746_v61 = vmul.f32 %v13168_v15, %v724_v54  ;;  %v12510_v62 = vld [vmem:[%s16842_s3 + $0xd0] sm:$0xff]  ;;  %627 = vst [vmem:[#allocation2 + $0x8] sm:$0x11] %v626_v59 }
  0x2e   : > { %v745_v55 = vmul.f32 %v13170_v16, %v723_v51  ;;  %654 = vst [vmem:[#allocation2 + $0x98] sm:$0x11] %v653_v52  ;;  %1597 = vmatpush.bf16.msrb.mxu1 %v12511_v43  ;;  %v874_v63 = vld [vmem:[#allocation2 + $0x10] sm:$0xff]  ;;  %v747_v0 = vmul.f32 %v13170_v16, %v725_v60  ;;  %v631_v2 = vld [vmem:[#allocation2 + $0x28] sm:$0x11]  ;;  %v12496_v6 = vld [vmem:[%s16842_s3 + $0x60] sm:$0xff] }
  0x2f   : > { %v789_v48 = vshrl.u32 %v780_v37, 16  ;;  %v792_v49 = vshll.u32 %v780_v37, 16  ;;  %v726_v3 = vld [vmem:[%s13146_s30 + $0x30] sm:$0xff]  ;;  %v768_v5 = vadd.f32 %v13188_v21, %v746_v61  ;;  %v634_v8 = vld [vmem:[#allocation2 + $0x38] sm:$0x11]  ;;  %vm1181_vm1 = vcmask 261120  }
  0x30   : > { %1363 = vmatpush.bf16.msra.mxu2 %v12488_v24  ;;  %1197 = vmatpush.bf16.msra.mxu0 %v12498_v28  ;;  %v767_v1 = vadd.f32 %v13190_v22, %v745_v55  ;;  %v12486_v4 = vld [vmem:[%s16842_s3 + $0x10] sm:$0xff]  ;;  %v769_v10 = vadd.f32 %v13190_v22, %v747_v0  ;;  %v602_v13 = vld [vmem:[#allocation2 + $0x40] sm:$0x11]  ;;  %v727_v14 = vld [vmem:[%s13146_s30 + $0x38] sm:$0xff]  ;;  %v748_v17 = vmul.f32 %v13168_v15, %v726_v3  ;;  %v632_v23 = vsel %vm13224_vm14, 0, %v631_v2  ;;  %s10713_s25 = sshll.u32 %s566_s21, 7 }
  0x31   : > { %v13271_v57 = vrot.slane %v789_v48, 7  ;;  %v728_v24 = vld [vmem:[%s13146_s30 + $0x40] sm:$0xff]  ;;  %v749_v25 = vmul.f32 %v13170_v16, %v727_v14  ;;  %v729_v31 = vld [vmem:[%s13146_s30 + $0x48] sm:$0xff]  ;;  %v12495_v34 = vld [vmem:[%s16842_s3 + $0x58] sm:$0xff]  ;;  %v635_v37 = vsel %vm13224_vm14, 0, %v634_v8  ;;  %v603_v38 = vsel %vm13182_vm11, 0, %v602_v13 }
  0x32   : > { %v781_v11 = vpack.c.bf16 %v767_v1, %v766_v56  ;;  %1598 = vmatpush.bf16.msrb.mxu1 %v12510_v62  ;;  %v782_v29 = vpack.c.bf16 %v769_v10, %v768_v5  ;;  %v12485_v33 = vld [vmem:[%s16842_s3 + $0x8] sm:$0xff]  ;;  %v750_v39 = vmul.f32 %v13168_v15, %v728_v24  ;;  %601 = vst [vmem:[#allocation2 + $0x30] sm:$0x11] %v600_v9  ;;  %v605_v42 = vld [vmem:[#allocation2 + $0x50] sm:$0x11]  ;;  %v12484_v46 = vld [vmem:[%s16842_s3] sm:$0xff] }
  0x33   : > { %v794_v7 = vor.u32 %v792_v49, %v13271_v57  ;;  %v795_v19 = vrot.slane %v13271_v57, 4  ;;  %v751_v43 = vmul.f32 %v13170_v16, %v729_v31  ;;  %v770_v44 = vadd.f32 %v13188_v21, %v748_v17  ;;  %v12476_v45 = vld [vmem:[#allocation2 + $0x4] sm:$0xf]  ;;  %v10762_v47 = vld [vmem:[#allocation2] sm:$0xf]  ;;  %v12494_v56 = vld [vmem:[%s16842_s3 + $0x50] sm:$0xff] }
  0x34   : > { %1364 = vmatpush.bf16.msra.mxu2 %v12487_v35  ;;  %1198 = vmatpush.bf16.msra.mxu0 %v12497_v36  ;;  %v797_v30 = vshrl.u32 %v781_v11, 16  ;;  %v922_v35 = vld [vmem:[#allocation2] sm:$0xff]  ;;  %v800_v36 = vshll.u32 %v781_v11, 16  ;;  %v805_v51 = vshrl.u32 %v782_v29, 16  ;;  %633 = vst [vmem:[#allocation2 + $0x28] sm:$0x11] %v632_v23  ;;  %v771_v55 = vadd.f32 %v13190_v22, %v749_v25 }
  0x35   : > { %v875_v20 = vsel %vm13277_vm0, %v794_v7, %v874_v63  ;;  %v962_v40 = vshrl.u32 %v922_v35, 16  ;;  %v965_v41 = vshll.u32 %v922_v35, 16  ;;  %v13334_v52 = vld [vmem:[#allocation2 + $0x8] sm:$0x11]  ;;  %636 = vst [vmem:[#allocation2 + $0x38] sm:$0x11] %v635_v37  ;;  %v772_v5 = vadd.f32 %v13188_v21, %v750_v39 }
  0x36   : > { %876 = vst [vmem:[#allocation2 + $0x10] sm:$0xff] %v875_v20  ;;  %v976_v27 = vshrl.u32 %v875_v20, 16  ;;  %v979_v28 = vshll.u32 %v875_v20, 16  ;;  %v799_v50 = vrot.slane %v797_v30, 7  ;;  %v877_v57 = vld [vmem:[#allocation2 + $0x18] sm:$0x11]  ;;  %v773_v8 = vadd.f32 %v13190_v22, %v751_v43 }
  0x37   : > { %v964_v53 = vrot.slane %v962_v40, 4  ;;  %v967_v54 = vrot.slane %v965_v41, 5  ;;  %v971_v59 = vshll.u32 %v13334_v52, 16  ;;  %v808_v61 = vshll.u32 %v782_v29, 16  ;;  %v880_v3 = vld [vmem:[#allocation2 + $0x20] sm:$0xff]  ;;  %v12509_v14 = vld [vmem:[%s16842_s3 + $0xc8] sm:$0xff] }
  0x38   : > { %1365 = vmatpush.bf16.msra.mxu2 %v12486_v4  ;;  %1199 = vmatpush.bf16.msra.mxu0 %v12496_v6  ;;  %v13330_v48 = vrot.slane %v976_v27, 4  ;;  %v13332_v49 = vrot.slane %v979_v28, 5  ;;  %v802_v60 = vor.u32 %v800_v36, %v799_v50  ;;  %v606_v62 = vsel %vm13182_vm11, 0, %v605_v42  ;;  %604 = vst [vmem:[#allocation2 + $0x40] sm:$0x11] %v603_v38  ;;  %v12508_v30 = vld [vmem:[%s16842_s3 + $0xc0] sm:$0xff] }
  0x39   : > { %v878_v63 = vsel %vm13182_vm11, %v795_v19, %v877_v57  ;;  %v968_v0 = vor.u32 %v967_v54, %v964_v53  ;;  %v803_v1 = vrot.slane %v799_v50, 4  ;;  %v807_v2 = vrot.slane %v805_v51, 7  ;;  %v886_v20 = vld [vmem:[#allocation2 + $0x30] sm:$0xff]  ;;  %607 = vst [vmem:[#allocation2 + $0x50] sm:$0x11] %v606_v62  ;;  %1599 = vmatpush.bf16.msrb.mxu1 %v12509_v14  ;;  %v12512_v31 = vld [vmem:[%s16842_s3 + $0xe0] sm:$0xff] }
  0x3a   : > { %879 = vst [vmem:[#allocation2 + $0x18] sm:$0x11] %v878_v63  ;;  %v881_v7 = vsel %vm13277_vm0, %v802_v60, %v880_v3  ;;  %v783_v9 = vpack.c.bf16 %v771_v55, %v770_v44  ;;  %vm959_vm5 = vsmask.f32 7440  ;;  %v982_v13 = vor.u32 %v13332_v49, %v13330_v48  ;;  %1633 = vmatpush.bf16.msrb.mxu3 %v12512_v31  ;;  %v637_v43 = vld [vmem:[#allocation2 + $0x48] sm:$0x11] }
  0x3b   : > { %882 = vst [vmem:[#allocation2 + $0x20] sm:$0xff] %v881_v7  ;;  %v810_v17 = vor.u32 %v808_v61, %v807_v2  ;;  %v811_v19 = vrot.slane %v807_v2, 4  ;;  %v990_v23 = vshrl.u32 %v881_v7, 16  ;;  %v993_v24 = vshll.u32 %v881_v7, 16  ;;  %v883_v27 = vld [vmem:[#allocation2 + $0x28] sm:$0x11]  ;;  %vm13367_vm6 = vmor %vm958_vm4, %vm959_vm5 }
  0x3c   : > { %1366 = vmatpush.bf16.msra.mxu2 %v12485_v33  ;;  %1200 = vmatpush.bf16.msra.mxu0 %v12495_v34  ;;  %v969_v25 = vrot.slane %v968_v0, 4  ;;  %v784_v28 = vpack.c.bf16 %v773_v8, %v772_v5  ;;  %v813_v29 = vshrl.u32 %v783_v9, 16  ;;  %v973_v33 = vrot.slane %v971_v59, 5  ;;  %v889_v36 = vld [vmem:[#allocation2 + $0x38] sm:$0x11]  ;;  %v730_v61 = vld [vmem:[%s13146_s30 + $0x50] sm:$0xff] }
  0x3d   : > { %v10764_v4 = vld [vmem:[#allocation2 + $0x10] sm:$0xf0]  ;;  %v12477_v6 = vld [vmem:[#allocation2 + $0xc] sm:$0xf0]  ;;  %v887_v34 = vsel %vm13277_vm0, %v810_v17, %v886_v20  ;;  %v884_v35 = vsel %vm13182_vm11, %v803_v1, %v883_v27  ;;  %v816_v37 = vshll.u32 %v783_v9, 16  ;;  %v16862_v38 = vmov 0  ;;  %1600 = vmatpush.bf16.msrb.mxu1 %v12508_v30 }
  0x3e   : > { %v10767_v10 = vor.u32 %v12476_v45, %v10764_v4  ;;  %v10763_v11 = vor.u32 %v12477_v6, %v10762_v47  ;;  %v16863_v38 = vsel %vm13367_vm6, 4294967295, %v16862_v38  ;;  %888 = vst [vmem:[#allocation2 + $0x30] sm:$0xff] %v887_v34  ;;  %v890_v39 = vsel %vm13182_vm11, %v811_v19, %v889_v36  ;;  %v640_v44 = vld [vmem:[#allocation2 + $0x58] sm:$0x11]  ;;  %v608_v5 = vld [vmem:[#allocation2 + $0x60] sm:$0x11] }
  0x3f   : > { %16864 = vst [vmem:[#allocation13_spill] sm:$0xff] %v16863_v38  ;;  %v992_v40 = vrot.slane %v990_v23, 4  ;;  %v995_v41 = vrot.slane %v993_v24, 5  ;;  %v1004_v42 = vshrl.u32 %v887_v34, 16  ;;  %v983_v45 = vrot.slane %v982_v13, 4  ;;  %v892_v51 = vld [vmem:[#allocation2 + $0x40] sm:$0xff] }
  0x40   : > { %1367 = vmatpush.bf16.msra.mxu2 %v12484_v46  ;;  %1201 = vmatpush.bf16.msra.mxu0 %v12494_v56  ;;  %885 = vst [vmem:[#allocation2 + $0x28] sm:$0x11] %v884_v35  ;;  %v1007_v46 = vshll.u32 %v887_v34, 16  ;;  %v13373_v47 = vrot.slane %v813_v29, 7  ;;  %v821_v48 = vshrl.u32 %v784_v28, 16  ;;  %v824_v50 = vshll.u32 %v784_v28, 16 }
  0x41   : > { %10832 = vmatmul.msk.bf16.vlgmr.msra.gmra.mxu3 %vm1181_vm1, %v10767_v10  ;;  %v13375_v49 = vld [vmem:[#allocation2 + $0x18] sm:$0x11]  ;;  %891 = vst [vmem:[#allocation2 + $0x38] sm:$0x11] %v890_v39  ;;  %v974_v53 = vsel %vm13367_vm6, %v969_v25, %v973_v33  ;;  %v996_v55 = vor.u32 %v995_v41, %v992_v40  ;;  %v1006_v57 = vrot.slane %v1004_v42, 4  ;;  %v638_v1 = vsel %vm13224_vm14, 0, %v637_v43 }
  0x42   : > { %v985_v54 = vshll.u32 %v13375_v49, 16  ;;  %v818_v56 = vor.u32 %v816_v37, %v13373_v47  ;;  %v1009_v59 = vrot.slane %v1007_v46, 5  ;;  %v13381_v60 = vrot.slane %v821_v48, 7  ;;  %v12478_v63 = vld [vmem:[#allocation2 + $0x24] sm:$0xf]  ;;  %v898_v7 = vld [vmem:[#allocation2 + $0x50] sm:$0xff] }
  0x43   : > { %1368 = vmatmul.bf16.vlgmr.msra.gmra.mxu2 %v10763_v11  ;;  %v641_v2 = vsel %vm13224_vm14, 0, %v640_v44  ;;  %v1093_v3 = vunpack.c.l.b16 %v974_v53  ;;  %v1094_v4 = vunpack.c.h.b16 %v974_v53  ;;  %v731_v8 = vld [vmem:[%s13146_s30 + $0x58] sm:$0xff]  ;;  %v732_v9 = vld [vmem:[%s13146_s30 + $0x60] sm:$0xff]  ;;  %v13398_v14 = vrot.slane %v996_v55, 4  ;;  %639 = vst [vmem:[#allocation2 + $0x48] sm:$0x11] %v638_v1 }
  0x44   : > { %v987_v62 = vrot.slane %v985_v54, 5  ;;  %v13386_v0 = vsel %vm13277_vm0, %v818_v56, %v892_v51  ;;  %v826_v6 = vor.u32 %v824_v50, %v13381_v60  ;;  %v10770_v13 = vld [vmem:[#allocation2 + $0x20] sm:$0xf]  ;;  %v752_v17 = vmul.f32 %v13168_v15, %v730_v61  ;;  %642 = vst [vmem:[#allocation2 + $0x58] sm:$0x11] %v641_v2  ;;  %v733_v31 = vld [vmem:[%s13146_s30 + $0x68] sm:$0xff] }
  0x45   : > { %894 = vst [vmem:[#allocation2 + $0x40] sm:$0xff] %v13386_v0  ;;  %v10772_v11 = vld [vmem:[#allocation2 + $0x30] sm:$0xf0]  ;;  %v1010_v24 = vor.u32 %v1009_v59, %v1006_v57  ;;  %v819_v25 = vrot.slane %v13373_v47, 4  ;;  %v12479_v27 = vld [vmem:[#allocation2 + $0x2c] sm:$0xf0]  ;;  %v753_v33 = vmul.f32 %v13170_v16, %v731_v8  ;;  %v754_v34 = vmul.f32 %v13168_v15, %v732_v9 }
  0x46   : > { %v988_v10 = vsel %vm13367_vm6, %v983_v45, %v987_v62  ;;  %v899_v30 = vsel %vm13277_vm0, %v826_v6, %v898_v7  ;;  %v10775_v37 = vor.u32 %v12478_v63, %v10772_v11  ;;  %v827_v41 = vrot.slane %v13381_v60, 4  ;;  %v12507_v47 = vld [vmem:[%s16842_s3 + $0xb8] sm:$0xff]  ;;  %v12529_v48 = vld [vmem:[%s16842_s3 + $0x128] sm:$0xff]  ;;  %v611_v54 = vld [vmem:[#allocation2 + $0x70] sm:$0x11]  ;;  %s12838_s1 = sshll.u32 %s13088_s0, 7 }
  0x47   : > { %v1095_v19 = vunpack.c.l.b16 %v988_v10  ;;  %v1096_v20 = vunpack.c.h.b16 %v988_v10  ;;  %v13401_v23 = vld [vmem:[#allocation2 + $0x28] sm:$0x11]  ;;  %900 = vst [vmem:[#allocation2 + $0x50] sm:$0xff] %v899_v30  ;;  %v1018_v42 = vshrl.u32 %v13386_v0, 16  ;;  %v609_v43 = vsel %vm13182_vm11, 0, %v608_v5  ;;  %1601 = vmatpush.bf16.msrb.mxu1 %v12507_v47  ;;  %v12506_v61 = vld [vmem:[%s16842_s3 + $0xb0] sm:$0xff]  ;;  %1799 = vmatpush.bf16.msrb.mxu0 %v12529_v48 }
  0x48   : > { %v13404_v28 = vld [vmem:[#allocation2 + $0x38] sm:$0x11]  ;;  %v999_v29 = vshll.u32 %v13401_v23, 16  ;;  %v10771_v44 = vor.u32 %v12479_v27, %v10770_v13  ;;  %v1011_v45 = vrot.slane %v1010_v24, 4  ;;  %v1021_v46 = vshll.u32 %v13386_v0, 16  ;;  %v12528_v2 = vld [vmem:[%s16842_s3 + $0x120] sm:$0xff] }
  0x49   : > { %v1109_v35 = vpack.c.b16 %v1095_v19, %v1093_v3  ;;  %v1110_v36 = vpack.c.b16 %v1096_v20, %v1094_v4  ;;  %v1013_v39 = vshll.u32 %v13404_v28, 16  ;;  %610 = vst [vmem:[#allocation2 + $0x60] sm:$0x11] %v609_v43  ;;  %v755_v50 = vmul.f32 %v13170_v16, %v733_v31  ;;  %v643_v62 = vld [vmem:[#allocation2 + $0x68] sm:$0x11]  ;;  %v12527_v27 = vld [vmem:[%s16842_s3 + $0x118] sm:$0xff] }
  0x4a   : > { %v1001_v40 = vrot.slane %v999_v29, 5  ;;  %v1032_v53 = vshrl.u32 %v899_v30, 16  ;;  %v774_v55 = vadd.f32 %v13188_v21, %v752_v17  ;;  %v775_v56 = vadd.f32 %v13190_v22, %v753_v33  ;;  %v895_v57 = vld [vmem:[#allocation2 + $0x48] sm:$0x11]  ;;  %v646_v5 = vld [vmem:[#allocation2 + $0x78] sm:$0x11] }
  0x4b   : > { %1202 = vmatmul.bf16.vlgmr.msra.gmra.mxu0 %v1109_v35  ;;  %10756 = vmatmul.msk.bf16.vlgmr.msra.gmra.mxu1 %vm1181_vm1, %v1110_v36  ;;  %v1015_v51 = vrot.slane %v1013_v39, 5  ;;  %v1035_v59 = vshll.u32 %v899_v30, 16  ;;  %v776_v60 = vadd.f32 %v13188_v21, %v754_v34  ;;  %v896_v0 = vsel %vm13182_vm11, %v819_v25, %v895_v57  ;;  %v901_v1 = vld [vmem:[#allocation2 + $0x58] sm:$0x11] }
  0x4c   : > { %v1002_v63 = vsel %vm13367_vm6, %v13398_v14, %v1001_v40  ;;  %897 = vst [vmem:[#allocation2 + $0x48] sm:$0x11] %v896_v0  ;;  %v902_v3 = vsel %vm13182_vm11, %v827_v41, %v901_v1  ;;  %v1020_v4 = vrot.slane %v1018_v42, 4  ;;  %v612_v6 = vsel %vm13182_vm11, 0, %v611_v54  ;;  %1602 = vmatpush.bf16.msrb.mxu1 %v12506_v61  ;;  %1800 = vmatpush.bf16.msrb.mxu0 %v12528_v2 }
  0x4d   : > { %v777_v7 = vadd.f32 %v13190_v22, %v755_v50  ;;  %v1016_v8 = vsel %vm13367_vm6, %v1011_v45, %v1015_v51  ;;  %903 = vst [vmem:[#allocation2 + $0x58] sm:$0x11] %v902_v3  ;;  %v1023_v9 = vrot.slane %v1021_v46, 5  ;;  %v1034_v10 = vrot.slane %v1032_v53, 4  ;;  %v12526_v46 = vld [vmem:[%s16842_s3 + $0x110] sm:$0xff] }
  0x4e   : > { %v785_v11 = vpack.c.bf16 %v775_v56, %v774_v55  ;;  %v1097_v13 = vunpack.c.l.b16 %v1002_v63  ;;  %v1098_v17 = vunpack.c.h.b16 %v1002_v63  ;;  %v1037_v19 = vrot.slane %v1035_v59, 5  ;;  %613 = vst [vmem:[#allocation2 + $0x70] sm:$0x11] %v612_v6  ;;  %v10780_v41 = vld [vmem:[#allocation2 + $0x50] sm:$0xf0]  ;;  %v12505_v6 = vld [vmem:[%s16842_s3 + $0xa8] sm:$0xff] }
  0x4f   : > { %v786_v20 = vpack.c.bf16 %v777_v7, %v776_v60  ;;  %v644_v29 = vsel %vm13224_vm14, 0, %v643_v62  ;;  %v647_v30 = vsel %vm13224_vm14, 0, %v646_v5  ;;  %v1099_v31 = vunpack.c.l.b16 %v1016_v8  ;;  %v10778_v50 = vld [vmem:[#allocation2 + $0x40] sm:$0xf]  ;;  %v12481_v55 = vld [vmem:[#allocation2 + $0x4c] sm:$0xf0] }
  0x50   : > { %v829_v24 = vshrl.u32 %v785_v11, 16  ;;  %v832_v25 = vshll.u32 %v785_v11, 16  ;;  %v1100_v33 = vunpack.c.h.b16 %v1016_v8  ;;  %645 = vst [vmem:[#allocation2 + $0x68] sm:$0x11] %v644_v29  ;;  %v904_v40 = vld [vmem:[#allocation2 + $0x60] sm:$0xff]  ;;  %v1024_v43 = vor.u32 %v1023_v9, %v1020_v4  ;;  %1801 = vmatpush.bf16.msrb.mxu0 %v12527_v27  ;;  %v12525_v7 = vld [vmem:[%s16842_s3 + $0x108] sm:$0xff]  ;;  %1603 = vmatpush.bf16.msrb.mxu1 %v12505_v6 }
  0x51   : > { %10833 = vmatmul.msk.bf16.gmra.mxu3 %vm1181_vm1, %v10775_v37  ;;  %v837_v34 = vshrl.u32 %v786_v20, 16  ;;  %v840_v35 = vshll.u32 %v786_v20, 16  ;;  %648 = vst [vmem:[#allocation2 + $0x78] sm:$0x11] %v647_v30  ;;  %v12480_v37 = vld [vmem:[#allocation2 + $0x44] sm:$0xf]  ;;  %v1111_v47 = vpack.c.b16 %v1099_v31, %v1097_v13  ;;  %v10779_v1 = vor.u32 %v12481_v55, %v10778_v50 }
  0x52   : > { %v831_v36 = vrot.slane %v829_v24, 7  ;;  %v1112_v48 = vpack.c.b16 %v1100_v33, %v1098_v17  ;;  %v10783_v62 = vor.u32 %v12480_v37, %v10780_v41  ;;  %v13469_v2 = vrot.slane %v1024_v43, 4  ;;  %v12531_v11 = vld [vmem:[%s16842_s3 + $0x138] sm:$0xff]  ;;  %v12504_v13 = vld [vmem:[%s16842_s3 + $0xa0] sm:$0xff]  ;;  %v12530_v31 = vld [vmem:[%s16842_s3 + $0x130] sm:$0xff] }
  0x53   : > { %1373 = vmatmul.bf16.gmra.mxu2 %v10771_v44  ;;  %v839_v39 = vrot.slane %v837_v34, 7  ;;  %v13455_v42 = vld [vmem:[#allocation2 + $0x48] sm:$0x11]  ;;  %v1038_v44 = vor.u32 %v1037_v19, %v1034_v10  ;;  %v12524_v17 = vld [vmem:[%s16842_s3 + $0x100] sm:$0xff]  ;;  %v12523_v33 = vld [vmem:[%s16842_s3 + $0xf8] sm:$0xff]  ;;  %vm1443_vm10 = vcmask 1046532  }
  0x54   : > { %v834_v45 = vor.u32 %v832_v25, %v831_v36  ;;  %v13460_v51 = vld [vmem:[#allocation2 + $0x58] sm:$0x11]  ;;  %v835_v53 = vrot.slane %v831_v36, 4  ;;  %v1027_v56 = vshll.u32 %v13455_v42, 16  ;;  %1802 = vmatpush.bf16.msrb.mxu0 %v12526_v46  ;;  %v12541_v19 = vld [vmem:[%s16842_s3 + $0x188] sm:$0xff]  ;;  %1834 = vmatpush.bf16.msrb.mxu2 %v12531_v11  ;;  %vm13529_vm13 = vmor %vm1442_vm9, %vm1443_vm10  ;;  %vm5210_vm5 = vcmask 523264  }
  0x55   : > { %v842_v54 = vor.u32 %v840_v35, %v839_v39  ;;  %v1041_v57 = vshll.u32 %v13460_v51, 16  ;;  %v843_v59 = vrot.slane %v839_v39, 4  ;;  %v910_v61 = vld [vmem:[#allocation2 + $0x70] sm:$0xff]  ;;  %v1039_v8 = vrot.slane %v1038_v44, 4  ;;  %2148 = vmatpush.bf16.msra.mxu3 %v12541_v19  ;;  %1604 = vmatpush.bf16.msrb.mxu1 %v12504_v13 }
  0x56   : > { %v905_v60 = vsel %vm13277_vm0, %v834_v45, %v904_v40  ;;  %v1029_v5 = vrot.slane %v1027_v56, 5  ;;  %v16865_v13 = vmov 0  ;;  %v1873_v32 = vld [vmem:[#allocation2 + $0x50] sm:$0xff]  ;;  %vm6588_vm9 = vcmask 778752  }
  0x57   : > { %906 = vst [vmem:[#allocation2 + $0x60] sm:$0xff] %v905_v60  ;;  %v911_v63 = vsel %vm13277_vm0, %v842_v54, %v910_v61  ;;  %v907_v0 = vld [vmem:[#allocation2 + $0x68] sm:$0x11]  ;;  %v1043_v9 = vrot.slane %v1041_v57, 5  ;;  %v1046_v20 = vshrl.u32 %v905_v60, 16  ;;  %v1049_v24 = vshll.u32 %v905_v60, 16  ;;  %vm15405_vm10 = vmand %vm6588_vm9, %vm584_vm3 }
  0x58   : > { %912 = vst [vmem:[#allocation2 + $0x70] sm:$0xff] %v911_v63  ;;  %v908_v3 = vsel %vm13182_vm11, %v835_v53, %v907_v0  ;;  %v913_v4 = vld [vmem:[#allocation2 + $0x78] sm:$0x11]  ;;  %1803 = vmatpush.bf16.msrb.mxu0 %v12525_v7  ;;  %v1030_v25 = vsel %vm13367_vm6, %v13469_v2, %v1029_v5  ;;  %v1060_v29 = vshrl.u32 %v911_v63, 16  ;;  %v1063_v30 = vshll.u32 %v911_v63, 16  ;;  %1835 = vmatpush.bf16.msrb.mxu2 %v12530_v31  ;;  %v12538_v5 = vld [vmem:[%s16842_s3 + $0x170] sm:$0xff] }
  0x59   : > { %909 = vst [vmem:[#allocation2 + $0x68] sm:$0x11] %v908_v3  ;;  %v914_v10 = vsel %vm13182_vm11, %v843_v59, %v913_v4  ;;  %v1044_v27 = vsel %vm13367_vm6, %v1039_v8, %v1043_v9  ;;  %v1101_v34 = vunpack.c.l.b16 %v1030_v25  ;;  %v1102_v35 = vunpack.c.h.b16 %v1030_v25  ;;  %v1419_v0 = vld [vmem:[#allocation2 + $0x10] sm:$0xee] }
  0x5a   : > { %915 = vst [vmem:[#allocation2 + $0x78] sm:$0x11] %v914_v10  ;;  %v1103_v36 = vunpack.c.l.b16 %v1044_v27  ;;  %v1104_v37 = vunpack.c.h.b16 %v1044_v27  ;;  %v1048_v39 = vrot.slane %v1046_v20, 4  ;;  %v1051_v40 = vrot.slane %v1049_v24, 5 }
  0x5b   : > { %1207 = vmatmul.bf16.gmra.mxu0 %v1111_v47  ;;  %10757 = vmatmul.msk.bf16.gmra.mxu1 %vm1181_vm1, %v1112_v48  ;;  %v1062_v41 = vrot.slane %v1060_v29, 4  ;;  %v1065_v43 = vrot.slane %v1063_v30, 5  ;;  %v12522_v48 = vld [vmem:[%s16842_s3 + $0xf0] sm:$0xff]  ;;  %v1447_v8 = vrot.slane %v13334_v52, 5  ;;  %v1451_v9 = vrot.slane %v13375_v49, 5 }
  0x5c   : > { %1804 = vmatpush.bf16.msrb.mxu0 %v12524_v17  ;;  %v1113_v50 = vpack.c.b16 %v1103_v36, %v1101_v34  ;;  %v1114_v53 = vpack.c.b16 %v1104_v37, %v1102_v35  ;;  %v1052_v56 = vor.u32 %v1051_v40, %v1048_v39  ;;  %v10837_v11 = vrot.slane %v1419_v0, 9  ;;  %v12514_v34 = vld [vmem:[#allocation2 + $0x14] sm:$0xf]  ;;  %v10892_v35 = vld [vmem:[#allocation2 + $0x20] sm:$0xf0] }
  0x5d   : > { %v1066_v59 = vor.u32 %v1065_v43, %v1062_v41  ;;  %v16866_v13 = vsel %vm13529_vm13, 4294967295, %v16865_v13  ;;  %v10895_v37 = vor.u32 %v12514_v34, %v10892_v35  ;;  %v1420_v39 = vld [vmem:[#allocation2 + $0x20] sm:$0xee]  ;;  %v1421_v40 = vld [vmem:[#allocation2 + $0x30] sm:$0xee]  ;;  %v12537_v41 = vld [vmem:[%s16842_s3 + $0x168] sm:$0xff] }
  0x5e   : > { %v12482_v46 = vld [vmem:[#allocation2 + $0x64] sm:$0xf]  ;;  %v10786_v54 = vld [vmem:[#allocation2 + $0x60] sm:$0xf]  ;;  %v13518_v3 = vrot.slane %v1052_v56, 4  ;;  %16867 = vst [vmem:[#allocation14_spill] sm:$0xff] %v16866_v13  ;;  %v1452_v49 = vsel %vm13529_vm13, %v10837_v11, %v1451_v9 }
  0x5f   : > { %v10788_v47 = vld [vmem:[#allocation2 + $0x70] sm:$0xf0]  ;;  %v12483_v55 = vld [vmem:[#allocation2 + $0x6c] sm:$0xf0]  ;;  %v13520_v6 = vrot.slane %v1066_v59, 4  ;;  %v1500_v30 = vunpack.c.h.b16 %v1452_v49  ;;  %v12536_v43 = vld [vmem:[%s16842_s3 + $0x160] sm:$0xff] }
  0x60   : > { %v13505_v44 = vld [vmem:[#allocation2 + $0x68] sm:$0x11]  ;;  %1805 = vmatpush.bf16.msrb.mxu0 %v12523_v33  ;;  %v10791_v61 = vor.u32 %v12482_v46, %v10788_v47  ;;  %v10787_v63 = vor.u32 %v12483_v55, %v10786_v54  ;;  %v12540_v46 = vld [vmem:[%s16842_s3 + $0x180] sm:$0xff]  ;;  %v10838_v47 = vrot.slane %v1420_v39, 9  ;;  %v734_v54 = vld [vmem:[%s13146_s30 + $0x70] sm:$0xff]  ;;  %v1467_v35 = vrot.slane %v13460_v51, 5 }
  0x61   : > { %10834 = vmatmul.msk.bf16.gmra.mxu3 %vm1181_vm1, %v10783_v62  ;;  %v13507_v45 = vld [vmem:[#allocation2 + $0x78] sm:$0x11]  ;;  %v1055_v57 = vshll.u32 %v13505_v44, 16  ;;  %v1418_v62 = vld [vmem:[#allocation2] sm:$0xee]  ;;  %v756_v56 = vmul.f32 %v13168_v15, %v734_v54 }
  0x62   : > { %v1069_v60 = vshll.u32 %v13507_v45, 16  ;;  %v10836_v10 = vrot.slane %v1418_v62, 9  ;;  %2149 = vmatpush.bf16.msra.mxu3 %v12540_v46  ;;  %v735_v55 = vld [vmem:[%s13146_s30 + $0x78] sm:$0xff]  ;;  %v10890_v15 = vld [vmem:[#allocation2 + $0x10] sm:$0xf] }
  0x63   : > { %1378 = vmatmul.bf16.gmra.mxu2 %v10779_v1  ;;  %v12539_v1 = vld [vmem:[%s16842_s3 + $0x178] sm:$0xff]  ;;  %v1057_v4 = vrot.slane %v1055_v57, 5  ;;  %v757_v57 = vmul.f32 %v13170_v16, %v735_v55  ;;  %v10900_v11 = vld [vmem:[#allocation2 + $0x40] sm:$0xf0]  ;;  %v666_v13 = vld [vmem:[#allocation3 + $0x10] sm:$0x1] }
  0x64   : > { %1806 = vmatpush.bf16.msrb.mxu0 %v12522_v48  ;;  %v1071_v7 = vrot.slane %v1069_v60, 5  ;;  %2113 = vmatpush.bf16.msra.mxu1 %v12539_v1  ;;  %v1448_v52 = vsel %vm13529_vm13, %v10836_v10, %v1447_v8  ;;  %v1455_v48 = vrot.slane %v13401_v23, 5  ;;  %v614_v23 = vld [vmem:[#allocation2 + $0x80] sm:$0x11]  ;;  %v12516_v10 = vld [vmem:[#allocation2 + $0x34] sm:$0xf] }
  0x65   : > { %v1058_v17 = vsel %vm13367_vm6, %v13518_v3, %v1057_v4  ;;  %v1498_v29 = vunpack.c.h.b16 %v1448_v52  ;;  %v1497_v62 = vunpack.c.l.b16 %v1448_v52  ;;  %v615_v0 = vsel %vm13182_vm11, 0, %v614_v23  ;;  %v12515_v1 = vld [vmem:[#allocation2 + $0x1c] sm:$0xf0]  ;;  %v10908_v54 = vld [vmem:[#allocation2 + $0x60] sm:$0xf0]  ;;  %v12545_v23 = vld [vmem:[%s16842_s3 + $0x1a8] sm:$0xff] }
  0x66   : > { %v1072_v19 = vsel %vm13367_vm6, %v13520_v6, %v1071_v7  ;;  %v1105_v20 = vunpack.c.l.b16 %v1058_v17  ;;  %v1106_v24 = vunpack.c.h.b16 %v1058_v17  ;;  %v1456_v59 = vsel %vm13529_vm13, %v10838_v47, %v1455_v48  ;;  %616 = vst [vmem:[#allocation2 + $0x80] sm:$0x11] %v615_v0  ;;  %v12546_v47 = vld [vmem:[%s16842_s3 + $0x1b0] sm:$0xff] }
  0x67   : > { %v1107_v25 = vunpack.c.l.b16 %v1072_v19  ;;  %v1108_v27 = vunpack.c.h.b16 %v1072_v19  ;;  %v1514_v36 = vpack.c.b16 %v1500_v30, %v1498_v29  ;;  %v1502_v4 = vunpack.c.h.b16 %v1456_v59  ;;  %v1422_v19 = vld [vmem:[#allocation2 + $0x40] sm:$0xee]  ;;  %v12534_v29 = vld [vmem:[%s16842_s3 + $0x150] sm:$0xff] }
  0x68   : > { %2114 = vmatpush.bf16.msra.mxu1 %v12538_v5  ;;  %v10891_v9 = vor.u32 %v12515_v1, %v10890_v15  ;;  %v1501_v51 = vunpack.c.l.b16 %v1456_v59  ;;  %v1425_v59 = vld [vmem:[#allocation2 + $0x70] sm:$0xee]  ;;  %v1475_v0 = vrot.slane %v13507_v45, 5  ;;  %v12544_v15 = vld [vmem:[%s16842_s3 + $0x1a0] sm:$0xff]  ;;  %v12569_v45 = vld [vmem:[%s16842_s3 + $0x228] sm:$0xff] }
  0x69   : > { %v1115_v31 = vpack.c.b16 %v1107_v25, %v1105_v20  ;;  %v1116_v33 = vpack.c.b16 %v1108_v27, %v1106_v24  ;;  %v1423_v20 = vld [vmem:[#allocation2 + $0x50] sm:$0xee]  ;;  %v12535_v24 = vld [vmem:[%s16842_s3 + $0x158] sm:$0xff]  ;;  %v12549_v25 = vld [vmem:[%s16842_s3 + $0x1c8] sm:$0xff] }
  0x6a   : > { %v10841_v34 = vrot.slane %v1423_v20, 9  ;;  %2355 = vmatpush.bf16.msra.mxu0 %v12549_v25  ;;  %v1865_v1 = vld [vmem:[#allocation2 + $0x10] sm:$0xff] }
  0x6b   : > { %1212 = vmatmul.bf16.gmra.mxu0 %v1113_v50  ;;  %10758 = vmatmul.msk.bf16.gmra.mxu1 %vm1181_vm1, %v1114_v53  ;;  %v10839_v50 = vrot.slane %v1421_v40, 9  ;;  %v1459_v53 = vrot.slane %v13404_v28, 5  ;;  %v779_v28 = vadd.f32 %v13190_v22, %v757_v57  ;;  %v10898_v40 = vld [vmem:[#allocation2 + $0x30] sm:$0xf] }
  0x6c   : > { %2115 = vmatpush.bf16.msra.mxu1 %v12537_v41  ;;  %v12517_v41 = vld [vmem:[#allocation2 + $0x3c] sm:$0xf0] }
  0x6d   : > { %v1460_v60 = vsel %vm13529_vm13, %v10839_v50, %v1459_v53  ;;  %v916_v27 = vld [vmem:[#allocation2 + $0x80] sm:$0xff]  ;;  %v10899_v50 = vor.u32 %v12517_v41, %v10898_v40  ;;  %v12518_v53 = vld [vmem:[#allocation2 + $0x54] sm:$0xf]  ;;  %v12567_v40 = vld [vmem:[%s16842_s3 + $0x218] sm:$0xff] }
  0x6e   : > { %v1504_v7 = vunpack.c.h.b16 %v1460_v60  ;;  %v1503_v39 = vunpack.c.l.b16 %v1460_v60  ;;  %v10911_v57 = vor.u32 %v12518_v53, %v10908_v54  ;;  %v12533_v60 = vld [vmem:[%s16842_s3 + $0x148] sm:$0xff] }
  0x70   : > { %2116 = vmatpush.bf16.msra.mxu1 %v12536_v43  ;;  %v1516_v22 = vpack.c.b16 %v1504_v7, %v1502_v4  ;;  %v1515_v48 = vpack.c.b16 %v1503_v39, %v1501_v51  ;;  %v2179_v51 = vld [vmem:[#allocation2 + $0x10] sm:$0xee]  ;;  %v2180_v39 = vld [vmem:[#allocation2 + $0x20] sm:$0xee] }
  0x71   : > { %10835 = vmatmul.msk.bf16.gmra.mxu3 %vm1181_vm1, %v10791_v61  ;;  %v778_v61 = vadd.f32 %v13188_v21, %v756_v56  ;;  %v1424_v56 = vld [vmem:[#allocation2 + $0x60] sm:$0xee]  ;;  %v11009_v53 = vrot.slane %v2180_v39, 9  ;;  %v1938_v39 = vshrl.u32 %v1873_v32, 16 }
  0x73   : > { %1383 = vmatmul.bf16.gmra.mxu2 %v10787_v63  ;;  %v1499_v63 = vunpack.c.l.b16 %v1452_v49  ;;  %v787_v16 = vpack.c.bf16 %v779_v28, %v778_v61  ;;  %v10903_v49 = vor.u32 %v12516_v10, %v10900_v11  ;;  %v12551_v61 = vld [vmem:[%s16842_s3 + $0x1d8] sm:$0xff]  ;;  %v10842_v28 = vrot.slane %v1424_v56, 9 }
  0x74   : > { %2117 = vmatpush.bf16.msra.mxu1 %v12535_v24  ;;  %2390 = vmatpush.bf16.msra.mxu2 %v12551_v61  ;;  %v10914_v61 = vld [vmem:[#allocation2 + $0x70] sm:$0xf] }
  0x75   : > { %v845_v5 = vshrl.u32 %v787_v16, 16  ;;  %v1513_v8 = vpack.c.b16 %v1499_v63, %v1497_v62  ;;  %v848_v21 = vshll.u32 %v787_v16, 16  ;;  %v1471_v62 = vrot.slane %v13505_v44, 5  ;;  %v12532_v16 = vld [vmem:[%s16842_s3 + $0x140] sm:$0xff]  ;;  %v12550_v44 = vld [vmem:[%s16842_s3 + $0x1d0] sm:$0xff] }
  0x76   : > { %v10843_v63 = vrot.slane %v1425_v59, 9 }
  0x77   : > { %v13569_v17 = vrot.slane %v845_v5, 7  ;;  %v13630_v4 = vsel %vm13529_vm13, %v10842_v28, %v1471_v62  ;;  %v1882_v5 = vshrl.u32 %v1865_v1, 16 }
  0x78   : > { %2118 = vmatpush.bf16.msra.mxu1 %v12534_v29  ;;  %v1476_v7 = vsel %vm13529_vm13, %v10843_v63, %v1475_v0  ;;  %2391 = vmatpush.bf16.msra.mxu2 %v12550_v44  ;;  %v1868_v29 = vld [vmem:[#allocation2 + $0x28] sm:$0x11] }
  0x79   : > { %v850_v52 = vor.u32 %v848_v21, %v13569_v17  ;;  %v10906_v21 = vld [vmem:[#allocation2 + $0x50] sm:$0xf]  ;;  %v2209_v54 = vrot.slane %v1868_v29, 5 }
  0x7b   : > { %1217 = vmatmul.bf16.gmra.mxu0 %v1115_v31  ;;  %10759 = vmatmul.msk.bf16.gmra.mxu1 %vm1181_vm1, %v1116_v33  ;;  %v13584_v30 = vsel %vm13277_vm0, %v850_v52, %v916_v27  ;;  %v10840_v31 = vrot.slane %v1422_v19, 9  ;;  %v1463_v33 = vrot.slane %v13455_v42, 5  ;;  %v12547_v42 = vld [vmem:[%s16842_s3 + $0x1b8] sm:$0xff]  ;;  %v1510_v19 = vunpack.c.h.b16 %v13630_v4 }
  0x7c   : > { %918 = vst [vmem:[#allocation2 + $0x80] sm:$0xff] %v13584_v30  ;;  %2119 = vmatpush.bf16.msra.mxu1 %v12533_v60  ;;  %v1512_v52 = vunpack.c.h.b16 %v1476_v7  ;;  %v1866_v27 = vld [vmem:[#allocation2 + $0x18] sm:$0x11]  ;;  %v1509_v60 = vunpack.c.l.b16 %v13630_v4  ;;  %v2210_v63 = vsel %vm13529_vm13, %v11009_v53, %v2209_v54  ;;  %vm4755_vm0 = vcmask 519424  }
  0x7d   : > { %v1464_v58 = vsel %vm13529_vm13, %v10840_v31, %v1463_v33  ;;  %v12520_v31 = vld [vmem:[#allocation2 + $0x74] sm:$0xf]  ;;  %vm14856_vm4 = vmand %vm4755_vm0, %vm620_vm7 }
  0x7e   : > { %v1506_v43 = vunpack.c.h.b16 %v1464_v58  ;;  %v1505_v10 = vunpack.c.l.b16 %v1464_v58  ;;  %v1891_v58 = vshll.u32 %v1866_v27, 16 }
  0x80   : > { %2120 = vmatpush.bf16.msra.mxu1 %v12532_v16 }
  0x81   : > { %10884 = vmatmul.msk.bf16.vlgmr.msrb.gmra.mxu3 %vm1181_vm1, %v1514_v36  ;;  %v12548_v36 = vld [vmem:[%s16842_s3 + $0x1c0] sm:$0xff] }
  0x82   : > { %2356 = vmatpush.bf16.msra.mxu0 %v12548_v36  ;;  %2593 = vmatpush.bf16.msrb.mxu3 %v12569_v45 }
  0x83   : > { %10960 = vmatmul.msk.bf16.vlgmr.msrb.gmra.mxu2 %vm1181_vm1, %v10895_v37  ;;  %v1468_v37 = vsel %vm13529_vm13, %v10841_v34, %v1467_v35  ;;  %v10916_v33 = vld [vmem:[#allocation2 + $0x80] sm:$0xf0]  ;;  %v12542_v34 = vld [vmem:[%s16842_s3 + $0x190] sm:$0xff]  ;;  %v1520_v35 = vpack.c.b16 %v1512_v52, %v1510_v19  ;;  %v12521_v28 = vld [vmem:[#allocation2 + $0x7c] sm:$0xf0] }
  0x84   : > { %v1508_v46 = vunpack.c.h.b16 %v1468_v37  ;;  %v1507_v11 = vunpack.c.l.b16 %v1468_v37  ;;  %v1905_v37 = vshll.u32 %v1868_v29, 16  ;;  %v10915_v45 = vor.u32 %v12521_v28, %v10914_v61 }
  0x86   : > { %2357 = vmatpush.bf16.msra.mxu0 %v12547_v42  ;;  %v1518_v55 = vpack.c.b16 %v1508_v46, %v1506_v43  ;;  %v1517_v24 = vpack.c.b16 %v1507_v11, %v1505_v10  ;;  %v10919_v42 = vor.u32 %v12520_v31, %v10916_v33  ;;  %v1893_v43 = vrot.slane %v1891_v58, 5 }
  0x87   : > { %v1907_v46 = vrot.slane %v1905_v37, 5  ;;  %v851_v31 = vrot.slane %v13569_v17, 4 }
  0x89   : > { %v13653_v56 = vsel %vm13367_vm6, %v13398_v14, %v1907_v46  ;;  %v12566_v14 = vld [vmem:[%s16842_s3 + $0x210] sm:$0xff] }
  0x8a   : > { %2358 = vmatpush.bf16.msra.mxu0 %v12546_v47  ;;  %v1869_v47 = vld [vmem:[#allocation2 + $0x30] sm:$0xff] }
  0x8b   : > { %1605 = vmatmul.bf16.vlgmr.msrb.gmra.mxu1 %v1513_v8  ;;  %1807 = vmatmul.bf16.vlgmr.msrb.gmra.mxu0 %v10891_v9  ;;  %v1885_v8 = vshll.u32 %v1865_v1, 16  ;;  %v12543_v9 = vld [vmem:[%s16842_s3 + $0x198] sm:$0xff]  ;;  %v1913_v59 = vshll.u32 %v1869_v47, 16 }
  0x8c   : > { %2558 = vmatpush.bf16.msrb.mxu1 %v12567_v40  ;;  %v1941_v40 = vshll.u32 %v1873_v32, 16 }
  0x8d   : > { %v1887_v20 = vrot.slane %v1885_v8, 5  ;;  %v1915_v16 = vrot.slane %v1913_v59, 5  ;;  %v1872_v8 = vld [vmem:[#allocation2 + $0x48] sm:$0x11] }
  0x8e   : > { %2359 = vmatpush.bf16.msra.mxu0 %v12545_v23  ;;  %v1511_v23 = vunpack.c.l.b16 %v1476_v7  ;;  %v2258_v7 = vunpack.c.h.b16 %v2210_v63  ;;  %v2217_v58 = vrot.slane %v1872_v8, 5  ;;  %v1943_v59 = vrot.slane %v1941_v40, 5 }
  0x8f   : > { %v1983_v40 = vshll.u32 %v13584_v30, 16 }
  0x90   : > { %v1519_v44 = vpack.c.b16 %v1511_v23, %v1509_v60  ;;  %2559 = vmatpush.bf16.msrb.mxu1 %v12566_v14 }
  0x91   : > { %10885 = vmatmul.msk.bf16.gmra.mxu3 %vm1181_vm1, %v1516_v22  ;;  %v12519_v22 = vld [vmem:[#allocation2 + $0x5c] sm:$0xf0] }
  0x92   : > { %2360 = vmatpush.bf16.msra.mxu0 %v12544_v15  ;;  %v10907_v25 = vor.u32 %v12519_v22, %v10906_v21  ;;  %v2016_v15 = vunpack.c.h.b16 %v13653_v56  ;;  %v1933_v22 = vshll.u32 %v1872_v8, 16 }
  0x93   : > { %10961 = vmatmul.msk.bf16.gmra.mxu2 %vm1181_vm1, %v10903_v49  ;;  %v1884_v49 = vrot.slane %v1882_v5, 4  ;;  %v1870_v5 = vld [vmem:[#allocation2 + $0x38] sm:$0x11] }
  0x94   : > { %v1919_v21 = vshll.u32 %v1870_v5, 16  ;;  %v1935_v29 = vrot.slane %v1933_v22, 5  ;;  %v12563_v22 = vld [vmem:[%s16842_s3 + $0x1f8] sm:$0xff] }
  0x95   : > { %v1888_v36 = vor.u32 %v1887_v20, %v1884_v49  ;;  %v2181_v49 = vld [vmem:[#allocation2 + $0x30] sm:$0xee]  ;;  %v2182_v20 = vld [vmem:[#allocation2 + $0x40] sm:$0xee] }
  0x96   : > { %2361 = vmatpush.bf16.msra.mxu0 %v12543_v9  ;;  %v649_v9 = vld [vmem:[#allocation2 + $0x88] sm:$0x11]  ;;  %v13684_v17 = vsel %vm13367_vm6, %v13469_v2, %v1935_v29 }
  0x97   : > { %v1889_v41 = vrot.slane %v1888_v36, 4  ;;  %v650_v19 = vsel %vm13224_vm14, 0, %v649_v9  ;;  %v11011_v36 = vrot.slane %v2182_v20, 9  ;;  %v2020_v54 = vunpack.c.h.b16 %v13684_v17  ;;  %v12577_v9 = vld [vmem:[%s16842_s3 + $0x268] sm:$0xff] }
  0x98   : > { %651 = vst [vmem:[#allocation2 + $0x88] sm:$0x11] %v650_v19  ;;  %vm3294_vm14 = vcmask 253952  }
  0x99   : > { %v13695_v53 = vsel %vm13529_vm13, %v11011_v36, %v2217_v58  ;;  %vm14228_vm2 = vmand %vm3294_vm14, %vm584_vm3 }
  0x9a   : > { %2362 = vmatpush.bf16.msra.mxu0 %v12542_v34  ;;  %v11010_v34 = vrot.slane %v2181_v49, 9  ;;  %v2262_v28 = vunpack.c.h.b16 %v13695_v53 }
  0x9b   : > { %1610 = vmatmul.bf16.gmra.mxu1 %v1515_v48  ;;  %1812 = vmatmul.bf16.gmra.mxu0 %v10899_v50  ;;  %v11008_v48 = vrot.slane %v2179_v51, 9  ;;  %v2205_v50 = vrot.slane %v1866_v27, 5  ;;  %v1921_v27 = vrot.slane %v1919_v21, 5  ;;  %v2184_v21 = vld [vmem:[#allocation2 + $0x60] sm:$0xee] }
  0x9d   : > { %v2206_v62 = vsel %vm13529_vm13, %v11008_v48, %v2205_v50 }
  0x9e   : > { %v2256_v4 = vunpack.c.h.b16 %v2206_v62  ;;  %v2255_v46 = vunpack.c.l.b16 %v2206_v62  ;;  %v1874_v62 = vld [vmem:[#allocation2 + $0x58] sm:$0x11]  ;;  %2872 = vmatpush.bf16.msrb.mxu0 %v12577_v9  ;;  %v2186_v9 = vld [vmem:[#allocation2 + $0x80] sm:$0xee] }
  0x9f   : > { %v2221_v29 = vrot.slane %v1874_v62, 5 }
  0xa0   : > { %v2272_v52 = vpack.c.b16 %v2258_v7, %v2256_v4  ;;  %v1947_v4 = vshll.u32 %v1874_v62, 16  ;;  %v12574_v62 = vld [vmem:[%s16842_s3 + $0x250] sm:$0xff] }
  0xa1   : > { %10886 = vmatmul.msk.bf16.gmra.mxu3 %vm1181_vm1, %v1518_v55  ;;  %v13648_v55 = vsel %vm13367_vm6, %v1889_v41, %v1893_v43  ;;  %v919_v41 = vld [vmem:[#allocation2 + $0x88] sm:$0x11]  ;;  %v2015_v43 = vunpack.c.l.b16 %v13653_v56  ;;  %v12568_v56 = vld [vmem:[%s16842_s3 + $0x220] sm:$0xff] }
  0xa2   : > { %v2014_v0 = vunpack.c.h.b16 %v13648_v55  ;;  %v2013_v37 = vunpack.c.l.b16 %v13648_v55  ;;  %v920_v48 = vsel %vm13182_vm11, %v851_v31, %v919_v41  ;;  %v12564_v55 = vld [vmem:[%s16842_s3 + $0x200] sm:$0xff]  ;;  %2594 = vmatpush.bf16.msrb.mxu3 %v12568_v56  ;;  %v11013_v31 = vrot.slane %v2184_v21, 9 }
  0xa3   : > { %10962 = vmatmul.msk.bf16.gmra.mxu2 %vm1181_vm1, %v10911_v57  ;;  %v1910_v57 = vshrl.u32 %v1869_v47, 16  ;;  %v2257_v47 = vunpack.c.l.b16 %v2210_v63  ;;  %921 = vst [vmem:[#allocation2 + $0x88] sm:$0x11] %v920_v48  ;;  %v1876_v63 = vld [vmem:[#allocation2 + $0x68] sm:$0x11] }
  0xa4   : > { %v2030_v10 = vpack.c.b16 %v2016_v15, %v2014_v0  ;;  %v2029_v60 = vpack.c.b16 %v2015_v43, %v2013_v37  ;;  %v1961_v7 = vshll.u32 %v1876_v63, 16  ;;  %v2225_v32 = vrot.slane %v1876_v63, 5 }
  0xa5   : > { %v1912_v1 = vrot.slane %v1910_v57, 4  ;;  %v1940_v57 = vrot.slane %v1938_v39, 4  ;;  %v2271_v23 = vpack.c.b16 %v2257_v47, %v2255_v46  ;;  %v1980_v39 = vshrl.u32 %v13584_v30, 16  ;;  %v12575_v30 = vld [vmem:[%s16842_s3 + $0x258] sm:$0xff] }
  0xa6   : > { %v1963_v49 = vrot.slane %v1961_v7, 5  ;;  %v2019_v43 = vunpack.c.l.b16 %v13684_v17  ;;  %v2261_v46 = vunpack.c.l.b16 %v13695_v53  ;;  %v12562_v53 = vld [vmem:[%s16842_s3 + $0x1f0] sm:$0xff]  ;;  %v12573_v7 = vld [vmem:[%s16842_s3 + $0x248] sm:$0xff] }
  0xa7   : > { %v1916_v11 = vor.u32 %v1915_v16, %v1912_v1 }
  0xab   : > { %1615 = vmatmul.bf16.gmra.mxu1 %v1517_v24  ;;  %1817 = vmatmul.bf16.gmra.mxu0 %v10907_v25  ;;  %v12565_v24 = vld [vmem:[%s16842_s3 + $0x208] sm:$0xff]  ;;  %v13671_v25 = vrot.slane %v1916_v11, 4  ;;  %v2183_v11 = vld [vmem:[#allocation2 + $0x50] sm:$0xee] }
  0xac   : > { %2560 = vmatpush.bf16.msrb.mxu1 %v12565_v24 }
  0xad   : > { %v13679_v51 = vsel %vm13367_vm6, %v13671_v25, %v1921_v27  ;;  %v11012_v27 = vrot.slane %v2183_v11, 9  ;;  %v12561_v11 = vld [vmem:[%s16842_s3 + $0x1e8] sm:$0xff] }
  0xae   : > { %v2018_v2 = vunpack.c.h.b16 %v13679_v51  ;;  %v2017_v36 = vunpack.c.l.b16 %v13679_v51 }
  0xaf   : > { %v13740_v47 = vsel %vm13529_vm13, %v11012_v27, %v2221_v29 }
  0xb0   : > { %2561 = vmatpush.bf16.msrb.mxu1 %v12564_v55  ;;  %v2032_v16 = vpack.c.b16 %v2020_v54, %v2018_v2  ;;  %v1982_v2 = vrot.slane %v1980_v39, 4  ;;  %v1985_v54 = vrot.slane %v1983_v40, 5  ;;  %v2031_v55 = vpack.c.b16 %v2019_v43, %v2017_v36  ;;  %v12578_v43 = vld [vmem:[%s16842_s3 + $0x270] sm:$0xff] }
  0xb1   : > { %10887 = vmatmul.msk.bf16.gmra.mxu3 %vm1181_vm1, %v1520_v35  ;;  %v2213_v35 = vrot.slane %v1870_v5, 5 }
  0xb3   : > { %10963 = vmatmul.msk.bf16.gmra.mxu2 %vm1181_vm1, %v10919_v42  ;;  %v13691_v50 = vsel %vm13529_vm13, %v11010_v34, %v2213_v35 }
  0xb4   : > { %v2260_v61 = vunpack.c.h.b16 %v13691_v50  ;;  %2562 = vmatpush.bf16.msrb.mxu1 %v12563_v22  ;;  %v2259_v51 = vunpack.c.l.b16 %v13691_v50 }
  0xb6   : > { %v2274_v8 = vpack.c.b16 %v2262_v28, %v2260_v61  ;;  %v2273_v56 = vpack.c.b16 %v2261_v46, %v2259_v51 }
  0xb8   : > { %2563 = vmatpush.bf16.msrb.mxu1 %v12562_v53 }
  0xbb   : > { %1620 = vmatmul.bf16.gmra.mxu1 %v1519_v44  ;;  %1822 = vmatmul.bf16.gmra.mxu0 %v10915_v45  ;;  %v1944_v45 = vor.u32 %v1943_v59, %v1940_v57  ;;  %v2264_v57 = vunpack.c.h.b16 %v13740_v47 }
  0xbc   : > { %2564 = vmatpush.bf16.msrb.mxu1 %v12561_v11 }
  0xbd   : > { %v13716_v19 = vrot.slane %v1944_v45, 4 }
  0xc1   : > { %11004 = vmatmul.msk.bf16.vlgmr.msra.gmra.mxu3 %vm1181_vm1, %v2030_v10 }
  0xc3   : > { %11056 = vmatmul.msk.bf16.vlgmr.msra.gmra.mxu2 %vm1181_vm1, %v2272_v52  ;;  %v1949_v52 = vrot.slane %v1947_v4, 5 }
  0xc4   : > { %v1398_v33 = vpop.f32.mrf.mxu3 }
  0xc5   : > { %v13726_v37 = vsel %vm13367_vm6, %v13716_v19, %v1949_v52 }
  0xc6   : > { %v1369_v42 = vpop.f32.mrf.mxu2  ;;  %v2022_v17 = vunpack.c.h.b16 %v13726_v37 }
  0xc8   : > { %v1203_v0 = vpop.f32.mrf.mxu0  ;;  %v1232_v15 = vpop.f32.mrf.mxu1 }
  0xc9   : > { %v1233_v14 = vadd.f32 %v1232_v15, %v1203_v0 }
  0xcb   : > { %v1370_v5 = vadd.f32 %v1369_v42, %v1233_v14  ;;  %2121 = vmatmul.bf16.vlgmr.msra.gmra.mxu1 %v2029_v60  ;;  %2363 = vmatmul.bf16.vlgmr.msra.gmra.mxu0 %v2271_v23  ;;  %v13731_v42 = vsel %vm13367_vm6, %v13518_v3, %v1963_v49  ;;  %v13744_v3 = vsel %vm13529_vm13, %v11013_v31, %v2225_v32  ;;  %v1878_v60 = vld [vmem:[#allocation2 + $0x78] sm:$0x11]  ;;  %v1880_v23 = vld [vmem:[#allocation2 + $0x88] sm:$0x11]  ;;  %v11015_v32 = vrot.slane %v2186_v9, 9 }
  0xcc   : > { %v1400_v1 = vpop.f32.mrf.mxu3  ;;  %v2024_v50 = vunpack.c.h.b16 %v13731_v42  ;;  %v2266_v59 = vunpack.c.h.b16 %v13744_v3  ;;  %v12579_v49 = vld [vmem:[%s16842_s3 + $0x278] sm:$0xff]  ;;  %v2229_v31 = vrot.slane %v1878_v60, 5 }
  0xcd   : > { %v13710_v10 = vadd.f32 %v1398_v33, %v1370_v5  ;;  %v12576_v33 = vld [vmem:[%s16842_s3 + $0x260] sm:$0xff]  ;;  %2907 = vmatpush.bf16.msrb.mxu2 %v12579_v49 }
  0xce   : > { %v1371_v44 = vpop.f32.mrf.mxu2  ;;  %2873 = vmatpush.bf16.msrb.mxu0 %v12576_v33  ;;  %v2034_v15 = vpack.c.b16 %v2024_v50, %v2022_v17  ;;  %v2276_v4 = vpack.c.b16 %v2266_v59, %v2264_v57  ;;  %v2233_v33 = vrot.slane %v1880_v23, 5  ;;  %v2263_v17 = vunpack.c.l.b16 %v13740_v47 }
  0xcf   : > { %v2265_v50 = vunpack.c.l.b16 %v13744_v3  ;;  %v12560_v3 = vld [vmem:[%s16842_s3 + $0x1e0] sm:$0xff] }
  0xd0   : > { %v1205_v20 = vpop.f32.mrf.mxu0  ;;  %v1234_v24 = vpop.f32.mrf.mxu1  ;;  %v13799_v53 = vsel %vm13529_vm13, %v11015_v32, %v2233_v33  ;;  %2565 = vmatpush.bf16.msrb.mxu1 %v12560_v3  ;;  %v13852_v3 = vld [vmem:[#allocation2 + $0x48] sm:$0x11] }
  0xd1   : > { %11005 = vmatmul.msk.bf16.gmra.mxu3 %vm1181_vm1, %v2032_v16  ;;  %v1235_v34 = vadd.f32 %v1234_v24, %v1205_v20  ;;  %v1986_v16 = vor.u32 %v1985_v54, %v1982_v2  ;;  %v2624_v20 = vld [vmem:[#allocation2 + $0x20] sm:$0xff]  ;;  %2908 = vmatpush.bf16.msrb.mxu2 %v12578_v43  ;;  %v12571_v2 = vld [vmem:[%s16842_s3 + $0x238] sm:$0xff] }
  0xd2   : > { %2874 = vmatpush.bf16.msrb.mxu0 %v12575_v30  ;;  %v2641_v51 = vshrl.u32 %v2624_v20, 16  ;;  %v2644_v46 = vshll.u32 %v2624_v20, 16 }
  0xd3   : > { %11057 = vmatmul.msk.bf16.gmra.mxu2 %vm1181_vm1, %v2274_v8  ;;  %v1372_v41 = vadd.f32 %v1371_v44, %v1235_v34  ;;  %v1989_v44 = vshll.u32 %v1880_v23, 16  ;;  %v2185_v8 = vld [vmem:[#allocation2 + $0x70] sm:$0xee]  ;;  %v1987_v22 = vrot.slane %v1986_v16, 4  ;;  %v12572_v34 = vld [vmem:[%s16842_s3 + $0x240] sm:$0xff] }
  0xd4   : > { %v1403_v35 = vpop.f32.mrf.mxu3  ;;  %v11014_v29 = vrot.slane %v2185_v8, 9  ;;  %v2646_v57 = vrot.slane %v2644_v46, 5 }
  0xd5   : > { %v13749_v48 = vadd.f32 %v1400_v1, %v1372_v41  ;;  %v1975_v1 = vshll.u32 %v1878_v60, 16  ;;  %v1991_v52 = vrot.slane %v1989_v44, 5  ;;  %v2275_v60 = vpack.c.b16 %v2265_v50, %v2263_v17 }
  0xd6   : > { %v1374_v58 = vpop.f32.mrf.mxu2  ;;  %2875 = vmatpush.bf16.msrb.mxu0 %v12574_v62 }
  0xd7   : > { %v1977_v21 = vrot.slane %v1975_v1, 5  ;;  %v13785_v41 = vsel %vm13367_vm6, %v1987_v22, %v1991_v52 }
  0xd8   : > { %v1208_v61 = vpop.f32.mrf.mxu0  ;;  %v1237_v28 = vpop.f32.mrf.mxu1  ;;  %v2028_v47 = vunpack.c.h.b16 %v13785_v41 }
  0xd9   : > { %v1238_v63 = vadd.f32 %v1237_v28, %v1208_v61  ;;  %v13781_v40 = vsel %vm13367_vm6, %v13520_v6, %v1977_v21  ;;  %v13795_v6 = vsel %vm13529_vm13, %v11014_v29, %v2229_v31  ;;  %v2270_v61 = vunpack.c.h.b16 %v13799_v53  ;;  %v13816_v28 = vld [vmem:[#allocation2 + $0x28] sm:$0x11]  ;;  %v12587_v21 = vld [vmem:[%s16842_s3 + $0x2b8] sm:$0xff] }
  0xda   : > { %2876 = vmatpush.bf16.msrb.mxu0 %v12573_v7  ;;  %v2268_v23 = vunpack.c.h.b16 %v13795_v6  ;;  %3114 = vmatpush.bf16.msra.mxu1 %v12587_v21  ;;  %v2025_v32 = vunpack.c.l.b16 %v13781_v40 }
  0xdb   : > { %v1375_v45 = vadd.f32 %v1374_v58, %v1238_v63  ;;  %2126 = vmatmul.bf16.gmra.mxu1 %v2031_v55  ;;  %2368 = vmatmul.bf16.gmra.mxu0 %v2273_v56  ;;  %v2021_v58 = vunpack.c.l.b16 %v13726_v37  ;;  %v2023_v37 = vunpack.c.l.b16 %v13731_v42  ;;  %v2026_v42 = vunpack.c.h.b16 %v13781_v40  ;;  %v12589_v55 = vld [vmem:[%s16842_s3 + $0x2c8] sm:$0xff] }
  0xdc   : > { %v1405_v0 = vpop.f32.mrf.mxu3  ;;  %v2643_v56 = vrot.slane %v2641_v51, 4  ;;  %3149 = vmatpush.bf16.msra.mxu3 %v12589_v55  ;;  %v2278_v8 = vpack.c.b16 %v2270_v61, %v2268_v23  ;;  %v13854_v55 = vld [vmem:[#allocation2 + $0x58] sm:$0x11] }
  0xdd   : > { %v13764_v5 = vadd.f32 %v1403_v35, %v1375_v45  ;;  %v2033_v59 = vpack.c.b16 %v2023_v37, %v2021_v58  ;;  %v2036_v16 = vpack.c.b16 %v2028_v47, %v2026_v42  ;;  %v11064_v37 = vld [vmem:[#allocation2 + $0x30] sm:$0xf0] }
  0xde   : > { %v1376_v14 = vpop.f32.mrf.mxu2  ;;  %2877 = vmatpush.bf16.msrb.mxu0 %v12572_v34  ;;  %v2647_v45 = vor.u32 %v2646_v57, %v2643_v56  ;;  %v2027_v34 = vunpack.c.l.b16 %v13785_v41  ;;  %v12586_v41 = vld [vmem:[%s16842_s3 + $0x2b0] sm:$0xff] }
  0xdf   : > { %3115 = vmatpush.bf16.msra.mxu1 %v12586_v41  ;;  %v11072_v41 = vld [vmem:[#allocation2 + $0x50] sm:$0xf0] }
  0xe0   : > { %v1210_v24 = vpop.f32.mrf.mxu0  ;;  %v1239_v27 = vpop.f32.mrf.mxu1  ;;  %v2648_v22 = vrot.slane %v2647_v45, 4 }
  0xe1   : > { %11006 = vmatmul.msk.bf16.gmra.mxu3 %vm1181_vm1, %v2034_v15  ;;  %v1240_v35 = vadd.f32 %v1239_v27, %v1210_v24  ;;  %v12570_v15 = vld [vmem:[%s16842_s3 + $0x230] sm:$0xff]  ;;  %v2628_v27 = vld [vmem:[#allocation2 + $0x40] sm:$0xff] }
  0xe2   : > { %2878 = vmatpush.bf16.msrb.mxu0 %v12571_v2  ;;  %v2669_v51 = vshrl.u32 %v2628_v27, 16  ;;  %v2672_v46 = vshll.u32 %v2628_v27, 16 }
  0xe3   : > { %11058 = vmatmul.msk.bf16.gmra.mxu2 %vm1181_vm1, %v2276_v4  ;;  %v1377_v30 = vadd.f32 %v1376_v14, %v1240_v35  ;;  %v2650_v4 = vshll.u32 %v13816_v28, 16  ;;  %v2267_v35 = vunpack.c.l.b16 %v13795_v6  ;;  %v2035_v6 = vpack.c.b16 %v2027_v34, %v2025_v32  ;;  %v12553_v34 = vld [vmem:[#allocation2 + $0x2c] sm:$0xf0] }
  0xe4   : > { %v1408_v36 = vpop.f32.mrf.mxu3  ;;  %v2671_v2 = vrot.slane %v2669_v51, 4  ;;  %v12588_v51 = vld [vmem:[%s16842_s3 + $0x2c0] sm:$0xff] }
  0xe5   : > { %v13804_v54 = vadd.f32 %v1405_v0, %v1377_v30  ;;  %v13818_v0 = vld [vmem:[#allocation2 + $0x38] sm:$0x11]  ;;  %v2652_v52 = vrot.slane %v2650_v4, 5  ;;  %v12552_v30 = vld [vmem:[#allocation2 + $0x24] sm:$0xf]  ;;  %3150 = vmatpush.bf16.msra.mxu3 %v12588_v51 }
  0xe6   : > { %v1379_v39 = vpop.f32.mrf.mxu2  ;;  %2879 = vmatpush.bf16.msrb.mxu0 %v12570_v15  ;;  %v2664_v9 = vshll.u32 %v13818_v0, 16  ;;  %v2692_v15 = vshll.u32 %v13854_v55, 16 }
  0xe7   : > { %v13838_v58 = vsel %vm13367_vm6, %v2648_v22, %v2652_v52  ;;  %v2632_v22 = vld [vmem:[#allocation2 + $0x60] sm:$0xff]  ;;  %v2634_v52 = vld [vmem:[#allocation2 + $0x70] sm:$0xff] }
  0xe8   : > { %v1213_v62 = vpop.f32.mrf.mxu0  ;;  %v1242_v63 = vpop.f32.mrf.mxu1  ;;  %v2666_v49 = vrot.slane %v2664_v9, 5  ;;  %v2773_v17 = vunpack.c.h.b16 %v13838_v58  ;;  %v2694_v45 = vrot.slane %v2692_v15, 5  ;;  %v2697_v18 = vshrl.u32 %v2632_v22, 16 }
  0xe9   : > { %v1243_v14 = vadd.f32 %v1242_v63, %v1213_v62  ;;  %v2678_v63 = vshll.u32 %v13852_v3, 16 }
  0xea   : > { %v13843_v43 = vsel %vm13367_vm6, %v13671_v25, %v2666_v49  ;;  %v2674_v25 = vrot.slane %v2672_v46, 5  ;;  %v12554_v46 = vld [vmem:[#allocation2 + $0x44] sm:$0xf] }
  0xeb   : > { %v1380_v7 = vadd.f32 %v1379_v39, %v1243_v14  ;;  %2131 = vmatmul.bf16.gmra.mxu1 %v2033_v59  ;;  %2373 = vmatmul.bf16.gmra.mxu0 %v2275_v60  ;;  %v2775_v50 = vunpack.c.h.b16 %v13843_v43  ;;  %v11067_v59 = vor.u32 %v12552_v30, %v11064_v37 }
  0xec   : > { %v1410_v1 = vpop.f32.mrf.mxu3  ;;  %v2675_v62 = vor.u32 %v2674_v25, %v2671_v2 }
  0xed   : > { %v13825_v11 = vadd.f32 %v1408_v36, %v1380_v7  ;;  %v2269_v36 = vunpack.c.l.b16 %v13799_v53  ;;  %v2789_v23 = vpack.c.b16 %v2775_v50, %v2773_v17 }
  0xee   : > { %v1381_v44 = vpop.f32.mrf.mxu2 }
  0xef   : > { %v2277_v53 = vpack.c.b16 %v2269_v36, %v2267_v35  ;;  %v2700_v35 = vshll.u32 %v2632_v22, 16  ;;  %v2711_v36 = vshrl.u32 %v2634_v52, 16 }
  0xf0   : > { %v1215_v20 = vpop.f32.mrf.mxu0  ;;  %v1244_v24 = vpop.f32.mrf.mxu1 }
  0xf1   : > { %11007 = vmatmul.msk.bf16.gmra.mxu3 %vm1181_vm1, %v2036_v16  ;;  %v1245_v29 = vadd.f32 %v1244_v24, %v1215_v20  ;;  %v2676_v16 = vrot.slane %v2675_v62, 4  ;;  %v2772_v24 = vunpack.c.l.b16 %v13838_v58  ;;  %v2702_v2 = vrot.slane %v2700_v35, 5  ;;  %v12555_v35 = vld [vmem:[#allocation2 + $0x4c] sm:$0xf0] }
  0xf2   : > { %v2713_v25 = vrot.slane %v2711_v36, 4 }
  0xf3   : > { %11059 = vmatmul.msk.bf16.gmra.mxu2 %vm1181_vm1, %v2278_v8  ;;  %v1382_v39 = vadd.f32 %v1381_v44, %v1245_v29  ;;  %v2680_v44 = vrot.slane %v2678_v63, 5  ;;  %v617_v8 = vld [vmem:[#allocation2 + $0x90] sm:$0x11]  ;;  %v11062_v29 = vld [vmem:[#allocation2 + $0x20] sm:$0xf] }
  0xf4   : > { %v1413_v31 = vpop.f32.mrf.mxu3  ;;  %v618_v49 = vsel %vm13182_vm11, 0, %v617_v8  ;;  %v11063_v30 = vor.u32 %v12553_v34, %v11062_v29  ;;  %vm3289_vm11 = vcmask 257024  }
  0xf5   : > { %v13845_v40 = vadd.f32 %v1410_v1, %v1382_v39  ;;  %v12585_v1 = vld [vmem:[%s16842_s3 + $0x2a8] sm:$0xff]  ;;  %619 = vst [vmem:[#allocation2 + $0x90] sm:$0x11] %v618_v49  ;;  %v13871_v32 = vsel %vm13367_vm6, %v2676_v16, %v2680_v44  ;;  %v2714_v39 = vshll.u32 %v2634_v52, 16  ;;  %v2636_v52 = vld [vmem:[#allocation2 + $0x80] sm:$0xff]  ;;  %vm14220_vm15 = vmand %vm3289_vm11, %vm620_vm7  ;;  %vm6584_vm11 = vcmask 781824  }
  0xf6   : > { %v1384_v33 = vpop.f32.mrf.mxu2  ;;  %3116 = vmatpush.bf16.msra.mxu1 %v12585_v1  ;;  %v2777_v37 = vunpack.c.h.b16 %v13871_v32  ;;  %v2776_v29 = vunpack.c.l.b16 %v13871_v32  ;;  %v2725_v36 = vshrl.u32 %v2636_v52, 16  ;;  %v12582_v32 = vld [vmem:[%s16842_s3 + $0x290] sm:$0xff]  ;;  %vm15438_vm14 = vmand %vm6584_vm11, %vm620_vm7 }
  0xf8   : > { %v1218_v42 = vpop.f32.mrf.mxu0  ;;  %v1247_v47 = vpop.f32.mrf.mxu1 }
  0xf9   : > { %v1248_v56 = vadd.f32 %v1247_v47, %v1218_v42  ;;  %v2716_v42 = vrot.slane %v2714_v39, 5  ;;  %v2728_v39 = vshll.u32 %v2636_v52, 16  ;;  %v12581_v52 = vld [vmem:[%s16842_s3 + $0x288] sm:$0xff] }
  0xfb   : > { %v1385_v61 = vadd.f32 %v1384_v33, %v1248_v56  ;;  %2136 = vmatmul.bf16.gmra.mxu1 %v2035_v6  ;;  %2378 = vmatmul.bf16.gmra.mxu0 %v2277_v53  ;;  %v13876_v33 = vsel %vm13367_vm6, %v13716_v19, %v2694_v45  ;;  %v2699_v53 = vrot.slane %v2697_v18, 4  ;;  %v2717_v16 = vor.u32 %v2716_v42, %v2713_v25  ;;  %v11070_v18 = vld [vmem:[#allocation2 + $0x40] sm:$0xf]  ;;  %v13924_v25 = vld [vmem:[#allocation2 + $0x88] sm:$0x11] }
  0xfc   : > { %v1415_v57 = vpop.f32.mrf.mxu3  ;;  %v2779_v17 = vunpack.c.h.b16 %v13876_v33 }
  0xfd   : > { %v13858_v14 = vadd.f32 %v1413_v31, %v1385_v61  ;;  %v2774_v31 = vunpack.c.l.b16 %v13843_v43  ;;  %v12584_v43 = vld [vmem:[%s16842_s3 + $0x2a0] sm:$0xff]  ;;  %v2703_v15 = vor.u32 %v2702_v2, %v2699_v53 }
  0xfe   : > { %v1386_v60 = vpop.f32.mrf.mxu2  ;;  %3117 = vmatpush.bf16.msra.mxu1 %v12584_v43  ;;  %v2791_v63 = vpack.c.b16 %v2779_v17, %v2777_v37 }
  0xff   : > { %v2788_v19 = vpack.c.b16 %v2774_v31, %v2772_v24  ;;  %v2704_v8 = vrot.slane %v2703_v15, 4  ;;  %v2638_v24 = vld [vmem:[#allocation2 + $0x90] sm:$0xff]  ;;  %v2778_v31 = vunpack.c.l.b16 %v13876_v33 }
 0x100   : > { %v1220_v4 = vpop.f32.mrf.mxu0  ;;  %v1249_v7 = vpop.f32.mrf.mxu1 }
 0x101   : > { %11132 = vmatmul.msk.bf16.vlgmr.msrb.gmra.mxu3 %vm1181_vm1, %v11067_v59  ;;  %v1250_v9 = vadd.f32 %v1249_v7, %v1220_v4  ;;  %v11075_v59 = vor.u32 %v12554_v46, %v11072_v41  ;;  %v12583_v4 = vld [vmem:[%s16842_s3 + $0x298] sm:$0xff]  ;;  %v2739_v46 = vshrl.u32 %v2638_v24, 16  ;;  %v2742_v41 = vshll.u32 %v2638_v24, 16 }
 0x102   : > { %3118 = vmatpush.bf16.msra.mxu1 %v12583_v4  ;;  %v2790_v33 = vpack.c.b16 %v2778_v31, %v2776_v29  ;;  %v2734_v4 = vshll.u32 %v13924_v25, 16  ;;  %v2968_v24 = vrot.slane %v13818_v0, 5 }
 0x103   : > { %11176 = vmatmul.msk.bf16.vlgmr.msrb.gmra.mxu2 %vm1181_vm1, %v2789_v23  ;;  %v1387_v27 = vadd.f32 %v1386_v60, %v1250_v9  ;;  %v13888_v60 = vld [vmem:[#allocation2 + $0x68] sm:$0x11]  ;;  %v13890_v23 = vld [vmem:[#allocation2 + $0x78] sm:$0x11]  ;;  %v2741_v42 = vrot.slane %v2739_v46, 4 }
 0x104   : > { %v1635_v21 = vpop.f32.mrf.mxu3  ;;  %v2706_v1 = vshll.u32 %v13888_v60, 16  ;;  %v2720_v44 = vshll.u32 %v13890_v23, 16  ;;  %v2736_v29 = vrot.slane %v2734_v4, 5 }
 0x105   : > { %v13878_v58 = vadd.f32 %v1415_v57, %v1387_v27 }
 0x106   : > { %v1837_v20 = vpop.f32.mrf.mxu2  ;;  %v2708_v9 = vrot.slane %v2706_v1, 5  ;;  %v2722_v22 = vrot.slane %v2720_v44, 5  ;;  %3119 = vmatpush.bf16.msra.mxu1 %v12582_v32 }
 0x108   : > { %v1606_v50 = vpop.f32.mrf.mxu1  ;;  %v1808_v6 = vpop.f32.mrf.mxu0  ;;  %v13913_v43 = vsel %vm13367_vm6, %v2704_v8, %v2708_v9  ;;  %v2938_v9 = vld [vmem:[#allocation2 + $0x20] sm:$0xee] }
 0x109   : > { %v1636_v47 = vadd.f32 %v1635_v21, %v1606_v50  ;;  %v1838_v56 = vadd.f32 %v1837_v20, %v1808_v6  ;;  %v2718_v21 = vrot.slane %v2717_v16, 4  ;;  %v2781_v37 = vunpack.c.h.b16 %v13913_v43 }
 0x10a   : > { %v2727_v50 = vrot.slane %v2725_v36, 4  ;;  %v2730_v6 = vrot.slane %v2728_v39, 5  ;;  %3120 = vmatpush.bf16.msra.mxu1 %v12581_v52 }
 0x10b   : > { %v1655_v62 = vadd.f32 %v1636_v47, %v13710_v10  ;;  %2566 = vmatmul.bf16.vlgmr.msrb.gmra.mxu1 %v11063_v30  ;;  %2880 = vmatmul.bf16.vlgmr.msrb.gmra.mxu0 %v2788_v19  ;;  %v13917_v51 = vsel %vm13367_vm6, %v2718_v21, %v2722_v22  ;;  %v12556_v30 = vld [vmem:[#allocation2 + $0x64] sm:$0xf]  ;;  %v11080_v19 = vld [vmem:[#allocation2 + $0x70] sm:$0xf0]  ;;  %v2744_v47 = vrot.slane %v2742_v41, 5 }
 0x10c   : > { %v1637_v57 = vpop.f32.mrf.mxu3  ;;  %v2783_v17 = vunpack.c.h.b16 %v13917_v51  ;;  %v2731_v44 = vor.u32 %v2730_v6, %v2727_v50  ;;  %v2939_v21 = vld [vmem:[#allocation2 + $0x30] sm:$0xee] }
 0x10d   : > { %v13897_v45 = vadd.f32 %v1838_v56, %v1655_v62  ;;  %v11083_v62 = vor.u32 %v12556_v30, %v11080_v19  ;;  %v2782_v30 = vunpack.c.l.b16 %v13917_v51  ;;  %v12558_v51 = vld [vmem:[#allocation2 + $0x84] sm:$0xf] }
 0x10e   : > { %v13892_v61 = vpop.f32.mrf.mxu2  ;;  %v2793_v16 = vpack.c.b16 %v2783_v17, %v2781_v37  ;;  %v11078_v37 = vld [vmem:[#allocation2 + $0x60] sm:$0xf]  ;;  %v12557_v17 = vld [vmem:[#allocation2 + $0x6c] sm:$0xf0] }
 0x110   : > { %v1608_v10 = vpop.f32.mrf.mxu1  ;;  %v13904_v7 = vpop.f32.mrf.mxu0 }
 0x111   : > { %11133 = vmatmul.msk.bf16.gmra.mxu3 %vm1181_vm1, %v11075_v59  ;;  %v1638_v49 = vadd.f32 %v1637_v57, %v1608_v10  ;;  %v2745_v10 = vor.u32 %v2744_v47, %v2741_v42  ;;  %v11088_v47 = vld [vmem:[#allocation2 + $0x90] sm:$0xf0] }
 0x113   : > { %11177 = vmatmul.msk.bf16.gmra.mxu2 %vm1181_vm1, %v2791_v63  ;;  %v13909_v34 = vadd.f32 %v1638_v49, %v13749_v48  ;;  %v11071_v48 = vor.u32 %v12555_v35, %v11070_v18  ;;  %v13926_v63 = vld [vmem:[#allocation2 + $0x98] sm:$0x11]  ;;  %v2964_v49 = vrot.slane %v13816_v28, 5  ;;  %v2746_v36 = vrot.slane %v2745_v10, 4 }
 0x114   : > { %v1640_v20 = vpop.f32.mrf.mxu3  ;;  %v2748_v8 = vshll.u32 %v13926_v63, 16  ;;  %v11091_v10 = vor.u32 %v12558_v51, %v11088_v47 }
 0x116   : > { %v1842_v27 = vpop.f32.mrf.mxu2  ;;  %v2750_v39 = vrot.slane %v2748_v8, 5 }
 0x118   : > { %v1611_v53 = vpop.f32.mrf.mxu1  ;;  %v1813_v2 = vpop.f32.mrf.mxu0 }
 0x119   : > { %v1641_v56 = vadd.f32 %v1640_v20, %v1611_v53  ;;  %v1843_v57 = vadd.f32 %v1842_v27, %v1813_v2  ;;  %v11181_v20 = vrot.slane %v2939_v21, 9  ;;  %v2732_v27 = vrot.slane %v2731_v44, 4  ;;  %v12580_v2 = vld [vmem:[%s16842_s3 + $0x280] sm:$0xff] }
 0x11a   : > { %v2751_v53 = vsel %vm13367_vm6, %v2746_v36, %v2750_v39  ;;  %3121 = vmatpush.bf16.msra.mxu1 %v12580_v2 }
 0x11b   : > { %v1657_v1 = vadd.f32 %v1641_v56, %v13764_v5  ;;  %2571 = vmatmul.bf16.gmra.mxu1 %v11071_v48  ;;  %2885 = vmatmul.bf16.gmra.mxu0 %v2790_v33  ;;  %v11180_v5 = vrot.slane %v2938_v9, 9  ;;  %v2969_v46 = vsel %vm13529_vm13, %v11181_v20, %v2968_v24  ;;  %v2780_v33 = vunpack.c.l.b16 %v13913_v43 }
 0x11c   : > { %v1642_v59 = vpop.f32.mrf.mxu3  ;;  %v3017_v0 = vunpack.c.h.b16 %v2969_v46  ;;  %v2737_v6 = vsel %vm13367_vm6, %v2732_v27, %v2736_v29  ;;  %v11079_v43 = vor.u32 %v12557_v17, %v11078_v37  ;;  %v2787_v56 = vunpack.c.h.b16 %v2751_v53 }
 0x11d   : > { %v13933_v22 = vadd.f32 %v1843_v57, %v1657_v1  ;;  %v2965_v31 = vsel %vm13529_vm13, %v11180_v5, %v2964_v49  ;;  %v2792_v42 = vpack.c.b16 %v2782_v30, %v2780_v33  ;;  %v2940_v5 = vld [vmem:[#allocation2 + $0x40] sm:$0xee]  ;;  %v2941_v49 = vld [vmem:[#allocation2 + $0x50] sm:$0xee]  ;;  %v2972_v27 = vrot.slane %v13852_v3, 5 }
 0x11e   : > { %v13928_v15 = vpop.f32.mrf.mxu2  ;;  %v3015_v28 = vunpack.c.h.b16 %v2965_v31  ;;  %v3014_v57 = vunpack.c.l.b16 %v2965_v31  ;;  %v11182_v24 = vrot.slane %v2940_v5, 9  ;;  %v11183_v29 = vrot.slane %v2941_v49, 9  ;;  %v11086_v33 = vld [vmem:[#allocation2 + $0x80] sm:$0xf]  ;;  %v12559_v30 = vld [vmem:[#allocation2 + $0x8c] sm:$0xf0] }
 0x11f   : > { %v2976_v31 = vrot.slane %v13854_v55, 5  ;;  %v2786_v55 = vunpack.c.l.b16 %v2751_v53  ;;  %v11087_v17 = vor.u32 %v12559_v30, %v11086_v33 }
 0x120   : > { %v1613_v18 = vpop.f32.mrf.mxu1  ;;  %v13944_v35 = vpop.f32.mrf.mxu0  ;;  %v13953_v50 = vpack.c.b16 %v3017_v0, %v3015_v28  ;;  %v2784_v0 = vunpack.c.l.b16 %v2737_v6 }
 0x121   : > { %11134 = vmatmul.msk.bf16.gmra.mxu3 %vm1181_vm1, %v11083_v62  ;;  %v1643_v41 = vadd.f32 %v1642_v59, %v1613_v18  ;;  %v3016_v59 = vunpack.c.l.b16 %v2969_v46  ;;  %v2977_v39 = vsel %vm13529_vm13, %v11183_v29, %v2976_v31 }
 0x122   : > { %v2794_v2 = vpack.c.b16 %v2786_v55, %v2784_v0  ;;  %v2992_v0 = vrot.slane %v13926_v63, 5 }
 0x123   : > { %11178 = vmatmul.msk.bf16.gmra.mxu2 %vm1181_vm1, %v2793_v16  ;;  %v13951_v19 = vadd.f32 %v1643_v41, %v13804_v54  ;;  %v2785_v54 = vunpack.c.h.b16 %v2737_v6  ;;  %v13962_v8 = vpack.c.b16 %v3016_v59, %v3014_v57  ;;  %v2943_v6 = vld [vmem:[#allocation2 + $0x70] sm:$0xee] }
 0x124   : > { %v1645_v32 = vpop.f32.mrf.mxu3 }
 0x125   : > { %v2795_v21 = vpack.c.b16 %v2787_v56, %v2785_v54 }
 0x126   : > { %v1847_v48 = vpop.f32.mrf.mxu2 }
 0x128   : > { %v1616_v62 = vpop.f32.mrf.mxu1  ;;  %v1818_v1 = vpop.f32.mrf.mxu0 }
 0x129   : > { %v1646_v16 = vadd.f32 %v1645_v32, %v1616_v62  ;;  %v1848_v44 = vadd.f32 %v1847_v48, %v1818_v1  ;;  %v3021_v32 = vunpack.c.h.b16 %v2977_v39 }
 0x12b   : > { %v1659_v9 = vadd.f32 %v1646_v16, %v13825_v11  ;;  %2576 = vmatmul.bf16.gmra.mxu1 %v11079_v43  ;;  %2890 = vmatmul.bf16.gmra.mxu0 %v2792_v42  ;;  %v2973_v11 = vsel %vm13529_vm13, %v11182_v24, %v2972_v27  ;;  %v3020_v42 = vunpack.c.l.b16 %v2977_v39  ;;  %v2980_v16 = vrot.slane %v13888_v60, 5 }
 0x12c   : > { %v1647_v4 = vpop.f32.mrf.mxu3  ;;  %v3019_v46 = vunpack.c.h.b16 %v2973_v11  ;;  %v3018_v43 = vunpack.c.l.b16 %v2973_v11 }
 0x12d   : > { %v13967_v20 = vadd.f32 %v1848_v44, %v1659_v9  ;;  %v11185_v44 = vrot.slane %v2943_v6, 9 }
 0x12e   : > { %v13965_v52 = vpop.f32.mrf.mxu2  ;;  %v3033_v48 = vpack.c.b16 %v3021_v32, %v3019_v46  ;;  %v3032_v59 = vpack.c.b16 %v3020_v42, %v3018_v43  ;;  %v2944_v46 = vld [vmem:[#allocation2 + $0x80] sm:$0xee] }
 0x130   : > { %v1618_v18 = vpop.f32.mrf.mxu1  ;;  %v13975_v36 = vpop.f32.mrf.mxu0 }
 0x131   : > { %11135 = vmatmul.msk.bf16.gmra.mxu3 %vm1181_vm1, %v11091_v10  ;;  %v1648_v28 = vadd.f32 %v1647_v4, %v1618_v18  ;;  %v2984_v4 = vrot.slane %v13890_v23, 5 }
 0x133   : > { %11179 = vmatmul.msk.bf16.gmra.mxu2 %vm1181_vm1, %v2795_v21  ;;  %v13980_v3 = vadd.f32 %v1648_v28, %v13845_v40  ;;  %v2942_v40 = vld [vmem:[#allocation2 + $0x60] sm:$0xee]  ;;  %v2945_v28 = vld [vmem:[#allocation2 + $0x90] sm:$0xee] }
 0x134   : > { %v1650_v41 = vpop.f32.mrf.mxu3  ;;  %v11184_v1 = vrot.slane %v2942_v40, 9  ;;  %v11187_v32 = vrot.slane %v2945_v28, 9 }
 0x136   : > { %v1852_v37 = vpop.f32.mrf.mxu2  ;;  %v2981_v10 = vsel %vm13529_vm13, %v11184_v1, %v2980_v16 }
 0x137   : > { %v3023_v21 = vunpack.c.h.b16 %v2981_v10  ;;  %v3022_v29 = vunpack.c.l.b16 %v2981_v10 }
 0x138   : > { %v1621_v51 = vpop.f32.mrf.mxu1  ;;  %v1823_v47 = vpop.f32.mrf.mxu0 }
 0x139   : > { %v1651_v54 = vadd.f32 %v1650_v41, %v1621_v51  ;;  %v1853_v56 = vadd.f32 %v1852_v37, %v1823_v47  ;;  %v11186_v41 = vrot.slane %v2944_v46, 9 }
 0x13b   : > { %v1661_v62 = vadd.f32 %v1651_v54, %v13858_v14  ;;  %2581 = vmatmul.bf16.gmra.mxu1 %v11087_v17  ;;  %2895 = vmatmul.bf16.gmra.mxu0 %v2794_v2  ;;  %v2985_v14 = vsel %vm13529_vm13, %v11185_v44, %v2984_v4 }
 0x13c   : > { %v1652_v57 = vpop.f32.mrf.mxu3  ;;  %v3025_v24 = vunpack.c.h.b16 %v2985_v14  ;;  %v3024_v60 = vunpack.c.l.b16 %v2985_v14 }
 0x13d   : > { %v13983_v53 = vadd.f32 %v1853_v56, %v1661_v62 }
 0x13e   : > { %v3034_v18 = vpack.c.b16 %v3024_v60, %v3022_v29  ;;  %v14007_v33 = vpop.f32.mrf.mxu2 }
 0x140   : > { %v1623_v9 = vpop.f32.mrf.mxu1  ;;  %v14013_v37 = vpop.f32.mrf.mxu0 }
 0x141   : > { %11228 = vmatmul.msk.bf16.vlgmr.msra.gmra.mxu3 %vm1181_vm1, %v13953_v50  ;;  %v1653_v5 = vadd.f32 %v1652_v57, %v1623_v9  ;;  %v3035_v50 = vpack.c.b16 %v3025_v24, %v3023_v21 }
 0x143   : > { %v13994_v27 = vadd.f32 %v1653_v5, %v13878_v58  ;;  %v2988_v58 = vrot.slane %v13924_v25, 5 }
 0x144   : > { %v2151_v49 = vpop.f32.mrf.mxu3 }
 0x145   : > { %v2989_v55 = vsel %vm13529_vm13, %v11186_v41, %v2988_v58 }
 0x146   : > { %v3026_v25 = vunpack.c.l.b16 %v2989_v55  ;;  %v14017_v54 = vpop.f32.mrf.mxu2 }
 0x148   : > { %v2122_v31 = vpop.f32.mrf.mxu1  ;;  %v14019_v56 = vpop.f32.mrf.mxu0 }
 0x149   : > { %v2152_v11 = vadd.f32 %v2151_v49, %v2122_v31 }
 0x14b   : > { %v13999_v39 = vadd.f32 %v2152_v11, %v13897_v45  ;;  %3122 = vmatmul.bf16.vlgmr.msra.gmra.mxu1 %v13962_v8  ;;  %v2993_v45 = vsel %vm13529_vm13, %v11187_v32, %v2992_v0  ;;  %v3027_v8 = vunpack.c.h.b16 %v2989_v55 }
 0x14c   : > { %v13996_v23 = vpop.f32.mrf.mxu3  ;;  %v3029_v17 = vunpack.c.h.b16 %v2993_v45  ;;  %v3028_v43 = vunpack.c.l.b16 %v2993_v45 }
 0x14e   : > { %v3037_v2 = vpack.c.b16 %v3029_v17, %v3027_v8  ;;  %v3036_v47 = vpack.c.b16 %v3028_v43, %v3026_v25  ;;  %v14027_v6 = vpop.f32.mrf.mxu2  ;;  %v663_v43 = vld [vmem:[#allocation3 + $0x8] sm:$0x1] }
 0x150   : > { %v14009_v30 = vpop.f32.mrf.mxu1  ;;  %v14029_v1 = vpop.f32.mrf.mxu0 }
 0x151   : > { %11229 = vmatmul.msk.bf16.gmra.mxu3 %vm1181_vm1, %v3033_v48 }
 0x154   : > { %v2156_v48 = vpop.f32.mrf.mxu3 }
 0x158   : > { %v2127_v42 = vpop.f32.mrf.mxu1 }
 0x159   : > { %v2157_v63 = vadd.f32 %v2156_v48, %v2127_v42  ;;  %v693_v42 = vld [vmem:[#allocation3 + $0xc] sm:$0x1] }
 0x15b   : > { %v14022_v57 = vadd.f32 %v2157_v63, %v13933_v22  ;;  %3127 = vmatmul.bf16.gmra.mxu1 %v3032_v59  ;;  %v14037_v22 = vpop.f32.mrf.mxu2  ;;  %v14039_v59 = vpop.f32.mrf.mxu0  ;;  %v664_v63 = vsel %vm13162_vm8, 0, %v663_v43 }
 0x15c   : > { %v14015_v51 = vpop.f32.mrf.mxu3  ;;  %665 = vst [vmem:[#allocation3 + $0x8] sm:$0x1] %v664_v63  ;;  %v667_v63 = vsel %vm13162_vm8, 0, %v666_v13  ;;  %v12599_v13 = vld [vmem:[%s16805_s5 + $0x8] sm:$0xff] }
 0x15d   : > { %668 = vst [vmem:[#allocation3 + $0x10] sm:$0x1] %v667_v63  ;;  %3596 = vmatpush.bf16.msra.mxu2 %v12599_v13 }
 0x160   : > { %v14025_v62 = vpop.f32.mrf.mxu1 }
 0x161   : > { %11230 = vmatmul.msk.bf16.gmra.mxu3 %vm1181_vm1, %v3035_v50 }
 0x163   : > { %v14043_v21 = vpop.f32.mrf.mxu2  ;;  %v14045_v49 = vpop.f32.mrf.mxu0 }
 0x164   : > { %v2161_v40 = vpop.f32.mrf.mxu3 }
 0x168   : > { %v2132_v16 = vpop.f32.mrf.mxu1 }
 0x169   : > { %v2162_v44 = vadd.f32 %v2161_v40, %v2132_v16 }
 0x16b   : > { %v14034_v10 = vadd.f32 %v2162_v44, %v13967_v20  ;;  %3132 = vmatmul.bf16.gmra.mxu1 %v3034_v18  ;;  %v14054_v31 = vpop.f32.mrf.mxu2  ;;  %v14056_v11 = vpop.f32.mrf.mxu0 }
 0x16c   : > { %v14031_v4 = vpop.f32.mrf.mxu3 }
 0x170   : > { %v14041_v9 = vpop.f32.mrf.mxu1 }
 0x171   : > { %11231 = vmatmul.msk.bf16.gmra.mxu3 %vm1181_vm1, %v3037_v2 }
 0x173   : > { %v14060_v28 = vpop.f32.mrf.mxu2  ;;  %v14062_v41 = vpop.f32.mrf.mxu0 }
 0x174   : > { %v2166_v14 = vpop.f32.mrf.mxu3 }
 0x178   : > { %v2137_v5 = vpop.f32.mrf.mxu1 }
 0x179   : > { %v2167_v24 = vadd.f32 %v2166_v14, %v2137_v5 }
 0x17b   : > { %v14050_v20 = vadd.f32 %v2167_v24, %v13983_v53  ;;  %3137 = vmatmul.bf16.gmra.mxu1 %v3036_v47  ;;  %v12601_v53 = vld [vmem:[%s16805_s5 + $0x18] sm:$0xff]  ;;  %v14071_v0 = vpop.f32.mrf.mxu2  ;;  %v14073_v55 = vpop.f32.mrf.mxu0  ;;  %v694_v47 = vsel %vm13205_vm12, 0, %v693_v42 }
 0x17c   : > { %v14047_v50 = vpop.f32.mrf.mxu3  ;;  %3523 = vmatpush.bf16.msra.mxu0 %v12601_v53  ;;  %695 = vst [vmem:[#allocation3 + $0xc] sm:$0x1] %v694_v47  ;;  %v696_v47 = vld [vmem:[#allocation3 + $0x14] sm:$0x1] }
 0x180   : > { %v14052_v29 = vpop.f32.mrf.mxu1 }
 0x183   : > { %v14079_v48 = vpop.f32.mrf.mxu2  ;;  %v14083_v2 = vpop.f32.mrf.mxu0 }
 0x184   : > { %v2596_v60 = vpop.f32.mrf.mxu3  ;;  %16868 = vst [vmem:[#allocation15_spill] sm:$0xff] %v14079_v48  ;;  %v690_v48 = vld [vmem:[#allocation3 + $0x4] sm:$0x1] }
 0x185   : > { %16869 = vst [vmem:[#allocation16_spill] sm:$0xff] %v14083_v2 }
 0x188   : > { %v2567_v18 = vpop.f32.mrf.mxu1 }
 0x18b   : > { %v2910_v44 = vpop.f32.mrf.mxu2  ;;  %v2881_v14 = vpop.f32.mrf.mxu0 }
 0x18c   : > { %v14058_v46 = vpop.f32.mrf.mxu3 }
 0x190   : > { %v14067_v58 = vpop.f32.mrf.mxu1 }
 0x193   : > { %v14099_v53 = vpop.f32.mrf.mxu2  ;;  %v14101_v38 = vpop.f32.mrf.mxu0 }
 0x194   : > { %v14069_v32 = vpop.f32.mrf.mxu3 }
 0x198   : > { %v14075_v45 = vpop.f32.mrf.mxu1 }
 0x19b   : > { %v14121_v63 = vpop.f32.mrf.mxu2 }
 0x19c   : > { %v14077_v8 = vpop.f32.mrf.mxu3 }
 0x1a0   : > { %v14081_v17 = vpop.f32.mrf.mxu1 }
 0x1a4   : > { %v14085_v25 = vpop.f32.mrf.mxu3 }
 0x1a5   : > { %16870 = vst [vmem:[#allocation17_spill] sm:$0xff] %v14085_v25  ;;  %v699_v25 = vld [vmem:[#allocation3 + $0x1c] sm:$0x1] }
 0x1a8   : > { %v14091_v40 = vpop.f32.mrf.mxu1 }
 0x1a9   : > { %16871 = vst [vmem:[#allocation18_spill] sm:$0xff] %v14091_v40 }
 0x1ac   : > { %v14093_v16 = vpop.f32.mrf.mxu3 }
 0x1ad   : > { %16872 = vst [vmem:[#allocation19_spill] sm:$0xff] %v14093_v16  ;;  %v660_v16 = vld [vmem:[#allocation3] sm:$0x1] }
 0x1b0   : > { %v14095_v5 = vpop.f32.mrf.mxu1 }
 0x1b1   : > { %16873 = vst [vmem:[#allocation20_spill] sm:$0xff] %v14095_v5  ;;  %v697_v5 = vsel %vm13205_vm12, 0, %v696_v47  ;;  %v14125_v47 = vpop.f32.mrf.mxu0 }
 0x1b2   : > { %698 = vst [vmem:[#allocation3 + $0x14] sm:$0x1] %v697_v5  ;;  %v1840_v5 = vadd.f32 %v13892_v61, %v13904_v7  ;;  %v12603_v61 = vld [vmem:[%s16805_s5 + $0x28] sm:$0xff]  ;;  %v2154_v7 = vadd.f32 %v13996_v23, %v14009_v30  ;;  %v2396_v23 = vadd.f32 %v14027_v6, %v14029_v1  ;;  %v14165_v6 = vld [vmem:[%s16878_s4] ss:$0 sm:$0xff] }
 0x1b3   : > { %3721 = vmatpush.bf16.msrb.mxu1 %v12603_v61 }
 0x1b4   : > { %v14097_v24 = vpop.f32.mrf.mxu3 }
 0x1b5   : > { %16874 = vst [vmem:[#allocation21_spill] sm:$0xff] %v14097_v24  ;;  %v661_v24 = vsel %vm13162_vm8, 0, %v660_v16  ;;  %v2394_v16 = vadd.f32 %v14017_v54, %v14019_v56  ;;  %v700_v54 = vsel %vm13205_vm12, 0, %v699_v25 }
 0x1b6   : > { %662 = vst [vmem:[#allocation3] sm:$0x1] %v661_v24  ;;  %v12598_v24 = vld [vmem:[%s16805_s5] sm:$0xff] }
 0x1b7   : > { %3597 = vmatpush.bf16.msra.mxu2 %v12598_v24  ;;  %v2413_v56 = vadd.f32 %v2394_v16, %v13999_v39  ;;  %701 = vst [vmem:[#allocation3 + $0x1c] sm:$0x1] %v700_v54  ;;  %v2599_v39 = vadd.f32 %v14058_v46, %v14067_v58  ;;  %v672_v16 = vld [vmem:[#allocation3 + $0x20] sm:$0x1]  ;;  %v2399_v54 = vadd.f32 %v14037_v22, %v14039_v59 }
 0x1b8   : > { %v14103_v43 = vpop.f32.mrf.mxu1  ;;  %v673_v46 = vsel %vm13162_vm8, 0, %v672_v16 }
 0x1b9   : > { %16875 = vst [vmem:[#allocation22_spill] sm:$0xff] %v14103_v43  ;;  %v12600_v43 = vld [vmem:[%s16805_s5 + $0x10] sm:$0xff]  ;;  %v14160_v24 = vpop.f32.mrf.mxu0  ;;  %v2415_v22 = vadd.f32 %v2399_v54, %v14022_v57  ;;  %v2404_v57 = vadd.f32 %v14054_v31, %v14056_v11 }
 0x1ba   : > { %3524 = vmatpush.bf16.msra.mxu0 %v12600_v43  ;;  %v2597_v43 = vadd.f32 %v2596_v60, %v2567_v18  ;;  %v1858_v60 = vadd.f32 %v1840_v5, %v13909_v34  ;;  %v12609_v18 = vld [vmem:[%s16805_s5 + $0x38] sm:$0xff]  ;;  %v14155_v34 = vpop.f32.mrf.mxu2  ;;  %v702_v5 = vld [vmem:[#allocation3 + $0x24] sm:$0x1]  ;;  %674 = vst [vmem:[#allocation3 + $0x20] sm:$0x1] %v673_v46 }
 0x1bb   : > { %3814 = vmatpush.bf16.msrb.mxu3 %v12609_v18  ;;  %v703_v58 = vsel %vm13205_vm12, 0, %v702_v5  ;;  %v675_v18 = vld [vmem:[#allocation3 + $0x28] sm:$0x1] }
 0x1bc   : > { %v14105_v42 = vpop.f32.mrf.mxu3  ;;  %v2616_v25 = vadd.f32 %v2597_v43, %v2413_v56  ;;  %v2172_v40 = vadd.f32 %v2154_v7, %v1858_v60  ;;  %704 = vst [vmem:[#allocation3 + $0x24] sm:$0x1] %v703_v58  ;;  %v2159_v7 = vadd.f32 %v14015_v51, %v14025_v62  ;;  %v2913_v60 = vadd.f32 %v14099_v53, %v14101_v38 }
 0x1bd   : > { %16876 = vst [vmem:[#allocation23_spill] sm:$0xff] %v14105_v42  ;;  %v691_v42 = vsel %vm13205_vm12, 0, %v690_v48  ;;  %v669_v48 = vld [vmem:[#allocation3 + $0x18] sm:$0x1]  ;;  %v2401_v62 = vadd.f32 %v14043_v21, %v14045_v49  ;;  %v2602_v53 = vadd.f32 %v14069_v32, %v14075_v45  ;;  %v2406_v49 = vadd.f32 %v14060_v28, %v14062_v41 }
 0x1be   : > { %692 = vst [vmem:[#allocation3 + $0x4] sm:$0x1] %v691_v42  ;;  %v670_v13 = vsel %vm13162_vm8, 0, %v669_v48  ;;  %v2911_v48 = vadd.f32 %v2910_v44, %v2881_v14  ;;  %v12608_v44 = vld [vmem:[%s16805_s5 + $0x30] sm:$0xff]  ;;  %v2409_v32 = vadd.f32 %v14071_v0, %v14073_v55  ;;  %v2916_v28 = vadd.f32 %v14121_v63, %v14125_v47 }
 0x1bf   : > { %671 = vst [vmem:[#allocation3 + $0x18] sm:$0x1] %v670_v13  ;;  %v2414_v13 = vadd.f32 %v2396_v23, %v2172_v40  ;;  %3815 = vmatpush.bf16.msrb.mxu3 %v12608_v44  ;;  %v2164_v40 = vadd.f32 %v14031_v4, %v14041_v9  ;;  %v2618_v11 = vadd.f32 %v2602_v53, %v2415_v22  ;;  %v16885_v53 = vld [vmem:[#allocation16_spill] sm:$0xff] }
 0x1c0   : > { %v14129_v2 = vpop.f32.mrf.mxu1  ;;  %v2930_v14 = vadd.f32 %v2911_v48, %v2616_v25  ;;  %v705_v25 = vld [vmem:[#allocation3 + $0x2c] sm:$0x1]  ;;  %v2604_v41 = vadd.f32 %v14077_v8, %v14081_v17  ;;  %v2417_v44 = vadd.f32 %v2404_v57, %v14034_v10  ;;  %v2169_v10 = vadd.f32 %v14047_v50, %v14052_v29  ;;  %v678_v57 = vld [vmem:[#allocation3 + $0x30] sm:$0x1] }
 0x1c1   : > { %16877 = vst [vmem:[#allocation24_spill] sm:$0xff] %v14129_v2  ;;  %v12602_v2 = vld [vmem:[%s16805_s5 + $0x20] sm:$0xff]  ;;  %v2617_v56 = vadd.f32 %v2599_v39, %v2414_v13  ;;  %v14205_v45 = vpop.f32.mrf.mxu0  ;;  %v3296_v17 = vld [vmem:[#allocation3 + $0xc] sm:$0x1] }
 0x1c2   : > { %3722 = vmatpush.bf16.msrb.mxu1 %v12602_v2  ;;  %v1845_v2 = vadd.f32 %v13928_v15, %v13944_v35  ;;  %v14207_v48 = vpop.f32.mrf.mxu2  ;;  %v3619_v13 = vld [vmem:[#allocation3] sm:$0xe] }
 0x1c3   : > { %v2931_v38 = vadd.f32 %v2913_v60, %v2617_v56  ;;  %v11272_v29 = vrot.slane %v3619_v13, 9 }
 0x1c4   : > { %v3152_v42 = vpop.f32.mrf.mxu3  ;;  %v1860_v35 = vadd.f32 %v1845_v2, %v13951_v19 }
 0x1c6   : > { %v2174_v51 = vadd.f32 %v2159_v7, %v1860_v35 }
 0x1c8   : > { %v3123_v30 = vpop.f32.mrf.mxu1  ;;  %v2416_v0 = vadd.f32 %v2401_v62, %v2174_v51 }
 0x1c9   : > { %v3153_v43 = vadd.f32 %v3152_v42, %v3123_v30  ;;  %v1850_v42 = vadd.f32 %v13965_v52, %v13975_v36  ;;  %v1855_v36 = vadd.f32 %v14007_v33, %v14013_v37  ;;  %v676_v33 = vsel %vm13162_vm8, 0, %v675_v18  ;;  %v3345_v30 = vld [vmem:[#allocation3] sm:$0xf] }
 0x1ca   : > { %v706_v37 = vsel %vm13205_vm12, 0, %v705_v25  ;;  %677 = vst [vmem:[#allocation3 + $0x28] sm:$0x1] %v676_v33  ;;  %v3366_v63 = vshrl.u32 %v3345_v30, 16  ;;  %v3369_v47 = vshll.u32 %v3345_v30, 16  ;;  %v2619_v54 = vadd.f32 %v2604_v41, %v2416_v0  ;;  %v16887_v25 = vld [vmem:[#allocation20_spill] sm:$0xff] }
 0x1cb   : > { %v3172_v61 = vadd.f32 %v3153_v43, %v2930_v14  ;;  %v1862_v52 = vadd.f32 %v1850_v42, %v13980_v3  ;;  %707 = vst [vmem:[#allocation3 + $0x2c] sm:$0x1] %v706_v37  ;;  %v14211_v31 = vadd.f32 %v1855_v36, %v13994_v27  ;;  %v3291_v43 = vld [vmem:[#allocation3 + $0x8] sm:$0xf]  ;;  %v2932_v42 = vadd.f32 %v2916_v28, %v2618_v11  ;;  %v16884_v36 = vld [vmem:[#allocation17_spill] sm:$0xff] }
 0x1cc   : > { %v3154_v1 = vpop.f32.mrf.mxu3  ;;  %v3368_v22 = vrot.slane %v3366_v63, 4  ;;  %v679_v11 = vsel %vm13162_vm8, 0, %v678_v57  ;;  %v2921_v0 = vadd.f32 %v14207_v48, %v14205_v45  ;;  %v11246_v63 = vld [vmem:[#allocation3] sm:$0xf] }
 0x1cd   : > { %v3184_v15 = vadd.f32 %v14165_v6, %v3172_v61  ;;  %v2176_v21 = vadd.f32 %v2164_v40, %v1862_v52  ;;  %v2918_v61 = vadd.f32 %v14155_v34, %v14160_v24  ;;  %v14243_v40 = vld [vmem:[#allocation3 + $0x4] sm:$0x1]  ;;  %v16883_v52 = vld [vmem:[#allocation18_spill] sm:$0xff]  ;;  %680 = vst [vmem:[#allocation3 + $0x30] sm:$0x1] %v679_v11 }
 0x1ce   : > { %v2607_v50 = vadd.f32 %v16884_v36, %v16883_v52  ;;  %v3645_v37 = vrot.slane %v14243_v40, 5 }
 0x1cf   : > { %v3192_v59 = vmax.f32 %v3184_v15, 0.0  ;;  %v2418_v14 = vadd.f32 %v2406_v49, %v2176_v21  ;;  %v708_v21 = vld [vmem:[#allocation3 + $0x34] sm:$0x1]  ;;  %v2922_v49 = vpop.f32.mrf.mxu2  ;;  %v2933_v28 = vadd.f32 %v2918_v61, %v2619_v54 }
 0x1d0   : > { %v3125_v19 = vpop.f32.mrf.mxu1  ;;  %v2620_v41 = vadd.f32 %v2607_v50, %v2417_v44  ;;  %v3646_v44 = vsel %vm13529_vm13, %v11272_v29, %v3645_v37 }
 0x1d1   : > { %v14193_v4 = vpack.c.bf16 %v3192_v59, %v3192_v59  ;;  %v3155_v3 = vadd.f32 %v3154_v1, %v3125_v19  ;;  %v14233_v1 = vadd.f32 %v2409_v32, %v14050_v20  ;;  %v3371_v59 = vrot.slane %v3369_v47, 5  ;;  %v16886_v19 = vld [vmem:[#allocation15_spill] sm:$0xff] }
 0x1d2   : > { %v14253_v18 = vadd.f32 %v16886_v19, %v16885_v53 }
 0x1d3   : > { %v3209_v23 = vshrl.u32 %v14193_v4, 16  ;;  %v3173_v39 = vadd.f32 %v3155_v3, %v2931_v38  ;;  %v3212_v16 = vshll.u32 %v14193_v4, 16  ;;  %v4928_v34 = vunpack.c.l.b16 %v14193_v4  ;;  %v12611_v38 = vld [vmem:[%s16805_s5 + $0x48] sm:$0xff]  ;;  %v16888_v3 = vld [vmem:[#allocation19_spill] sm:$0xff]  ;;  %v2893_v4 = vpop.f32.mrf.mxu0 }
 0x1d4   : > { %v3157_v9 = vpop.f32.mrf.mxu3  ;;  %4019 = vmatpush.bf16.msrb.mxu0 %v12611_v38  ;;  %v3372_v47 = vor.u32 %v3371_v59, %v3368_v22 }
 0x1d5   : > { %v3211_v55 = vrot.slane %v3209_v23, 7  ;;  %v3185_v27 = vadd.f32 %v14165_v6, %v3173_v39  ;;  %v3299_v23 = vld [vmem:[#allocation3 + $0x10] sm:$0xf] }
 0x1d6   : > { %v3373_v22 = vrot.slane %v3372_v47, 4  ;;  %v16891_v47 = vld [vmem:[#allocation22_spill] sm:$0xff] }
 0x1d7   : > { %v3214_v46 = vor.u32 %v3212_v16, %v3211_v55  ;;  %v3215_v58 = vrot.slane %v3211_v55, 4  ;;  %v3193_v2 = vmax.f32 %v3185_v27, 0.0  ;;  %v3302_v55 = vld [vmem:[#allocation3 + $0x14] sm:$0x1]  ;;  %v709_v16 = vsel %vm13205_vm12, 0, %v708_v21 }
 0x1d8   : > { %v3128_v7 = vpop.f32.mrf.mxu1  ;;  %710 = vst [vmem:[#allocation3 + $0x34] sm:$0x1] %v709_v16 }
 0x1d9   : > { %v3292_v56 = vsel %vm14220_vm15, %v3214_v46, %v3291_v43  ;;  %v3297_v20 = vsel %vm14228_vm2, %v3215_v58, %v3296_v17  ;;  %v3201_v60 = vpack.c.bf16 %v3193_v2, %v3193_v2  ;;  %v3158_v15 = vadd.f32 %v3157_v9, %v3128_v7 }
 0x1da   : > { %3293 = vst [vmem:[#allocation3 + $0x8] sm:$0xf] %v3292_v56  ;;  %v2609_v9 = vadd.f32 %v16888_v3, %v16887_v25  ;;  %v2923_v58 = vadd.f32 %v2922_v49, %v2893_v4  ;;  %v711_v25 = vld [vmem:[#allocation3 + $0x3c] sm:$0x1] }
 0x1db   : > { %3298 = vst [vmem:[#allocation3 + $0xc] sm:$0x1] %v3297_v20  ;;  %v3217_v24 = vshrl.u32 %v3201_v60, 16  ;;  %v4929_v51 = vunpack.c.l.b16 %v3201_v60  ;;  %v3174_v62 = vadd.f32 %v3158_v15, %v2932_v42  ;;  %v3220_v33 = vshll.u32 %v3201_v60, 16  ;;  %v3308_v3 = vld [vmem:[#allocation3 + $0x1c] sm:$0x1] }
 0x1dc   : > { %v3159_v35 = vpop.f32.mrf.mxu3  ;;  %v2621_v46 = vadd.f32 %v2609_v9, %v2418_v14  ;;  %v3375_v42 = vshll.u32 %v14243_v40, 16  ;;  %v14277_v14 = vadd.f32 %v2169_v10, %v14211_v31  ;;  %v2934_v60 = vadd.f32 %v2921_v0, %v2620_v41 }
 0x1dd   : > { %v3219_v32 = vrot.slane %v3217_v24, 7  ;;  %v14258_v39 = vpack.c.b16 %v4929_v51, %v4928_v34  ;;  %v3186_v30 = vadd.f32 %v14165_v6, %v3174_v62  ;;  %v3679_v34 = vunpack.c.l.b16 %v3646_v44  ;;  %v681_v24 = vld [vmem:[#allocation3 + $0x38] sm:$0x1] }
 0x1de   : > { %v14280_v59 = vadd.f32 %v2923_v58, %v2621_v46  ;;  %v3377_v10 = vrot.slane %v3375_v42, 5  ;;  %v3305_v62 = vld [vmem:[#allocation3 + $0x18] sm:$0xf]  ;;  %v682_v57 = vsel %vm13162_vm8, 0, %v681_v24  ;;  %v712_v0 = vsel %vm13205_vm12, 0, %v711_v25  ;;  %v16892_v46 = vld [vmem:[#allocation21_spill] sm:$0xff] }
 0x1df   : > { %v3222_v27 = vor.u32 %v3220_v33, %v3219_v32  ;;  %v3223_v43 = vrot.slane %v3219_v32, 4  ;;  %v3194_v17 = vmax.f32 %v3186_v30, 0.0  ;;  %683 = vst [vmem:[#allocation3 + $0x38] sm:$0x1] %v682_v57  ;;  %v2612_v58 = vadd.f32 %v16892_v46, %v16891_v47  ;;  %v714_v25 = vld [vmem:[#allocation3 + $0x44] sm:$0x1] }
 0x1e0   : > { %v3130_v2 = vpop.f32.mrf.mxu1  ;;  %713 = vst [vmem:[#allocation3 + $0x3c] sm:$0x1] %v712_v0  ;;  %v2420_v46 = vadd.f32 %v14253_v18, %v14277_v14  ;;  %v12610_v18 = vld [vmem:[%s16805_s5 + $0x40] sm:$0xff] }
 0x1e1   : > { %v3300_v45 = vsel %vm14220_vm15, %v3222_v27, %v3299_v23  ;;  %v3303_v48 = vsel %vm14228_vm2, %v3223_v43, %v3302_v55  ;;  %v14274_v54 = vpack.c.bf16 %v3194_v17, %v3194_v17  ;;  %v3160_v61 = vadd.f32 %v3159_v35, %v3130_v2  ;;  %v12594_v56 = vld [vmem:[#allocation3 + $0x4] sm:$0xf0]  ;;  %4020 = vmatpush.bf16.msrb.mxu0 %v12610_v18 }
 0x1e2   : > { %v3620_v20 = vld [vmem:[#allocation3 + $0x8] sm:$0xe]  ;;  %3301 = vst [vmem:[#allocation3 + $0x10] sm:$0xf] %v3300_v45  ;;  %v11247_v15 = vor.u32 %v12594_v56, %v11246_v63  ;;  %v3358_v52 = vld [vmem:[#allocation3 + $0xc] sm:$0x1]  ;;  %v2925_v56 = vpop.f32.mrf.mxu2 }
 0x1e3   : > { %v11273_v40 = vrot.slane %v3620_v20, 9  ;;  %3304 = vst [vmem:[#allocation3 + $0x14] sm:$0x1] %v3303_v48  ;;  %v3225_v36 = vshrl.u32 %v14274_v54, 16  ;;  %v3175_v50 = vadd.f32 %v3160_v61, %v2933_v28  ;;  %v3649_v29 = vrot.slane %v3358_v52, 5  ;;  %v2896_v61 = vpop.f32.mrf.mxu0 }
 0x1e4   : > { %v3162_v7 = vpop.f32.mrf.mxu3  ;;  %v3228_v35 = vshll.u32 %v14274_v54, 16  ;;  %11268 = vmatmul.msk.bf16.vlgmr.msra.gmra.mxu2 %vm1181_vm1, %v11247_v15  ;;  %v3346_v31 = vld [vmem:[#allocation3 + $0x8] sm:$0xf]  ;;  %v3389_v37 = vshll.u32 %v3358_v52, 16  ;;  %v3378_v28 = vsel %vm13367_vm6, %v3373_v22, %v3377_v10 }
 0x1e5   : > { %v3227_v51 = vrot.slane %v3225_v36, 7  ;;  %v3187_v38 = vadd.f32 %v14165_v6, %v3175_v50  ;;  %v3650_v53 = vsel %vm13529_vm13, %v11273_v40, %v3649_v29  ;;  %v3380_v19 = vshrl.u32 %v3346_v31, 16  ;;  %v11294_v17 = vld [vmem:[#allocation3 + $0x8] sm:$0xf]  ;;  %v3311_v36 = vld [vmem:[#allocation3 + $0x20] sm:$0xf] }
 0x1e6   : > { %v3680_v9 = vunpack.c.l.b16 %v3650_v53  ;;  %v3383_v33 = vshll.u32 %v3346_v31, 16  ;;  %v3391_v15 = vrot.slane %v3389_v37, 5  ;;  %v3481_v52 = vunpack.c.l.b16 %v3378_v28 }
 0x1e7   : > { %v3230_v21 = vor.u32 %v3228_v35, %v3227_v51  ;;  %v3231_v4 = vrot.slane %v3227_v51, 4  ;;  %v3195_v49 = vmax.f32 %v3187_v38, 0.0  ;;  %v3382_v32 = vrot.slane %v3380_v19, 4  ;;  %v684_v51 = vld [vmem:[#allocation3 + $0x40] sm:$0x1] }
 0x1e8   : > { %v3133_v23 = vpop.f32.mrf.mxu1  ;;  %v3687_v30 = vpack.c.b16 %v3680_v9, %v3679_v34  ;;  %v3385_v41 = vrot.slane %v3383_v33, 5  ;;  %v3314_v38 = vld [vmem:[#allocation3 + $0x24] sm:$0x1]  ;;  %v685_v19 = vsel %vm13162_vm8, 0, %v684_v51 }
 0x1e9   : > { %v3306_v55 = vsel %vm14220_vm15, %v3230_v21, %v3305_v62  ;;  %v3309_v16 = vsel %vm14228_vm2, %v3231_v4, %v3308_v3  ;;  %v14297_v27 = vpack.c.bf16 %v3195_v49, %v3195_v49  ;;  %v3163_v43 = vadd.f32 %v3162_v7, %v3133_v23  ;;  %v12604_v63 = vld [vmem:[#allocation3 + $0xc] sm:$0xf0]  ;;  %686 = vst [vmem:[#allocation3 + $0x40] sm:$0x1] %v685_v19  ;;  %v16894_v51 = vld [vmem:[#allocation23_spill] sm:$0xff] }
 0x1ea   : > { %3307 = vst [vmem:[#allocation3 + $0x18] sm:$0xf] %v3306_v55  ;;  %11288 = vmatmul.msk.bf16.vlgmr.msrb.gmra.mxu1 %vm1181_vm1, %v3687_v30  ;;  %v11295_v44 = vor.u32 %v12604_v63, %v11294_v17  ;;  %v3386_v42 = vor.u32 %v3385_v41, %v3382_v32  ;;  %v14302_v45 = vld [vmem:[#allocation3 + $0x14] sm:$0x1]  ;;  %v3621_v48 = vld [vmem:[#allocation3 + $0x10] sm:$0xe]  ;;  %v2926_v62 = vadd.f32 %v2925_v56, %v2896_v61 }
 0x1eb   : > { %3310 = vst [vmem:[#allocation3 + $0x1c] sm:$0x1] %v3309_v16  ;;  %v3233_v7 = vshrl.u32 %v14297_v27, 16  ;;  %v3176_v20 = vadd.f32 %v3163_v43, %v2934_v60  ;;  %v3236_v40 = vshll.u32 %v14297_v27, 16  ;;  %v11274_v29 = vrot.slane %v3621_v48, 9 }
 0x1ec   : > { %v3164_v2 = vpop.f32.mrf.mxu3  ;;  %11316 = vmatmul.msk.bf16.vlgmr.msrb.gmra.mxu3 %vm1181_vm1, %v11295_v44  ;;  %v3387_v50 = vrot.slane %v3386_v42, 4  ;;  %v3653_v22 = vrot.slane %v14302_v45, 5  ;;  %v3347_v35 = vld [vmem:[#allocation3 + $0x10] sm:$0xf]  ;;  %v2622_v60 = vadd.f32 %v2612_v58, %v14233_v1  ;;  %v715_v49 = vsel %vm13205_vm12, 0, %v714_v25  ;;  %v2898_v25 = vpop.f32.mrf.mxu0 }
 0x1ed   : > { %v3235_v34 = vrot.slane %v3233_v7, 7  ;;  %v3188_v31 = vadd.f32 %v14165_v6, %v3176_v20  ;;  %v3394_v10 = vshrl.u32 %v3347_v35, 16  ;;  %v3397_v24 = vshll.u32 %v3347_v35, 16  ;;  %v11250_v41 = vld [vmem:[#allocation3 + $0x10] sm:$0xf] }
 0x1ee   : > { %v3392_v53 = vsel %vm13367_vm6, %v3387_v50, %v3391_v15  ;;  %v3654_v21 = vsel %vm13529_vm13, %v11274_v29, %v3653_v22  ;;  %v3403_v42 = vshll.u32 %v14302_v45, 16  ;;  %v2936_v48 = vadd.f32 %v2926_v62, %v2622_v60  ;;  %716 = vst [vmem:[#allocation3 + $0x44] sm:$0x1] %v715_v49 }
 0x1ef   : > { %v3238_v3 = vor.u32 %v3236_v40, %v3235_v34  ;;  %v3239_v9 = vrot.slane %v3235_v34, 4  ;;  %v3196_v33 = vmax.f32 %v3188_v31, 0.0  ;;  %v3482_v37 = vunpack.c.l.b16 %v3392_v53  ;;  %v3317_v40 = vld [vmem:[#allocation3 + $0x28] sm:$0xf] }
 0x1f0   : > { %v3135_v57 = vpop.f32.mrf.mxu1  ;;  %v3396_v4 = vrot.slane %v3394_v10, 4  ;;  %v3399_v1 = vrot.slane %v3397_v24, 5  ;;  %v3681_v7 = vunpack.c.l.b16 %v3654_v21  ;;  %v16893_v24 = vld [vmem:[#allocation24_spill] sm:$0xff]  ;;  %v3405_v19 = vrot.slane %v3403_v42, 5 }
 0x1f1   : > { %v3312_v32 = vsel %vm14220_vm15, %v3238_v3, %v3311_v36  ;;  %v3315_v23 = vsel %vm14228_vm2, %v3239_v9, %v3314_v38  ;;  %v14322_v30 = vpack.c.bf16 %v3196_v33, %v3196_v33  ;;  %v3489_v28 = vpack.c.b16 %v3482_v37, %v3481_v52  ;;  %v12595_v0 = vld [vmem:[#allocation3 + $0x14] sm:$0xf0]  ;;  %v3320_v36 = vld [vmem:[#allocation3 + $0x2c] sm:$0x1]  ;;  %v2927_v3 = vpop.f32.mrf.mxu2 }
 0x1f2   : > { %v3622_v55 = vld [vmem:[#allocation3 + $0x18] sm:$0xe]  ;;  %3313 = vst [vmem:[#allocation3 + $0x20] sm:$0xf] %v3312_v32  ;;  %v3165_v16 = vadd.f32 %v3164_v2, %v3135_v57  ;;  %v11251_v43 = vor.u32 %v12595_v0, %v11250_v41  ;;  %v3360_v17 = vld [vmem:[#allocation3 + $0x1c] sm:$0x1]  ;;  %v3400_v47 = vor.u32 %v3399_v1, %v3396_v4  ;;  %v2614_v60 = vadd.f32 %v16894_v51, %v16893_v24 }
 0x1f3   : > { %v11275_v63 = vrot.slane %v3622_v55, 9  ;;  %3316 = vst [vmem:[#allocation3 + $0x24] sm:$0x1] %v3315_v23  ;;  %v3241_v58 = vshrl.u32 %v14322_v30, 16  ;;  %11240 = vmatmul.msk.bf16.vlgmr.msra.gmra.mxu0 %vm1181_vm1, %v3489_v28  ;;  %v3657_v44 = vrot.slane %v3360_v17, 5  ;;  %v3244_v61 = vshll.u32 %v14322_v30, 16 }
 0x1f4   : > { %v3177_v2 = vadd.f32 %v3165_v16, %v14280_v59  ;;  %v3167_v56 = vpop.f32.mrf.mxu3  ;;  %11269 = vmatmul.msk.bf16.gmra.mxu2 %vm1181_vm1, %v11251_v43  ;;  %v3348_v20 = vld [vmem:[#allocation3 + $0x18] sm:$0xf]  ;;  %v3401_v29 = vrot.slane %v3400_v47, 4  ;;  %v3417_v22 = vshll.u32 %v3360_v17, 16  ;;  %v2623_v17 = vadd.f32 %v2614_v60, %v2420_v46 }
 0x1f5   : > { %v3243_v14 = vrot.slane %v3241_v58, 7  ;;  %v3658_v15 = vsel %vm13529_vm13, %v11275_v63, %v3657_v44  ;;  %v3408_v45 = vshrl.u32 %v3348_v20, 16  ;;  %v3411_v52 = vshll.u32 %v3348_v20, 16  ;;  %v11298_v57 = vld [vmem:[#allocation3 + $0x18] sm:$0xf] }
 0x1f6   : > { %v3189_v59 = vadd.f32 %v14165_v6, %v3177_v2  ;;  %v3682_v50 = vunpack.c.l.b16 %v3658_v15  ;;  %v3406_v23 = vsel %vm13367_vm6, %v3401_v29, %v3405_v19  ;;  %v3419_v28 = vrot.slane %v3417_v22, 5  ;;  %v3326_v15 = vld [vmem:[#allocation3 + $0x34] sm:$0x1] }
 0x1f7   : > { %v3246_v35 = vor.u32 %v3244_v61, %v3243_v14  ;;  %v3247_v34 = vrot.slane %v3243_v14, 4  ;;  %v3410_v31 = vrot.slane %v3408_v45, 4  ;;  %v3413_v10 = vrot.slane %v3411_v52, 5  ;;  %v3323_v14 = vld [vmem:[#allocation3 + $0x30] sm:$0xf] }
 0x1f8   : > { %v3197_v62 = vmax.f32 %v3189_v59, 0.0  ;;  %v3138_v38 = vpop.f32.mrf.mxu1  ;;  %v3688_v53 = vpack.c.b16 %v3682_v50, %v3681_v7  ;;  %v2928_v63 = vadd.f32 %v2927_v3, %v2898_v25  ;;  %v3483_v61 = vunpack.c.l.b16 %v3406_v23 }
 0x1f9   : > { %v3318_v9 = vsel %vm14220_vm15, %v3246_v35, %v3317_v40  ;;  %v3321_v33 = vsel %vm14228_vm2, %v3247_v34, %v3320_v36  ;;  %v3168_v37 = vadd.f32 %v3167_v56, %v3138_v38  ;;  %v12605_v21 = vld [vmem:[#allocation3 + $0x1c] sm:$0xf0]  ;;  %v3414_v4 = vor.u32 %v3413_v10, %v3410_v31 }
 0x1fa   : > { %v3623_v1 = vld [vmem:[#allocation3 + $0x20] sm:$0xe]  ;;  %3319 = vst [vmem:[#allocation3 + $0x28] sm:$0xf] %v3318_v9  ;;  %v14344_v49 = vpack.c.bf16 %v3197_v62, %v3197_v62  ;;  %11289 = vmatmul.msk.bf16.gmra.mxu1 %vm1181_vm1, %v3688_v53  ;;  %v11299_v32 = vor.u32 %v12605_v21, %v11298_v57  ;;  %v14349_v41 = vld [vmem:[#allocation3 + $0x24] sm:$0x1]  ;;  %v2937_v34 = vadd.f32 %v2928_v63, %v2623_v17 }
 0x1fb   : > { %3322 = vst [vmem:[#allocation3 + $0x2c] sm:$0x1] %v3321_v33  ;;  %v3178_v0 = vadd.f32 %v3168_v37, %v2936_v48  ;;  %v3415_v55 = vrot.slane %v3414_v4, 4  ;;  %v11276_v16 = vrot.slane %v3623_v1, 9  ;;  %v3661_v43 = vrot.slane %v14349_v41, 5  ;;  %v12613_v48 = vld [vmem:[%s16805_s5 + $0x58] sm:$0xff] }
 0x1fc   : > { %v3249_v47 = vshrl.u32 %v14344_v49, 16  ;;  %11317 = vmatmul.msk.bf16.gmra.mxu3 %vm1181_vm1, %v11299_v32  ;;  %v3349_v58 = vld [vmem:[#allocation3 + $0x20] sm:$0xf]  ;;  %v3252_v46 = vshll.u32 %v14344_v49, 16  ;;  %v3169_v7 = vpop.f32.mrf.mxu3  ;;  %4152 = vmatpush.bf16.msrb.mxu2 %v12613_v48  ;;  %v3431_v60 = vshll.u32 %v14349_v41, 16  ;;  %v12612_v21 = vld [vmem:[%s16805_s5 + $0x50] sm:$0xff] }
 0x1fd   : > { %v3190_v44 = vadd.f32 %v14165_v6, %v3178_v0  ;;  %v3420_v42 = vsel %vm13367_vm6, %v3415_v55, %v3419_v28  ;;  %v3422_v2 = vshrl.u32 %v3349_v58, 16  ;;  %v3425_v18 = vshll.u32 %v3349_v58, 16  ;;  %v11254_v22 = vld [vmem:[#allocation3 + $0x20] sm:$0xf]  ;;  %v12619_v28 = vld [vmem:[%s16805_s5 + $0x68] sm:$0xff]  ;;  %v12621_v17 = vld [vmem:[%s16805_s5 + $0x78] sm:$0xff] }
 0x1fe   : > { %v3251_v56 = vrot.slane %v3249_v47, 7  ;;  %v3484_v20 = vunpack.c.l.b16 %v3420_v42  ;;  %v3662_v52 = vsel %vm13529_vm13, %v11276_v16, %v3661_v43  ;;  %v3329_v0 = vld [vmem:[#allocation3 + $0x38] sm:$0xf]  ;;  %v3332_v63 = vld [vmem:[#allocation3 + $0x3c] sm:$0x1]  ;;  %4246 = vmatpush.bf16.msra.mxu1 %v12619_v28  ;;  %4451 = vmatpush.bf16.msra.mxu3 %v12621_v17 }
 0x1ff   : > { %v3198_v45 = vmax.f32 %v3190_v44, 0.0  ;;  %v3424_v40 = vrot.slane %v3422_v2, 4  ;;  %v3427_v35 = vrot.slane %v3425_v18, 5  ;;  %v3683_v57 = vunpack.c.l.b16 %v3662_v52 }
 0x200   : > { %v3254_v36 = vor.u32 %v3252_v46, %v3251_v56  ;;  %v3255_v59 = vrot.slane %v3251_v56, 4  ;;  %v3490_v50 = vpack.c.b16 %v3484_v20, %v3483_v61  ;;  %v3140_v29 = vpop.f32.mrf.mxu1  ;;  %4153 = vmatpush.bf16.msrb.mxu2 %v12612_v21  ;;  %v3433_v46 = vrot.slane %v3431_v60, 5 }
 0x201   : > { %v14363_v31 = vpack.c.bf16 %v3198_v45, %v3198_v45  ;;  %v3170_v10 = vadd.f32 %v3169_v7, %v3140_v29  ;;  %v12596_v24 = vld [vmem:[#allocation3 + $0x24] sm:$0xf0]  ;;  %v3428_v1 = vor.u32 %v3427_v35, %v3424_v40 }
 0x202   : > { %v3624_v51 = vld [vmem:[#allocation3 + $0x28] sm:$0xe]  ;;  %v3324_v62 = vsel %vm14220_vm15, %v3254_v36, %v3323_v14  ;;  %v3327_v38 = vsel %vm14228_vm2, %v3255_v59, %v3326_v15  ;;  %v11255_v53 = vor.u32 %v12596_v24, %v11254_v22  ;;  %v3362_v19 = vld [vmem:[#allocation3 + $0x2c] sm:$0x1]  ;;  %v12620_v59 = vld [vmem:[%s16805_s5 + $0x70] sm:$0xff] }
 0x203   : > { %v11277_v25 = vrot.slane %v3624_v51, 9  ;;  %v3350_v3 = vld [vmem:[#allocation3 + $0x28] sm:$0xf]  ;;  %3325 = vst [vmem:[#allocation3 + $0x30] sm:$0xf] %v3324_v62  ;;  %v3257_v9 = vshrl.u32 %v14363_v31, 16  ;;  %11241 = vmatmul.msk.bf16.gmra.mxu0 %vm1181_vm1, %v3490_v50  ;;  %v3179_v33 = vadd.f32 %v3170_v10, %v2937_v34  ;;  %4452 = vmatpush.bf16.msra.mxu3 %v12620_v59 }
 0x204   : > { %v3665_v37 = vrot.slane %v3362_v19, 5  ;;  %3328 = vst [vmem:[#allocation3 + $0x34] sm:$0x1] %v3327_v38  ;;  %v3260_v4 = vshll.u32 %v14363_v31, 16  ;;  %11270 = vmatmul.msk.bf16.gmra.mxu2 %vm1181_vm1, %v11255_v53  ;;  %v3436_v32 = vshrl.u32 %v3350_v3, 16  ;;  %v3439_v23 = vshll.u32 %v3350_v3, 16 }
 0x205   : > { %v3259_v41 = vrot.slane %v3257_v9, 7  ;;  %v3191_v55 = vadd.f32 %v14165_v6, %v3179_v33  ;;  %v3445_v43 = vshll.u32 %v3362_v19, 16  ;;  %v3429_v58 = vrot.slane %v3428_v1, 4  ;;  %v12618_v6 = vld [vmem:[%s16805_s5 + $0x60] sm:$0xff]  ;;  %v11302_v15 = vld [vmem:[#allocation3 + $0x28] sm:$0xf] }
 0x206   : > { %v3666_v16 = vsel %vm13529_vm13, %v11277_v25, %v3665_v37  ;;  %v3438_v44 = vrot.slane %v3436_v32, 4  ;;  %v3441_v42 = vrot.slane %v3439_v23, 5  ;;  %v14402_v22 = vld [vmem:[#allocation3 + $0x14] sm:$0x1]  ;;  %4247 = vmatpush.bf16.msra.mxu1 %v12618_v6  ;;  %v3335_v62 = vld [vmem:[#allocation3 + $0x40] sm:$0xf] }
 0x207   : > { %v3684_v47 = vunpack.c.l.b16 %v3666_v16  ;;  %v3262_v61 = vor.u32 %v3260_v4, %v3259_v41  ;;  %v3263_v2 = vrot.slane %v3259_v41, 4  ;;  %v3199_v48 = vmax.f32 %v3191_v55, 0.0  ;;  %v4051_v19 = vld [vmem:[#allocation3 + $0x10] sm:$0xe]  ;;  %v3338_v25 = vld [vmem:[#allocation3 + $0x44] sm:$0x1] }
 0x208   : > { %v3442_v7 = vor.u32 %v3441_v42, %v3438_v44  ;;  %v3447_v45 = vrot.slane %v3445_v43, 5  ;;  %v3434_v40 = vsel %vm13367_vm6, %v3429_v58, %v3433_v46  ;;  %v14408_v1 = vld [vmem:[#allocation3 + $0x8] sm:$0xe]  ;;  %v4277_v32 = vld [vmem:[#allocation3 + $0x10] sm:$0xf]  ;;  %v11333_v41 = vrot.slane %v4051_v19, 9 }
 0x209   : > { %v3689_v56 = vpack.c.b16 %v3684_v47, %v3683_v57  ;;  %v3330_v20 = vsel %vm14220_vm15, %v3262_v61, %v3329_v0  ;;  %v3333_v18 = vsel %vm14228_vm2, %v3263_v2, %v3332_v63  ;;  %v14393_v14 = vpack.c.bf16 %v3199_v48, %v3199_v48  ;;  %v4279_v55 = vld [vmem:[#allocation3 + $0x18] sm:$0xf]  ;;  %v14415_v48 = vld [vmem:[#allocation3 + $0xc] sm:$0x1] }
 0x20a   : > { %3331 = vst [vmem:[#allocation3 + $0x38] sm:$0xf] %v3330_v20  ;;  %v12606_v52 = vld [vmem:[#allocation3 + $0x2c] sm:$0xf0]  ;;  %v3443_v36 = vrot.slane %v3442_v7, 4  ;;  %v3485_v38 = vunpack.c.l.b16 %v3434_v40  ;;  %v4080_v0 = vrot.slane %v14402_v22, 5 }
 0x20b   : > { %11290 = vmatmul.msk.bf16.gmra.mxu1 %vm1181_vm1, %v3689_v56  ;;  %3334 = vst [vmem:[#allocation3 + $0x3c] sm:$0x1] %v3333_v18  ;;  %v3265_v50 = vshrl.u32 %v14393_v14, 16  ;;  %v11303_v29 = vor.u32 %v12606_v52, %v11302_v15  ;;  %v3363_v34 = vld [vmem:[#allocation3 + $0x34] sm:$0x1]  ;;  %v3268_v60 = vshll.u32 %v14393_v14, 16 }
 0x20c   : > { %v3448_v35 = vsel %vm13367_vm6, %v3443_v36, %v3447_v45  ;;  %v3625_v10 = vld [vmem:[#allocation3 + $0x30] sm:$0xe]  ;;  %v3669_v4 = vrot.slane %v3363_v34, 5  ;;  %v3459_v2 = vshll.u32 %v3363_v34, 16  ;;  %v4294_v56 = vshrl.u32 %v4277_v32, 16  ;;  %v12623_v15 = vld [vmem:[%s16805_s5 + $0x88] sm:$0xff] }
 0x20d   : > { %v3351_v24 = vld [vmem:[#allocation3 + $0x30] sm:$0xf]  ;;  %v3267_v51 = vrot.slane %v3265_v50, 7  ;;  %11318 = vmatmul.msk.bf16.gmra.mxu3 %vm1181_vm1, %v11303_v29  ;;  %v3486_v53 = vunpack.c.l.b16 %v3448_v35  ;;  %v11278_v3 = vrot.slane %v3625_v10, 9  ;;  %v11332_v18 = vrot.slane %v14408_v1, 9  ;;  %4584 = vmatpush.bf16.msra.mxu0 %v12623_v15 }
 0x20e   : > { %v3450_v9 = vshrl.u32 %v3351_v24, 16  ;;  %v3453_v33 = vshll.u32 %v3351_v24, 16  ;;  %v11258_v17 = vld [vmem:[#allocation3 + $0x30] sm:$0xf]  ;;  %v4297_v40 = vshll.u32 %v4277_v32, 16  ;;  %v4308_v36 = vshrl.u32 %v4279_v55, 16 }
 0x20f   : > { %v3270_v37 = vor.u32 %v3268_v60, %v3267_v51  ;;  %v3271_v57 = vrot.slane %v3267_v51, 4  ;;  %v3491_v21 = vpack.c.b16 %v3486_v53, %v3485_v38  ;;  %v3670_v5 = vsel %vm13529_vm13, %v11278_v3, %v3669_v4  ;;  %v3845_v34 = vld [vmem:[#allocation3 + $0x8] sm:$0xf]  ;;  %v3847_v3 = vld [vmem:[#allocation3 + $0x10] sm:$0xf] }
 0x210   : > { %v3452_v23 = vrot.slane %v3450_v9, 4  ;;  %v3455_v28 = vrot.slane %v3453_v33, 5  ;;  %v3685_v59 = vunpack.c.l.b16 %v3670_v5  ;;  %v3461_v10 = vrot.slane %v3459_v2, 5  ;;  %v14433_v32 = vld [vmem:[#allocation3 + $0x1c] sm:$0x1] }
 0x211   : > { %v3336_v16 = vsel %vm14220_vm15, %v3270_v37, %v3335_v62  ;;  %v3339_v43 = vsel %vm14228_vm2, %v3271_v57, %v3338_v25  ;;  %v12597_v63 = vld [vmem:[#allocation3 + $0x34] sm:$0xf0]  ;;  %v4076_v24 = vrot.slane %v14415_v48, 5  ;;  %v4081_v51 = vsel %vm13529_vm13, %v11333_v41, %v4080_v0 }
 0x212   : > { %v3626_v47 = vld [vmem:[#allocation3 + $0x38] sm:$0xe]  ;;  %3337 = vst [vmem:[#allocation3 + $0x40] sm:$0xf] %v3336_v16  ;;  %v11259_v58 = vor.u32 %v12597_v63, %v11258_v17  ;;  %v3364_v44 = vld [vmem:[#allocation3 + $0x3c] sm:$0x1]  ;;  %v3456_v61 = vor.u32 %v3455_v28, %v3452_v23  ;;  %v4111_v0 = vunpack.c.l.b16 %v4081_v51 }
 0x213   : > { %v11279_v42 = vrot.slane %v3626_v47, 9  ;;  %3340 = vst [vmem:[#allocation3 + $0x44] sm:$0x1] %v3339_v43  ;;  %11242 = vmatmul.msk.bf16.gmra.mxu0 %vm1181_vm1, %v3491_v21  ;;  %v3673_v6 = vrot.slane %v3364_v44, 5  ;;  %v3352_v8 = vld [vmem:[#allocation3 + $0x38] sm:$0xf]  ;;  %v4077_v41 = vsel %vm13529_vm13, %v11332_v18, %v4076_v24 }
 0x214   : > { %11271 = vmatmul.msk.bf16.gmra.mxu2 %vm1181_vm1, %v11259_v58  ;;  %v3464_v46 = vshrl.u32 %v3352_v8, 16  ;;  %v3467_v7 = vshll.u32 %v3352_v8, 16  ;;  %v3473_v20 = vshll.u32 %v3364_v44, 16  ;;  %v3457_v52 = vrot.slane %v3456_v61, 4  ;;  %v11306_v38 = vld [vmem:[#allocation3 + $0x38] sm:$0xf] }
 0x215   : > { %v3674_v45 = vsel %vm13529_vm13, %v11279_v42, %v3673_v6  ;;  %v4296_v60 = vrot.slane %v4294_v56, 4  ;;  %v4310_v19 = vrot.slane %v4308_v36, 4  ;;  %v4311_v25 = vshll.u32 %v4279_v55, 16  ;;  %v14440_v58 = vld [vmem:[#allocation3 + $0x14] sm:$0x1] }
 0x216   : > { %v3686_v50 = vunpack.c.l.b16 %v3674_v45  ;;  %v3466_v29 = vrot.slane %v3464_v46, 4  ;;  %v3469_v35 = vrot.slane %v3467_v7, 5  ;;  %v3462_v33 = vsel %vm13367_vm6, %v3457_v52, %v3461_v10  ;;  %v11354_v46 = vld [vmem:[#allocation3 + $0x10] sm:$0xf]  ;;  %v12614_v7 = vld [vmem:[#allocation3 + $0x14] sm:$0xf0] }
 0x217   : > { %v3475_v37 = vrot.slane %v3473_v20, 5  ;;  %v4299_v57 = vrot.slane %v4297_v40, 5  ;;  %v3862_v21 = vshrl.u32 %v3845_v34, 16  ;;  %v4313_v23 = vrot.slane %v4311_v25, 5  ;;  %v14445_v52 = vld [vmem:[#allocation3 + $0x24] sm:$0x1] }
 0x218   : > { %v3690_v62 = vpack.c.b16 %v3686_v50, %v3685_v59  ;;  %v3470_v53 = vor.u32 %v3469_v35, %v3466_v29  ;;  %v3865_v28 = vshll.u32 %v3845_v34, 16  ;;  %v3876_v43 = vshrl.u32 %v3847_v3, 16  ;;  %v4281_v40 = vld [vmem:[#allocation3 + $0x20] sm:$0xf]  ;;  %v4283_v34 = vld [vmem:[#allocation3 + $0x28] sm:$0xf] }
 0x219   : > { %v12607_v9 = vld [vmem:[#allocation3 + $0x3c] sm:$0xf0]  ;;  %v4314_v16 = vor.u32 %v4313_v23, %v4310_v19  ;;  %v3879_v17 = vshll.u32 %v3847_v3, 16  ;;  %v3487_v63 = vunpack.c.l.b16 %v3462_v33  ;;  %v4300_v44 = vor.u32 %v4299_v57, %v4296_v60  ;;  %v14452_v60 = vld [vmem:[#allocation3 + $0x1c] sm:$0x1] }
 0x21a   : > { %v11307_v4 = vor.u32 %v12607_v9, %v11306_v38  ;;  %v3471_v1 = vrot.slane %v3470_v53, 4  ;;  %v4317_v42 = vshll.u32 %v14433_v32, 16  ;;  %v3864_v61 = vrot.slane %v3862_v21, 4  ;;  %v4053_v35 = vld [vmem:[#allocation3 + $0x20] sm:$0xe] }
 0x21b   : > { %11291 = vmatmul.msk.bf16.gmra.mxu1 %vm1181_vm1, %v3690_v62  ;;  %v3867_v2 = vrot.slane %v3865_v28, 5  ;;  %v3878_v5 = vrot.slane %v3876_v43, 4  ;;  %v3881_v6 = vrot.slane %v3879_v17, 5  ;;  %v4110_v56 = vunpack.c.l.b16 %v4077_v41  ;;  %v4052_v53 = vld [vmem:[#allocation3 + $0x18] sm:$0xe] }
 0x21c   : > { %v3476_v55 = vsel %vm13367_vm6, %v3471_v1, %v3475_v37  ;;  %v4303_v20 = vshll.u32 %v14440_v58, 16  ;;  %v4315_v18 = vrot.slane %v4314_v16, 4  ;;  %v3871_v45 = vshll.u32 %v14415_v48, 16  ;;  %v3849_v21 = vld [vmem:[#allocation3 + $0x18] sm:$0xf] }
 0x21d   : > { %11319 = vmatmul.msk.bf16.gmra.mxu3 %vm1181_vm1, %v11307_v4  ;;  %v3488_v47 = vunpack.c.l.b16 %v3476_v55  ;;  %v4118_v15 = vpack.c.b16 %v4111_v0, %v4110_v56  ;;  %v4301_v36 = vrot.slane %v4300_v44, 4  ;;  %v4319_v59 = vrot.slane %v4317_v42, 5  ;;  %v3851_v41 = vld [vmem:[#allocation3 + $0x20] sm:$0xf]  ;;  %v14465_v56 = vld [vmem:[#allocation3 + $0x24] sm:$0x1] }
 0x21e   : > { %v3868_v50 = vor.u32 %v3867_v2, %v3864_v61  ;;  %v3882_v29 = vor.u32 %v3881_v6, %v3878_v5  ;;  %v11355_v10 = vor.u32 %v12614_v7, %v11354_v46  ;;  %v3885_v24 = vshll.u32 %v14402_v22, 16 }
 0x21f   : > { %v3492_v8 = vpack.c.b16 %v3488_v47, %v3487_v63  ;;  %v4305_v51 = vrot.slane %v4303_v20, 5  ;;  %v4320_v48 = vsel %vm13367_vm6, %v4315_v18, %v4319_v59  ;;  %v4322_v62 = vshrl.u32 %v4281_v40, 16  ;;  %v14460_v47 = vld [vmem:[#allocation3 + $0x2c] sm:$0x1] }
 0x220   : > { %v4325_v38 = vshll.u32 %v4281_v40, 16  ;;  %v11335_v19 = vrot.slane %v4053_v35, 9  ;;  %v4088_v25 = vrot.slane %v14445_v52, 5  ;;  %v4336_v3 = vshrl.u32 %v4283_v34, 16 }
 0x221   : > { %v4339_v9 = vshll.u32 %v4283_v34, 16  ;;  %v4306_v33 = vsel %vm13367_vm6, %v4301_v36, %v4305_v51  ;;  %v3869_v22 = vrot.slane %v3868_v50, 4  ;;  %v3873_v37 = vrot.slane %v3871_v45, 5 }
 0x222   : > { %v3883_v57 = vrot.slane %v3882_v29, 4  ;;  %v4410_v4 = vunpack.c.l.b16 %v4320_v48  ;;  %v3887_v1 = vrot.slane %v3885_v24, 5  ;;  %v4338_v23 = vrot.slane %v4336_v3, 4  ;;  %v4287_v48 = vld [vmem:[#allocation3 + $0x38] sm:$0xf] }
 0x223   : > { %11243 = vmatmul.msk.bf16.gmra.mxu0 %vm1181_vm1, %v3492_v8  ;;  %v4341_v28 = vrot.slane %v4339_v9, 5  ;;  %v11334_v0 = vrot.slane %v4052_v53, 9  ;;  %v4084_v55 = vrot.slane %v14452_v60, 5  ;;  %v4324_v16 = vrot.slane %v4322_v62, 4  ;;  %v14474_v53 = vld [vmem:[#allocation3 + $0x34] sm:$0x1] }
 0x224   : > { %11348 = vmatmul.msk.bf16.vlgmr.msrb.gmra.mxu2 %vm1181_vm1, %v4118_v15  ;;  %v4327_v43 = vrot.slane %v4325_v38, 5  ;;  %v4409_v17 = vunpack.c.l.b16 %v4306_v33  ;;  %v4089_v63 = vsel %vm13529_vm13, %v11335_v19, %v4088_v25  ;;  %v3890_v44 = vshrl.u32 %v3849_v21, 16  ;;  %v4055_v19 = vld [vmem:[#allocation3 + $0x30] sm:$0xe] }
 0x225   : > { %v3893_v42 = vshll.u32 %v3849_v21, 16  ;;  %v3888_v61 = vsel %vm13367_vm6, %v3883_v57, %v3887_v1  ;;  %v4342_v2 = vor.u32 %v4341_v28, %v4338_v23  ;;  %v3904_v5 = vshrl.u32 %v3851_v41, 16  ;;  %v12615_v57 = vld [vmem:[#allocation3 + $0x24] sm:$0xf0]  ;;  %v12622_v23 = vld [vmem:[%s16805_s5 + $0x80] sm:$0xff] }
 0x226   : > { %v3907_v6 = vshll.u32 %v3851_v41, 16  ;;  %v4417_v8 = vpack.c.b16 %v4410_v4, %v4409_v17  ;;  %v3874_v46 = vsel %vm13367_vm6, %v3869_v22, %v3873_v37  ;;  %v4085_v7 = vsel %vm13529_vm13, %v11334_v0, %v4084_v55  ;;  %v4285_v22 = vld [vmem:[#allocation3 + $0x30] sm:$0xf]  ;;  %v11358_v37 = vld [vmem:[#allocation3 + $0x20] sm:$0xf]  ;;  %4585 = vmatpush.bf16.msra.mxu0 %v12622_v23 }
 0x227   : > { %v4328_v20 = vor.u32 %v4327_v43, %v4324_v16  ;;  %v4345_v18 = vshll.u32 %v14460_v47, 16  ;;  %v3978_v15 = vunpack.c.l.b16 %v3888_v61  ;;  %v4113_v45 = vunpack.c.l.b16 %v4089_v63  ;;  %v14487_v0 = vld [vmem:[#allocation3 + $0x2c] sm:$0x1]  ;;  %v4054_v17 = vld [vmem:[#allocation3 + $0x28] sm:$0xe] }
 0x228   : > { %v3892_v40 = vrot.slane %v3890_v44, 4  ;;  %v3895_v36 = vrot.slane %v3893_v42, 5  ;;  %v4331_v59 = vshll.u32 %v14465_v56, 16  ;;  %v4343_v50 = vrot.slane %v4342_v2, 4  ;;  %v3853_v2 = vld [vmem:[#allocation3 + $0x28] sm:$0xf] }
 0x229   : > { %v3906_v29 = vrot.slane %v3904_v5, 4  ;;  %v3909_v35 = vrot.slane %v3907_v6, 5  ;;  %v3977_v34 = vunpack.c.l.b16 %v3874_v46  ;;  %v4329_v24 = vrot.slane %v4328_v20, 4  ;;  %v3855_v5 = vld [vmem:[#allocation3 + $0x30] sm:$0xf] }
 0x22a   : > { %v4347_v51 = vrot.slane %v4345_v18, 5  ;;  %v3896_v38 = vor.u32 %v3895_v36, %v3892_v40  ;;  %v4333_v3 = vrot.slane %v4331_v59, 5  ;;  %v3899_v21 = vshll.u32 %v14452_v60, 16  ;;  %v717_v40 = vld [vmem:[#allocation3 + $0x4c] sm:$0x1] }
 0x22b   : > { %11376 = vmatmul.msk.bf16.vlgmr.msra.gmra.mxu1 %vm1181_vm1, %v11355_v10  ;;  %v4112_v10 = vunpack.c.l.b16 %v4085_v7  ;;  %v3985_v62 = vpack.c.b16 %v3978_v15, %v3977_v34  ;;  %v3910_v33 = vor.u32 %v3909_v35, %v3906_v29  ;;  %v4364_v4 = vshrl.u32 %v4287_v48, 16  ;;  %v14498_v34 = vld [vmem:[#allocation3 + $0x3c] sm:$0x1] }
 0x22c   : > { %v4348_v9 = vsel %vm13367_vm6, %v4343_v50, %v4347_v51  ;;  %v4367_v1 = vshll.u32 %v4287_v48, 16  ;;  %v4334_v28 = vsel %vm13367_vm6, %v4329_v24, %v4333_v3  ;;  %v3913_v41 = vshll.u32 %v14445_v52, 16  ;;  %v687_v52 = vld [vmem:[#allocation3 + $0x48] sm:$0x1] }
 0x22d   : > { %11388 = vmatmul.msk.bf16.vlgmr.msra.gmra.mxu3 %vm1181_vm1, %v4417_v8  ;;  %v4119_v25 = vpack.c.b16 %v4113_v45, %v4112_v10  ;;  %v11337_v55 = vrot.slane %v4055_v19, 9  ;;  %v4096_v16 = vrot.slane %v14474_v53, 5  ;;  %v4412_v43 = vunpack.c.l.b16 %v4348_v9 }
 0x22e   : > { %v3897_v60 = vrot.slane %v3896_v38, 4  ;;  %v4350_v63 = vshrl.u32 %v4285_v22, 16  ;;  %v4353_v44 = vshll.u32 %v4285_v22, 16  ;;  %v11359_v42 = vor.u32 %v12615_v57, %v11358_v37 }
 0x22f   : > { %v3911_v61 = vrot.slane %v3910_v33, 4  ;;  %v4411_v6 = vunpack.c.l.b16 %v4334_v28  ;;  %v3901_v8 = vrot.slane %v3899_v21, 5  ;;  %v4366_v46 = vrot.slane %v4364_v4, 4 }
 0x230   : > { %v4369_v7 = vrot.slane %v4367_v1, 5  ;;  %v3915_v20 = vrot.slane %v3913_v41, 5  ;;  %v11336_v18 = vrot.slane %v4054_v17, 9  ;;  %v4092_v15 = vrot.slane %v14487_v0, 5 }
 0x231   : > { %v4097_v45 = vsel %vm13529_vm13, %v11337_v55, %v4096_v16  ;;  %v4418_v36 = vpack.c.b16 %v4412_v43, %v4411_v6  ;;  %v3902_v59 = vsel %vm13367_vm6, %v3897_v60, %v3901_v8  ;;  %v4352_v50 = vrot.slane %v4350_v63, 4  ;;  %v12616_v55 = vld [vmem:[#allocation3 + $0x34] sm:$0xf0]  ;;  %v4289_v60 = vld [vmem:[#allocation3 + $0x40] sm:$0xf] }
 0x232   : > { %v4355_v29 = vrot.slane %v4353_v44, 5  ;;  %v3916_v35 = vsel %vm13367_vm6, %v3911_v61, %v3915_v20  ;;  %v3918_v10 = vshrl.u32 %v3853_v2, 16  ;;  %v3932_v24 = vshrl.u32 %v3855_v5, 16  ;;  %v11362_v63 = vld [vmem:[#allocation3 + $0x30] sm:$0xf] }
 0x233   : > { %11328 = vmatmul.msk.bf16.vlgmr.msrb.gmra.mxu0 %vm1181_vm1, %v3985_v62  ;;  %v3935_v51 = vshll.u32 %v3855_v5, 16  ;;  %v4370_v48 = vor.u32 %v4369_v7, %v4366_v46  ;;  %v3921_v62 = vshll.u32 %v3853_v2, 16  ;;  %v688_v38 = vsel %vm13162_vm8, 0, %v687_v52  ;;  %v14512_v61 = vld [vmem:[#allocation3 + $0x3c] sm:$0x1] }
 0x234   : > { %11349 = vmatmul.msk.bf16.gmra.mxu2 %vm1181_vm1, %v4119_v25  ;;  %v718_v19 = vsel %vm13205_vm12, 0, %v717_v40  ;;  %v14504_v25 = vld [vmem:[#allocation3 + $0x34] sm:$0x1]  ;;  %689 = vst [vmem:[#allocation3 + $0x48] sm:$0x1] %v688_v38  ;;  %v3980_v3 = vunpack.c.l.b16 %v3916_v35  ;;  %v4093_v9 = vsel %vm13529_vm13, %v11336_v18, %v4092_v15  ;;  %v4356_v33 = vor.u32 %v4355_v29, %v4352_v50 }
 0x235   : > { %v4373_v22 = vshll.u32 %v14498_v34, 16  ;;  %719 = vst [vmem:[#allocation3 + $0x4c] sm:$0x1] %v718_v19  ;;  %v3979_v37 = vunpack.c.l.b16 %v3902_v59  ;;  %v4115_v57 = vunpack.c.l.b16 %v4097_v45  ;;  %v3934_v12 = vrot.slane %v3932_v24, 4  ;;  %v4056_v2 = vld [vmem:[#allocation3 + $0x38] sm:$0xe] }
 0x236   : > { %v3937_v21 = vrot.slane %v3935_v51, 5  ;;  %v4359_v26 = vshll.u32 %v14504_v25, 16  ;;  %v4371_v4 = vrot.slane %v4370_v48, 4  ;;  %v3920_v1 = vrot.slane %v3918_v10, 4  ;;  %v14517_v46 = vld [vmem:[#allocation3 + $0x44] sm:$0x1] }
 0x237   : > { %v3923_v23 = vrot.slane %v3921_v62, 5  ;;  %v4114_v28 = vunpack.c.l.b16 %v4093_v9  ;;  %v3986_v41 = vpack.c.b16 %v3980_v3, %v3979_v37  ;;  %v4357_v16 = vrot.slane %v4356_v33, 4  ;;  %v4057_v52 = vld [vmem:[#allocation3 + $0x40] sm:$0xe]  ;;  %v11446_v50 = vld [vmem:[%s16813_s13 + $0x10] sm:$0xf] }
 0x238   : > { %v4375_v43 = vrot.slane %v4373_v22, 5  ;;  %v3938_v44 = vor.u32 %v3937_v21, %v3934_v12  ;;  %v4361_v5 = vrot.slane %v4359_v26, 5  ;;  %v4378_v20 = vshrl.u32 %v4289_v60, 16  ;;  %v12593_v29 = vld [vmem:[%s16813_s13 + $0x14] sm:$0xf0] }
 0x239   : > { %v4120_v17 = vpack.c.b16 %v4115_v57, %v4114_v28  ;;  %v3924_v8 = vor.u32 %v3923_v23, %v3920_v1  ;;  %v4381_v18 = vshll.u32 %v4289_v60, 16  ;;  %v11363_v45 = vor.u32 %v12616_v55, %v11362_v63  ;;  %v3857_v51 = vld [vmem:[#allocation3 + $0x38] sm:$0xf]  ;;  %v3859_v48 = vld [vmem:[#allocation3 + $0x40] sm:$0xf] }
 0x23a   : > { %v4376_v6 = vsel %vm13367_vm6, %v4371_v4, %v4375_v43  ;;  %v4362_v40 = vsel %vm13367_vm6, %v4357_v16, %v4361_v5  ;;  %v11338_v59 = vrot.slane %v4056_v2, 9  ;;  %v3939_v35 = vrot.slane %v3938_v44, 4  ;;  %v11438_v9 = vld [vmem:[%s16813_s13] sm:$0xf]  ;;  %v12591_v12 = vld [vmem:[%s16813_s13 + $0x4] sm:$0xf0] }
 0x23b   : > { %11377 = vmatmul.msk.bf16.gmra.mxu1 %vm1181_vm1, %v11359_v42  ;;  %v3941_v42 = vshll.u32 %v14474_v53, 16  ;;  %v4291_v7 = vld [vmem:[#allocation3 + $0x48] sm:$0xf]  ;;  %v4100_v24 = vrot.slane %v14512_v61, 5  ;;  %v11447_v62 = vor.u32 %v12593_v29, %v11446_v50  ;;  %v4414_v38 = vunpack.c.l.b16 %v4376_v6  ;;  %v14546_v60 = vld [vmem:[#allocation3 + $0x44] sm:$0x1] }
 0x23c   : > { %v4392_v15 = vshrl.u32 %v4291_v7, 16  ;;  %v4395_v53 = vshll.u32 %v4291_v7, 16  ;;  %v3925_v19 = vrot.slane %v3924_v8, 4  ;;  %v11339_v3 = vrot.slane %v4057_v52, 9 }
 0x23d   : > { %11389 = vmatmul.msk.bf16.gmra.mxu3 %vm1181_vm1, %v4418_v36  ;;  %v3927_v36 = vshll.u32 %v14487_v0, 16  ;;  %v3943_v10 = vrot.slane %v3941_v42, 5  ;;  %v4104_v0 = vrot.slane %v14517_v46, 5  ;;  %v4380_v33 = vrot.slane %v4378_v20, 4 }
 0x23e   : > { %v4383_v22 = vrot.slane %v4381_v18, 5  ;;  %v4394_v37 = vrot.slane %v4392_v15, 4  ;;  %v4397_v57 = vrot.slane %v4395_v53, 5  ;;  %4978 = vmatpush.bf16.msrb.mxu3 %v11447_v62  ;;  %v4413_v21 = vunpack.c.l.b16 %v4362_v40 }
 0x23f   : > { %v3929_v26 = vrot.slane %v3927_v36, 5  ;;  %v11439_v4 = vor.u32 %v12591_v12, %v11438_v9  ;;  %v3944_v1 = vsel %vm13367_vm6, %v3939_v35, %v3943_v10  ;;  %v4101_v23 = vsel %vm13529_vm13, %v11338_v59, %v4100_v24 }
 0x240   : > { %v3960_v28 = vshrl.u32 %v3859_v48, 16  ;;  %v4419_v55 = vpack.c.b16 %v4414_v38, %v4413_v21  ;;  %v4105_v43 = vsel %vm13529_vm13, %v11339_v3, %v4104_v0  ;;  %v3946_v63 = vshrl.u32 %v3857_v51, 16  ;;  %v11366_v38 = vld [vmem:[#allocation3 + $0x40] sm:$0xf] }
 0x241   : > { %v3930_v16 = vsel %vm13367_vm6, %v3925_v19, %v3929_v26  ;;  %v4384_v44 = vor.u32 %v4383_v22, %v4380_v33  ;;  %v4398_v42 = vor.u32 %v4397_v57, %v4394_v37  ;;  %v3949_v5 = vshll.u32 %v3857_v51, 16  ;;  %v12617_v19 = vld [vmem:[#allocation3 + $0x44] sm:$0xf0] }
 0x242   : > { %4979 = vmatpush.bf16.msrb.mxu3 %v11439_v4  ;;  %v3982_v6 = vunpack.c.l.b16 %v3944_v1  ;;  %v4117_v8 = vunpack.c.l.b16 %v4105_v43  ;;  %v4387_v7 = vshll.u32 %v14546_v60, 16  ;;  %v3962_v52 = vrot.slane %v3960_v28, 4  ;;  %v4482_v28 = vld [vmem:[#allocation3 + $0x10] sm:$0xe] }
 0x243   : > { %11329 = vmatmul.msk.bf16.gmra.mxu0 %vm1181_vm1, %v3986_v41  ;;  %v3963_v41 = vshll.u32 %v3859_v48, 16  ;;  %v3981_v18 = vunpack.c.l.b16 %v3930_v16  ;;  %v4116_v15 = vunpack.c.l.b16 %v4101_v23  ;;  %v3948_v53 = vrot.slane %v3946_v63, 4  ;;  %v4483_v23 = vld [vmem:[#allocation3 + $0x18] sm:$0xe] }
 0x244   : > { %11350 = vmatmul.msk.bf16.gmra.mxu2 %vm1181_vm1, %v4120_v17  ;;  %v14548_v17 = vld [vmem:[#allocation3 + $0x4c] sm:$0x1]  ;;  %v4399_v40 = vrot.slane %v4398_v42, 4  ;;  %v3951_v59 = vrot.slane %v3949_v5, 5  ;;  %v4389_v35 = vrot.slane %v4387_v7, 5  ;;  %v3969_v62 = vshll.u32 %v14517_v46, 16 }
 0x245   : > { %v4401_v2 = vshll.u32 %v14548_v17, 16  ;;  %v3965_v20 = vrot.slane %v3963_v41, 5  ;;  %v3987_v50 = vpack.c.b16 %v3982_v6, %v3981_v18  ;;  %v4121_v29 = vpack.c.b16 %v4117_v8, %v4116_v15  ;;  %v4484_v8 = vld [vmem:[#allocation3 + $0x20] sm:$0xe] }
 0x246   : > { %v3952_v48 = vor.u32 %v3951_v59, %v3948_v53  ;;  %v3955_v3 = vshll.u32 %v14512_v61, 16  ;;  %v11367_v22 = vor.u32 %v12617_v19, %v11366_v38  ;;  %v3971_v57 = vrot.slane %v3969_v62, 5 }
 0x247   : > { %v4403_v36 = vrot.slane %v4401_v2, 5  ;;  %v3966_v10 = vor.u32 %v3965_v20, %v3962_v52  ;;  %v11393_v41 = vrot.slane %v4483_v23, 9  ;;  %v11392_v16 = vrot.slane %v4482_v28, 9 }
 0x248   : > { %v3953_v37 = vrot.slane %v3952_v48, 4  ;;  %v3957_v12 = vrot.slane %v3955_v3, 5  ;;  %v4508_v43 = vrot.slane %v14440_v58, 5  ;;  %v4520_v58 = vrot.slane %v14460_v47, 5 }
 0x249   : > { %v4404_v51 = vsel %vm13367_vm6, %v4399_v40, %v4403_v36  ;;  %v3967_v0 = vrot.slane %v3966_v10, 4  ;;  %v4931_v52 = vunpack.c.l.b16 %v14297_v27  ;;  %v11394_v18 = vrot.slane %v4484_v8, 9 }
 0x24a   : > { %v4416_v33 = vunpack.c.l.b16 %v4404_v51  ;;  %v3958_v46 = vsel %vm13367_vm6, %v3953_v37, %v3957_v12  ;;  %v4516_v15 = vrot.slane %v14465_v56, 5  ;;  %v4930_v53 = vunpack.c.l.b16 %v14274_v54  ;;  %v4487_v56 = vld [vmem:[#allocation3 + $0x38] sm:$0xe]  ;;  %v4486_v54 = vld [vmem:[#allocation3 + $0x30] sm:$0xe] }
 0x24b   : > { %11378 = vmatmul.msk.bf16.gmra.mxu1 %vm1181_vm1, %v11363_v45  ;;  %v4385_v45 = vrot.slane %v4384_v44, 4  ;;  %v3972_v21 = vsel %vm13367_vm6, %v3967_v0, %v3971_v57  ;;  %v3983_v61 = vunpack.c.l.b16 %v3958_v46  ;;  %v4509_v44 = vsel %vm13529_vm13, %v11392_v16, %v4508_v43  ;;  %v12590_v46 = vld [vmem:[%s16813_s13 + $0x4] sm:$0xf] }
 0x24c   : > { %v3984_v4 = vunpack.c.l.b16 %v3972_v21  ;;  %v4542_v2 = vunpack.c.l.b16 %v4509_v44  ;;  %v14587_v40 = vpack.c.b16 %v4931_v52, %v4930_v53  ;;  %v4517_v36 = vsel %vm13529_vm13, %v11394_v18, %v4516_v15  ;;  %v4488_v21 = vld [vmem:[#allocation3 + $0x40] sm:$0xe] }
 0x24d   : > { %11390 = vmatmul.msk.bf16.gmra.mxu3 %vm1181_vm1, %v4419_v55  ;;  %v4390_v24 = vsel %vm13367_vm6, %v4385_v45, %v4389_v35  ;;  %v4512_v55 = vrot.slane %v14433_v32, 5  ;;  %v4485_v32 = vld [vmem:[#allocation3 + $0x28] sm:$0xe]  ;;  %v4544_v27 = vunpack.c.l.b16 %v4517_v36  ;;  %v4528_v35 = vrot.slane %v14498_v34, 5 }
 0x24e   : > { %v4415_v9 = vunpack.c.l.b16 %v4390_v24  ;;  %v3988_v1 = vpack.c.b16 %v3984_v4, %v3983_v61  ;;  %v11395_v7 = vrot.slane %v4485_v32, 9  ;;  %v4933_v24 = vunpack.c.l.b16 %v14344_v49  ;;  %v11440_v4 = vld [vmem:[%s16813_s13 + $0x8] sm:$0xf0] }
 0x24f   : > { %v4513_v63 = vsel %vm13529_vm13, %v11393_v41, %v4512_v55  ;;  %v11396_v48 = vrot.slane %v4486_v54, 9  ;;  %v4524_v62 = vrot.slane %v14504_v25, 5  ;;  %v4932_v38 = vunpack.c.l.b16 %v14322_v30  ;;  %v12592_v25 = vld [vmem:[%s16813_s13 + $0x14] sm:$0xf]  ;;  %v11448_v30 = vld [vmem:[%s16813_s13 + $0x18] sm:$0xf0] }
 0x250   : > { %v4420_v26 = vpack.c.b16 %v4416_v33, %v4415_v9  ;;  %v4543_v42 = vunpack.c.l.b16 %v4513_v63  ;;  %v4521_v45 = vsel %vm13529_vm13, %v11395_v7, %v4520_v58  ;;  %v11451_v9 = vor.u32 %v12592_v25, %v11448_v30 }
 0x251   : > { %v4545_v47 = vunpack.c.l.b16 %v4521_v45  ;;  %v14608_v0 = vpack.c.b16 %v4933_v24, %v4932_v38  ;;  %v4525_v34 = vsel %vm13529_vm13, %v11396_v48, %v4524_v62  ;;  %v11443_v61 = vor.u32 %v12590_v46, %v11440_v4  ;;  %v11422_v4 = vld [vmem:[%s16813_s13 + $0x30] sm:$0xf] }
 0x252   : > { %v4550_v6 = vpack.c.b16 %v4543_v42, %v4542_v2  ;;  %v4546_v33 = vunpack.c.l.b16 %v4525_v34  ;;  %5007 = vmatpush.bf16.msrb.mxu0 %v11451_v9  ;;  %v11398_v23 = vrot.slane %v4488_v21, 9  ;;  %v4532_v28 = vrot.slane %v14546_v60, 5 }
 0x253   : > { %11330 = vmatmul.msk.bf16.gmra.mxu0 %vm1181_vm1, %v3987_v50  ;;  %v4551_v50 = vpack.c.b16 %v4545_v47, %v4544_v27  ;;  %v4536_v55 = vrot.slane %v14548_v17, 5  ;;  %v4935_v16 = vunpack.c.l.b16 %v14393_v14  ;;  %v4934_v63 = vunpack.c.l.b16 %v14363_v31 }
 0x254   : > { %11351 = vmatmul.msk.bf16.gmra.mxu2 %vm1181_vm1, %v4121_v29  ;;  %v11397_v29 = vrot.slane %v4487_v56, 9  ;;  %v4533_v42 = vsel %vm13529_vm13, %v11398_v23, %v4532_v28  ;;  %vm4759_vm8 = vcmask 516352   ;;  %vm6965_vm15 = vcmask 785408  }
 0x255   : > { %v4939_v32 = vpack.c.b16 %v4935_v16, %v4934_v63  ;;  %v4548_v60 = vunpack.c.l.b16 %v4533_v42  ;;  %v11414_v16 = vld [vmem:[%s16813_s13 + $0x20] sm:$0xf]  ;;  %v12625_v63 = vld [vmem:[%s16813_s13 + $0x24] sm:$0xf0]  ;;  %vm14832_vm12 = vmand %vm4759_vm8, %vm584_vm3  ;;  %vm8463_vm2 = vcmask 1044224  }
 0x256   : > { %v4529_v19 = vsel %vm13529_vm13, %v11397_v29, %v4528_v35  ;;  %5008 = vmatpush.bf16.msrb.mxu0 %v11443_v61  ;;  %vm16036_vm8 = vmand %vm8463_vm2, %vm620_vm7  ;;  %vm8467_vm7 = vcmask 1041152  }
 0x257   : > { %v4547_v49 = vunpack.c.l.b16 %v4529_v19 }
 0x259   : > { %v4552_v12 = vpack.c.b16 %v4547_v49, %v4546_v33 }
 0x25b   : > { %11379 = vmatmul.msk.bf16.gmra.mxu1 %vm1181_vm1, %v11367_v22 }
 0x25d   : > { %11391 = vmatmul.msk.bf16.gmra.mxu3 %vm1181_vm1, %v4420_v26  ;;  %v4489_v26 = vld [vmem:[#allocation3 + $0x48] sm:$0xe] }
 0x25e   : > { %v11399_v41 = vrot.slane %v4489_v26, 9 }
 0x260   : > { %v4537_v2 = vsel %vm13529_vm13, %v11399_v41, %v4536_v55 }
 0x261   : > { %v4549_v17 = vunpack.c.l.b16 %v4537_v2  ;;  %v11415_v2 = vor.u32 %v12625_v63, %v11414_v16 }
 0x263   : > { %11331 = vmatmul.msk.bf16.gmra.mxu0 %vm1181_vm1, %v3988_v1  ;;  %v4553_v7 = vpack.c.b16 %v4549_v17, %v4548_v60 }
 0x267   : > { %v14597_v10 = vpop.f32.mrf.mxu2  ;;  %v14606_v3 = vpop.f32.mrf.mxu1 }
 0x26d   : > { %11452 = vmatmul.msk.bf16.vlgmr.msrb.gmra.mxu3 %vm1181_vm1, %v14258_v39 }
 0x26f   : > { %v14620_v22 = vpop.f32.mrf.mxu3  ;;  %v3601_v57 = vpop.f32.mrf.mxu2 }
 0x270   : > { %v14576_v5 = vpop.f32.mrf.mxu0  ;;  %v14631_v1 = vpop.f32.mrf.mxu1 }
 0x273   : > { %11408 = vmatmul.msk.bf16.vlgmr.msra.gmra.mxu0 %vm1181_vm1, %v4550_v6 }
 0x277   : > { %v3819_v44 = vpop.f32.mrf.mxu3  ;;  %v3604_v6 = vpop.f32.mrf.mxu2 }
 0x278   : > { %v14581_v20 = vpop.f32.mrf.mxu0  ;;  %v14644_v8 = vpop.f32.mrf.mxu1 }
 0x279   : > { %v3602_v26 = vadd.f32 %v3601_v57, %v14581_v20  ;;  %v11424_v20 = vld [vmem:[%s16813_s13 + $0x38] sm:$0xf0] }
 0x27d   : > { %11453 = vmatmul.msk.bf16.gmra.mxu3 %vm1181_vm1, %v14587_v40 }
 0x27f   : > { %v14649_v31 = vpop.f32.mrf.mxu3  ;;  %v14651_v58 = vpop.f32.mrf.mxu2 }
 0x280   : > { %v14593_v59 = vpop.f32.mrf.mxu0  ;;  %v14655_v18 = vpop.f32.mrf.mxu1 }
 0x281   : > { %v3605_v55 = vadd.f32 %v3604_v6, %v14593_v59 }
 0x283   : > { %11409 = vmatmul.msk.bf16.gmra.mxu0 %vm1181_vm1, %v4551_v50  ;;  %v3746_v17 = vadd.f32 %v14644_v8, %v3605_v55 }
 0x287   : > { %v14657_v15 = vpop.f32.mrf.mxu3  ;;  %v14659_v53 = vpop.f32.mrf.mxu2 }
 0x288   : > { %v14600_v51 = vpop.f32.mrf.mxu0  ;;  %v14661_v36 = vpop.f32.mrf.mxu1 }
 0x28d   : > { %11454 = vmatmul.msk.bf16.gmra.mxu3 %vm1181_vm1, %v14608_v0 }
 0x28f   : > { %v14667_v50 = vpop.f32.mrf.mxu2 }
 0x290   : > { %v14622_v37 = vpop.f32.mrf.mxu0  ;;  %v14665_v47 = vpop.f32.mrf.mxu3 }
 0x291   : > { %v14669_v56 = vpop.f32.mrf.mxu1 }
 0x293   : > { %11410 = vmatmul.msk.bf16.gmra.mxu0 %vm1181_vm1, %v4552_v12 }
 0x297   : > { %v14673_v35 = vpop.f32.mrf.mxu2 }
 0x298   : > { %v14636_v43 = vpop.f32.mrf.mxu0  ;;  %v14671_v29 = vpop.f32.mrf.mxu3 }
 0x299   : > { %v14677_v24 = vpop.f32.mrf.mxu1 }
 0x29d   : > { %11455 = vmatmul.msk.bf16.gmra.mxu3 %vm1181_vm1, %v4939_v32 }
 0x29f   : > { %v14683_v62 = vpop.f32.mrf.mxu2 }
 0x2a0   : > { %v14646_v14 = vpop.f32.mrf.mxu0 }
 0x2a1   : > { %v14687_v19 = vpop.f32.mrf.mxu1 }
 0x2a3   : > { %11411 = vmatmul.msk.bf16.gmra.mxu0 %vm1181_vm1, %v4553_v7 }
 0x2a7   : > { %v4155_v49 = vpop.f32.mrf.mxu2 }
 0x2a8   : > { %v14653_v52 = vpop.f32.mrf.mxu0 }
 0x2a9   : > { %v4249_v30 = vpop.f32.mrf.mxu1 }
 0x2af   : > { %v4157_v46 = vpop.f32.mrf.mxu2 }
 0x2b0   : > { %v4022_v45 = vpop.f32.mrf.mxu0 }
 0x2b1   : > { %v4251_v57 = vpop.f32.mrf.mxu1 }
 0x2b3   : > { %11456 = vmatmul.msk.bf16.vlgmr.msrb.gmra.mxu0 %vm1181_vm1, %v14258_v39  ;;  %v14681_v39 = vpop.f32.mrf.mxu3 }
 0x2b7   : > { %v4160_v6 = vpop.f32.mrf.mxu2 }
 0x2b8   : > { %v4024_v27 = vpop.f32.mrf.mxu0 }
 0x2bb   : > { %v14691_v34 = vpop.f32.mrf.mxu3 }
 0x2c0   : > { %v4027_v54 = vpop.f32.mrf.mxu0 }
 0x2c3   : > { %11457 = vmatmul.msk.bf16.gmra.mxu0 %vm1181_vm1, %v14587_v40  ;;  %v3600_v40 = vadd.f32 %v14597_v10, %v14576_v5  ;;  %v4454_v33 = vpop.f32.mrf.mxu3  ;;  %v12627_v5 = vld [vmem:[%s16813_s13 + $0x34] sm:$0xf0]  ;;  %v12626_v10 = vld [vmem:[%s16813_s13 + $0x34] sm:$0xf] }
 0x2c4   : > { %v11427_v61 = vor.u32 %v12626_v10, %v11424_v20 }
 0x2c5   : > { %v3744_v9 = vadd.f32 %v14606_v3, %v3600_v40  ;;  %v11423_v3 = vor.u32 %v12627_v5, %v11422_v4  ;;  %v14735_v40 = vld [vmem:[%s16806_s6] ss:$0 sm:$0xff]  ;;  %v4162_v4 = vpop.f32.mrf.mxu2 }
 0x2c6   : > { %4897 = vmatpush.bf16.msrb.mxu1 %v11427_v61 }
 0x2c7   : > { %v3837_v21 = vadd.f32 %v14620_v22, %v3744_v9  ;;  %v3745_v22 = vadd.f32 %v14631_v1, %v3602_v26  ;;  %4868 = vmatpush.bf16.msra.mxu2 %v11423_v3  ;;  %v12624_v1 = vld [vmem:[%s16813_s13 + $0x24] sm:$0xf]  ;;  %v3607_v9 = vadd.f32 %v14651_v58, %v14600_v51  ;;  %v3610_v51 = vadd.f32 %v14659_v53, %v14622_v37 }
 0x2c8   : > { %v14679_v48 = vpop.f32.mrf.mxu0 }
 0x2c9   : > { %v3838_v41 = vadd.f32 %v3819_v44, %v3745_v22  ;;  %v11416_v44 = vld [vmem:[%s16813_s13 + $0x28] sm:$0xf0]  ;;  %v3748_v16 = vadd.f32 %v14661_v36, %v3610_v51 }
 0x2ca   : > { %v11419_v60 = vor.u32 %v12624_v1, %v11416_v44 }
 0x2cb   : > { %v4456_v42 = vpop.f32.mrf.mxu3  ;;  %v4043_v59 = vadd.f32 %v4024_v27, %v3838_v41  ;;  %4869 = vmatpush.bf16.msra.mxu2 %v11415_v2  ;;  %v3839_v27 = vadd.f32 %v14649_v31, %v3746_v17  ;;  %v3841_v53 = vadd.f32 %v14665_v47, %v3748_v16 }
 0x2cc   : > { %4898 = vmatpush.bf16.msrb.mxu1 %v11419_v60 }
 0x2cd   : > { %v4165_v44 = vpop.f32.mrf.mxu2 }
 0x2d0   : > { %v14685_v38 = vpop.f32.mrf.mxu0 }
 0x2d3   : > { %11458 = vmatmul.msk.bf16.gmra.mxu0 %vm1181_vm1, %v14608_v0  ;;  %v4042_v0 = vadd.f32 %v4022_v45, %v3837_v21  ;;  %v4176_v45 = vadd.f32 %v4157_v46, %v4043_v59  ;;  %v4459_v46 = vpop.f32.mrf.mxu3 }
 0x2d5   : > { %v4175_v23 = vadd.f32 %v4155_v49, %v4042_v0  ;;  %v4254_v49 = vpop.f32.mrf.mxu1  ;;  %v4270_v26 = vadd.f32 %v4251_v57, %v4176_v45  ;;  %v4044_v0 = vadd.f32 %v4027_v54, %v3839_v27 }
 0x2d7   : > { %v4475_v10 = vadd.f32 %v4456_v42, %v4270_v26  ;;  %v4177_v3 = vadd.f32 %v4160_v6, %v4044_v0 }
 0x2d8   : > { %v14693_v25 = vpop.f32.mrf.mxu0 }
 0x2dd   : > { %v4256_v31 = vpop.f32.mrf.mxu1 }
 0x2e0   : > { %v14698_v12 = vpop.f32.mrf.mxu0 }
 0x2e3   : > { %11459 = vmatmul.msk.bf16.gmra.mxu0 %vm1181_vm1, %v4939_v32  ;;  %v4269_v32 = vadd.f32 %v4249_v30, %v4175_v23  ;;  %v4271_v23 = vadd.f32 %v4254_v49, %v4177_v3 }
 0x2e5   : > { %v4474_v7 = vadd.f32 %v4454_v33, %v4269_v32  ;;  %v3747_v33 = vadd.f32 %v14655_v18, %v3607_v9  ;;  %v4476_v2 = vadd.f32 %v4459_v46, %v4271_v23  ;;  %v4259_v45 = vpop.f32.mrf.mxu1 }
 0x2e7   : > { %v3840_v22 = vadd.f32 %v14657_v15, %v3747_v33  ;;  %v4461_v15 = vpop.f32.mrf.mxu3 }
 0x2e8   : > { %v14716_v28 = vpop.f32.mrf.mxu0 }
 0x2e9   : > { %v4045_v54 = vadd.f32 %v14679_v48, %v3840_v22  ;;  %v3612_v48 = vadd.f32 %v14667_v50, %v14636_v43 }
 0x2eb   : > { %v4178_v42 = vadd.f32 %v4162_v4, %v4045_v54 }
 0x2ed   : > { %v4272_v17 = vadd.f32 %v4256_v31, %v4178_v42 }
 0x2ef   : > { %v4477_v0 = vadd.f32 %v4461_v15, %v4272_v17  ;;  %v4464_v46 = vpop.f32.mrf.mxu3 }
 0x2f0   : > { %v4587_v21 = vpop.f32.mrf.mxu0 }
 0x2f1   : > { %v4607_v30 = vadd.f32 %v4587_v21, %v4474_v7  ;;  %v4046_v7 = vadd.f32 %v14685_v38, %v3841_v53 }
 0x2f3   : > { %v4619_v8 = vadd.f32 %v14735_v40, %v4607_v30  ;;  %v3749_v30 = vadd.f32 %v14669_v56, %v3612_v48  ;;  %v3615_v56 = vadd.f32 %v14673_v35, %v14646_v14 }
 0x2f5   : > { %v4627_v5 = vmax.f32 %v4619_v8, 0.0  ;;  %v4179_v8 = vadd.f32 %v4165_v44, %v4046_v7  ;;  %v3842_v38 = vadd.f32 %v14671_v29, %v3749_v30  ;;  %v4261_v29 = vpop.f32.mrf.mxu1 }
 0x2f7   : > { %v4635_v20 = vpack.c.bf16 %v4627_v5, %v4627_v5  ;;  %v4167_v5 = vpop.f32.mrf.mxu2  ;;  %v4273_v22 = vadd.f32 %v4259_v45, %v4179_v8  ;;  %v4466_v15 = vpop.f32.mrf.mxu3 }
 0x2f8   : > { %v4589_v58 = vpop.f32.mrf.mxu0 }
 0x2f9   : > { %v4608_v61 = vadd.f32 %v4589_v58, %v4475_v10  ;;  %v4644_v57 = vshrl.u32 %v4635_v20, 16  ;;  %v4647_v55 = vshll.u32 %v4635_v20, 16  ;;  %v4818_v59 = vunpack.c.l.b16 %v4635_v20 }
 0x2fa   : > { %v4047_v20 = vadd.f32 %v14693_v25, %v3842_v38  ;;  %v4478_v23 = vadd.f32 %v4464_v46, %v4273_v22  ;;  %v3617_v25 = vadd.f32 %v14683_v62, %v14653_v52 }
 0x2fb   : > { %v4620_v18 = vadd.f32 %v14735_v40, %v4608_v61  ;;  %v4646_v41 = vrot.slane %v4644_v57, 7  ;;  %v3750_v61 = vadd.f32 %v14677_v24, %v3615_v56 }
 0x2fc   : > { %v4180_v35 = vadd.f32 %v4167_v5, %v4047_v20 }
 0x2fd   : > { %v4628_v63 = vmax.f32 %v4620_v18, 0.0  ;;  %v4649_v1 = vor.u32 %v4647_v55, %v4646_v41  ;;  %v4650_v43 = vrot.slane %v4646_v41, 4  ;;  %v3843_v41 = vadd.f32 %v14681_v39, %v3750_v61 }
 0x2fe   : > { %v4274_v42 = vadd.f32 %v4261_v29, %v4180_v35  ;;  %v12639_v35 = vld [vmem:[%s16807_s7 + $0x38] sm:$0xff] }
 0x2ff   : > { %v4636_v37 = vpack.c.bf16 %v4628_v63, %v4628_v63  ;;  %4707 = vrot.lane.b32.xlu0 %v4649_v1, %s12967_s26  ;;  %v4170_v44 = vpop.f32.mrf.mxu2  ;;  %5227 = vmatpush.bf16.msrb.mxu2 %v12639_v35 }
 0x300   : > { %v4592_v32 = vpop.f32.mrf.mxu0 }
 0x301   : > { %v4819_v6 = vunpack.c.l.b16 %v4636_v37  ;;  %v4609_v60 = vadd.f32 %v4592_v32, %v4476_v2  ;;  %v4652_v36 = vshrl.u32 %v4636_v37, 16  ;;  %v4655_v27 = vshll.u32 %v4636_v37, 16 }
 0x302   : > { %v4048_v2 = vadd.f32 %v14698_v12, %v3843_v41  ;;  %v3751_v32 = vadd.f32 %v14687_v19, %v3617_v25 }
 0x303   : > { %v4826_v49 = vpack.c.b16 %v4819_v6, %v4818_v59  ;;  %v4621_v9 = vadd.f32 %v14735_v40, %v4609_v60  ;;  %v4654_v21 = vrot.slane %v4652_v36, 7  ;;  %v4264_v6 = vpop.f32.mrf.mxu1  ;;  %v4479_v60 = vadd.f32 %v4466_v15, %v4274_v42 }
 0x304   : > { %v4181_v36 = vadd.f32 %v4170_v44, %v4048_v2  ;;  %v3844_v12 = vadd.f32 %v14691_v34, %v3751_v32  ;;  %v12637_v32 = vld [vmem:[%s16807_s7 + $0x28] sm:$0xff] }
 0x305   : > { %v4629_v47 = vmax.f32 %v4621_v9, 0.0  ;;  %11428 = vmatmul.msk.bf16.vlgmr.msra.gmra.mxu2 %vm1181_vm1, %v4826_v49  ;;  %11432 = vmatmul.msk.bf16.vlgmr.msrb.gmra.mxu1 %vm1181_vm1, %v4826_v49  ;;  %v4658_v50 = vrot.slane %v4654_v21, 4  ;;  %v4657_v26 = vor.u32 %v4655_v27, %v4654_v21 }
 0x306   : > { %v4049_v49 = vadd.f32 %v14716_v28, %v3844_v12  ;;  %v4275_v9 = vadd.f32 %v4264_v6, %v4181_v36  ;;  %v12633_v6 = vld [vmem:[%s16807_s7 + $0x8] sm:$0xff]  ;;  %v12650_v36 = vld [vmem:[%s16807_s7 + $0x70] sm:$0xff]  ;;  %v12636_v12 = vld [vmem:[%s16807_s7 + $0x20] sm:$0xff] }
 0x307   : > { %v4637_v33 = vpack.c.bf16 %v4629_v47, %v4629_v47  ;;  %4709 = vrot.lane.b32.xlu0 %v4650_v43, %s12967_s26  ;;  %4713 = vrot.lane.b32.xlu2 %v4658_v50, %s12967_s26  ;;  %v4469_v47 = vpop.f32.mrf.mxu3  ;;  %v4172_v43 = vpop.f32.mrf.mxu2 }
 0x308   : > { %4711 = vrot.lane.b32.xlu1 %v4657_v26, %s12967_s26  ;;  %v4594_v4 = vpop.f32.mrf.mxu0  ;;  %v4182_v8 = vadd.f32 %v4172_v43, %v4049_v49  ;;  %v4767_v49 = vld [vmem:[#allocation3 + $0x14] sm:$0x1]  ;;  %v4773_v43 = vld [vmem:[#allocation3 + $0x1c] sm:$0x1] }
 0x309   : > { %v4610_v10 = vadd.f32 %v4594_v4, %v4477_v0  ;;  %v4660_v3 = vshrl.u32 %v4637_v33, 16  ;;  %v4663_v31 = vshll.u32 %v4637_v33, 16  ;;  %v4820_v16 = vunpack.c.l.b16 %v4637_v33 }
 0x30a   : > { %v4480_v33 = vadd.f32 %v4469_v47, %v4275_v9  ;;  %v12640_v47 = vld [vmem:[%s16807_s7 + $0x40] sm:$0xff] }
 0x30b   : > { %v4622_v51 = vadd.f32 %v14735_v40, %v4610_v10  ;;  %v4662_v58 = vrot.slane %v4660_v3, 7  ;;  %v4266_v56 = vpop.f32.mrf.mxu1 }
 0x30c   : > { %v4276_v10 = vadd.f32 %v4266_v56, %v4182_v8  ;;  %v12656_v8 = vld [vmem:[%s16807_s7 + $0xa0] sm:$0xff] }
 0x30d   : > { %v4630_v57 = vmax.f32 %v4622_v51, 0.0  ;;  %v4666_v54 = vrot.slane %v4662_v58, 4  ;;  %v4665_v14 = vor.u32 %v4663_v31, %v4662_v58 }
 0x30f   : > { %v4638_v18 = vpack.c.bf16 %v4630_v57, %v4630_v57  ;;  %4717 = vrot.lane.b32.xlu2 %v4666_v54, %s12967_s26  ;;  %v4471_v29 = vpop.f32.mrf.mxu3 }
 0x310   : > { %4715 = vrot.lane.b32.xlu1 %v4665_v14, %s12967_s26  ;;  %v4597_v55 = vpop.f32.mrf.mxu0  ;;  %v4481_v57 = vadd.f32 %v4471_v29, %v4276_v10 }
 0x311   : > { %v4821_v63 = vunpack.c.l.b16 %v4638_v18  ;;  %v4611_v24 = vadd.f32 %v4597_v55, %v4478_v23  ;;  %v4668_v1 = vshrl.u32 %v4638_v18, 16  ;;  %v4671_v39 = vshll.u32 %v4638_v18, 16 }
 0x313   : > { %v4623_v37 = vadd.f32 %v14735_v40, %v4611_v24  ;;  %v4827_v53 = vpack.c.b16 %v4821_v63, %v4820_v16  ;;  %v4670_v48 = vrot.slane %v4668_v1, 7 }
 0x315   : > { %v4631_v52 = vmax.f32 %v4623_v37, 0.0  ;;  %11429 = vmatmul.msk.bf16.gmra.mxu2 %vm1181_vm1, %v4827_v53  ;;  %11433 = vmatmul.msk.bf16.gmra.mxu1 %vm1181_vm1, %v4827_v53  ;;  %v4674_v62 = vrot.slane %v4670_v48, 4  ;;  %v4673_v59 = vor.u32 %v4671_v39, %v4670_v48  ;;  %v12638_v39 = vld [vmem:[%s16807_s7 + $0x30] sm:$0xff] }
 0x316   : > { %5228 = vmatpush.bf16.msrb.mxu2 %v12638_v39 }
 0x317   : > { %v4639_v17 = vpack.c.bf16 %v4631_v52, %v4631_v52  ;;  %4721 = vrot.lane.b32.xlu2 %v4674_v62, %s12967_s26  ;;  %4719 = vrot.lane.b32.xlu0 %v4673_v59, %s12967_s26  ;;  %v12635_v52 = vld [vmem:[%s16807_s7 + $0x18] sm:$0xff]  ;;  %v12634_v62 = vld [vmem:[%s16807_s7 + $0x10] sm:$0xff] }
 0x318   : > { %v4599_v7 = vpop.f32.mrf.mxu0  ;;  %5312 = vmatpush.bf16.msra.mxu1 %v12635_v52  ;;  %v12651_v59 = vld [vmem:[%s16807_s7 + $0x78] sm:$0xff] }
 0x319   : > { %v4612_v45 = vadd.f32 %v4599_v7, %v4479_v60  ;;  %v4676_v19 = vshrl.u32 %v4639_v17, 16  ;;  %v4679_v30 = vshll.u32 %v4639_v17, 16  ;;  %v4822_v28 = vunpack.c.l.b16 %v4639_v17  ;;  %5562 = vmatpush.bf16.msra.mxu0 %v12651_v59  ;;  %v12632_v60 = vld [vmem:[%s16807_s7] sm:$0xff]  ;;  %v12643_v17 = vld [vmem:[%s16807_s7 + $0x58] sm:$0xff]  ;;  %v12649_v7 = vld [vmem:[%s16807_s7 + $0x68] sm:$0xff] }
 0x31a   : > { %5229 = vmatpush.bf16.msrb.mxu2 %v12637_v32  ;;  %5453 = vmatpush.bf16.msra.mxu3 %v12643_v17 }
 0x31b   : > { %v4624_v21 = vadd.f32 %v14735_v40, %v4612_v45  ;;  %v4678_v27 = vrot.slane %v4676_v19, 7  ;;  %v12642_v19 = vld [vmem:[%s16807_s7 + $0x50] sm:$0xff]  ;;  %v12675_v45 = vld [vmem:[%s16807_s7 + $0x118] sm:$0xff] }
 0x31c   : > { %5313 = vmatpush.bf16.msra.mxu1 %v12634_v62 }
 0x31d   : > { %v4632_v50 = vmax.f32 %v4624_v21, 0.0  ;;  %v4682_v26 = vrot.slane %v4678_v27, 4  ;;  %v4681_v0 = vor.u32 %v4679_v30, %v4678_v27  ;;  %5563 = vmatpush.bf16.msra.mxu0 %v12650_v36  ;;  %v12648_v27 = vld [vmem:[%s16807_s7 + $0x60] sm:$0xff]  ;;  %v12641_v30 = vld [vmem:[%s16807_s7 + $0x48] sm:$0xff] }
 0x31e   : > { %5230 = vmatpush.bf16.msrb.mxu2 %v12636_v12  ;;  %5454 = vmatpush.bf16.msra.mxu3 %v12642_v19 }
 0x31f   : > { %v4640_v38 = vpack.c.bf16 %v4632_v50, %v4632_v50  ;;  %4725 = vrot.lane.b32.xlu0 %v4682_v26, %s12967_s26  ;;  %4723 = vrot.lane.b32.xlu1 %v4681_v0, %s12967_s26  ;;  %v12655_v0 = vld [vmem:[%s16807_s7 + $0x98] sm:$0xff] }
 0x320   : > { %v4602_v34 = vpop.f32.mrf.mxu0  ;;  %5314 = vmatpush.bf16.msra.mxu1 %v12633_v6 }
 0x321   : > { %v4823_v46 = vunpack.c.l.b16 %v4640_v38  ;;  %v4613_v4 = vadd.f32 %v4602_v34, %v4480_v33  ;;  %v4684_v5 = vshrl.u32 %v4640_v38, 16  ;;  %v4687_v51 = vshll.u32 %v4640_v38, 16  ;;  %5564 = vmatpush.bf16.msra.mxu0 %v12649_v7  ;;  %v5030_v33 = vld [vmem:[#allocation3] sm:$0xf]  ;;  %v4779_v34 = vld [vmem:[#allocation3 + $0x24] sm:$0x1] }
 0x322   : > { %5455 = vmatpush.bf16.msra.mxu3 %v12641_v30  ;;  %5783 = vmatpush.bf16.msra.mxu2 %v12655_v0  ;;  %v5058_v10 = vshll.u32 %v5030_v33, 16 }
 0x323   : > { %v4625_v3 = vadd.f32 %v14735_v40, %v4613_v4  ;;  %v4828_v20 = vpack.c.b16 %v4823_v46, %v4822_v28  ;;  %v4686_v22 = vrot.slane %v4684_v5, 7  ;;  %v12899_v28 = vld [vmem:[#allocation3 + $0x8] sm:$0xf]  ;;  %v5055_v5 = vshrl.u32 %v5030_v33, 16  ;;  %v4776_v33 = vld [vmem:[#allocation3 + $0x20] sm:$0xf] }
 0x324   : > { %5315 = vmatpush.bf16.msra.mxu1 %v12632_v60 }
 0x325   : > { %v4633_v58 = vmax.f32 %v4625_v3, 0.0  ;;  %11430 = vmatmul.msk.bf16.gmra.mxu2 %vm1181_vm1, %v4828_v20  ;;  %11434 = vmatmul.msk.bf16.gmra.mxu1 %vm1181_vm1, %v4828_v20  ;;  %v4690_v31 = vrot.slane %v4686_v22, 4  ;;  %v4689_v61 = vor.u32 %v4687_v51, %v4686_v22  ;;  %v5057_v3 = vrot.slane %v5055_v5, 4  ;;  %v5046_v22 = vld [vmem:[#allocation3 + $0x4] sm:$0x1] }
 0x326   : > { %5565 = vmatpush.bf16.msra.mxu0 %v12648_v27  ;;  %5456 = vmatpush.bf16.msra.mxu3 %v12640_v47  ;;  %v5060_v20 = vrot.slane %v5058_v10, 5  ;;  %v11482_v51 = vld [vmem:[#allocation3] sm:$0xf] }
 0x327   : > { %v4641_v54 = vpack.c.bf16 %v4633_v58, %v4633_v58  ;;  %4729 = vrot.lane.b32.xlu0 %v4690_v31, %s12967_s26  ;;  %4727 = vrot.lane.b32.xlu1 %v4689_v61, %s12967_s26  ;;  %v4761_v58 = vld [vmem:[#allocation3 + $0xc] sm:$0x1]  ;;  %v4764_v61 = vld [vmem:[#allocation3 + $0x10] sm:$0xf] }
 0x328   : > { %v4604_v14 = vpop.f32.mrf.mxu0  ;;  %v5061_v35 = vor.u32 %v5060_v20, %v5057_v3 }
 0x329   : > { %v4614_v23 = vadd.f32 %v4604_v14, %v4481_v57  ;;  %v4692_v18 = vshrl.u32 %v4641_v54, 16  ;;  %v4695_v55 = vshll.u32 %v4641_v54, 16  ;;  %v4824_v42 = vunpack.c.l.b16 %v4641_v54  ;;  %v5337_v14 = vld [vmem:[#allocation3] sm:$0xe] }
 0x32b   : > { %v4626_v41 = vadd.f32 %v14735_v40, %v4614_v23  ;;  %v4694_v25 = vrot.slane %v4692_v18, 7  ;;  %v5064_v23 = vshll.u32 %v5046_v22, 16 }
 0x32d   : > { %v4634_v16 = vmax.f32 %v4626_v41, 0.0  ;;  %v4698_v63 = vrot.slane %v4694_v25, 4  ;;  %v4697_v24 = vor.u32 %v4695_v55, %v4694_v25 }
 0x32f   : > { %v4642_v1 = vpack.c.bf16 %v4634_v16, %v4634_v16  ;;  %4733 = vrot.lane.b32.xlu1 %v4698_v63, %s12967_s26  ;;  %4731 = vrot.lane.b32.xlu2 %v4697_v24, %s12967_s26  ;;  %v11516_v63 = vrot.slane %v5337_v14, 9  ;;  %v5363_v24 = vrot.slane %v5046_v22, 5 }
 0x331   : > { %v4825_v15 = vunpack.c.l.b16 %v4642_v1  ;;  %v4700_v2 = vshrl.u32 %v4642_v1, 16  ;;  %v4703_v53 = vshll.u32 %v4642_v1, 16  ;;  %v12654_v1 = vld [vmem:[%s16807_s7 + $0x90] sm:$0xff] }
 0x332   : > { %5784 = vmatpush.bf16.msra.mxu2 %v12654_v1  ;;  %v4785_v1 = vld [vmem:[#allocation3 + $0x2c] sm:$0x1] }
 0x333   : > { %v4829_v44 = vpack.c.b16 %v4825_v15, %v4824_v42  ;;  %v4702_v37 = vrot.slane %v4700_v2, 7  ;;  %v5062_v42 = vrot.slane %v5061_v35, 4  ;;  %v5066_v15 = vrot.slane %v5064_v23, 5 }
 0x335   : > { %11431 = vmatmul.msk.bf16.gmra.mxu2 %vm1181_vm1, %v4829_v44  ;;  %11435 = vmatmul.msk.bf16.gmra.mxu1 %vm1181_vm1, %v4829_v44  ;;  %v4706_v40 = vrot.slane %v4702_v37, 4  ;;  %v4705_v48 = vor.u32 %v4703_v53, %v4702_v37  ;;  %v5364_v53 = vsel %vm13529_vm13, %v11516_v63, %v5363_v24  ;;  %v5067_v62 = vsel %vm13367_vm6, %v5062_v42, %v5066_v15  ;;  %v4782_v15 = vld [vmem:[#allocation3 + $0x28] sm:$0xf] }
 0x336   : > { %v5401_v7 = vunpack.c.l.b16 %v5364_v53  ;;  %v5174_v47 = vunpack.c.l.b16 %v5067_v62 }
 0x337   : > { %4737 = vrot.lane.b32.xlu0 %v4706_v40, %s12967_s26  ;;  %4735 = vrot.lane.b32.xlu2 %v4705_v48, %s12967_s26  ;;  %v4770_v48 = vld [vmem:[#allocation3 + $0x18] sm:$0xf]  ;;  %s16718_s26 = scalar_lea.vmem [#allocation4], %s10713_s25 }
 0x338   : > { %s10644_s23 = sshll.u32 %s16718_s26, 4  ;;  %s10645_s23 = int_to_ptr.vmem [resolvable:$true] %s10644_s23 }
 0x361   : > { %v4714_v9 = vpop.permute.xlu2 %4713 }
 0x362   : > { %v4768_v21 = vsel %vm14832_vm12, %v4714_v9, %v4767_v49 }
 0x363   : > { %4769 = vst [vmem:[#allocation3 + $0x14] sm:$0x1] %v4768_v21 }
 0x369   : > { %v4718_v50 = vpop.permute.xlu2 %4717 }
 0x36a   : > { %v4774_v26 = vsel %vm14832_vm12, %v4718_v50, %v4773_v43  ;;  %v5048_v20 = vld [vmem:[#allocation3 + $0x14] sm:$0x1] }
 0x36b   : > { %4775 = vst [vmem:[#allocation3 + $0x1c] sm:$0x1] %v4774_v26  ;;  %v5092_v23 = vshll.u32 %v5048_v20, 16 }
 0x371   : > { %v4708_v38 = vpop.permute.xlu0 %4707  ;;  %v4722_v56 = vpop.permute.xlu2 %4721 }
 0x372   : > { %v4757_v46 = vsel %vm14856_vm4, %v4708_v38, %v12899_v28  ;;  %v4780_v4 = vsel %vm14832_vm12, %v4722_v56, %v4779_v34  ;;  %v4794_v34 = vld [vmem:[#allocation3 + $0x38] sm:$0xf]  ;;  %v5049_v22 = vld [vmem:[#allocation3 + $0x1c] sm:$0x1] }
 0x373   : > { %4758 = vst [vmem:[#allocation3 + $0x8] sm:$0xf] %v4757_v46 }
 0x374   : > { %4781 = vst [vmem:[#allocation3 + $0x24] sm:$0x1] %v4780_v4 }
 0x379   : > { %v4710_v31 = vpop.permute.xlu0 %4709 }
 0x37a   : > { %v4762_v29 = vsel %vm14832_vm12, %v4710_v31, %v4761_v58  ;;  %v4712_v57 = vpop.permute.xlu1 %4711  ;;  %v12628_v54 = vld [vmem:[#allocation3 + $0x4] sm:$0xf0] }
 0x37b   : > { %4763 = vst [vmem:[#allocation3 + $0xc] sm:$0x1] %v4762_v29  ;;  %v4765_v18 = vsel %vm14856_vm4, %v4712_v57, %v4764_v61  ;;  %v11483_v41 = vor.u32 %v12628_v54, %v11482_v51  ;;  %v5031_v25 = vld [vmem:[#allocation3 + $0x8] sm:$0xf] }
 0x37c   : > { %4766 = vst [vmem:[#allocation3 + $0x10] sm:$0xf] %v4765_v18  ;;  %v5069_v55 = vshrl.u32 %v5031_v25, 16  ;;  %v5072_v16 = vshll.u32 %v5031_v25, 16  ;;  %v5338_v37 = vld [vmem:[#allocation3 + $0x8] sm:$0xe] }
 0x37d   : > { %11512 = vmatmul.msk.bf16.vlgmr.msra.gmra.mxu1 %vm5210_vm5, %v11483_v41  ;;  %v11546_v32 = vld [vmem:[#allocation3 + $0x8] sm:$0xf]  ;;  %v11517_v60 = vrot.slane %v5338_v37, 9  ;;  %v5106_v18 = vshll.u32 %v5049_v22, 16  ;;  %v12659_v25 = vld [vmem:[%s16807_s7 + $0xb8] sm:$0xff]  ;;  %v5371_v37 = vrot.slane %v5048_v20, 5 }
 0x37e   : > { %v5071_v2 = vrot.slane %v5069_v55, 4  ;;  %v5074_v44 = vrot.slane %v5072_v16, 5  ;;  %v12653_v41 = vld [vmem:[%s16807_s7 + $0x88] sm:$0xff]  ;;  %v5375_v16 = vrot.slane %v5049_v22, 5  ;;  %5932 = vmatpush.bf16.msrb.mxu1 %v12659_v25  ;;  %v12670_v25 = vld [vmem:[%s16807_s7 + $0xf0] sm:$0xff] }
 0x37f   : > { %5785 = vmatpush.bf16.msra.mxu2 %v12653_v41 }
 0x380   : > { %v5075_v40 = vor.u32 %v5074_v44, %v5071_v2  ;;  %v4800_v44 = vld [vmem:[#allocation3 + $0x40] sm:$0xf] }
 0x382   : > { %v4716_v39 = vpop.permute.xlu1 %4715  ;;  %v5047_v52 = vld [vmem:[#allocation3 + $0xc] sm:$0x1]  ;;  %v5076_v9 = vrot.slane %v5075_v40, 4 }
 0x383   : > { %v4771_v59 = vsel %vm14856_vm4, %v4716_v39, %v4770_v48  ;;  %v12644_v6 = vld [vmem:[#allocation3 + $0xc] sm:$0xf0]  ;;  %v5367_v36 = vrot.slane %v5047_v52, 5  ;;  %v5078_v17 = vshll.u32 %v5047_v52, 16 }
 0x384   : > { %4772 = vst [vmem:[#allocation3 + $0x18] sm:$0xf] %v4771_v59  ;;  %v11547_v12 = vor.u32 %v12644_v6, %v11546_v32  ;;  %v5032_v19 = vld [vmem:[#allocation3 + $0x10] sm:$0xf]  ;;  %v5094_v6 = vrot.slane %v5092_v23, 5 }
 0x385   : > { %v5368_v49 = vsel %vm13529_vm13, %v11517_v60, %v5367_v36  ;;  %v5080_v21 = vrot.slane %v5078_v17, 5  ;;  %v5083_v27 = vshrl.u32 %v5032_v19, 16  ;;  %v5086_v43 = vshll.u32 %v5032_v19, 16  ;;  %v11486_v3 = vld [vmem:[#allocation3 + $0x10] sm:$0xf] }
 0x386   : > { %11576 = vmatmul.msk.bf16.vlgmr.msra.gmra.mxu0 %vm5210_vm5, %v11547_v12  ;;  %v5402_v30 = vunpack.c.l.b16 %v5368_v49  ;;  %v5339_v58 = vld [vmem:[#allocation3 + $0x10] sm:$0xe]  ;;  %v5108_v60 = vrot.slane %v5106_v18, 5 }
 0x387   : > { %v5081_v50 = vsel %vm13367_vm6, %v5076_v9, %v5080_v21  ;;  %v5085_v28 = vrot.slane %v5083_v27, 4  ;;  %v5088_v46 = vrot.slane %v5086_v43, 5  ;;  %v11518_v55 = vrot.slane %v5339_v58, 9  ;;  %v12658_v49 = vld [vmem:[%s16807_s7 + $0xb0] sm:$0xff] }
 0x388   : > { %v5409_v26 = vpack.c.b16 %v5402_v30, %v5401_v7  ;;  %v5175_v0 = vunpack.c.l.b16 %v5081_v50  ;;  %5933 = vmatpush.bf16.msrb.mxu1 %v12658_v49 }
 0x389   : > { %v4720_v38 = vpop.permute.xlu0 %4719  ;;  %v4732_v56 = vpop.permute.xlu2 %4731  ;;  %v5089_v54 = vor.u32 %v5088_v46, %v5085_v28  ;;  %v5372_v12 = vsel %vm13529_vm13, %v11518_v55, %v5371_v37  ;;  %v4788_v28 = vld [vmem:[#allocation3 + $0x30] sm:$0xf]  ;;  %v4797_v37 = vld [vmem:[#allocation3 + $0x3c] sm:$0x1] }
 0x38a   : > { %v4777_v4 = vsel %vm14856_vm4, %v4720_v38, %v4776_v33  ;;  %v4795_v5 = vsel %vm14856_vm4, %v4732_v56, %v4794_v34  ;;  %11540 = vmatmul.msk.bf16.vlgmr.msra.gmra.mxu3 %vm5210_vm5, %v5409_v26  ;;  %v5182_v10 = vpack.c.b16 %v5175_v0, %v5174_v47  ;;  %v5403_v43 = vunpack.c.l.b16 %v5372_v12  ;;  %v12657_v26 = vld [vmem:[%s16807_s7 + $0xa8] sm:$0xff]  ;;  %v12671_v0 = vld [vmem:[%s16807_s7 + $0xf8] sm:$0xff]  ;;  %v4791_v34 = vld [vmem:[#allocation3 + $0x34] sm:$0x1] }
 0x38b   : > { %4778 = vst [vmem:[#allocation3 + $0x20] sm:$0xf] %v4777_v4  ;;  %v12629_v51 = vld [vmem:[#allocation3 + $0x14] sm:$0xf0]  ;;  %v5090_v40 = vrot.slane %v5089_v54, 4  ;;  %6262 = vmatpush.bf16.msrb.mxu0 %v12671_v0 }
 0x38c   : > { %4796 = vst [vmem:[#allocation3 + $0x38] sm:$0xf] %v4795_v5  ;;  %11476 = vmatmul.msk.bf16.vlgmr.msrb.gmra.mxu2 %vm5210_vm5, %v5182_v10  ;;  %v11487_v31 = vor.u32 %v12629_v51, %v11486_v3  ;;  %v5340_v61 = vld [vmem:[#allocation3 + $0x18] sm:$0xe]  ;;  %5934 = vmatpush.bf16.msrb.mxu1 %v12657_v26  ;;  %v5050_v51 = vld [vmem:[#allocation3 + $0x24] sm:$0x1] }
 0x38d   : > { %v5033_v29 = vld [vmem:[#allocation3 + $0x18] sm:$0xf]  ;;  %v11519_v57 = vrot.slane %v5340_v61, 9  ;;  %v5095_v21 = vsel %vm13367_vm6, %v5090_v40, %v5094_v6  ;;  %v5379_v40 = vrot.slane %v5050_v51, 5 }
 0x38e   : > { %v5097_v14 = vshrl.u32 %v5033_v29, 16  ;;  %v5100_v35 = vshll.u32 %v5033_v29, 16  ;;  %11513 = vmatmul.msk.bf16.gmra.mxu1 %vm5210_vm5, %v11487_v31  ;;  %v11550_v62 = vld [vmem:[#allocation3 + $0x18] sm:$0xf]  ;;  %v5176_v38 = vunpack.c.l.b16 %v5095_v21 }
 0x38f   : > { %v5376_v53 = vsel %vm13529_vm13, %v11519_v57, %v5375_v16  ;;  %v5120_v16 = vshll.u32 %v5050_v51, 16  ;;  %6263 = vmatpush.bf16.msrb.mxu0 %v12670_v25  ;;  %v14962_v51 = vld [vmem:[#allocation3 + $0xc] sm:$0x1] }
 0x390   : > { %v5099_v63 = vrot.slane %v5097_v14, 4  ;;  %v5102_v24 = vrot.slane %v5100_v35, 5  ;;  %v5404_v9 = vunpack.c.l.b16 %v5376_v53  ;;  %5935 = vmatpush.bf16.msrb.mxu1 %v12656_v8 }
 0x391   : > { %v4726_v42 = vpop.permute.xlu0 %4725  ;;  %v4724_v2 = vpop.permute.xlu1 %4723 }
 0x392   : > { %v5103_v48 = vor.u32 %v5102_v24, %v5099_v63  ;;  %v4786_v39 = vsel %vm14832_vm12, %v4726_v42, %v4785_v1  ;;  %v4783_v32 = vsel %vm14856_vm4, %v4724_v2, %v4782_v15  ;;  %v4736_v52 = vpop.permute.xlu2 %4735  ;;  %v12645_v59 = vld [vmem:[#allocation3 + $0x1c] sm:$0xf0]  ;;  %v5410_v33 = vpack.c.b16 %v5404_v9, %v5403_v43  ;;  %v12667_v24 = vld [vmem:[%s16807_s7 + $0xd8] sm:$0xff] }
 0x393   : > { %4787 = vst [vmem:[#allocation3 + $0x2c] sm:$0x1] %v4786_v39  ;;  %v4801_v36 = vsel %vm14856_vm4, %v4736_v52, %v4800_v44  ;;  %v11551_v17 = vor.u32 %v12645_v59, %v11550_v62  ;;  %v5034_v19 = vld [vmem:[#allocation3 + $0x20] sm:$0xf]  ;;  %v12669_v44 = vld [vmem:[%s16807_s7 + $0xe8] sm:$0xff]  ;;  %6041 = vmatpush.bf16.msrb.mxu3 %v12667_v24  ;;  %v12666_v59 = vld [vmem:[%s16807_s7 + $0xd0] sm:$0xff] }
 0x394   : > { %v5104_v7 = vrot.slane %v5103_v48, 4  ;;  %4784 = vst [vmem:[#allocation3 + $0x28] sm:$0xf] %v4783_v32  ;;  %v5111_v30 = vshrl.u32 %v5034_v19, 16  ;;  %v5114_v47 = vshll.u32 %v5034_v19, 16  ;;  %v12652_v1 = vld [vmem:[%s16807_s7 + $0x80] sm:$0xff]  ;;  %6264 = vmatpush.bf16.msrb.mxu0 %v12669_v44 }
 0x395   : > { %4802 = vst [vmem:[#allocation3 + $0x40] sm:$0xf] %v4801_v36  ;;  %v11490_v22 = vld [vmem:[#allocation3 + $0x20] sm:$0xf]  ;;  %v5037_v39 = vld [vmem:[#allocation3 + $0x38] sm:$0xf]  ;;  %5786 = vmatpush.bf16.msra.mxu2 %v12652_v1 }
 0x396   : > { %v5109_v27 = vsel %vm13367_vm6, %v5104_v7, %v5108_v60  ;;  %11577 = vmatmul.msk.bf16.gmra.mxu0 %vm5210_vm5, %v11551_v17  ;;  %v5113_v4 = vrot.slane %v5111_v30, 4  ;;  %v5116_v5 = vrot.slane %v5114_v47, 5  ;;  %v5341_v61 = vld [vmem:[#allocation3 + $0x20] sm:$0xe]  ;;  %v5122_v17 = vrot.slane %v5120_v16, 5 }
 0x397   : > { %v5177_v50 = vunpack.c.l.b16 %v5109_v27  ;;  %v11520_v55 = vrot.slane %v5341_v61, 9  ;;  %v5153_v9 = vshrl.u32 %v5037_v39, 16  ;;  %v5156_v21 = vshll.u32 %v5037_v39, 16  ;;  %6042 = vmatpush.bf16.msrb.mxu3 %v12666_v59  ;;  %v12668_v43 = vld [vmem:[%s16807_s7 + $0xe0] sm:$0xff]  ;;  %v5817_v1 = vld [vmem:[#allocation3 + $0x10] sm:$0xe] }
 0x398   : > { %v5117_v23 = vor.u32 %v5116_v5, %v5113_v4  ;;  %6265 = vmatpush.bf16.msrb.mxu0 %v12668_v43  ;;  %v5842_v44 = vrot.slane %v14962_v51, 5  ;;  %v11601_v59 = vrot.slane %v5817_v1, 9  ;;  %v14987_v43 = vld [vmem:[#allocation3 + $0x14] sm:$0x1]  ;;  %v6078_v1 = vld [vmem:[#allocation3 + $0x20] sm:$0xf] }
 0x399   : > { %v4730_v56 = vpop.permute.xlu0 %4729  ;;  %v4728_v46 = vpop.permute.xlu1 %4727  ;;  %v5183_v20 = vpack.c.b16 %v5177_v50, %v5176_v38  ;;  %v5380_v60 = vsel %vm13529_vm13, %v11520_v55, %v5379_v40  ;;  %v12665_v50 = vld [vmem:[%s16807_s7 + $0xc8] sm:$0xff]  ;;  %v5155_v4 = vrot.slane %v5153_v9, 4  ;;  %v5158_v5 = vrot.slane %v5156_v21, 5  ;;  %6411 = vmatpush.bf16.msrb.mxu2 %v12675_v45 }
 0x39a   : > { %v4792_v10 = vsel %vm14832_vm12, %v4730_v56, %v4791_v34  ;;  %v4789_v3 = vsel %vm14856_vm4, %v4728_v46, %v4788_v28  ;;  %11541 = vmatmul.msk.bf16.gmra.mxu3 %vm5210_vm5, %v5410_v33  ;;  %v5051_v58 = vld [vmem:[#allocation3 + $0x2c] sm:$0x1]  ;;  %v5118_v48 = vrot.slane %v5117_v23, 4  ;;  %v5405_v26 = vunpack.c.l.b16 %v5380_v60  ;;  %v4803_v33 = vld [vmem:[#allocation3 + $0x44] sm:$0x1] }
 0x39b   : > { %4793 = vst [vmem:[#allocation3 + $0x34] sm:$0x1] %v4792_v10  ;;  %v12630_v31 = vld [vmem:[#allocation3 + $0x24] sm:$0xf0]  ;;  %v5383_v54 = vrot.slane %v5051_v58, 5  ;;  %v5134_v63 = vshll.u32 %v5051_v58, 16  ;;  %6043 = vmatpush.bf16.msrb.mxu3 %v12665_v50 }
 0x39c   : > { %4790 = vst [vmem:[#allocation3 + $0x30] sm:$0xf] %v4789_v3  ;;  %11477 = vmatmul.msk.bf16.gmra.mxu2 %vm5210_vm5, %v5183_v20  ;;  %v11491_v29 = vor.u32 %v12630_v31, %v11490_v22  ;;  %v5342_v57 = vld [vmem:[#allocation3 + $0x28] sm:$0xe]  ;;  %v5123_v27 = vsel %vm13367_vm6, %v5118_v48, %v5122_v17  ;;  %v5344_v46 = vld [vmem:[#allocation3 + $0x38] sm:$0xe] }
 0x39d   : > { %v11521_v14 = vrot.slane %v5342_v57, 9  ;;  %v5035_v35 = vld [vmem:[#allocation3 + $0x28] sm:$0xf]  ;;  %v5136_v12 = vrot.slane %v5134_v63, 5  ;;  %v5178_v56 = vunpack.c.l.b16 %v5123_v27  ;;  %v12631_v3 = vld [vmem:[#allocation3 + $0x34] sm:$0xf0] }
 0x39e   : > { %11514 = vmatmul.msk.bf16.gmra.mxu1 %vm5210_vm5, %v11491_v29  ;;  %v5125_v18 = vshrl.u32 %v5035_v35, 16  ;;  %v5128_v41 = vshll.u32 %v5035_v35, 16  ;;  %v11554_v52 = vld [vmem:[#allocation3 + $0x28] sm:$0xf]  ;;  %v6074_v58 = vld [vmem:[#allocation3 + $0x10] sm:$0xf] }
 0x39f   : > { %v5384_v42 = vsel %vm13529_vm13, %v11521_v14, %v5383_v54  ;;  %v12664_v31 = vld [vmem:[%s16807_s7 + $0xc0] sm:$0xff]  ;;  %v5816_v14 = vld [vmem:[#allocation3 + $0x8] sm:$0xe]  ;;  %v6091_v25 = vshrl.u32 %v6074_v58, 16  ;;  %v6094_v55 = vshll.u32 %v6074_v58, 16  ;;  %v11523_v16 = vrot.slane %v5344_v46, 9 }
 0x3a0   : > { %v5127_v15 = vrot.slane %v5125_v18, 4  ;;  %v5130_v2 = vrot.slane %v5128_v41, 5  ;;  %v5406_v36 = vunpack.c.l.b16 %v5384_v42  ;;  %v5159_v18 = vor.u32 %v5158_v5, %v5155_v4  ;;  %v6076_v41 = vld [vmem:[#allocation3 + $0x18] sm:$0xf]  ;;  %6044 = vmatpush.bf16.msrb.mxu3 %v12664_v31  ;;  %v14989_v50 = vld [vmem:[#allocation3 + $0x1c] sm:$0x1] }
 0x3a1   : > { %v4734_v53 = vpop.permute.xlu1 %4733  ;;  %v11600_v48 = vrot.slane %v5816_v14, 9  ;;  %v6105_v39 = vshrl.u32 %v6076_v41, 16  ;;  %v6096_v60 = vrot.slane %v6094_v55, 5 }
 0x3a2   : > { %v4798_v32 = vsel %vm14832_vm12, %v4734_v53, %v4797_v37  ;;  %v5131_v62 = vor.u32 %v5130_v2, %v5127_v15  ;;  %v5411_v34 = vpack.c.b16 %v5406_v36, %v5405_v26  ;;  %v5052_v57 = vld [vmem:[#allocation3 + $0x34] sm:$0x1]  ;;  %v11558_v37 = vld [vmem:[#allocation3 + $0x38] sm:$0xf]  ;;  %v12647_v53 = vld [vmem:[#allocation3 + $0x3c] sm:$0xf0] }
 0x3a3   : > { %4799 = vst [vmem:[#allocation3 + $0x3c] sm:$0x1] %v4798_v32  ;;  %v12646_v6 = vld [vmem:[#allocation3 + $0x2c] sm:$0xf0]  ;;  %v5387_v15 = vrot.slane %v5052_v57, 5  ;;  %v5148_v2 = vshll.u32 %v5052_v57, 16 }
 0x3a4   : > { %v11555_v7 = vor.u32 %v12646_v6, %v11554_v52  ;;  %v5132_v19 = vrot.slane %v5131_v62, 4  ;;  %v5036_v49 = vld [vmem:[#allocation3 + $0x30] sm:$0xf]  ;;  %v6108_v32 = vshll.u32 %v6076_v41, 16  ;;  %v5160_v52 = vrot.slane %v5159_v18, 4 }
 0x3a5   : > { %v5139_v30 = vshrl.u32 %v5036_v49, 16  ;;  %v5142_v47 = vshll.u32 %v5036_v49, 16  ;;  %v11494_v28 = vld [vmem:[#allocation3 + $0x30] sm:$0xf]  ;;  %v14976_v62 = vld [vmem:[#allocation3 + $0x14] sm:$0x1]  ;;  %v11559_v49 = vor.u32 %v12647_v53, %v11558_v37 }
 0x3a6   : > { %11578 = vmatmul.msk.bf16.gmra.mxu0 %vm5210_vm5, %v11555_v7  ;;  %v5137_v0 = vsel %vm13367_vm6, %v5132_v19, %v5136_v12  ;;  %v5343_v35 = vld [vmem:[#allocation3 + $0x30] sm:$0xe]  ;;  %v11495_v8 = vor.u32 %v12631_v3, %v11494_v28  ;;  %v6093_v6 = vrot.slane %v6091_v25, 4  ;;  %v6107_v12 = vrot.slane %v6105_v39, 4  ;;  %v6080_v18 = vld [vmem:[#allocation3 + $0x28] sm:$0xf] }
 0x3a7   : > { %v5179_v38 = vunpack.c.l.b16 %v5137_v0  ;;  %v5141_v20 = vrot.slane %v5139_v30, 4  ;;  %v5144_v22 = vrot.slane %v5142_v47, 5  ;;  %v11522_v42 = vrot.slane %v5343_v35, 9  ;;  %v5597_v19 = vld [vmem:[#allocation3 + $0x10] sm:$0xf] }
 0x3a8   : > { %v6110_v7 = vrot.slane %v6108_v32, 5  ;;  %v5150_v21 = vrot.slane %v5148_v2, 5  ;;  %v5843_v30 = vsel %vm13529_vm13, %v11600_v48, %v5842_v44  ;;  %v5846_v47 = vrot.slane %v14976_v62, 5  ;;  %v5819_v44 = vld [vmem:[#allocation3 + $0x20] sm:$0xe] }
 0x3a9   : > { %v4738_v10 = vpop.permute.xlu0 %4737  ;;  %v5184_v29 = vpack.c.b16 %v5179_v38, %v5178_v56  ;;  %v5145_v24 = vor.u32 %v5144_v22, %v5141_v20  ;;  %v5388_v9 = vsel %vm13529_vm13, %v11522_v42, %v5387_v15  ;;  %v6097_v0 = vor.u32 %v6096_v60, %v6093_v6  ;;  %v12674_v42 = vld [vmem:[%s16807_s7 + $0x110] sm:$0xff]  ;;  %v5818_v48 = vld [vmem:[#allocation3 + $0x18] sm:$0xe] }
 0x3aa   : > { %v4804_v61 = vsel %vm14832_vm12, %v4738_v10, %v4803_v33  ;;  %11542 = vmatmul.msk.bf16.gmra.mxu3 %vm5210_vm5, %v5411_v34  ;;  %v5053_v54 = vld [vmem:[#allocation3 + $0x3c] sm:$0x1]  ;;  %v5595_v33 = vld [vmem:[#allocation3 + $0x8] sm:$0xf]  ;;  %v5626_v38 = vshrl.u32 %v5597_v19, 16  ;;  %v5629_v34 = vshll.u32 %v5597_v19, 16  ;;  %v5407_v56 = vunpack.c.l.b16 %v5388_v9  ;;  %6412 = vmatpush.bf16.msrb.mxu2 %v12674_v42  ;;  %vm16066_vm12 = vmand %vm8467_vm7, %vm584_vm3 }
 0x3ab   : > { %4805 = vst [vmem:[#allocation3 + $0x44] sm:$0x1] %v4804_v61  ;;  %v5162_v23 = vshll.u32 %v5053_v54, 16  ;;  %v5391_v63 = vrot.slane %v5053_v54, 5  ;;  %v5146_v17 = vrot.slane %v5145_v24, 4  ;;  %v5847_v46 = vsel %vm13529_vm13, %v11601_v59, %v5846_v47 }
 0x3ac   : > { %11478 = vmatmul.msk.bf16.gmra.mxu2 %vm5210_vm5, %v5184_v29  ;;  %v6111_v4 = vor.u32 %v6110_v7, %v6107_v12  ;;  %v5880_v10 = vunpack.c.l.b16 %v5843_v30  ;;  %v6100_v3 = vshll.u32 %v14987_v43, 16  ;;  %v6114_v20 = vshll.u32 %v14989_v50, 16  ;;  %v5601_v59 = vld [vmem:[#allocation3 + $0x20] sm:$0xf]  ;;  %v15014_v7 = vld [vmem:[#allocation3 + $0x1c] sm:$0x1] }
 0x3ad   : > { %v5164_v40 = vrot.slane %v5162_v23, 5  ;;  %v5392_v36 = vsel %vm13529_vm13, %v11523_v16, %v5391_v63  ;;  %v5151_v28 = vsel %vm13367_vm6, %v5146_v17, %v5150_v21  ;;  %v5612_v22 = vshrl.u32 %v5595_v33, 16  ;;  %v15012_v17 = vpop.f32.mrf.mxu2 }
 0x3ae   : > { %11515 = vmatmul.msk.bf16.gmra.mxu1 %vm5210_vm5, %v11495_v8  ;;  %v5408_v26 = vunpack.c.l.b16 %v5392_v36  ;;  %v5615_v58 = vshll.u32 %v5595_v33, 16  ;;  %v5628_v31 = vrot.slane %v5626_v38, 4  ;;  %v5631_v61 = vrot.slane %v5629_v34, 5 }
 0x3af   : > { %v5165_v27 = vsel %vm13367_vm6, %v5160_v52, %v5164_v40  ;;  %v5180_v57 = vunpack.c.l.b16 %v5151_v28  ;;  %v5881_v54 = vunpack.c.l.b16 %v5847_v46  ;;  %v6098_v14 = vrot.slane %v6097_v0, 4  ;;  %v15010_v40 = vld [vmem:[#allocation3 + $0x24] sm:$0x1]  ;;  %v15022_v46 = vld [vmem:[#allocation3 + $0x2c] sm:$0x1] }
 0x3b0   : > { %v5181_v5 = vunpack.c.l.b16 %v5165_v27  ;;  %v5412_v29 = vpack.c.b16 %v5408_v26, %v5407_v56  ;;  %v6112_v35 = vrot.slane %v6111_v4, 4  ;;  %v6102_v8 = vrot.slane %v6100_v3, 5  ;;  %v5599_v27 = vld [vmem:[#allocation3 + $0x18] sm:$0xf] }
 0x3b1   : > { %v6116_v41 = vrot.slane %v6114_v20, 5  ;;  %v5614_v25 = vrot.slane %v5612_v22, 4  ;;  %v5617_v55 = vrot.slane %v5615_v58, 5  ;;  %v5632_v45 = vor.u32 %v5631_v61, %v5628_v31  ;;  %v12660_v4 = vld [vmem:[#allocation3 + $0x14] sm:$0xf0] }
 0x3b2   : > { %v5185_v23 = vpack.c.b16 %v5181_v5, %v5180_v57  ;;  %v5888_v16 = vpack.c.b16 %v5881_v54, %v5880_v10  ;;  %v6103_v63 = vsel %vm13367_vm6, %v6098_v14, %v6102_v8  ;;  %v5621_v24 = vshll.u32 %v14962_v51, 16  ;;  %v15027_v58 = vld [vmem:[#allocation3 + $0x24] sm:$0x1] }
 0x3b3   : > { %v6117_v15 = vsel %vm13367_vm6, %v6112_v35, %v6116_v41  ;;  %v5635_v2 = vshll.u32 %v14976_v62, 16  ;;  %v6133_v37 = vshrl.u32 %v6080_v18, 16  ;;  %v6136_v53 = vshll.u32 %v6080_v18, 16 }
 0x3b4   : > { %v5618_v51 = vor.u32 %v5617_v55, %v5614_v25  ;;  %v5633_v39 = vrot.slane %v5632_v45, 4  ;;  %v6119_v32 = vshrl.u32 %v6078_v1, 16  ;;  %v6122_v52 = vshll.u32 %v6078_v1, 16 }
 0x3b5   : > { %v6210_v6 = vunpack.c.l.b16 %v6103_v63  ;;  %v6211_v60 = vunpack.c.l.b16 %v6117_v15  ;;  %v11603_v36 = vrot.slane %v5819_v44, 9  ;;  %v5623_v62 = vrot.slane %v5621_v24, 5  ;;  %v15034_v24 = vpop.f32.mrf.mxu2  ;;  %v6082_v15 = vld [vmem:[#allocation3 + $0x30] sm:$0xf] }
 0x3b6   : > { %11579 = vmatmul.msk.bf16.gmra.mxu0 %vm5210_vm5, %v11559_v49  ;;  %v5637_v12 = vrot.slane %v5635_v2, 5  ;;  %v6135_v19 = vrot.slane %v6133_v37, 4  ;;  %v6138_v49 = vrot.slane %v6136_v53, 5  ;;  %v11602_v9 = vrot.slane %v5818_v48, 9  ;;  %16899 = vst [vmem:[#allocation18_spill] sm:$0xff] %v15034_v24 }
 0x3b7   : > { %v5854_v21 = vrot.slane %v15010_v40, 5  ;;  %v5654_v30 = vshrl.u32 %v5601_v59, 16  ;;  %v5657_v47 = vshll.u32 %v5601_v59, 16  ;;  %v5619_v26 = vrot.slane %v5618_v51, 4  ;;  %v15039_v53 = vld [vmem:[#allocation3 + $0x2c] sm:$0x1] }
 0x3b8   : > { %v5638_v0 = vsel %vm13367_vm6, %v5633_v39, %v5637_v12  ;;  %v6121_v33 = vrot.slane %v6119_v32, 4  ;;  %v6124_v38 = vrot.slane %v6122_v52, 5  ;;  %v6218_v34 = vpack.c.b16 %v6211_v60, %v6210_v6  ;;  %v6084_v48 = vld [vmem:[#allocation3 + $0x38] sm:$0xf]  ;;  %v12673_v51 = vld [vmem:[%s16807_s7 + $0x108] sm:$0xff] }
 0x3b9   : > { %v5850_v56 = vrot.slane %v15014_v7, 5  ;;  %v5855_v28 = vsel %vm13529_vm13, %v11603_v36, %v5854_v21  ;;  %v5624_v5 = vsel %vm13367_vm6, %v5619_v26, %v5623_v62  ;;  %v6139_v10 = vor.u32 %v6138_v49, %v6135_v19  ;;  %v15046_v59 = vld [vmem:[#allocation3 + $0x34] sm:$0x1]  ;;  %v5820_v6 = vld [vmem:[#allocation3 + $0x28] sm:$0xe]  ;;  %6413 = vmatpush.bf16.msrb.mxu2 %v12673_v51 }
 0x3ba   : > { %11543 = vmatmul.msk.bf16.gmra.mxu3 %vm5210_vm5, %v5412_v29  ;;  %v5640_v3 = vshrl.u32 %v5599_v27, 16  ;;  %v5643_v20 = vshll.u32 %v5599_v27, 16  ;;  %v5732_v22 = vunpack.c.l.b16 %v5638_v0  ;;  %v5656_v31 = vrot.slane %v5654_v30, 4  ;;  %v11630_v29 = vld [vmem:[#allocation3 + $0x10] sm:$0xf] }
 0x3bb   : > { %v5659_v61 = vrot.slane %v5657_v47, 5  ;;  %v5851_v57 = vsel %vm13529_vm13, %v11602_v9, %v5850_v56  ;;  %v6125_v54 = vor.u32 %v6124_v38, %v6121_v33  ;;  %v6142_v14 = vshll.u32 %v15022_v46, 16  ;;  %v5821_v36 = vld [vmem:[#allocation3 + $0x30] sm:$0xe]  ;;  %v5603_v38 = vld [vmem:[#allocation3 + $0x28] sm:$0xf] }
 0x3bc   : > { %11479 = vmatmul.msk.bf16.gmra.mxu2 %vm5210_vm5, %v5185_v23  ;;  %v11631_v35 = vor.u32 %v12660_v4, %v11630_v29  ;;  %v5731_v23 = vunpack.c.l.b16 %v5624_v5  ;;  %v5883_v8 = vunpack.c.l.b16 %v5855_v28  ;;  %v6128_v18 = vshll.u32 %v15027_v58, 16  ;;  %v5605_v30 = vld [vmem:[#allocation3 + $0x30] sm:$0xf]  ;;  %v12661_v56 = vld [vmem:[#allocation3 + $0x24] sm:$0xf0] }
 0x3bd   : > { %v6140_v41 = vrot.slane %v6139_v10, 4  ;;  %v5642_v25 = vrot.slane %v5640_v3, 4  ;;  %v5645_v55 = vrot.slane %v5643_v20, 5  ;;  %v5660_v63 = vor.u32 %v5659_v61, %v5656_v31  ;;  %v15055_v4 = vld [vmem:[#allocation3 + $0x3c] sm:$0x1] }
 0x3be   : > { %11624 = vmatmul.msk.bf16.vlgmr.msrb.gmra.mxu1 %vm5210_vm5, %v5888_v16  ;;  %v5739_v45 = vpack.c.b16 %v5732_v22, %v5731_v23  ;;  %v5882_v16 = vunpack.c.l.b16 %v5851_v57  ;;  %v6126_v1 = vrot.slane %v6125_v54, 4  ;;  %v6144_v42 = vrot.slane %v6142_v14, 5  ;;  %v15057_v3 = vld [vmem:[#allocation3 + $0x34] sm:$0x1]  ;;  %v15059_v14 = vpop.f32.mrf.mxu2 }
 0x3bf   : > { %v5649_v44 = vshll.u32 %v15014_v7, 16  ;;  %v5663_v37 = vshll.u32 %v15010_v40, 16  ;;  %v6130_v39 = vrot.slane %v6128_v18, 5  ;;  %v5646_v52 = vor.u32 %v5645_v55, %v5642_v25 }
 0x3c0   : > { %v5889_v2 = vpack.c.b16 %v5883_v8, %v5882_v16  ;;  %v6145_v32 = vsel %vm13367_vm6, %v6140_v41, %v6144_v42  ;;  %v5661_v60 = vrot.slane %v5660_v63, 4  ;;  %v6147_v40 = vshrl.u32 %v6082_v15, 16 }
 0x3c1   : > { %v6150_v62 = vshll.u32 %v6082_v15, 16  ;;  %v6131_v12 = vsel %vm13367_vm6, %v6126_v1, %v6130_v39  ;;  %v6161_v7 = vshrl.u32 %v6084_v48, 16  ;;  %v6164_v19 = vshll.u32 %v6084_v48, 16  ;;  %v15070_v15 = vpop.f32.mrf.mxu1 }
 0x3c2   : > { %v6213_v49 = vunpack.c.l.b16 %v6145_v32  ;;  %v5651_v9 = vrot.slane %v5649_v44, 5  ;;  %v5665_v21 = vrot.slane %v5663_v37, 5  ;;  %v11604_v27 = vrot.slane %v5820_v6, 9 }
 0x3c3   : > { %v5647_v47 = vrot.slane %v5646_v52, 4  ;;  %v5858_v26 = vrot.slane %v15039_v53, 5  ;;  %v11605_v0 = vrot.slane %v5821_v36, 9  ;;  %v5862_v33 = vrot.slane %v15046_v59, 5  ;;  %v6088_v52 = vld [vmem:[#allocation3 + $0x48] sm:$0xf] }
 0x3c4   : > { %v5666_v28 = vsel %vm13367_vm6, %v5661_v60, %v5665_v21  ;;  %v6149_v5 = vrot.slane %v6147_v40, 4  ;;  %v6152_v10 = vrot.slane %v6150_v62, 5  ;;  %v6163_v20 = vrot.slane %v6161_v7, 4  ;;  %v15073_v40 = vpop.f32.mrf.mxu3 }
 0x3c5   : > { %v6166_v22 = vrot.slane %v6164_v19, 5  ;;  %v5682_v31 = vshrl.u32 %v5605_v30, 16  ;;  %v5685_v61 = vshll.u32 %v5605_v30, 16  ;;  %v5668_v57 = vshrl.u32 %v5603_v38, 16  ;;  %v15083_v30 = vld [vmem:[#allocation3 + $0x44] sm:$0x1] }
 0x3c6   : > { %11680 = vmatmul.msk.bf16.vlgmr.msrb.gmra.mxu0 %vm5210_vm5, %v6218_v34  ;;  %v6212_v34 = vunpack.c.l.b16 %v6131_v12  ;;  %v5671_v54 = vshll.u32 %v5603_v38, 16  ;;  %v5652_v23 = vsel %vm13367_vm6, %v5647_v47, %v5651_v9  ;;  %v5863_v8 = vsel %vm13529_vm13, %v11605_v0, %v5862_v33  ;;  %v12672_v9 = vld [vmem:[%s16807_s7 + $0x100] sm:$0xff]  ;;  %v5822_v0 = vld [vmem:[#allocation3 + $0x38] sm:$0xe]  ;;  %v15086_v33 = vpop.f32.mrf.mxu2 }
 0x3c7   : > { %v6170_v18 = vshll.u32 %v15055_v4, 16  ;;  %v5734_v25 = vunpack.c.l.b16 %v5666_v28  ;;  %v5859_v55 = vsel %vm13529_vm13, %v11604_v27, %v5858_v26  ;;  %v6153_v16 = vor.u32 %v6152_v10, %v6149_v5  ;;  %6414 = vmatpush.bf16.msrb.mxu2 %v12672_v9  ;;  %16900 = vst [vmem:[#allocation17_spill] sm:$0xff] %v15086_v33 }
 0x3c8   : > { %v6219_v29 = vpack.c.b16 %v6213_v49, %v6212_v34  ;;  %v6167_v63 = vor.u32 %v6166_v22, %v6163_v20  ;;  %v5684_v1 = vrot.slane %v5682_v31, 4  ;;  %v5687_v42 = vrot.slane %v5685_v61, 5  ;;  %v6086_v49 = vld [vmem:[#allocation3 + $0x40] sm:$0xf]  ;;  %v15093_v22 = vpop.f32.mrf.mxu0 }
 0x3c9   : > { %v5885_v44 = vunpack.c.l.b16 %v5863_v8  ;;  %v5670_v37 = vrot.slane %v5668_v57, 4  ;;  %v5673_v48 = vrot.slane %v5671_v54, 5  ;;  %v6172_v51 = vrot.slane %v6170_v18, 5  ;;  %v5823_v34 = vld [vmem:[#allocation3 + $0x40] sm:$0xe] }
 0x3ca   : > { %11660 = vmatmul.msk.bf16.vlgmr.msrb.gmra.mxu3 %vm5210_vm5, %v11631_v35  ;;  %v11634_v35 = vld [vmem:[#allocation3 + $0x20] sm:$0xf]  ;;  %v5884_v32 = vunpack.c.l.b16 %v5859_v55  ;;  %v6154_v6 = vrot.slane %v6153_v16, 4  ;;  %v6168_v60 = vrot.slane %v6167_v63, 4  ;;  %v5688_v36 = vor.u32 %v5687_v42, %v5684_v1 }
 0x3cb   : > { %v11635_v41 = vor.u32 %v12661_v56, %v11634_v35  ;;  %v5674_v7 = vor.u32 %v5673_v48, %v5670_v37  ;;  %v5677_v19 = vshll.u32 %v15039_v53, 16  ;;  %v5691_v27 = vshll.u32 %v15046_v59, 16  ;;  %v15090_v59 = vld [vmem:[#allocation3 + $0x3c] sm:$0x1]  ;;  %v15097_v35 = vpop.f32.mrf.mxu1  ;;  %v5607_v37 = vld [vmem:[#allocation3 + $0x38] sm:$0xf] }
 0x3cc   : > { %11596 = vmatmul.msk.bf16.vlgmr.msra.gmra.mxu2 %vm5210_vm5, %v5739_v45  ;;  %v6156_v45 = vshll.u32 %v15057_v3, 16  ;;  %v5890_v62 = vpack.c.b16 %v5885_v44, %v5884_v32  ;;  %v6173_v21 = vsel %vm13367_vm6, %v6168_v60, %v6172_v51  ;;  %v6189_v47 = vshrl.u32 %v6088_v52, 16  ;;  %16901 = vst [vmem:[#allocation16_spill] sm:$0xff] %v15097_v35  ;;  %v11638_v48 = vld [vmem:[#allocation3 + $0x30] sm:$0xf] }
 0x3cd   : > { %v6192_v26 = vshll.u32 %v6088_v52, 16  ;;  %v5689_v38 = vrot.slane %v5688_v36, 4  ;;  %v6175_v56 = vshrl.u32 %v6086_v49, 16  ;;  %v6178_v28 = vshll.u32 %v6086_v49, 16  ;;  %v12662_v36 = vld [vmem:[#allocation3 + $0x34] sm:$0xf0] }
 0x3ce   : > { %11625 = vmatmul.msk.bf16.gmra.mxu1 %vm5210_vm5, %v5889_v2  ;;  %v5733_v2 = vunpack.c.l.b16 %v5652_v23  ;;  %v6158_v12 = vrot.slane %v6156_v45, 5  ;;  %v6215_v5 = vunpack.c.l.b16 %v6173_v21  ;;  %v5675_v10 = vrot.slane %v5674_v7, 4 }
 0x3cf   : > { %v5870_v20 = vrot.slane %v15083_v30, 5  ;;  %v5679_v31 = vrot.slane %v5677_v19, 5  ;;  %v5693_v61 = vrot.slane %v5691_v27, 5  ;;  %v6191_v57 = vrot.slane %v6189_v47, 4  ;;  %v15115_v47 = vpop.f32.mrf.mxu2 }
 0x3d0   : > { %v5740_v39 = vpack.c.b16 %v5734_v25, %v5733_v2  ;;  %v6159_v53 = vsel %vm13367_vm6, %v6154_v6, %v6158_v12  ;;  %v6194_v54 = vrot.slane %v6192_v26, 5  ;;  %v11606_v8 = vrot.slane %v5822_v0, 9  ;;  %v5609_v25 = vld [vmem:[#allocation3 + $0x40] sm:$0xf]  ;;  %v15110_v6 = vpop.f32.mrf.mxu3 }
 0x3d1   : > { %v6214_v23 = vunpack.c.l.b16 %v6159_v53  ;;  %v11607_v18 = vrot.slane %v5823_v34, 9  ;;  %v5694_v55 = vsel %vm13367_vm6, %v5689_v38, %v5693_v61  ;;  %v5866_v45 = vrot.slane %v15090_v59, 5  ;;  %16902 = vst [vmem:[#allocation15_spill] sm:$0xff] %v15110_v6 }
 0x3d2   : > { %v6177_v16 = vrot.slane %v6175_v56, 4  ;;  %v6180_v63 = vrot.slane %v6178_v28, 5  ;;  %v5680_v42 = vsel %vm13367_vm6, %v5675_v10, %v5679_v31  ;;  %v6195_v51 = vor.u32 %v6194_v54, %v6191_v57  ;;  %v15118_v28 = vpop.f32.mrf.mxu0 }
 0x3d3   : > { %v6220_v1 = vpack.c.b16 %v6215_v5, %v6214_v23  ;;  %v5871_v2 = vsel %vm13529_vm13, %v11607_v18, %v5870_v20  ;;  %v5710_v32 = vshrl.u32 %v5609_v25, 16  ;;  %v5713_v52 = vshll.u32 %v5609_v25, 16  ;;  %16903 = vst [vmem:[#allocation20_spill] sm:$0xff] %v15118_v28  ;;  %v15121_v61 = vpop.f32.mrf.mxu1 }
 0x3d4   : > { %v5736_v60 = vunpack.c.l.b16 %v5694_v55  ;;  %v6181_v12 = vor.u32 %v6180_v63, %v6177_v16  ;;  %v5696_v7 = vshrl.u32 %v5607_v37, 16  ;;  %v5699_v19 = vshll.u32 %v5607_v37, 16 }
 0x3d5   : > { %v11639_v49 = vor.u32 %v12662_v36, %v11638_v48  ;;  %v5735_v9 = vunpack.c.l.b16 %v5680_v42  ;;  %v5887_v21 = vunpack.c.l.b16 %v5871_v2  ;;  %v6196_v26 = vrot.slane %v6195_v51, 4  ;;  %v12663_v51 = vld [vmem:[#allocation3 + $0x44] sm:$0xf0] }
 0x3d6   : > { %11681 = vmatmul.msk.bf16.gmra.mxu0 %vm5210_vm5, %v6219_v29  ;;  %v15095_v29 = vld [vmem:[#allocation3 + $0x44] sm:$0x1]  ;;  %v5712_v53 = vrot.slane %v5710_v32, 4  ;;  %v5715_v38 = vrot.slane %v5713_v52, 5  ;;  %v6182_v5 = vrot.slane %v6181_v12, 4  ;;  %v5698_v10 = vrot.slane %v5696_v7, 4 }
 0x3d7   : > { %v6184_v44 = vshll.u32 %v15095_v29, 16  ;;  %v5741_v34 = vpack.c.b16 %v5736_v60, %v5735_v9  ;;  %v5701_v20 = vrot.slane %v5699_v19, 5  ;;  %v5719_v31 = vshll.u32 %v15083_v30, 16  ;;  %v15132_v42 = vpop.f32.mrf.mxu2  ;;  %v6296_v7 = vld [vmem:[#allocation3 + $0x18] sm:$0xe] }
 0x3d8   : > { %v5716_v18 = vor.u32 %v5715_v38, %v5712_v53  ;;  %16904 = vst [vmem:[#allocation19_spill] sm:$0xff] %v15132_v42  ;;  %v6321_v53 = vrot.slane %v14987_v43, 5  ;;  %v6298_v43 = vld [vmem:[#allocation3 + $0x28] sm:$0xe]  ;;  %vm10471_vm3 = vcmask 1041408  }
 0x3d9   : > { %v6186_v27 = vrot.slane %v6184_v44, 5  ;;  %v5702_v25 = vor.u32 %v5701_v20, %v5698_v10  ;;  %v5721_v55 = vrot.slane %v5719_v31, 5 }
 0x3da   : > { %11661 = vmatmul.msk.bf16.gmra.mxu3 %vm5210_vm5, %v11635_v41  ;;  %v15099_v41 = vld [vmem:[#allocation3 + $0x4c] sm:$0x1]  ;;  %v15136_v48 = vpop.f32.mrf.mxu0 }
 0x3db   : > { %v6187_v54 = vsel %vm13367_vm6, %v6182_v5, %v6186_v27  ;;  %v5703_v2 = vrot.slane %v5702_v25, 4  ;;  %v15140_v32 = vpop.f32.mrf.mxu1  ;;  %v6333_v25 = vrot.slane %v15022_v46, 5 }
 0x3dc   : > { %11597 = vmatmul.msk.bf16.gmra.mxu2 %vm5210_vm5, %v5740_v39  ;;  %v6198_v39 = vshll.u32 %v15099_v41, 16  ;;  %v6216_v30 = vunpack.c.l.b16 %v6187_v54  ;;  %16905 = vst [vmem:[#allocation14_spill] sm:$0xff] %v15140_v32 }
 0x3de   : > { %11626 = vmatmul.msk.bf16.gmra.mxu1 %vm5210_vm5, %v5890_v62  ;;  %v5867_v62 = vsel %vm13529_vm13, %v11606_v8, %v5866_v45  ;;  %v6200_v0 = vrot.slane %v6198_v39, 5  ;;  %v5705_v8 = vshll.u32 %v15090_v59, 16  ;;  %v15130_v45 = vpop.f32.mrf.mxu3  ;;  %v11642_v59 = vld [vmem:[#allocation3 + $0x40] sm:$0xf] }
 0x3df   : > { %v5886_v56 = vunpack.c.l.b16 %v5867_v62  ;;  %v11643_v60 = vor.u32 %v12663_v51, %v11642_v59  ;;  %v15147_v19 = vpop.f32.mrf.mxu2 }
 0x3e0   : > { %v6201_v23 = vsel %vm13367_vm6, %v6196_v26, %v6200_v0  ;;  %v5707_v63 = vrot.slane %v5705_v8, 5  ;;  %16907 = vst [vmem:[#allocation22_spill] sm:$0xff] %v15147_v19  ;;  %v6325_v0 = vrot.slane %v14989_v50, 5  ;;  %v12679_v19 = vld [vmem:[%s16813_s13 + $0x54] sm:$0xf0] }
 0x3e1   : > { %v5891_v57 = vpack.c.b16 %v5887_v21, %v5886_v56  ;;  %v6217_v16 = vunpack.c.l.b16 %v6201_v23  ;;  %v11685_v21 = vrot.slane %v6296_v7, 9  ;;  %v6297_v23 = vld [vmem:[#allocation3 + $0x20] sm:$0xe] }
 0x3e2   : > { %v5708_v39 = vsel %vm13367_vm6, %v5703_v2, %v5707_v63  ;;  %v15149_v9 = vpop.f32.mrf.mxu0 }
 0x3e3   : > { %v6221_v37 = vpack.c.b16 %v6217_v16, %v6216_v30  ;;  %v5737_v36 = vunpack.c.l.b16 %v5708_v39  ;;  %16908 = vst [vmem:[#allocation21_spill] sm:$0xff] %v15149_v9  ;;  %v15151_v27 = vpop.f32.mrf.mxu1  ;;  %v6326_v38 = vsel %vm13529_vm13, %v11685_v21, %v6325_v0  ;;  %v6329_v16 = vrot.slane %v15027_v58, 5 }
 0x3e4   : > { %16909 = vst [vmem:[#allocation24_spill] sm:$0xff] %v15151_v27  ;;  %v6360_v5 = vunpack.c.l.b16 %v6326_v38 }
 0x3e6   : > { %11682 = vmatmul.msk.bf16.gmra.mxu0 %vm5210_vm5, %v6220_v1  ;;  %v5717_v1 = vrot.slane %v5716_v18, 4  ;;  %v15143_v62 = vpop.f32.mrf.mxu3  ;;  %v11687_v18 = vrot.slane %v6298_v43, 9 }
 0x3e7   : > { %16906 = vst [vmem:[#allocation13_spill] sm:$0xff] %v15143_v62  ;;  %v15161_v10 = vpop.f32.mrf.mxu2 }
 0x3e8   : > { %v5722_v44 = vsel %vm13367_vm6, %v5717_v1, %v5721_v55  ;;  %16910 = vst [vmem:[#allocation23_spill] sm:$0xff] %v15161_v10  ;;  %v11686_v55 = vrot.slane %v6297_v23, 9  ;;  %v6334_v63 = vsel %vm13529_vm13, %v11687_v18, %v6333_v25  ;;  %v6301_v23 = vld [vmem:[#allocation3 + $0x40] sm:$0xe] }
 0x3e9   : > { %v5738_v52 = vunpack.c.l.b16 %v5722_v44  ;;  %v6362_v44 = vunpack.c.l.b16 %v6334_v63  ;;  %v6349_v63 = vrot.slane %v15099_v41, 5 }
 0x3ea   : > { %11662 = vmatmul.msk.bf16.gmra.mxu3 %vm5210_vm5, %v11639_v49  ;;  %v6295_v49 = vld [vmem:[#allocation3 + $0x10] sm:$0xe]  ;;  %v15163_v31 = vpop.f32.mrf.mxu0  ;;  %v6330_v2 = vsel %vm13529_vm13, %v11686_v55, %v6329_v16  ;;  %v6345_v55 = vrot.slane %v15095_v29, 5 }
 0x3eb   : > { %v5742_v12 = vpack.c.b16 %v5738_v52, %v5737_v36  ;;  %v11684_v26 = vrot.slane %v6295_v49, 9  ;;  %16911 = vst [vmem:[#allocation25_spill] sm:$0xff] %v15163_v31  ;;  %v6361_v51 = vunpack.c.l.b16 %v6330_v2  ;;  %v6299_v52 = vld [vmem:[#allocation3 + $0x30] sm:$0xe]  ;;  %v6337_v49 = vrot.slane %v15057_v3, 5 }
 0x3ec   : > { %11598 = vmatmul.msk.bf16.gmra.mxu2 %vm5210_vm5, %v5741_v34  ;;  %v11688_v7 = vrot.slane %v6299_v52, 9  ;;  %v6302_v3 = vld [vmem:[#allocation3 + $0x48] sm:$0xe]  ;;  %v11714_v31 = vld [vmem:[%s16813_s13 + $0x40] sm:$0xf] }
 0x3ed   : > { %v6322_v56 = vsel %vm13529_vm13, %v11684_v26, %v6321_v53  ;;  %v6368_v46 = vpack.c.b16 %v6362_v44, %v6361_v51  ;;  %v11691_v16 = vrot.slane %v6302_v3, 9  ;;  %v11690_v44 = vrot.slane %v6301_v23, 9 }
 0x3ee   : > { %11627 = vmatmul.msk.bf16.gmra.mxu1 %vm5210_vm5, %v5891_v57  ;;  %v15157_v34 = vpop.f32.mrf.mxu3  ;;  %v6359_v20 = vunpack.c.l.b16 %v6322_v56  ;;  %v15165_v57 = vpop.f32.mrf.mxu1  ;;  %v6338_v53 = vsel %vm13529_vm13, %v11688_v7, %v6337_v49 }
 0x3ef   : > { %16912 = vst [vmem:[#allocation26_spill] sm:$0xff] %v15165_v57  ;;  %v6346_v51 = vsel %vm13529_vm13, %v11690_v44, %v6345_v55 }
 0x3f0   : > { %v6367_v54 = vpack.c.b16 %v6360_v5, %v6359_v20 }
 0x3f2   : > { %v15173_v30 = vpop.f32.mrf.mxu0 }
 0x3f3   : > { %16914 = vst [vmem:[#allocation28_spill] sm:$0xff] %v15173_v30 }
 0x3f6   : > { %11683 = vmatmul.msk.bf16.gmra.mxu0 %vm5210_vm5, %v6221_v37  ;;  %v15168_v50 = vpop.f32.mrf.mxu3  ;;  %v15178_v1 = vpop.f32.mrf.mxu1 }
 0x3f7   : > { %16913 = vst [vmem:[#allocation27_spill] sm:$0xff] %v15168_v50 }
 0x3f8   : > { %16915 = vst [vmem:[#allocation29_spill] sm:$0xff] %v15178_v1 }
 0x3fa   : > { %11663 = vmatmul.msk.bf16.gmra.mxu3 %vm5210_vm5, %v11643_v60  ;;  %v15187_v39 = vpop.f32.mrf.mxu0  ;;  %v6300_v60 = vld [vmem:[#allocation3 + $0x38] sm:$0xe] }
 0x3fb   : > { %16917 = vst [vmem:[#allocation31_spill] sm:$0xff] %v15187_v39  ;;  %v11689_v21 = vrot.slane %v6300_v60, 9  ;;  %v6365_v60 = vunpack.c.l.b16 %v6346_v51 }
 0x3fc   : > { %11599 = vmatmul.msk.bf16.gmra.mxu2 %vm5210_vm5, %v5742_v12  ;;  %v6341_v12 = vrot.slane %v15055_v4, 5 }
 0x3fe   : > { %v15184_v59 = vpop.f32.mrf.mxu3  ;;  %v15189_v58 = vpop.f32.mrf.mxu1  ;;  %v6342_v0 = vsel %vm13529_vm13, %v11689_v21, %v6341_v12 }
 0x3ff   : > { %16916 = vst [vmem:[#allocation30_spill] sm:$0xff] %v15184_v59  ;;  %v6364_v56 = vunpack.c.l.b16 %v6342_v0  ;;  %v11722_v59 = vld [vmem:[%s16813_s13 + $0x50] sm:$0xf] }
 0x400   : > { %16918 = vst [vmem:[#allocation32_spill] sm:$0xff] %v15189_v58 }
 0x402   : > { %v15201_v5 = vpop.f32.mrf.mxu0 }
 0x403   : > { %16920 = vst [vmem:[#allocation34_spill] sm:$0xff] %v15201_v5 }
 0x406   : > { %v15195_v26 = vpop.f32.mrf.mxu3  ;;  %v5317_v38 = vpop.f32.mrf.mxu1 }
 0x407   : > { %16919 = vst [vmem:[#allocation33_spill] sm:$0xff] %v15195_v26 }
 0x40a   : > { %v5567_v18 = vpop.f32.mrf.mxu0 }
 0x40c   : > { %11708 = vmatmul.msk.bf16.vlgmr.msrb.gmra.mxu2 %vm5210_vm5, %v6367_v54  ;;  %v6363_v54 = vunpack.c.l.b16 %v6338_v53 }
 0x40e   : > { %v5458_v4 = vpop.f32.mrf.mxu3  ;;  %v6369_v43 = vpack.c.b16 %v6364_v56, %v6363_v54  ;;  %v5319_v2 = vpop.f32.mrf.mxu1 }
 0x40f   : > { %v15170_v8 = vpop.f32.mrf.mxu2 }
 0x410   : > { %v5318_v32 = vadd.f32 %v5317_v38, %v15170_v8  ;;  %v11723_v8 = vor.u32 %v12679_v19, %v11722_v59  ;;  %v12677_v19 = vld [vmem:[%s16813_s13 + $0x44] sm:$0xf0] }
 0x412   : > { %v5569_v49 = vpop.f32.mrf.mxu0  ;;  %v5478_v33 = vadd.f32 %v5458_v4, %v5318_v32  ;;  %v12678_v32 = vld [vmem:[%s16813_s13 + $0x54] sm:$0xf]  ;;  %6697 = vmatpush.bf16.msra.mxu1 %v11723_v8 }
 0x414   : > { %v5587_v39 = vadd.f32 %v5567_v18, %v5478_v33 }
 0x416   : > { %v5460_v52 = vpop.f32.mrf.mxu3  ;;  %v5322_v21 = vpop.f32.mrf.mxu1 }
 0x417   : > { %v15182_v37 = vpop.f32.mrf.mxu2 }
 0x418   : > { %v5320_v6 = vadd.f32 %v5319_v2, %v15182_v37  ;;  %v11724_v37 = vld [vmem:[%s16813_s13 + $0x58] sm:$0xf0] }
 0x41a   : > { %v15219_v53 = vpop.f32.mrf.mxu0  ;;  %v5479_v38 = vadd.f32 %v5460_v52, %v5320_v6  ;;  %v12676_v6 = vld [vmem:[%s16813_s13 + $0x44] sm:$0xf] }
 0x41c   : > { %11709 = vmatmul.msk.bf16.gmra.mxu2 %vm5210_vm5, %v6368_v46  ;;  %v6350_v46 = vsel %vm13529_vm13, %v11691_v16, %v6349_v63 }
 0x41d   : > { %v6366_v12 = vunpack.c.l.b16 %v6350_v46 }
 0x41e   : > { %v5463_v29 = vpop.f32.mrf.mxu3  ;;  %v15221_v56 = vpop.f32.mrf.mxu1 }
 0x41f   : > { %v15191_v36 = vpop.f32.mrf.mxu2  ;;  %v6370_v0 = vpack.c.b16 %v6366_v12, %v6365_v60 }
 0x420   : > { %v5323_v2 = vadd.f32 %v5322_v21, %v15191_v36 }
 0x422   : > { %v15227_v3 = vpop.f32.mrf.mxu0 }
 0x426   : > { %v15229_v23 = vpop.f32.mrf.mxu1 }
 0x427   : > { %v15203_v20 = vpop.f32.mrf.mxu2 }
 0x42a   : > { %v15233_v63 = vpop.f32.mrf.mxu0 }
 0x42c   : > { %11710 = vmatmul.msk.bf16.gmra.mxu2 %vm5210_vm5, %v6369_v43  ;;  %v15225_v43 = vpop.f32.mrf.mxu3 }
 0x42e   : > { %v15235_v51 = vpop.f32.mrf.mxu1 }
 0x42f   : > { %v15206_v25 = vpop.f32.mrf.mxu2 }
 0x432   : > { %v15239_v12 = vpop.f32.mrf.mxu0 }
 0x434   : > { %v15231_v16 = vpop.f32.mrf.mxu3 }
 0x437   : > { %v15214_v7 = vpop.f32.mrf.mxu2 }
 0x43a   : > { %v15247_v26 = vpop.f32.mrf.mxu0 }
 0x43c   : > { %11711 = vmatmul.msk.bf16.gmra.mxu2 %vm5210_vm5, %v6370_v0  ;;  %v15237_v46 = vpop.f32.mrf.mxu3  ;;  %v15241_v0 = vpop.f32.mrf.mxu1 }
 0x43f   : > { %v15217_v41 = vpop.f32.mrf.mxu2 }
 0x442   : > { %v15255_v50 = vpop.f32.mrf.mxu0 }
 0x444   : > { %v15243_v5 = vpop.f32.mrf.mxu3  ;;  %v15249_v10 = vpop.f32.mrf.mxu1 }
 0x447   : > { %v15223_v54 = vpop.f32.mrf.mxu2 }
 0x44a   : > { %v6267_v28 = vpop.f32.mrf.mxu0 }
 0x44c   : > { %v15253_v57 = vpop.f32.mrf.mxu3  ;;  %v5937_v42 = vpop.f32.mrf.mxu1 }
 0x44f   : > { %v5788_v55 = vpop.f32.mrf.mxu2 }
 0x450   : > { %v5808_v1 = vadd.f32 %v5788_v55, %v5587_v39  ;;  %v11727_v39 = vor.u32 %v12678_v32, %v11724_v37  ;;  %v5588_v55 = vadd.f32 %v5569_v49, %v5479_v38  ;;  %v5480_v32 = vadd.f32 %v5463_v29, %v5323_v2 }
 0x452   : > { %v5957_v4 = vadd.f32 %v5937_v42, %v5808_v1  ;;  %6726 = vmatpush.bf16.msra.mxu3 %v11727_v39  ;;  %v6269_v59 = vpop.f32.mrf.mxu0  ;;  %v11715_v42 = vor.u32 %v12677_v19, %v11714_v31  ;;  %v11716_v1 = vld [vmem:[%s16813_s13 + $0x48] sm:$0xf0]  ;;  %v15293_v39 = vld [vmem:[%s16808_s8] ss:$0 sm:$0xff]  ;;  %v5325_v31 = vadd.f32 %v15221_v56, %v15203_v20  ;;  %v5589_v27 = vadd.f32 %v15219_v53, %v5480_v32 }
 0x453   : > { %v11719_v21 = vor.u32 %v12676_v6, %v11716_v1 }
 0x454   : > { %v6046_v62 = vpop.f32.mrf.mxu3  ;;  %v5939_v24 = vpop.f32.mrf.mxu1  ;;  %6698 = vmatpush.bf16.msra.mxu1 %v11715_v42 }
 0x455   : > { %v6066_v49 = vadd.f32 %v6046_v62, %v5957_v4 }
 0x456   : > { %6727 = vmatpush.bf16.msra.mxu3 %v11719_v21 }
 0x457   : > { %v5790_v44 = vpop.f32.mrf.mxu2  ;;  %v6287_v38 = vadd.f32 %v6267_v28, %v6066_v49 }
 0x458   : > { %v5809_v52 = vadd.f32 %v5790_v44, %v5588_v55 }
 0x45a   : > { %v5958_v8 = vadd.f32 %v5939_v24, %v5809_v52  ;;  %v5481_v24 = vadd.f32 %v15225_v43, %v5325_v31  ;;  %v6272_v2 = vpop.f32.mrf.mxu0  ;;  %v5328_v52 = vadd.f32 %v15229_v23, %v15206_v25 }
 0x45c   : > { %v6048_v33 = vpop.f32.mrf.mxu3  ;;  %v5942_v36 = vpop.f32.mrf.mxu1  ;;  %v5590_v20 = vadd.f32 %v15227_v3, %v5481_v24 }
 0x45d   : > { %v6067_v29 = vadd.f32 %v6048_v33, %v5958_v8 }
 0x45f   : > { %v5793_v60 = vpop.f32.mrf.mxu2  ;;  %v6288_v1 = vadd.f32 %v6269_v59, %v6067_v29 }
 0x460   : > { %v5810_v62 = vadd.f32 %v5793_v60, %v5589_v27 }
 0x462   : > { %v5959_v6 = vadd.f32 %v5942_v36, %v5810_v62  ;;  %v5482_v36 = vadd.f32 %v15231_v16, %v5328_v52  ;;  %v6274_v31 = vpop.f32.mrf.mxu0 }
 0x464   : > { %v6051_v37 = vpop.f32.mrf.mxu3  ;;  %v5944_v28 = vpop.f32.mrf.mxu1 }
 0x465   : > { %v6068_v32 = vadd.f32 %v6051_v37, %v5959_v6  ;;  %v5591_v37 = vadd.f32 %v15233_v63, %v5482_v36 }
 0x467   : > { %v15245_v58 = vpop.f32.mrf.mxu2 }
 0x468   : > { %v5811_v60 = vadd.f32 %v15245_v58, %v5590_v20  ;;  %v6289_v58 = vadd.f32 %v6272_v2, %v6068_v32 }
 0x46a   : > { %v5960_v25 = vadd.f32 %v5944_v28, %v5811_v60 }
 0x46c   : > { %v6053_v53 = vpop.f32.mrf.mxu3  ;;  %v5947_v23 = vpop.f32.mrf.mxu1 }
 0x46d   : > { %v6069_v28 = vadd.f32 %v6053_v53, %v5960_v25  ;;  %v5333_v53 = vadd.f32 %v15241_v0, %v15217_v41 }
 0x46f   : > { %v15251_v30 = vpop.f32.mrf.mxu2 }
 0x470   : > { %v5812_v24 = vadd.f32 %v15251_v30, %v5591_v37  ;;  %v6290_v30 = vadd.f32 %v6274_v31, %v6069_v28 }
 0x474   : > { %v5949_v60 = vpop.f32.mrf.mxu1 }
 0x477   : > { %v15257_v9 = vpop.f32.mrf.mxu2 }
 0x47f   : > { %v15260_v35 = vpop.f32.mrf.mxu2 }
 0x487   : > { %v15275_v18 = vpop.f32.mrf.mxu2 }
 0x48f   : > { %v6416_v19 = vpop.f32.mrf.mxu2 }
 0x490   : > { %v6436_v44 = vadd.f32 %v6416_v19, %v6287_v38  ;;  %v5330_v19 = vadd.f32 %v15235_v51, %v15214_v7  ;;  %v5961_v51 = vadd.f32 %v5947_v23, %v5812_v24  ;;  %v5952_v24 = vpop.f32.mrf.mxu1 }
 0x492   : > { %v6448_v4 = vadd.f32 %v15293_v39, %v6436_v44  ;;  %v5483_v2 = vadd.f32 %v15237_v46, %v5330_v19 }
 0x494   : > { %v6456_v55 = vmax.f32 %v6448_v4, 0.0  ;;  %v5592_v46 = vadd.f32 %v15239_v12, %v5483_v2 }
 0x496   : > { %v6464_v42 = vpack.c.bf16 %v6456_v55, %v6456_v55  ;;  %v6056_v55 = vpop.f32.mrf.mxu3 }
 0x497   : > { %v6418_v56 = vpop.f32.mrf.mxu2 }
 0x498   : > { %v6437_v49 = vadd.f32 %v6418_v56, %v6288_v1  ;;  %v6473_v27 = vshrl.u32 %v6464_v42, 16  ;;  %v6476_v21 = vshll.u32 %v6464_v42, 16  ;;  %v6647_v16 = vunpack.c.l.b16 %v6464_v42 }
 0x49a   : > { %v6449_v33 = vadd.f32 %v15293_v39, %v6437_v49  ;;  %v6475_v43 = vrot.slane %v6473_v27, 7  ;;  %v6277_v49 = vpop.f32.mrf.mxu0 }
 0x49c   : > { %v6457_v8 = vmax.f32 %v6449_v33, 0.0  ;;  %v6479_v59 = vrot.slane %v6475_v43, 4  ;;  %v6478_v38 = vor.u32 %v6476_v21, %v6475_v43  ;;  %v5813_v21 = vadd.f32 %v15257_v9, %v5592_v46 }
 0x49d   : > { %v5335_v9 = vadd.f32 %v15249_v10, %v15223_v54 }
 0x49e   : > { %v6465_v3 = vpack.c.bf16 %v6457_v8, %v6457_v8  ;;  %6538 = vrot.lane.b32.xlu2 %v6479_v59, %s12968_s27  ;;  %6536 = vrot.lane.b32.xlu1 %v6478_v38, %s12968_s27  ;;  %v6070_v59 = vadd.f32 %v6056_v55, %v5961_v51  ;;  %v5484_v38 = vadd.f32 %v15243_v5, %v5333_v53  ;;  %v6058_v31 = vpop.f32.mrf.mxu3 }
 0x49f   : > { %v6421_v44 = vpop.f32.mrf.mxu2  ;;  %v5962_v0 = vadd.f32 %v5949_v60, %v5813_v21 }
 0x4a0   : > { %v6648_v62 = vunpack.c.l.b16 %v6465_v3  ;;  %v6438_v4 = vadd.f32 %v6421_v44, %v6289_v58  ;;  %v6481_v29 = vshrl.u32 %v6465_v3, 16  ;;  %v6484_v20 = vshll.u32 %v6465_v3, 16 }
 0x4a1   : > { %v6291_v12 = vadd.f32 %v6277_v49, %v6070_v59  ;;  %v5593_v58 = vadd.f32 %v15247_v26, %v5484_v38 }
 0x4a2   : > { %v6655_v6 = vpack.c.b16 %v6648_v62, %v6647_v16  ;;  %v6450_v1 = vadd.f32 %v15293_v39, %v6438_v4  ;;  %v6483_v52 = vrot.slane %v6481_v29, 7  ;;  %v6279_v62 = vpop.f32.mrf.mxu0  ;;  %v6071_v29 = vadd.f32 %v6058_v31, %v5962_v0 }
 0x4a3   : > { %v5814_v4 = vadd.f32 %v15260_v35, %v5593_v58 }
 0x4a4   : > { %v6458_v56 = vmax.f32 %v6450_v1, 0.0  ;;  %11728 = vmatmul.msk.bf16.vlgmr.msra.gmra.mxu1 %vm1181_vm1, %v6655_v6  ;;  %11732 = vmatmul.msk.bf16.vlgmr.msra.gmra.mxu3 %vm1181_vm1, %v6655_v6  ;;  %v6487_v7 = vrot.slane %v6483_v52, 4  ;;  %v6486_v63 = vor.u32 %v6484_v20, %v6483_v52  ;;  %v5485_v52 = vadd.f32 %v15253_v57, %v5335_v9 }
 0x4a5   : > { %v5963_v2 = vadd.f32 %v5952_v24, %v5814_v4  ;;  %v6292_v35 = vadd.f32 %v6279_v62, %v6071_v29 }
 0x4a6   : > { %v6466_v42 = vpack.c.bf16 %v6458_v56, %v6458_v56  ;;  %6542 = vrot.lane.b32.xlu2 %v6487_v7, %s12968_s27  ;;  %6540 = vrot.lane.b32.xlu0 %v6486_v63, %s12968_s27  ;;  %v6061_v20 = vpop.f32.mrf.mxu3  ;;  %v12695_v7 = vld [vmem:[%s16809_s9 + $0x58] sm:$0xff]  ;;  %v5594_v57 = vadd.f32 %v15255_v50, %v5485_v52 }
 0x4a7   : > { %v6423_v27 = vpop.f32.mrf.mxu2  ;;  %6980 = vmatpush.bf16.msra.mxu0 %v12695_v7  ;;  %v6072_v60 = vadd.f32 %v6061_v20, %v5963_v2 }
 0x4a8   : > { %v6439_v33 = vadd.f32 %v6423_v27, %v6290_v30  ;;  %v6489_v43 = vshrl.u32 %v6466_v42, 16  ;;  %v6492_v8 = vshll.u32 %v6466_v42, 16  ;;  %v6649_v37 = vunpack.c.l.b16 %v6466_v42  ;;  %v12694_v30 = vld [vmem:[%s16809_s9 + $0x50] sm:$0xff] }
 0x4a9   : > { %v5815_v53 = vadd.f32 %v15275_v18, %v5594_v57 }
 0x4aa   : > { %v6451_v32 = vadd.f32 %v15293_v39, %v6439_v33  ;;  %v6491_v36 = vrot.slane %v6489_v43, 7  ;;  %v6282_v33 = vpop.f32.mrf.mxu0  ;;  %v5954_v43 = vpop.f32.mrf.mxu1 }
 0x4ab   : > { %6981 = vmatpush.bf16.msra.mxu0 %v12694_v30  ;;  %v6293_v59 = vadd.f32 %v6282_v33, %v6072_v60  ;;  %v12701_v30 = vld [vmem:[%s16809_s9 + $0x88] sm:$0xff]  ;;  %v12686_v60 = vld [vmem:[%s16809_s9 + $0x10] sm:$0xff] }
 0x4ac   : > { %v6459_v25 = vmax.f32 %v6451_v32, 0.0  ;;  %v6495_v23 = vrot.slane %v6491_v36, 4  ;;  %v6494_v41 = vor.u32 %v6492_v8, %v6491_v36  ;;  %v5964_v36 = vadd.f32 %v5954_v43, %v5815_v53  ;;  %v12711_v53 = vld [vmem:[%s16809_s9 + $0xb8] sm:$0xff]  ;;  %7234 = vmatpush.bf16.msrb.mxu1 %v12701_v30  ;;  %v12710_v33 = vld [vmem:[%s16809_s9 + $0xb0] sm:$0xff] }
 0x4ad   : > { %7359 = vmatpush.bf16.msrb.mxu3 %v12711_v53  ;;  %v12691_v43 = vld [vmem:[%s16809_s9 + $0x38] sm:$0xff] }
 0x4ae   : > { %v6467_v3 = vpack.c.bf16 %v6459_v25, %v6459_v25  ;;  %6546 = vrot.lane.b32.xlu0 %v6495_v23, %s12968_s27  ;;  %6544 = vrot.lane.b32.xlu1 %v6494_v41, %s12968_s27  ;;  %v6063_v18 = vpop.f32.mrf.mxu3 }
 0x4af   : > { %v6426_v19 = vpop.f32.mrf.mxu2  ;;  %v6073_v0 = vadd.f32 %v6063_v18, %v5964_v36  ;;  %v12698_v36 = vld [vmem:[%s16809_s9 + $0x70] sm:$0xff] }
 0x4b0   : > { %v6650_v44 = vunpack.c.l.b16 %v6467_v3  ;;  %v6440_v5 = vadd.f32 %v6426_v19, %v6291_v12  ;;  %v6497_v16 = vshrl.u32 %v6467_v3, 16  ;;  %v6500_v1 = vshll.u32 %v6467_v3, 16 }
 0x4b1   : > { %7360 = vmatpush.bf16.msrb.mxu3 %v12710_v33 }
 0x4b2   : > { %v6452_v28 = vadd.f32 %v15293_v39, %v6440_v5  ;;  %v6656_v55 = vpack.c.b16 %v6650_v44, %v6649_v37  ;;  %v6499_v6 = vrot.slane %v6497_v16, 7  ;;  %v6284_v5 = vpop.f32.mrf.mxu0 }
 0x4b3   : > { %v6294_v62 = vadd.f32 %v6284_v5, %v6073_v0  ;;  %v12707_v0 = vld [vmem:[%s16809_s9 + $0x98] sm:$0xff] }
 0x4b4   : > { %v6460_v10 = vmax.f32 %v6452_v28, 0.0  ;;  %11729 = vmatmul.msk.bf16.gmra.mxu1 %vm1181_vm1, %v6656_v55  ;;  %11733 = vmatmul.msk.bf16.gmra.mxu3 %vm1181_vm1, %v6656_v55  ;;  %v6503_v26 = vrot.slane %v6499_v6, 4  ;;  %v6502_v54 = vor.u32 %v6500_v1, %v6499_v6 }
 0x4b6   : > { %v6468_v56 = vpack.c.bf16 %v6460_v10, %v6460_v10  ;;  %6550 = vrot.lane.b32.xlu0 %v6503_v26, %s12968_s27  ;;  %6548 = vrot.lane.b32.xlu1 %v6502_v54, %s12968_s27 }
 0x4b7   : > { %v6428_v63 = vpop.f32.mrf.mxu2 }
 0x4b8   : > { %v6441_v51 = vadd.f32 %v6428_v63, %v6292_v35  ;;  %v6505_v42 = vshrl.u32 %v6468_v56, 16  ;;  %v6508_v27 = vshll.u32 %v6468_v56, 16  ;;  %v6651_v31 = vunpack.c.l.b16 %v6468_v56  ;;  %v12693_v63 = vld [vmem:[%s16809_s9 + $0x48] sm:$0xff] }
 0x4b9   : > { %6982 = vmatpush.bf16.msra.mxu0 %v12693_v63 }
 0x4ba   : > { %v6453_v49 = vadd.f32 %v15293_v39, %v6441_v51  ;;  %v6507_v46 = vrot.slane %v6505_v42, 7  ;;  %v12689_v51 = vld [vmem:[%s16809_s9 + $0x28] sm:$0xff]  ;;  %v12692_v42 = vld [vmem:[%s16809_s9 + $0x40] sm:$0xff] }
 0x4bb   : > { %7077 = vmatpush.bf16.msra.mxu2 %v12689_v51 }
 0x4bc   : > { %v6461_v21 = vmax.f32 %v6453_v49, 0.0  ;;  %v6511_v32 = vrot.slane %v6507_v46, 4  ;;  %v6510_v50 = vor.u32 %v6508_v27, %v6507_v46  ;;  %v12688_v49 = vld [vmem:[%s16809_s9 + $0x20] sm:$0xff]  ;;  %v12687_v27 = vld [vmem:[%s16809_s9 + $0x18] sm:$0xff] }
 0x4bd   : > { %6983 = vmatpush.bf16.msra.mxu0 %v12692_v42  ;;  %v12700_v46 = vld [vmem:[%s16809_s9 + $0x80] sm:$0xff] }
 0x4be   : > { %v6469_v8 = vpack.c.bf16 %v6461_v21, %v6461_v21  ;;  %6554 = vrot.lane.b32.xlu1 %v6511_v32, %s12968_s27  ;;  %6552 = vrot.lane.b32.xlu2 %v6510_v50, %s12968_s27  ;;  %v12699_v21 = vld [vmem:[%s16809_s9 + $0x78] sm:$0xff]  ;;  %v12685_v32 = vld [vmem:[%s16809_s9 + $0x8] sm:$0xff] }
 0x4bf   : > { %v6431_v38 = vpop.f32.mrf.mxu2  ;;  %7078 = vmatpush.bf16.msra.mxu2 %v12688_v49  ;;  %7235 = vmatpush.bf16.msrb.mxu1 %v12700_v46  ;;  %v12709_v50 = vld [vmem:[%s16809_s9 + $0xa8] sm:$0xff] }
 0x4c0   : > { %v6652_v25 = vunpack.c.l.b16 %v6469_v8  ;;  %v6442_v23 = vadd.f32 %v6431_v38, %v6293_v59  ;;  %v6513_v41 = vshrl.u32 %v6469_v8, 16  ;;  %v6516_v58 = vshll.u32 %v6469_v8, 16  ;;  %v6590_v59 = vld [vmem:[#allocation3 + $0xc] sm:$0x1]  ;;  %7361 = vmatpush.bf16.msrb.mxu3 %v12709_v50 }
 0x4c1   : > { %6984 = vmatpush.bf16.msra.mxu0 %v12691_v43 }
 0x4c2   : > { %v6454_v3 = vadd.f32 %v15293_v39, %v6442_v23  ;;  %v6657_v12 = vpack.c.b16 %v6652_v25, %v6651_v31  ;;  %v6515_v9 = vrot.slane %v6513_v41, 7  ;;  %v12684_v31 = vld [vmem:[%s16809_s9] sm:$0xff]  ;;  %v12697_v23 = vld [vmem:[%s16809_s9 + $0x68] sm:$0xff]  ;;  %v12690_v41 = vld [vmem:[%s16809_s9 + $0x30] sm:$0xff] }
 0x4c3   : > { %7079 = vmatpush.bf16.msra.mxu2 %v12687_v27  ;;  %7236 = vmatpush.bf16.msrb.mxu1 %v12699_v21  ;;  %v12708_v25 = vld [vmem:[%s16809_s9 + $0xa0] sm:$0xff] }
 0x4c4   : > { %v6462_v19 = vmax.f32 %v6454_v3, 0.0  ;;  %11730 = vmatmul.msk.bf16.gmra.mxu1 %vm1181_vm1, %v6657_v12  ;;  %11734 = vmatmul.msk.bf16.gmra.mxu3 %vm1181_vm1, %v6657_v12  ;;  %v6519_v37 = vrot.slane %v6515_v9, 4  ;;  %v6518_v44 = vor.u32 %v6516_v58, %v6515_v9  ;;  %v12696_v3 = vld [vmem:[%s16809_s9 + $0x60] sm:$0xff]  ;;  %v6596_v12 = vld [vmem:[#allocation3 + $0x14] sm:$0x1] }
 0x4c5   : > { %7362 = vmatpush.bf16.msrb.mxu3 %v12708_v25  ;;  %6985 = vmatpush.bf16.msra.mxu0 %v12690_v41  ;;  %v12715_v25 = vld [vmem:[%s16809_s9 + $0xd8] sm:$0xff] }
 0x4c6   : > { %v6470_v16 = vpack.c.bf16 %v6462_v19, %v6462_v19  ;;  %6558 = vrot.lane.b32.xlu1 %v6519_v37, %s12968_s27  ;;  %6556 = vrot.lane.b32.xlu2 %v6518_v44, %s12968_s27  ;;  %v12706_v19 = vld [vmem:[%s16809_s9 + $0x90] sm:$0xff]  ;;  %v12717_v37 = vld [vmem:[%s16809_s9 + $0xe8] sm:$0xff]  ;;  %v6765_v44 = vld [vmem:[#allocation3] sm:$0xf] }
 0x4c7   : > { %v6433_v4 = vpop.f32.mrf.mxu2  ;;  %7080 = vmatpush.bf16.msra.mxu2 %v12686_v60  ;;  %7237 = vmatpush.bf16.msrb.mxu1 %v12698_v36 }
 0x4c8   : > { %v6443_v29 = vadd.f32 %v6433_v4, %v6294_v62  ;;  %v6521_v24 = vshrl.u32 %v6470_v16, 16  ;;  %v6524_v6 = vshll.u32 %v6470_v16, 16  ;;  %v6653_v54 = vunpack.c.l.b16 %v6470_v16 }
 0x4c9   : > { %7363 = vmatpush.bf16.msrb.mxu3 %v12707_v0  ;;  %7596 = vmatpush.bf16.msrb.mxu0 %v12717_v37  ;;  %v6794_v16 = vshrl.u32 %v6765_v44, 16  ;;  %v6797_v62 = vshll.u32 %v6765_v44, 16  ;;  %v6617_v37 = vld [vmem:[#allocation3 + $0x30] sm:$0xf] }
 0x4ca   : > { %v6455_v28 = vadd.f32 %v15293_v39, %v6443_v29  ;;  %v6523_v55 = vrot.slane %v6521_v24, 7  ;;  %v6785_v29 = vld [vmem:[#allocation3 + $0x4] sm:$0x1]  ;;  %v7104_v24 = vld [vmem:[#allocation3] sm:$0xe] }
 0x4cb   : > { %7081 = vmatpush.bf16.msra.mxu2 %v12685_v32  ;;  %7238 = vmatpush.bf16.msrb.mxu1 %v12697_v23 }
 0x4cc   : > { %v6463_v1 = vmax.f32 %v6455_v28, 0.0  ;;  %v6527_v52 = vrot.slane %v6523_v55, 4  ;;  %v6526_v10 = vor.u32 %v6524_v6, %v6523_v55  ;;  %v12900_v28 = vld [vmem:[#allocation3 + $0x8] sm:$0xf]  ;;  %v12716_v6 = vld [vmem:[%s16809_s9 + $0xe0] sm:$0xff] }
 0x4cd   : > { %7364 = vmatpush.bf16.msrb.mxu3 %v12706_v19  ;;  %7597 = vmatpush.bf16.msrb.mxu0 %v12716_v6 }
 0x4ce   : > { %v6471_v26 = vpack.c.bf16 %v6463_v1, %v6463_v1  ;;  %6562 = vrot.lane.b32.xlu2 %v6527_v52, %s12968_s27  ;;  %6560 = vrot.lane.b32.xlu0 %v6526_v10, %s12968_s27  ;;  %v11808_v1 = vrot.slane %v7104_v24, 9  ;;  %v7130_v52 = vrot.slane %v6785_v29, 5  ;;  %v6796_v10 = vrot.slane %v6794_v16, 4 }
 0x4cf   : > { %7082 = vmatpush.bf16.msra.mxu2 %v12684_v31  ;;  %7239 = vmatpush.bf16.msrb.mxu1 %v12696_v3  ;;  %v4982_v3 = vadd.f32 %v15073_v40, %v15012_v17 }
 0x4d0   : > { %v6654_v20 = vunpack.c.l.b16 %v6471_v26  ;;  %v6529_v2 = vshrl.u32 %v6471_v26, 16  ;;  %v6532_v7 = vshll.u32 %v6471_v26, 16  ;;  %v6799_v26 = vrot.slane %v6797_v62, 5 }
 0x4d1   : > { %7598 = vmatpush.bf16.msrb.mxu0 %v12715_v25 }
 0x4d2   : > { %v6658_v56 = vpack.c.b16 %v6654_v20, %v6653_v54  ;;  %v6531_v35 = vrot.slane %v6529_v2, 7  ;;  %v11766_v54 = vld [vmem:[#allocation3] sm:$0xf]  ;;  %v7131_v2 = vsel %vm13529_vm13, %v11808_v1, %v7130_v52 }
 0x4d3   : > { %v7172_v60 = vunpack.c.l.b16 %v7131_v2 }
 0x4d4   : > { %11731 = vmatmul.msk.bf16.gmra.mxu1 %vm1181_vm1, %v6658_v56  ;;  %11735 = vmatmul.msk.bf16.gmra.mxu3 %vm1181_vm1, %v6658_v56  ;;  %v6535_v39 = vrot.slane %v6531_v35, 4  ;;  %v6534_v57 = vor.u32 %v6532_v7, %v6531_v35  ;;  %v6800_v56 = vor.u32 %v6799_v26, %v6796_v10  ;;  %v6803_v35 = vshll.u32 %v6785_v29, 16  ;;  %v6593_v7 = vld [vmem:[#allocation3 + $0x10] sm:$0xf] }
 0x4d6   : > { %6566 = vrot.lane.b32.xlu1 %v6535_v39, %s12968_s27  ;;  %6564 = vrot.lane.b32.xlu0 %v6534_v57, %s12968_s27  ;;  %v6611_v57 = vld [vmem:[#allocation3 + $0x28] sm:$0xf]  ;;  %v6801_v43 = vrot.slane %v6800_v56, 4  ;;  %v6805_v21 = vrot.slane %v6803_v35, 5  ;;  %v12723_v56 = vld [vmem:[%s16809_s9 + $0x118] sm:$0xff]  ;;  %v5011_v35 = vadd.f32 %v15093_v22, %v15070_v15 }
 0x4d7   : > { %7761 = vmatpush.bf16.msrb.mxu2 %v12723_v56 }
 0x4d8   : > { %v6806_v41 = vsel %vm13367_vm6, %v6801_v43, %v6805_v21 }
 0x4d9   : > { %v6917_v1 = vunpack.c.l.b16 %v6806_v41 }
 0x4f8   : > { %v6539_v38 = vpop.permute.xlu2 %6538 }
 0x4f9   : > { %v6591_v18 = vsel %vm15405_vm10, %v6539_v38, %v6590_v59 }
 0x4fa   : > { %6592 = vst [vmem:[#allocation3 + $0xc] sm:$0x1] %v6591_v18 }
 0x500   : > { %v6543_v9 = vpop.permute.xlu2 %6542 }
 0x501   : > { %v6597_v58 = vsel %vm15405_vm10, %v6543_v9, %v6596_v12  ;;  %v6786_v20 = vld [vmem:[#allocation3 + $0xc] sm:$0x1]  ;;  %v6602_v12 = vld [vmem:[#allocation3 + $0x1c] sm:$0x1] }
 0x502   : > { %6598 = vst [vmem:[#allocation3 + $0x14] sm:$0x1] %v6597_v58  ;;  %v7134_v27 = vrot.slane %v6786_v20, 5  ;;  %v6817_v31 = vshll.u32 %v6786_v20, 16  ;;  %v6599_v58 = vld [vmem:[#allocation3 + $0x18] sm:$0xf] }
 0x510   : > { %v6537_v4 = vpop.permute.xlu1 %6536 }
 0x511   : > { %v6586_v55 = vsel %vm15438_vm14, %v6537_v4, %v12900_v28 }
 0x512   : > { %6587 = vst [vmem:[#allocation3 + $0x8] sm:$0xf] %v6586_v55  ;;  %v6819_v55 = vrot.slane %v6817_v31, 5 }
 0x518   : > { %v6541_v39 = vpop.permute.xlu0 %6540  ;;  %v6553_v63 = vpop.permute.xlu2 %6552 }
 0x519   : > { %v6594_v51 = vsel %vm15438_vm14, %v6541_v39, %v6593_v7  ;;  %v6612_v42 = vsel %vm15438_vm14, %v6553_v63, %v6611_v57  ;;  %v12680_v30 = vld [vmem:[#allocation3 + $0x4] sm:$0xf0]  ;;  %v6787_v39 = vld [vmem:[#allocation3 + $0x14] sm:$0x1] }
 0x51a   : > { %v7105_v53 = vld [vmem:[#allocation3 + $0x8] sm:$0xe]  ;;  %6595 = vst [vmem:[#allocation3 + $0x10] sm:$0xf] %v6594_v51  ;;  %v11767_v49 = vor.u32 %v12680_v30, %v11766_v54 }
 0x51b   : > { %v11809_v46 = vrot.slane %v7105_v53, 9  ;;  %v6766_v33 = vld [vmem:[#allocation3 + $0x8] sm:$0xf]  ;;  %6613 = vst [vmem:[#allocation3 + $0x28] sm:$0xf] %v6612_v42 }
 0x51c   : > { %v6808_v32 = vshrl.u32 %v6766_v33, 16  ;;  %v6811_v50 = vshll.u32 %v6766_v33, 16  ;;  %11804 = vmatmul.msk.bf16.vlgmr.msra.gmra.mxu2 %vm6965_vm15, %v11767_v49  ;;  %v11846_v29 = vld [vmem:[#allocation3 + $0x8] sm:$0xf]  ;;  %v6608_v53 = vld [vmem:[#allocation3 + $0x24] sm:$0x1] }
 0x51d   : > { %v7135_v36 = vsel %vm13529_vm13, %v11809_v46, %v7134_v27  ;;  %v6605_v46 = vld [vmem:[#allocation3 + $0x20] sm:$0xf] }
 0x51e   : > { %v7173_v59 = vunpack.c.l.b16 %v7135_v36  ;;  %v6810_v38 = vrot.slane %v6808_v32, 4  ;;  %v6813_v18 = vrot.slane %v6811_v50, 5  ;;  %v7138_v50 = vrot.slane %v6787_v39, 5 }
 0x520   : > { %v7180_v23 = vpack.c.b16 %v7173_v59, %v7172_v60  ;;  %v6814_v0 = vor.u32 %v6813_v18, %v6810_v38  ;;  %v6547_v9 = vpop.permute.xlu0 %6546  ;;  %v6545_v19 = vpop.permute.xlu1 %6544  ;;  %v6626_v60 = vld [vmem:[#allocation3 + $0x3c] sm:$0x1] }
 0x521   : > { %v6603_v44 = vsel %vm15405_vm10, %v6547_v9, %v6602_v12  ;;  %v6600_v16 = vsel %vm15438_vm14, %v6545_v19, %v6599_v58  ;;  %v6557_v62 = vpop.permute.xlu2 %6556  ;;  %v6700_v4 = vpop.f32.mrf.mxu1  ;;  %v12702_v24 = vld [vmem:[#allocation3 + $0xc] sm:$0xf0] }
 0x522   : > { %11840 = vmatmul.msk.bf16.vlgmr.msrb.gmra.mxu1 %vm6965_vm15, %v7180_v23  ;;  %v6815_v28 = vrot.slane %v6814_v0, 4  ;;  %6604 = vst [vmem:[#allocation3 + $0x1c] sm:$0x1] %v6603_v44  ;;  %v6618_v17 = vsel %vm15438_vm14, %v6557_v62, %v6617_v37  ;;  %v15470_v40 = vadd.f32 %v6700_v4, %v4982_v3  ;;  %v11847_v6 = vor.u32 %v12702_v24, %v11846_v29  ;;  %v6767_v52 = vld [vmem:[#allocation3 + $0x10] sm:$0xf]  ;;  %v12733_v29 = vld [vmem:[%s16809_s9 + $0x148] sm:$0xff] }
 0x523   : > { %6601 = vst [vmem:[#allocation3 + $0x18] sm:$0xf] %v6600_v16  ;;  %v6822_v26 = vshrl.u32 %v6767_v52, 16  ;;  %v6825_v54 = vshll.u32 %v6767_v52, 16  ;;  %v7106_v2 = vld [vmem:[#allocation3 + $0x10] sm:$0xe]  ;;  %7886 = vmatpush.bf16.msra.mxu1 %v12733_v29 }
 0x524   : > { %v6820_v10 = vsel %vm13367_vm6, %v6815_v28, %v6819_v55  ;;  %6619 = vst [vmem:[#allocation3 + $0x30] sm:$0xf] %v6618_v17  ;;  %11884 = vmatmul.msk.bf16.vlgmr.msrb.gmra.mxu3 %vm6965_vm15, %v11847_v6  ;;  %v11810_v42 = vrot.slane %v7106_v2, 9  ;;  %v11770_v21 = vld [vmem:[#allocation3 + $0x10] sm:$0xf]  ;;  %v6831_v3 = vshll.u32 %v6787_v39, 16 }
 0x525   : > { %v6918_v20 = vunpack.c.l.b16 %v6820_v10  ;;  %v6824_v57 = vrot.slane %v6822_v26, 4  ;;  %v6827_v63 = vrot.slane %v6825_v54, 5  ;;  %v12714_v19 = vld [vmem:[%s16809_s9 + $0xd0] sm:$0xff]  ;;  %v6770_v62 = vld [vmem:[#allocation3 + $0x28] sm:$0xf]  ;;  %v12739_v6 = vld [vmem:[%s16809_s9 + $0x178] sm:$0xff] }
 0x526   : > { %v7139_v25 = vsel %vm13529_vm13, %v11810_v42, %v7138_v50  ;;  %v12722_v4 = vld [vmem:[%s16809_s9 + $0x110] sm:$0xff]  ;;  %7599 = vmatpush.bf16.msrb.mxu0 %v12714_v19  ;;  %v6614_v52 = vld [vmem:[#allocation3 + $0x2c] sm:$0x1]  ;;  %v6833_v54 = vrot.slane %v6831_v3, 5  ;;  %v12732_v2 = vld [vmem:[%s16809_s9 + $0x140] sm:$0xff]  ;;  %v6867_v39 = vshll.u32 %v6770_v62, 16  ;;  %8123 = vmatpush.bf16.msra.mxu3 %v12739_v6 }
 0x527   : > { %v6925_v7 = vpack.c.b16 %v6918_v20, %v6917_v1  ;;  %v6729_v51 = vpop.f32.mrf.mxu3  ;;  %v6828_v18 = vor.u32 %v6827_v63, %v6824_v57  ;;  %v7174_v37 = vunpack.c.l.b16 %v7139_v25  ;;  %v4987_v1 = vadd.f32 %v15130_v45, %v15059_v14  ;;  %7762 = vmatpush.bf16.msrb.mxu2 %v12722_v4  ;;  %v12721_v20 = vld [vmem:[%s16809_s9 + $0x108] sm:$0xff]  ;;  %7887 = vmatpush.bf16.msra.mxu1 %v12732_v2  ;;  %v6620_v19 = vld [vmem:[#allocation3 + $0x34] sm:$0x1] }
 0x528   : > { %v15480_v30 = vadd.f32 %v6729_v51, %v5011_v35  ;;  %v6551_v49 = vpop.permute.xlu0 %6550  ;;  %v6549_v27 = vpop.permute.xlu1 %6548  ;;  %v6864_v45 = vshrl.u32 %v6770_v62, 16  ;;  %v7109_v50 = vld [vmem:[#allocation3 + $0x28] sm:$0xe] }
 0x529   : > { %11760 = vmatmul.msk.bf16.vlgmr.msra.gmra.mxu0 %vm6965_vm15, %v6925_v7  ;;  %v6609_v33 = vsel %vm15405_vm10, %v6551_v49, %v6608_v53  ;;  %v6606_v15 = vsel %vm15438_vm14, %v6549_v27, %v6605_v46  ;;  %v6563_v22 = vpop.permute.xlu2 %6562  ;;  %v15487_v43 = vpop.f32.mrf.mxu1  ;;  %v6788_v32 = vld [vmem:[#allocation3 + $0x1c] sm:$0x1]  ;;  %v6829_v16 = vrot.slane %v6828_v18, 4  ;;  %v12713_v25 = vld [vmem:[%s16809_s9 + $0xc8] sm:$0xff] }
 0x52a   : > { %6610 = vst [vmem:[#allocation3 + $0x24] sm:$0x1] %v6609_v33  ;;  %v6627_v36 = vsel %vm15405_vm10, %v6563_v22, %v6626_v60  ;;  %v12681_v59 = vld [vmem:[#allocation3 + $0x14] sm:$0xf0]  ;;  %v7142_v41 = vrot.slane %v6788_v32, 5  ;;  %v6845_v17 = vshll.u32 %v6788_v32, 16  ;;  %v5016_v22 = vadd.f32 %v15136_v48, %v15121_v61  ;;  %7600 = vmatpush.bf16.msrb.mxu0 %v12713_v25 }
 0x52b   : > { %v7107_v38 = vld [vmem:[#allocation3 + $0x18] sm:$0xe]  ;;  %6607 = vst [vmem:[#allocation3 + $0x20] sm:$0xf] %v6606_v15  ;;  %v11771_v31 = vor.u32 %v12681_v59, %v11770_v21  ;;  %v6834_v51 = vsel %vm13367_vm6, %v6829_v16, %v6833_v54  ;;  %7763 = vmatpush.bf16.msrb.mxu2 %v12721_v20  ;;  %v12720_v59 = vld [vmem:[%s16809_s9 + $0x100] sm:$0xff]  ;;  %v6869_v48 = vrot.slane %v6867_v39, 5 }
 0x52c   : > { %v11811_v23 = vrot.slane %v7107_v38, 9  ;;  %6628 = vst [vmem:[#allocation3 + $0x3c] sm:$0x1] %v6627_v36  ;;  %v6768_v0 = vld [vmem:[#allocation3 + $0x18] sm:$0xf]  ;;  %v6847_v46 = vrot.slane %v6845_v17, 5  ;;  %v6919_v32 = vunpack.c.l.b16 %v6834_v51 }
 0x52d   : > { %11805 = vmatmul.msk.bf16.gmra.mxu2 %vm6965_vm15, %v11771_v31  ;;  %v6836_v9 = vshrl.u32 %v6768_v0, 16  ;;  %v6839_v58 = vshll.u32 %v6768_v0, 16  ;;  %v11850_v7 = vld [vmem:[#allocation3 + $0x18] sm:$0xf]  ;;  %v6866_v36 = vrot.slane %v6864_v45, 4  ;;  %v12738_v38 = vld [vmem:[%s16809_s9 + $0x170] sm:$0xff] }
 0x52e   : > { %v7143_v12 = vsel %vm13529_vm13, %v11811_v23, %v7142_v41  ;;  %v12731_v23 = vld [vmem:[%s16809_s9 + $0x138] sm:$0xff]  ;;  %8124 = vmatpush.bf16.msra.mxu3 %v12738_v38  ;;  %v12682_v17 = vld [vmem:[#allocation3 + $0x24] sm:$0xf0]  ;;  %v12736_v20 = vld [vmem:[%s16809_s9 + $0x160] sm:$0xff] }
 0x52f   : > { %v7175_v44 = vunpack.c.l.b16 %v7143_v12  ;;  %v15505_v24 = vpop.f32.mrf.mxu3  ;;  %v6838_v28 = vrot.slane %v6836_v9, 4  ;;  %v6841_v55 = vrot.slane %v6839_v58, 5  ;;  %v12737_v12 = vld [vmem:[%s16809_s9 + $0x168] sm:$0xff]  ;;  %7764 = vmatpush.bf16.msrb.mxu2 %v12720_v59  ;;  %v12719_v16 = vld [vmem:[%s16809_s9 + $0xf8] sm:$0xff]  ;;  %7888 = vmatpush.bf16.msra.mxu1 %v12731_v23  ;;  %v12712_v51 = vld [vmem:[%s16809_s9 + $0xc0] sm:$0xff] }
 0x530   : > { %v6555_v10 = vpop.permute.xlu1 %6554  ;;  %7601 = vmatpush.bf16.msrb.mxu0 %v12712_v51 }
 0x531   : > { %v7181_v26 = vpack.c.b16 %v7175_v44, %v7174_v37  ;;  %v6615_v56 = vsel %vm15405_vm10, %v6555_v10, %v6614_v52  ;;  %v6705_v35 = vpop.f32.mrf.mxu1  ;;  %v6842_v14 = vor.u32 %v6841_v55, %v6838_v28  ;;  %v15525_v42 = vld [vmem:[#allocation3 + $0x24] sm:$0x1]  ;;  %v11813_v28 = vrot.slane %v7109_v50, 9  ;;  %v12730_v55 = vld [vmem:[%s16809_s9 + $0x130] sm:$0xff] }
 0x532   : > { %6616 = vst [vmem:[#allocation3 + $0x2c] sm:$0x1] %v6615_v56  ;;  %v15520_v57 = vadd.f32 %v6705_v35, %v4987_v1  ;;  %v12703_v63 = vld [vmem:[#allocation3 + $0x1c] sm:$0xf0]  ;;  %v7146_v61 = vrot.slane %v15525_v42, 5  ;;  %v6870_v52 = vor.u32 %v6869_v48, %v6866_v36  ;;  %8125 = vmatpush.bf16.msra.mxu3 %v12737_v12  ;;  %v12718_v35 = vld [vmem:[%s16809_s9 + $0xf0] sm:$0xff] }
 0x533   : > { %11841 = vmatmul.msk.bf16.gmra.mxu1 %vm6965_vm15, %v7181_v26  ;;  %v11851_v53 = vor.u32 %v12703_v63, %v11850_v7  ;;  %v6843_v49 = vrot.slane %v6842_v14, 4  ;;  %v7108_v27 = vld [vmem:[#allocation3 + $0x20] sm:$0xe]  ;;  %7765 = vmatpush.bf16.msrb.mxu2 %v12719_v16  ;;  %v6771_v56 = vld [vmem:[#allocation3 + $0x30] sm:$0xf]  ;;  %v6859_v45 = vshll.u32 %v15525_v42, 16 }
 0x534   : > { %v6769_v60 = vld [vmem:[#allocation3 + $0x20] sm:$0xf]  ;;  %v11812_v31 = vrot.slane %v7108_v27, 9  ;;  %7889 = vmatpush.bf16.msra.mxu1 %v12730_v55  ;;  %v12729_v63 = vld [vmem:[%s16809_s9 + $0x128] sm:$0xff]  ;;  %v12735_v42 = vld [vmem:[%s16809_s9 + $0x158] sm:$0xff] }
 0x535   : > { %v6850_v33 = vshrl.u32 %v6769_v60, 16  ;;  %v6853_v15 = vshll.u32 %v6769_v60, 16  ;;  %11885 = vmatmul.msk.bf16.gmra.mxu3 %vm6965_vm15, %v11851_v53  ;;  %v6848_v21 = vsel %vm13367_vm6, %v6843_v49, %v6847_v46  ;;  %v11774_v44 = vld [vmem:[#allocation3 + $0x20] sm:$0xf]  ;;  %v6871_v53 = vrot.slane %v6870_v52, 4 }
 0x536   : > { %v6920_v18 = vunpack.c.l.b16 %v6848_v21  ;;  %v7147_v6 = vsel %vm13529_vm13, %v11812_v31, %v7146_v61  ;;  %v11775_v26 = vor.u32 %v12682_v17, %v11774_v44  ;;  %v6878_v60 = vshrl.u32 %v6771_v56, 16  ;;  %8126 = vmatpush.bf16.msra.mxu3 %v12736_v20  ;;  %v7110_v12 = vld [vmem:[#allocation3 + $0x30] sm:$0xe]  ;;  %v6632_v17 = vld [vmem:[#allocation3 + $0x44] sm:$0x1] }
 0x537   : > { %v6734_v41 = vpop.f32.mrf.mxu3  ;;  %v6852_v0 = vrot.slane %v6850_v33, 4  ;;  %v6855_v3 = vrot.slane %v6853_v15, 5  ;;  %v7176_v7 = vunpack.c.l.b16 %v7147_v6  ;;  %v6881_v33 = vshll.u32 %v6771_v56, 16  ;;  %7766 = vmatpush.bf16.msrb.mxu2 %v12718_v35  ;;  %v11778_v6 = vld [vmem:[#allocation3 + $0x30] sm:$0xf] }
 0x538   : > { %v15548_v9 = vadd.f32 %v6734_v41, %v5016_v22  ;;  %v6926_v58 = vpack.c.b16 %v6920_v18, %v6919_v32  ;;  %v6559_v37 = vpop.permute.xlu1 %6558  ;;  %v4992_v15 = vadd.f32 %v15157_v34, %v15115_v47  ;;  %v6623_v22 = vld [vmem:[#allocation3 + $0x38] sm:$0xf]  ;;  %v12704_v32 = vld [vmem:[#allocation3 + $0x2c] sm:$0xf0]  ;;  %v6861_v59 = vrot.slane %v6859_v45, 5  ;;  %7890 = vmatpush.bf16.msra.mxu1 %v12729_v63  ;;  %v12728_v18 = vld [vmem:[%s16809_s9 + $0x120] sm:$0xff] }
 0x539   : > { %v6621_v62 = vsel %vm15405_vm10, %v6559_v37, %v6620_v19  ;;  %v15555_v4 = vpop.f32.mrf.mxu1  ;;  %v6790_v29 = vld [vmem:[#allocation3 + $0x2c] sm:$0x1]  ;;  %v6856_v54 = vor.u32 %v6855_v3, %v6852_v0  ;;  %v11854_v47 = vld [vmem:[#allocation3 + $0x28] sm:$0xf]  ;;  %v6880_v25 = vrot.slane %v6878_v60, 4  ;;  %v6883_v23 = vrot.slane %v6881_v33, 5 }
 0x53a   : > { %11761 = vmatmul.msk.bf16.gmra.mxu0 %vm6965_vm15, %v6926_v58  ;;  %6622 = vst [vmem:[#allocation3 + $0x34] sm:$0x1] %v6621_v62  ;;  %v7150_v1 = vrot.slane %v6790_v29, 5  ;;  %v6873_v10 = vshll.u32 %v6790_v29, 16  ;;  %v11855_v34 = vor.u32 %v12704_v32, %v11854_v47  ;;  %8127 = vmatpush.bf16.msra.mxu3 %v12735_v42  ;;  %v12734_v41 = vld [vmem:[%s16809_s9 + $0x150] sm:$0xff]  ;;  %v16926_v19 = vld [vmem:[#allocation24_spill] sm:$0xff] }
 0x53b   : > { %v6857_v27 = vrot.slane %v6856_v54, 4  ;;  %v15601_v3 = vld [vmem:[#allocation3 + $0x3c] sm:$0x1]  ;;  %v7921_v58 = vld [vmem:[#allocation3 + $0x10] sm:$0xf]  ;;  %v12745_v47 = vld [vmem:[%s16809_s9 + $0x1a8] sm:$0xff] }
 0x53c   : > { %v7151_v2 = vsel %vm13529_vm13, %v11813_v28, %v7150_v1  ;;  %v6875_v39 = vrot.slane %v6873_v10, 5  ;;  %7891 = vmatpush.bf16.msra.mxu1 %v12728_v18  ;;  %v16927_v37 = vld [vmem:[#allocation25_spill] sm:$0xff]  ;;  %v6629_v62 = vld [vmem:[#allocation3 + $0x40] sm:$0xf]  ;;  %v7923_v28 = vld [vmem:[#allocation3 + $0x18] sm:$0xf]  ;;  %v6884_v10 = vor.u32 %v6883_v23, %v6880_v25  ;;  %8288 = vmatpush.bf16.msra.mxu0 %v12745_v47 }
 0x53d   : > { %11806 = vmatmul.msk.bf16.gmra.mxu2 %vm6965_vm15, %v11775_v26  ;;  %v7177_v14 = vunpack.c.l.b16 %v7151_v2  ;;  %v6862_v61 = vsel %vm13367_vm6, %v6857_v27, %v6861_v59  ;;  %v5021_v44 = vadd.f32 %v16927_v37, %v16926_v19  ;;  %v11814_v1 = vrot.slane %v7110_v12, 9  ;;  %v15609_v35 = vld [vmem:[#allocation3 + $0x14] sm:$0x1]  ;;  %v7396_v18 = vld [vmem:[#allocation3 + $0x10] sm:$0xf] }
 0x53e   : > { %v6876_v38 = vsel %vm13367_vm6, %v6871_v53, %v6875_v39  ;;  %v6921_v16 = vunpack.c.l.b16 %v6862_v61  ;;  %v7158_v52 = vrot.slane %v15601_v3, 5  ;;  %8128 = vmatpush.bf16.msra.mxu3 %v12734_v41  ;;  %v7952_v27 = vshrl.u32 %v7923_v28, 16  ;;  %v15628_v23 = vld [vmem:[#allocation3 + $0xc] sm:$0x1]  ;;  %v7631_v41 = vld [vmem:[#allocation3 + $0x8] sm:$0xe] }
 0x53f   : > { %v15579_v49 = vpop.f32.mrf.mxu3  ;;  %v7182_v46 = vpack.c.b16 %v7177_v14, %v7176_v7  ;;  %v6922_v0 = vunpack.c.l.b16 %v6876_v38  ;;  %v7632_v7 = vld [vmem:[#allocation3 + $0x10] sm:$0xe]  ;;  %v7938_v14 = vshrl.u32 %v7921_v58, 16  ;;  %v7955_v8 = vshll.u32 %v7923_v28, 16  ;;  %v7394_v19 = vld [vmem:[#allocation3 + $0x8] sm:$0xf] }
 0x540   : > { %16925 = vst [vmem:[#allocation35_spill] sm:$0xff] %v15579_v49  ;;  %v6561_v21 = vpop.permute.xlu0 %6560  ;;  %v11917_v32 = vrot.slane %v7632_v7, 9  ;;  %v7661_v38 = vrot.slane %v15609_v35, 5  ;;  %v7954_v12 = vrot.slane %v7952_v27, 4  ;;  %v16930_v28 = vld [vmem:[#allocation22_spill] sm:$0xff]  ;;  %v7414_v27 = vshll.u32 %v7394_v19, 16 }
 0x541   : > { %v6624_v50 = vsel %vm15438_vm14, %v6561_v21, %v6623_v22  ;;  %v6710_v36 = vpop.f32.mrf.mxu1  ;;  %v6791_v48 = vld [vmem:[#allocation3 + $0x34] sm:$0x1]  ;;  %v6927_v54 = vpack.c.b16 %v6922_v0, %v6921_v16  ;;  %v6901_v21 = vshll.u32 %v15601_v3, 16  ;;  %v7940_v0 = vrot.slane %v7938_v14, 4  ;;  %v15641_v7 = vld [vmem:[#allocation3 + $0x1c] sm:$0x1] }
 0x542   : > { %6625 = vst [vmem:[#allocation3 + $0x38] sm:$0xf] %v6624_v50  ;;  %v15593_v31 = vadd.f32 %v6710_v36, %v4992_v15  ;;  %v7154_v29 = vrot.slane %v6791_v48, 5  ;;  %v6887_v56 = vshll.u32 %v6791_v48, 16  ;;  %v6885_v36 = vrot.slane %v6884_v10, 4 }
 0x543   : > { %11842 = vmatmul.msk.bf16.gmra.mxu1 %vm6965_vm15, %v7182_v46  ;;  %v7941_v46 = vshll.u32 %v7921_v58, 16  ;;  %v7957_v58 = vrot.slane %v7955_v8, 5  ;;  %v7411_v14 = vshrl.u32 %v7394_v19, 16  ;;  %v12062_v49 = vld [vmem:[%s16813_s13 + $0x60] sm:$0xf] }
 0x544   : > { %v7155_v33 = vsel %vm13529_vm13, %v11814_v1, %v7154_v29  ;;  %v6889_v59 = vrot.slane %v6887_v56, 5  ;;  %v7428_v29 = vshll.u32 %v7396_v18, 16  ;;  %v11916_v1 = vrot.slane %v7631_v41, 9  ;;  %v15639_v56 = vld [vmem:[#allocation3 + $0x14] sm:$0x1] }
 0x545   : > { %11886 = vmatmul.msk.bf16.gmra.mxu3 %vm6965_vm15, %v11855_v34  ;;  %v7178_v34 = vunpack.c.l.b16 %v7155_v33  ;;  %v7943_v3 = vrot.slane %v7941_v46, 5  ;;  %v7958_v46 = vor.u32 %v7957_v58, %v7954_v12  ;;  %v7413_v47 = vrot.slane %v7411_v14, 4 }
 0x546   : > { %v7430_v8 = vrot.slane %v7428_v29, 5  ;;  %v7927_v29 = vld [vmem:[#allocation3 + $0x28] sm:$0xf] }
 0x547   : > { %v6739_v55 = vpop.f32.mrf.mxu3  ;;  %v7959_v41 = vrot.slane %v7958_v46, 4 }
 0x548   : > { %v15607_v26 = vadd.f32 %v6739_v55, %v5021_v44  ;;  %v6567_v20 = vpop.permute.xlu1 %6566  ;;  %v6565_v2 = vpop.permute.xlu0 %6564  ;;  %v16931_v55 = vld [vmem:[#allocation30_spill] sm:$0xff] }
 0x549   : > { %v6633_v45 = vsel %vm15405_vm10, %v6567_v20, %v6632_v17  ;;  %v6630_v39 = vsel %vm15438_vm14, %v6565_v2, %v6629_v62  ;;  %v15615_v63 = vpop.f32.mrf.mxu1  ;;  %v12683_v51 = vld [vmem:[#allocation3 + $0x34] sm:$0xf0]  ;;  %v7425_v62 = vshrl.u32 %v7396_v18, 16  ;;  %v4997_v17 = vadd.f32 %v16931_v55, %v16930_v28  ;;  %v11954_v28 = vld [vmem:[#allocation3 + $0x10] sm:$0xf] }
 0x54a   : > { %16928 = vst [vmem:[#allocation24_spill] sm:$0xff] %v15615_v63  ;;  %v7111_v53 = vld [vmem:[#allocation3 + $0x38] sm:$0xe]  ;;  %11762 = vmatmul.msk.bf16.gmra.mxu0 %vm6965_vm15, %v6927_v54  ;;  %v11779_v60 = vor.u32 %v12683_v51, %v11778_v6  ;;  %v6903_v6 = vrot.slane %v6901_v21, 5  ;;  %v6890_v54 = vsel %vm13367_vm6, %v6885_v36, %v6889_v59  ;;  %v7662_v2 = vsel %vm13529_vm13, %v11917_v32, %v7661_v38  ;;  %v16933_v36 = vld [vmem:[#allocation31_spill] sm:$0xff] }
 0x54b   : > { %6634 = vst [vmem:[#allocation3 + $0x44] sm:$0x1] %v6633_v45  ;;  %v11815_v42 = vrot.slane %v7111_v53, 9  ;;  %v6772_v15 = vld [vmem:[#allocation3 + $0x38] sm:$0xf]  ;;  %v7944_v53 = vor.u32 %v7943_v3, %v7940_v0  ;;  %v7947_v21 = vshll.u32 %v15639_v56, 16 }
 0x54c   : > { %6631 = vst [vmem:[#allocation3 + $0x40] sm:$0xf] %v6630_v39  ;;  %v6892_v22 = vshrl.u32 %v6772_v15, 16  ;;  %v6895_v5 = vshll.u32 %v6772_v15, 16  ;;  %v11858_v39 = vld [vmem:[#allocation3 + $0x38] sm:$0xf] }
 0x54d   : > { %v7159_v50 = vsel %vm13529_vm13, %v11815_v42, %v7158_v52  ;;  %11807 = vmatmul.msk.bf16.gmra.mxu2 %vm6965_vm15, %v11779_v60  ;;  %v7657_v52 = vrot.slane %v15628_v23, 5  ;;  %v12744_v60 = vld [vmem:[%s16809_s9 + $0x1a0] sm:$0xff]  ;;  %v7427_v15 = vrot.slane %v7425_v62, 4  ;;  %v7961_v32 = vshll.u32 %v15641_v7, 16  ;;  %v12724_v55 = vld [vmem:[#allocation3 + $0x14] sm:$0xf0] }
 0x54e   : > { %v7179_v61 = vunpack.c.l.b16 %v7159_v50  ;;  %v6894_v48 = vrot.slane %v6892_v22, 4  ;;  %v6897_v25 = vrot.slane %v6895_v5, 5  ;;  %v6923_v22 = vunpack.c.l.b16 %v6890_v54  ;;  %8289 = vmatpush.bf16.msra.mxu0 %v12744_v60  ;;  %v16932_v50 = vld [vmem:[#allocation29_spill] sm:$0xff]  ;;  %v7925_v62 = vld [vmem:[#allocation3 + $0x20] sm:$0xf]  ;;  %v12743_v60 = vld [vmem:[%s16809_s9 + $0x198] sm:$0xff] }
 0x54f   : > { %v15630_v37 = vpop.f32.mrf.mxu3  ;;  %v5026_v59 = vadd.f32 %v16933_v36, %v16932_v50  ;;  %v7658_v18 = vsel %vm13529_vm13, %v11916_v1, %v7657_v52  ;;  %v7431_v0 = vor.u32 %v7430_v8, %v7427_v15  ;;  %v7949_v12 = vrot.slane %v7947_v21, 5  ;;  %v12749_v63 = vld [vmem:[%s16813_s13 + $0x74] sm:$0xf0] }
 0x550   : > { %16929 = vst [vmem:[#allocation25_spill] sm:$0xff] %v15630_v37  ;;  %v7183_v44 = vpack.c.b16 %v7179_v61, %v7178_v34  ;;  %v6898_v16 = vor.u32 %v6897_v25, %v6894_v48  ;;  %v7416_v34 = vrot.slane %v7414_v27, 5  ;;  %v7700_v48 = vunpack.c.l.b16 %v7662_v2  ;;  %v12070_v37 = vld [vmem:[%s16813_s13 + $0x70] sm:$0xf] }
 0x551   : > { %v6715_v10 = vpop.f32.mrf.mxu1  ;;  %v7945_v25 = vrot.slane %v7944_v53, 4  ;;  %v7963_v58 = vrot.slane %v7961_v32, 5  ;;  %v7699_v19 = vunpack.c.l.b16 %v7658_v18  ;;  %v7432_v54 = vrot.slane %v7431_v0, 4 }
 0x552   : > { %v6899_v20 = vrot.slane %v6898_v16, 4  ;;  %v15643_v45 = vadd.f32 %v6715_v10, %v4997_v17  ;;  %v7434_v16 = vshll.u32 %v15609_v35, 16  ;;  %v7417_v17 = vor.u32 %v7416_v34, %v7413_v47  ;;  %v7633_v35 = vld [vmem:[#allocation3 + $0x18] sm:$0xe]  ;;  %8290 = vmatpush.bf16.msra.mxu0 %v12743_v60 }
 0x553   : > { %11843 = vmatmul.msk.bf16.gmra.mxu1 %vm6965_vm15, %v7183_v44  ;;  %v12705_v51 = vld [vmem:[#allocation3 + $0x3c] sm:$0xf0]  ;;  %v7420_v44 = vshll.u32 %v15628_v23, 16  ;;  %v7707_v1 = vpack.c.b16 %v7700_v48, %v7699_v19  ;;  %v7950_v52 = vsel %vm13367_vm6, %v7945_v25, %v7949_v12  ;;  %v7964_v10 = vsel %vm13367_vm6, %v7959_v41, %v7963_v58  ;;  %v15669_v23 = vld [vmem:[#allocation3 + $0x24] sm:$0x1] }
 0x554   : > { %v11859_v33 = vor.u32 %v12705_v51, %v11858_v39  ;;  %v6904_v42 = vsel %vm13367_vm6, %v6899_v20, %v6903_v6  ;;  %v15663_v6 = vld [vmem:[#allocation3 + $0x1c] sm:$0x1]  ;;  %v7634_v20 = vld [vmem:[#allocation3 + $0x20] sm:$0xe]  ;;  %v7966_v2 = vshrl.u32 %v7925_v62, 16  ;;  %v7969_v14 = vshll.u32 %v7925_v62, 16 }
 0x555   : > { %v6924_v5 = vunpack.c.l.b16 %v6904_v42  ;;  %v7980_v39 = vshrl.u32 %v7927_v29, 16  ;;  %v7983_v51 = vshll.u32 %v7927_v29, 16  ;;  %v11955_v53 = vor.u32 %v12724_v55, %v11954_v28  ;;  %v15686_v19 = vld [vmem:[#allocation3 + $0x24] sm:$0x1] }
 0x556   : > { %11887 = vmatmul.msk.bf16.gmra.mxu3 %vm6965_vm15, %v11859_v33  ;;  %v7422_v46 = vrot.slane %v7420_v44, 5  ;;  %v7436_v27 = vrot.slane %v7434_v16, 5  ;;  %v8061_v33 = vunpack.c.l.b16 %v7950_v52  ;;  %v8062_v42 = vunpack.c.l.b16 %v7964_v10 }
 0x557   : > { %v6928_v38 = vpack.c.b16 %v6924_v5, %v6923_v22  ;;  %v6744_v61 = vpop.f32.mrf.mxu3  ;;  %v7418_v15 = vrot.slane %v7417_v17, 4  ;;  %v11918_v8 = vrot.slane %v7633_v35, 9  ;;  %v7398_v22 = vld [vmem:[#allocation3 + $0x18] sm:$0xf]  ;;  %v7400_v5 = vld [vmem:[#allocation3 + $0x20] sm:$0xf] }
 0x558   : > { %v15658_v3 = vadd.f32 %v6744_v61, %v5026_v59  ;;  %v7437_v21 = vsel %vm13367_vm6, %v7432_v54, %v7436_v27  ;;  %v7665_v32 = vrot.slane %v15663_v6, 5  ;;  %v11919_v50 = vrot.slane %v7634_v20, 9  ;;  %v15679_v59 = vld [vmem:[#allocation3 + $0x2c] sm:$0x1] }
 0x559   : > { %v7669_v36 = vrot.slane %v15669_v23, 5  ;;  %v7971_v18 = vrot.slane %v7969_v14, 5  ;;  %v7982_v47 = vrot.slane %v7980_v39, 4  ;;  %v7985_v34 = vrot.slane %v7983_v51, 5  ;;  %v7931_v39 = vld [vmem:[#allocation3 + $0x38] sm:$0xf] }
 0x55a   : > { %11763 = vmatmul.msk.bf16.gmra.mxu0 %vm6965_vm15, %v6928_v38  ;;  %v7968_v38 = vrot.slane %v7966_v2, 4  ;;  %v7439_v61 = vshrl.u32 %v7398_v22, 16  ;;  %v7442_v48 = vshll.u32 %v7398_v22, 16  ;;  %v7453_v25 = vshrl.u32 %v7400_v5, 16 }
 0x55b   : > { %v7456_v41 = vshll.u32 %v7400_v5, 16  ;;  %v8069_v0 = vpack.c.b16 %v8062_v42, %v8061_v33  ;;  %v7423_v12 = vsel %vm13367_vm6, %v7418_v15, %v7422_v46  ;;  %v7670_v58 = vsel %vm13529_vm13, %v11919_v50, %v7669_v36  ;;  %v15695_v15 = vld [vmem:[#allocation3 + $0x34] sm:$0x1]  ;;  %v11958_v36 = vld [vmem:[#allocation3 + $0x20] sm:$0xf] }
 0x55c   : > { %v7989_v44 = vshll.u32 %v15679_v59, 16  ;;  %v7535_v16 = vunpack.c.l.b16 %v7437_v21  ;;  %v7666_v62 = vsel %vm13529_vm13, %v11918_v8, %v7665_v32  ;;  %v7972_v29 = vor.u32 %v7971_v18, %v7968_v38  ;;  %v12742_v8 = vld [vmem:[%s16809_s9 + $0x190] sm:$0xff] }
 0x55d   : > { %11948 = vmatmul.msk.bf16.vlgmr.msrb.gmra.mxu2 %vm6965_vm15, %v7707_v1  ;;  %v7986_v28 = vor.u32 %v7985_v34, %v7982_v47  ;;  %v7441_v55 = vrot.slane %v7439_v61, 4  ;;  %v7444_v17 = vrot.slane %v7442_v48, 5  ;;  %v7455_v1 = vrot.slane %v7453_v25, 4  ;;  %v7929_v21 = vld [vmem:[#allocation3 + $0x30] sm:$0xf]  ;;  %8291 = vmatpush.bf16.msra.mxu0 %v12742_v8 }
 0x55e   : > { %v7458_v52 = vrot.slane %v7456_v41, 5  ;;  %v7534_v10 = vunpack.c.l.b16 %v7423_v12  ;;  %v7702_v54 = vunpack.c.l.b16 %v7670_v58  ;;  %v7975_v35 = vshll.u32 %v15686_v19, 16  ;;  %v7636_v38 = vld [vmem:[#allocation3 + $0x30] sm:$0xe]  ;;  %v7635_v61 = vld [vmem:[#allocation3 + $0x28] sm:$0xe] }
 0x55f   : > { %v7991_v20 = vrot.slane %v7989_v44, 5  ;;  %v7701_v14 = vunpack.c.l.b16 %v7666_v62  ;;  %v7973_v51 = vrot.slane %v7972_v29, 4  ;;  %v7445_v46 = vor.u32 %v7444_v17, %v7441_v55  ;;  %v7402_v29 = vld [vmem:[#allocation3 + $0x28] sm:$0xf] }
 0x560   : > { %v7542_v2 = vpack.c.b16 %v7535_v16, %v7534_v10  ;;  %v7459_v27 = vor.u32 %v7458_v52, %v7455_v1  ;;  %v7977_v33 = vrot.slane %v7975_v35, 5  ;;  %v7448_v42 = vshll.u32 %v15663_v6, 16  ;;  %v12725_v6 = vld [vmem:[#allocation3 + $0x24] sm:$0xf0]  ;;  %v7404_v1 = vld [vmem:[#allocation3 + $0x30] sm:$0xf] }
 0x561   : > { %v7708_v60 = vpack.c.b16 %v7702_v54, %v7701_v14  ;;  %v7462_v5 = vshll.u32 %v15669_v23, 16  ;;  %v8008_v32 = vshrl.u32 %v7931_v39, 16  ;;  %v8011_v50 = vshll.u32 %v7931_v39, 16  ;;  %v15707_v23 = vld [vmem:[#allocation3 + $0x2c] sm:$0x1] }
 0x562   : > { %v7978_v18 = vsel %vm13367_vm6, %v7973_v51, %v7977_v33  ;;  %v7446_v47 = vrot.slane %v7445_v46, 4  ;;  %v7460_v34 = vrot.slane %v7459_v27, 4  ;;  %v7677_v48 = vrot.slane %v15695_v15, 5  ;;  %v15722_v46 = vld [vmem:[#allocation3 + $0x34] sm:$0x1] }
 0x563   : > { %11992 = vmatmul.msk.bf16.vlgmr.msra.gmra.mxu1 %vm6965_vm15, %v11955_v53  ;;  %v7987_v53 = vrot.slane %v7986_v28, 4  ;;  %v7450_v41 = vrot.slane %v7448_v42, 5  ;;  %v7997_v12 = vshll.u32 %v7929_v21, 16  ;;  %v7464_v58 = vrot.slane %v7462_v5, 5 }
 0x564   : > { %v11921_v44 = vrot.slane %v7636_v38, 9  ;;  %v8010_v16 = vrot.slane %v8008_v32, 4  ;;  %v8013_v62 = vrot.slane %v8011_v50, 5  ;;  %v11959_v28 = vor.u32 %v12725_v6, %v11958_v36 }
 0x565   : > { %v7992_v22 = vsel %vm13367_vm6, %v7987_v53, %v7991_v20  ;;  %v8063_v55 = vunpack.c.l.b16 %v7978_v18  ;;  %v11920_v17 = vrot.slane %v7635_v61, 9  ;;  %v7451_v52 = vsel %vm13367_vm6, %v7446_v47, %v7450_v41  ;;  %v12741_v53 = vld [vmem:[%s16809_s9 + $0x188] sm:$0xff] }
 0x566   : > { %12020 = vmatmul.msk.bf16.vlgmr.msra.gmra.mxu3 %vm6965_vm15, %v8069_v0  ;;  %v8064_v25 = vunpack.c.l.b16 %v7992_v22  ;;  %v7994_v0 = vshrl.u32 %v7929_v21, 16  ;;  %v7465_v10 = vsel %vm13367_vm6, %v7460_v34, %v7464_v58  ;;  %v7673_v54 = vrot.slane %v15707_v23, 5  ;;  %8292 = vmatpush.bf16.msra.mxu0 %v12741_v53 }
 0x567   : > { %v7678_v35 = vsel %vm13529_vm13, %v11921_v44, %v7677_v48  ;;  %v7999_v39 = vrot.slane %v7997_v12, 5  ;;  %v7467_v51 = vshrl.u32 %v7402_v29, 16  ;;  %v8014_v27 = vor.u32 %v8013_v62, %v8010_v16  ;;  %v7935_v12 = vld [vmem:[#allocation3 + $0x48] sm:$0xf]  ;;  %v12740_v62 = vld [vmem:[%s16809_s9 + $0x180] sm:$0xff] }
 0x568   : > { %v8070_v20 = vpack.c.b16 %v8064_v25, %v8063_v55  ;;  %v7996_v14 = vrot.slane %v7994_v0, 4  ;;  %v7481_v33 = vshrl.u32 %v7404_v1, 16  ;;  %v7484_v42 = vshll.u32 %v7404_v1, 16  ;;  %v7933_v0 = vld [vmem:[#allocation3 + $0x40] sm:$0xf] }
 0x569   : > { %v7537_v8 = vunpack.c.l.b16 %v7465_v10  ;;  %v7536_v22 = vunpack.c.l.b16 %v7451_v52  ;;  %v7674_v5 = vsel %vm13529_vm13, %v11920_v17, %v7673_v54  ;;  %v7704_v32 = vunpack.c.l.b16 %v7678_v35  ;;  %v7638_v52 = vld [vmem:[#allocation3 + $0x40] sm:$0xe] }
 0x56a   : > { %11912 = vmatmul.msk.bf16.vlgmr.msrb.gmra.mxu0 %vm6965_vm15, %v7542_v2  ;;  %v15717_v2 = vld [vmem:[#allocation3 + $0x3c] sm:$0x1]  ;;  %v8000_v50 = vor.u32 %v7999_v39, %v7996_v14  ;;  %v8003_v36 = vshll.u32 %v15722_v46, 16  ;;  %v7469_v38 = vrot.slane %v7467_v51, 4  ;;  %v8015_v6 = vrot.slane %v8014_v27, 4 }
 0x56b   : > { %v8017_v21 = vshll.u32 %v15717_v2, 16  ;;  %v7483_v47 = vrot.slane %v7481_v33, 4  ;;  %v7486_v34 = vrot.slane %v7484_v42, 5  ;;  %v7543_v61 = vpack.c.b16 %v7537_v8, %v7536_v22  ;;  %8293 = vmatpush.bf16.msra.mxu0 %v12740_v62  ;;  %v15742_v27 = vld [vmem:[#allocation3 + $0x3c] sm:$0x1] }
 0x56c   : > { %v7703_v48 = vunpack.c.l.b16 %v7674_v5  ;;  %v7490_v41 = vshll.u32 %v15695_v15, 16  ;;  %v8005_v44 = vrot.slane %v8003_v36, 5  ;;  %v7476_v16 = vshll.u32 %v15707_v23, 16  ;;  %v15737_v15 = vld [vmem:[#allocation3 + $0x44] sm:$0x1] }
 0x56d   : > { %11949 = vmatmul.msk.bf16.gmra.mxu2 %vm6965_vm15, %v7708_v60  ;;  %v7470_v60 = vshll.u32 %v7402_v29, 16  ;;  %v8019_v25 = vrot.slane %v8017_v21, 5  ;;  %v12726_v29 = vld [vmem:[#allocation3 + $0x34] sm:$0xf0]  ;;  %v7487_v1 = vor.u32 %v7486_v34, %v7483_v47  ;;  %v8022_v10 = vshrl.u32 %v7933_v0, 16 }
 0x56e   : > { %v7709_v58 = vpack.c.b16 %v7704_v32, %v7703_v48  ;;  %v8025_v54 = vshll.u32 %v7933_v0, 16  ;;  %v8036_v35 = vshrl.u32 %v7935_v12, 16  ;;  %v11962_v23 = vld [vmem:[#allocation3 + $0x30] sm:$0xf]  ;;  %v7492_v14 = vrot.slane %v7490_v41, 5 }
 0x56f   : > { %v7472_v18 = vrot.slane %v7470_v60, 5  ;;  %v8020_v55 = vsel %vm13367_vm6, %v8015_v6, %v8019_v25  ;;  %v11963_v39 = vor.u32 %v12726_v29, %v11962_v23  ;;  %v7478_v53 = vrot.slane %v7476_v16, 5  ;;  %v7408_v33 = vld [vmem:[#allocation3 + $0x40] sm:$0xf]  ;;  %v7637_v5 = vld [vmem:[#allocation3 + $0x38] sm:$0xe] }
 0x570   : > { %v7685_v60 = vrot.slane %v15737_v15, 5  ;;  %v8066_v42 = vunpack.c.l.b16 %v8020_v55  ;;  %v7488_v22 = vrot.slane %v7487_v1, 4  ;;  %v11923_v21 = vrot.slane %v7638_v52, 9  ;;  %v7406_v6 = vld [vmem:[#allocation3 + $0x38] sm:$0xf] }
 0x571   : > { %v7473_v17 = vor.u32 %v7472_v18, %v7469_v38  ;;  %v8024_v32 = vrot.slane %v8022_v10, 4  ;;  %v8038_v36 = vrot.slane %v8036_v35, 4  ;;  %v7509_v34 = vshrl.u32 %v7408_v33, 16 }
 0x572   : > { %v7493_v47 = vsel %vm13367_vm6, %v7488_v22, %v7492_v14  ;;  %v11922_v25 = vrot.slane %v7637_v5, 9  ;;  %v7681_v41 = vrot.slane %v15742_v27, 5  ;;  %v7495_v16 = vshrl.u32 %v7406_v6, 16 }
 0x573   : > { %11993 = vmatmul.msk.bf16.gmra.mxu1 %vm6965_vm15, %v11959_v28  ;;  %v8001_v28 = vrot.slane %v8000_v50, 4  ;;  %v7474_v8 = vrot.slane %v7473_v17, 4  ;;  %v8027_v50 = vrot.slane %v8025_v54, 5  ;;  %v7498_v62 = vshll.u32 %v7406_v6, 16 }
 0x574   : > { %v7539_v29 = vunpack.c.l.b16 %v7493_v47  ;;  %v7511_v1 = vrot.slane %v7509_v34, 4  ;;  %v7682_v54 = vsel %vm13529_vm13, %v11922_v25, %v7681_v41  ;;  %v7497_v23 = vrot.slane %v7495_v16, 4 }
 0x575   : > { %v8006_v51 = vsel %vm13367_vm6, %v8001_v28, %v8005_v44  ;;  %v7479_v48 = vsel %vm13367_vm6, %v7474_v8, %v7478_v53  ;;  %v15755_v44 = vld [vmem:[#allocation3 + $0x4c] sm:$0x1]  ;;  %v8028_v28 = vor.u32 %v8027_v50, %v8024_v32  ;;  %v7500_v14 = vrot.slane %v7498_v62, 5 }
 0x576   : > { %12021 = vmatmul.msk.bf16.gmra.mxu3 %vm6965_vm15, %v8070_v20  ;;  %v8039_v20 = vshll.u32 %v7935_v12, 16  ;;  %v8065_v18 = vunpack.c.l.b16 %v8006_v51  ;;  %v7686_v12 = vsel %vm13529_vm13, %v11923_v21, %v7685_v60  ;;  %v8045_v17 = vshll.u32 %v15755_v44, 16 }
 0x577   : > { %v7538_v10 = vunpack.c.l.b16 %v7479_v48  ;;  %v8029_v51 = vrot.slane %v8028_v28, 4  ;;  %v7501_v5 = vor.u32 %v7500_v14, %v7497_v23  ;;  %v7518_v21 = vshll.u32 %v15737_v15, 16  ;;  %v8158_v28 = vld [vmem:[#allocation3 + $0x10] sm:$0xe] }
 0x578   : > { %v8041_v38 = vrot.slane %v8039_v20, 5  ;;  %v8071_v0 = vpack.c.b16 %v8066_v42, %v8065_v18  ;;  %v7706_v20 = vunpack.c.l.b16 %v7686_v12  ;;  %v8047_v60 = vrot.slane %v8045_v17, 5 }
 0x579   : > { %v7504_v6 = vshll.u32 %v15742_v27, 16  ;;  %v7520_v48 = vrot.slane %v7518_v21, 5  ;;  %v8188_v17 = vrot.slane %v15641_v7, 5  ;;  %v8196_v7 = vrot.slane %v15679_v59, 5  ;;  %v8163_v59 = vld [vmem:[#allocation3 + $0x38] sm:$0xe] }
 0x57a   : > { %11913 = vmatmul.msk.bf16.gmra.mxu0 %vm6965_vm15, %v7543_v61  ;;  %v7512_v61 = vshll.u32 %v7408_v33, 16  ;;  %v8042_v55 = vor.u32 %v8041_v38, %v8038_v36  ;;  %v7705_v33 = vunpack.c.l.b16 %v7682_v54  ;;  %v11966_v36 = vld [vmem:[#allocation3 + $0x40] sm:$0xf]  ;;  %v12727_v38 = vld [vmem:[#allocation3 + $0x44] sm:$0xf0] }
 0x57b   : > { %v11967_v25 = vor.u32 %v12727_v38, %v11966_v36  ;;  %v7506_v41 = vrot.slane %v7504_v6, 5  ;;  %v12029_v36 = vrot.slane %v8163_v59, 9  ;;  %v15799_v6 = vpop.f32.mrf.mxu3 }
 0x57c   : > { %v7514_v52 = vrot.slane %v7512_v61, 5  ;;  %v8043_v53 = vrot.slane %v8042_v55, 4  ;;  %v7710_v22 = vpack.c.b16 %v7706_v20, %v7705_v33  ;;  %v7502_v61 = vrot.slane %v7501_v5, 4  ;;  %16935 = vst [vmem:[#allocation30_spill] sm:$0xff] %v15799_v6 }
 0x57d   : > { %11950 = vmatmul.msk.bf16.gmra.mxu2 %vm6965_vm15, %v7709_v58  ;;  %v15753_v58 = vld [vmem:[#allocation3 + $0x44] sm:$0x1] }
 0x57e   : > { %v8031_v35 = vshll.u32 %v15753_v58, 16  ;;  %v7515_v42 = vor.u32 %v7514_v52, %v7511_v1  ;;  %v8048_v50 = vsel %vm13367_vm6, %v8043_v53, %v8047_v60  ;;  %v7507_v12 = vsel %vm13367_vm6, %v7502_v61, %v7506_v41 }
 0x57f   : > { %v8068_v34 = vunpack.c.l.b16 %v8048_v50  ;;  %v7540_v27 = vunpack.c.l.b16 %v7507_v12  ;;  %v12024_v1 = vrot.slane %v8158_v28, 9  ;;  %v8184_v52 = vrot.slane %v15639_v56, 5  ;;  %v15796_v50 = vpop.f32.mrf.mxu1 }
 0x580   : > { %v8033_v8 = vrot.slane %v8031_v35, 5  ;;  %v7516_v18 = vrot.slane %v7515_v42, 4  ;;  %v8192_v60 = vrot.slane %v15686_v19, 5  ;;  %16934 = vst [vmem:[#allocation22_spill] sm:$0xff] %v15796_v50  ;;  %v8162_v19 = vld [vmem:[#allocation3 + $0x30] sm:$0xe] }
 0x581   : > { %v8185_v54 = vsel %vm13529_vm13, %v12024_v1, %v8184_v52  ;;  %v12028_v61 = vrot.slane %v8162_v19, 9  ;;  %v8212_v1 = vrot.slane %v15755_v44, 5 }
 0x582   : > { %v8034_v32 = vsel %vm13367_vm6, %v8029_v51, %v8033_v8  ;;  %v7521_v15 = vsel %vm13367_vm6, %v7516_v18, %v7520_v48  ;;  %v8226_v23 = vunpack.c.l.b16 %v8185_v54  ;;  %v8161_v51 = vld [vmem:[#allocation3 + $0x28] sm:$0xe] }
 0x583   : > { %11994 = vmatmul.msk.bf16.gmra.mxu1 %vm6965_vm15, %v11963_v39  ;;  %v7544_v39 = vpack.c.b16 %v7539_v29, %v7538_v10  ;;  %v8067_v47 = vunpack.c.l.b16 %v8034_v32  ;;  %v7541_v16 = vunpack.c.l.b16 %v7521_v15  ;;  %v8159_v29 = vld [vmem:[#allocation3 + $0x18] sm:$0xe]  ;;  %v12027_v33 = vrot.slane %v8161_v51, 9 }
 0x584   : > { %v12025_v55 = vrot.slane %v8159_v29, 9  ;;  %v8165_v29 = vld [vmem:[#allocation3 + $0x48] sm:$0xe] }
 0x585   : > { %v7545_v62 = vpack.c.b16 %v7541_v16, %v7540_v27  ;;  %v8197_v42 = vsel %vm13529_vm13, %v12027_v33, %v8196_v7 }
 0x586   : > { %12022 = vmatmul.msk.bf16.gmra.mxu3 %vm6965_vm15, %v8071_v0  ;;  %v8072_v0 = vpack.c.b16 %v8068_v34, %v8067_v47  ;;  %v8189_v10 = vsel %vm13529_vm13, %v12025_v55, %v8188_v17  ;;  %v8200_v47 = vrot.slane %v15722_v46, 5  ;;  %v8204_v34 = vrot.slane %v15717_v2, 5  ;;  %v8164_v46 = vld [vmem:[#allocation3 + $0x40] sm:$0xe] }
 0x587   : > { %v8227_v35 = vunpack.c.l.b16 %v8189_v10  ;;  %v12030_v28 = vrot.slane %v8164_v46, 9  ;;  %v8208_v55 = vrot.slane %v15753_v58, 5  ;;  %v12031_v17 = vrot.slane %v8165_v29, 9 }
 0x588   : > { %v8205_v48 = vsel %vm13529_vm13, %v12029_v36, %v8204_v34  ;;  %v8201_v41 = vsel %vm13529_vm13, %v12028_v61, %v8200_v47 }
 0x589   : > { %v8234_v14 = vpack.c.b16 %v8227_v35, %v8226_v23  ;;  %v8231_v15 = vunpack.c.l.b16 %v8205_v48  ;;  %v8209_v54 = vsel %vm13529_vm13, %v12030_v28, %v8208_v55  ;;  %v8213_v35 = vsel %vm13529_vm13, %v12031_v17, %v8212_v1 }
 0x58a   : > { %11914 = vmatmul.msk.bf16.gmra.mxu0 %vm6965_vm15, %v7544_v39  ;;  %v8160_v39 = vld [vmem:[#allocation3 + $0x20] sm:$0xe] }
 0x58b   : > { %v12026_v56 = vrot.slane %v8160_v39, 9  ;;  %v8233_v39 = vunpack.c.l.b16 %v8213_v35 }
 0x58d   : > { %11951 = vmatmul.msk.bf16.gmra.mxu2 %vm6965_vm15, %v7710_v22  ;;  %v8193_v8 = vsel %vm13529_vm13, %v12026_v56, %v8192_v60  ;;  %v8229_v22 = vunpack.c.l.b16 %v8197_v42 }
 0x58e   : > { %v8228_v5 = vunpack.c.l.b16 %v8193_v8 }
 0x590   : > { %v8235_v32 = vpack.c.b16 %v8229_v22, %v8228_v5 }
 0x593   : > { %11995 = vmatmul.msk.bf16.gmra.mxu1 %vm6965_vm15, %v11967_v25 }
 0x596   : > { %12023 = vmatmul.msk.bf16.gmra.mxu3 %vm6965_vm15, %v8072_v0  ;;  %v8230_v0 = vunpack.c.l.b16 %v8201_v41 }
 0x59a   : > { %11915 = vmatmul.msk.bf16.gmra.mxu0 %vm6965_vm15, %v7545_v62  ;;  %v8236_v62 = vpack.c.b16 %v8231_v15, %v8230_v0 }
 0x59f   : > { %v7084_v38 = vpop.f32.mrf.mxu2  ;;  %v7241_v25 = vpop.f32.mrf.mxu1 }
 0x5a6   : > { %v15783_v20 = vpop.f32.mrf.mxu0 }
 0x5a7   : > { %v7366_v12 = vpop.f32.mrf.mxu3  ;;  %v7086_v27 = vpop.f32.mrf.mxu2  ;;  %v7085_v17 = vadd.f32 %v7084_v38, %v15783_v20  ;;  %v12748_v20 = vld [vmem:[%s16813_s13 + $0x74] sm:$0xf]  ;;  %v12071_v38 = vor.u32 %v12749_v63, %v12070_v37  ;;  %v12747_v63 = vld [vmem:[%s16813_s13 + $0x64] sm:$0xf0]  ;;  %v12746_v37 = vld [vmem:[%s16813_s13 + $0x64] sm:$0xf] }
 0x5a8   : > { %v7243_v2 = vpop.f32.mrf.mxu1 }
 0x5a9   : > { %8576 = vmatpush.bf16.msra.mxu2 %v12071_v38 }
 0x5aa   : > { %12056 = vmatmul.msk.bf16.vlgmr.msra.gmra.mxu0 %vm6965_vm15, %v8234_v14  ;;  %v8232_v14 = vunpack.c.l.b16 %v8209_v54  ;;  %v7261_v54 = vadd.f32 %v7241_v25, %v7085_v17  ;;  %v12072_v25 = vld [vmem:[%s16813_s13 + $0x78] sm:$0xf0] }
 0x5ac   : > { %v8237_v56 = vpack.c.b16 %v8233_v39, %v8232_v14  ;;  %v7386_v39 = vadd.f32 %v7366_v12, %v7261_v54 }
 0x5ae   : > { %v15786_v53 = vpop.f32.mrf.mxu0 }
 0x5af   : > { %v7368_v10 = vpop.f32.mrf.mxu3 }
 0x5b0   : > { %v7089_v23 = vpop.f32.mrf.mxu2  ;;  %v7246_v51 = vpop.f32.mrf.mxu1 }
 0x5b7   : > { %v15794_v21 = vpop.f32.mrf.mxu0 }
 0x5b8   : > { %v15823_v58 = vpop.f32.mrf.mxu3  ;;  %v15825_v44 = vpop.f32.mrf.mxu2 }
 0x5b9   : > { %v15829_v33 = vpop.f32.mrf.mxu1 }
 0x5ba   : > { %12057 = vmatmul.msk.bf16.gmra.mxu0 %vm6965_vm15, %v8235_v32 }
 0x5bf   : > { %v15801_v18 = vpop.f32.mrf.mxu0 }
 0x5c0   : > { %v15831_v42 = vpop.f32.mrf.mxu3  ;;  %v15833_v8 = vpop.f32.mrf.mxu2 }
 0x5c1   : > { %v15835_v5 = vpop.f32.mrf.mxu1 }
 0x5c7   : > { %v15809_v16 = vpop.f32.mrf.mxu0 }
 0x5c8   : > { %v15837_v32 = vpop.f32.mrf.mxu3  ;;  %v15839_v36 = vpop.f32.mrf.mxu2 }
 0x5c9   : > { %v15841_v19 = vpop.f32.mrf.mxu1 }
 0x5ca   : > { %12058 = vmatmul.msk.bf16.gmra.mxu0 %vm6965_vm15, %v8236_v62 }
 0x5cf   : > { %v15814_v52 = vpop.f32.mrf.mxu0 }
 0x5d0   : > { %v15843_v34 = vpop.f32.mrf.mxu3  ;;  %v15845_v61 = vpop.f32.mrf.mxu2 }
 0x5d1   : > { %v15847_v48 = vpop.f32.mrf.mxu1 }
 0x5d7   : > { %v15820_v7 = vpop.f32.mrf.mxu0 }
 0x5d8   : > { %v15853_v0 = vpop.f32.mrf.mxu2 }
 0x5d9   : > { %v15851_v15 = vpop.f32.mrf.mxu3  ;;  %v15857_v46 = vpop.f32.mrf.mxu1 }
 0x5da   : > { %12059 = vmatmul.msk.bf16.gmra.mxu0 %vm6965_vm15, %v8237_v56  ;;  %v7087_v56 = vadd.f32 %v7086_v27, %v15786_v53  ;;  %v12075_v27 = vor.u32 %v12748_v20, %v12072_v25 }
 0x5dc   : > { %v7262_v53 = vadd.f32 %v7243_v2, %v7087_v56  ;;  %8605 = vmatpush.bf16.msrb.mxu1 %v12075_v27  ;;  %v15897_v27 = vld [vmem:[%s16810_s10] ss:$0 sm:$0xff] }
 0x5de   : > { %v7387_v54 = vadd.f32 %v7368_v10, %v7262_v53  ;;  %v12064_v10 = vld [vmem:[%s16813_s13 + $0x68] sm:$0xf0] }
 0x5df   : > { %v15827_v60 = vpop.f32.mrf.mxu0  ;;  %v12067_v56 = vor.u32 %v12746_v37, %v12064_v10 }
 0x5e0   : > { %v7768_v28 = vpop.f32.mrf.mxu2 }
 0x5e1   : > { %v15859_v29 = vpop.f32.mrf.mxu3  ;;  %v7893_v1 = vpop.f32.mrf.mxu1  ;;  %8606 = vmatpush.bf16.msrb.mxu1 %v12067_v56 }
 0x5e7   : > { %v7603_v22 = vpop.f32.mrf.mxu0 }
 0x5e8   : > { %v7770_v6 = vpop.f32.mrf.mxu2  ;;  %v7623_v50 = vadd.f32 %v7603_v22, %v7386_v39  ;;  %v7090_v39 = vadd.f32 %v7089_v23, %v15794_v21 }
 0x5e9   : > { %v8130_v35 = vpop.f32.mrf.mxu3  ;;  %v7895_v12 = vpop.f32.mrf.mxu1 }
 0x5ea   : > { %v7788_v22 = vadd.f32 %v7768_v28, %v7623_v50  ;;  %v12063_v50 = vor.u32 %v12747_v63, %v12062_v49  ;;  %v7263_v20 = vadd.f32 %v7246_v51, %v7090_v39  ;;  %v7092_v49 = vadd.f32 %v15825_v44, %v15801_v18 }
 0x5eb   : > { %v7095_v18 = vadd.f32 %v15833_v8, %v15809_v16 }
 0x5ec   : > { %v7913_v28 = vadd.f32 %v7893_v1, %v7788_v22  ;;  %8577 = vmatpush.bf16.msra.mxu2 %v12063_v50  ;;  %v7388_v1 = vadd.f32 %v15823_v58, %v7263_v20 }
 0x5ee   : > { %v8150_v38 = vadd.f32 %v8130_v35, %v7913_v28  ;;  %v7264_v35 = vadd.f32 %v15829_v33, %v7092_v49 }
 0x5ef   : > { %v7605_v59 = vpop.f32.mrf.mxu0 }
 0x5f0   : > { %v7624_v21 = vadd.f32 %v7605_v59, %v7387_v54  ;;  %v7773_v23 = vpop.f32.mrf.mxu2 }
 0x5f1   : > { %v8132_v2 = vpop.f32.mrf.mxu3  ;;  %v7898_v53 = vpop.f32.mrf.mxu1 }
 0x5f2   : > { %v7789_v25 = vadd.f32 %v7770_v6, %v7624_v21  ;;  %v7389_v21 = vadd.f32 %v15831_v42, %v7264_v35 }
 0x5f4   : > { %v7914_v22 = vadd.f32 %v7895_v12, %v7789_v25 }
 0x5f6   : > { %v8151_v50 = vadd.f32 %v8132_v2, %v7914_v22  ;;  %v7265_v2 = vadd.f32 %v15835_v5, %v7095_v18 }
 0x5f7   : > { %v7608_v47 = vpop.f32.mrf.mxu0 }
 0x5f8   : > { %v7625_v54 = vadd.f32 %v7608_v47, %v7388_v1  ;;  %v7775_v39 = vpop.f32.mrf.mxu2 }
 0x5f9   : > { %v8135_v6 = vpop.f32.mrf.mxu3  ;;  %v7900_v58 = vpop.f32.mrf.mxu1 }
 0x5fa   : > { %v7790_v10 = vadd.f32 %v7773_v23, %v7625_v54 }
 0x5fc   : > { %v7915_v20 = vadd.f32 %v7898_v53, %v7790_v10  ;;  %v7097_v53 = vadd.f32 %v15839_v36, %v15814_v52 }
 0x5ff   : > { %v15849_v41 = vpop.f32.mrf.mxu0 }
 0x600   : > { %v7626_v47 = vadd.f32 %v15849_v41, %v7389_v21  ;;  %v7778_v16 = vpop.f32.mrf.mxu2  ;;  %v7390_v41 = vadd.f32 %v15837_v32, %v7265_v2 }
 0x601   : > { %v8137_v1 = vpop.f32.mrf.mxu3 }
 0x602   : > { %v7791_v42 = vadd.f32 %v7775_v39, %v7626_v47 }
 0x604   : > { %v7916_v39 = vadd.f32 %v7900_v58, %v7791_v42 }
 0x607   : > { %v15855_v62 = vpop.f32.mrf.mxu0 }
 0x60f   : > { %v15861_v55 = vpop.f32.mrf.mxu0 }
 0x617   : > { %v15864_v14 = vpop.f32.mrf.mxu0 }
 0x61f   : > { %v15879_v17 = vpop.f32.mrf.mxu0 }
 0x627   : > { %v8295_v63 = vpop.f32.mrf.mxu0 }
 0x628   : > { %v8315_v59 = vadd.f32 %v8295_v63, %v8150_v38 }
 0x62a   : > { %v8327_v51 = vadd.f32 %v15897_v27, %v8315_v59  ;;  %v8152_v59 = vadd.f32 %v8135_v6, %v7915_v20  ;;  %v7627_v6 = vadd.f32 %v15855_v62, %v7390_v41  ;;  %v7780_v20 = vpop.f32.mrf.mxu2  ;;  %v7102_v41 = vadd.f32 %v15853_v0, %v15827_v60 }
 0x62c   : > { %v8335_v37 = vmax.f32 %v8327_v51, 0.0 }
 0x62e   : > { %v8343_v28 = vpack.c.bf16 %v8335_v37, %v8335_v37  ;;  %v7903_v37 = vpop.f32.mrf.mxu1 }
 0x62f   : > { %v8297_v44 = vpop.f32.mrf.mxu0 }
 0x630   : > { %v8316_v56 = vadd.f32 %v8297_v44, %v8151_v50  ;;  %v8352_v12 = vshrl.u32 %v8343_v28, 16  ;;  %v8355_v25 = vshll.u32 %v8343_v28, 16  ;;  %v8526_v5 = vunpack.c.l.b16 %v8343_v28 }
 0x631   : > { %v7266_v44 = vadd.f32 %v15841_v19, %v7097_v53  ;;  %v8153_v28 = vadd.f32 %v8137_v1, %v7916_v39  ;;  %v8140_v19 = vpop.f32.mrf.mxu3 }
 0x632   : > { %v8328_v33 = vadd.f32 %v15897_v27, %v8316_v56  ;;  %v8354_v38 = vrot.slane %v8352_v12, 7  ;;  %v7792_v56 = vadd.f32 %v7778_v16, %v7627_v6  ;;  %v7100_v12 = vadd.f32 %v15845_v61, %v15820_v7  ;;  %v7783_v6 = vpop.f32.mrf.mxu2 }
 0x633   : > { %v7391_v62 = vadd.f32 %v15843_v34, %v7266_v44 }
 0x634   : > { %v8336_v23 = vmax.f32 %v8328_v33, 0.0  ;;  %v8358_v49 = vrot.slane %v8354_v38, 4  ;;  %v8357_v63 = vor.u32 %v8355_v25, %v8354_v38  ;;  %v7917_v2 = vadd.f32 %v7903_v37, %v7792_v56 }
 0x635   : > { %v7628_v25 = vadd.f32 %v15861_v55, %v7391_v62  ;;  %v7267_v42 = vadd.f32 %v15847_v48, %v7100_v12  ;;  %v12760_v12 = vld [vmem:[%s16811_s11 + $0x30] sm:$0xff] }
 0x636   : > { %v8344_v8 = vpack.c.bf16 %v8336_v23, %v8336_v23  ;;  %8417 = vrot.lane.b32.xlu0 %v8358_v49, %s12969_s24  ;;  %8415 = vrot.lane.b32.xlu2 %v8357_v63, %s12969_s24  ;;  %v7905_v1 = vpop.f32.mrf.mxu1  ;;  %v8154_v7 = vadd.f32 %v8140_v19, %v7917_v2  ;;  %v12768_v19 = vld [vmem:[%s16811_s11 + $0x70] sm:$0xff] }
 0x637   : > { %v8300_v22 = vpop.f32.mrf.mxu0  ;;  %v7392_v55 = vadd.f32 %v15851_v15, %v7267_v42  ;;  %v7268_v15 = vadd.f32 %v15857_v46, %v7102_v41  ;;  %v12769_v46 = vld [vmem:[%s16811_s11 + $0x78] sm:$0xff]  ;;  %v12759_v42 = vld [vmem:[%s16811_s11 + $0x28] sm:$0xff] }
 0x638   : > { %v8527_v54 = vunpack.c.l.b16 %v8344_v8  ;;  %v8317_v51 = vadd.f32 %v8300_v22, %v8152_v59  ;;  %v8360_v35 = vshrl.u32 %v8344_v8, 16  ;;  %v8363_v18 = vshll.u32 %v8344_v8, 16  ;;  %8868 = vmatpush.bf16.msrb.mxu3 %v12769_v46 }
 0x639   : > { %v7793_v8 = vadd.f32 %v7780_v20, %v7628_v25  ;;  %v7629_v39 = vadd.f32 %v15864_v14, %v7392_v55  ;;  %v12761_v14 = vld [vmem:[%s16811_s11 + $0x38] sm:$0xff] }
 0x63a   : > { %v8534_v50 = vpack.c.b16 %v8527_v54, %v8526_v5  ;;  %v8329_v10 = vadd.f32 %v15897_v27, %v8317_v51  ;;  %v8362_v21 = vrot.slane %v8360_v35, 7  ;;  %v8142_v35 = vpop.f32.mrf.mxu3  ;;  %8969 = vmatpush.bf16.msrb.mxu0 %v12761_v14  ;;  %v7785_v2 = vpop.f32.mrf.mxu2 }
 0x63b   : > { %v7918_v51 = vadd.f32 %v7905_v1, %v7793_v8 }
 0x63c   : > { %v8337_v32 = vmax.f32 %v8329_v10, 0.0  ;;  %12076 = vmatmul.msk.bf16.vlgmr.msra.gmra.mxu2 %vm1181_vm1, %v8534_v50  ;;  %12080 = vmatmul.msk.bf16.vlgmr.msrb.gmra.mxu1 %vm1181_vm1, %v8534_v50  ;;  %v8366_v52 = vrot.slane %v8362_v21, 4  ;;  %v8365_v36 = vor.u32 %v8363_v18, %v8362_v21 }
 0x63d   : > { %8869 = vmatpush.bf16.msrb.mxu3 %v12768_v19 }
 0x63e   : > { %v8345_v58 = vpack.c.bf16 %v8337_v32, %v8337_v32  ;;  %8421 = vrot.lane.b32.xlu0 %v8366_v52, %s12969_s24  ;;  %8419 = vrot.lane.b32.xlu1 %v8365_v36, %s12969_s24  ;;  %v7908_v44 = vpop.f32.mrf.mxu1  ;;  %v8155_v32 = vadd.f32 %v8142_v35, %v7918_v51  ;;  %v7794_v52 = vadd.f32 %v7783_v6, %v7629_v39 }
 0x63f   : > { %v8302_v47 = vpop.f32.mrf.mxu0  ;;  %8970 = vmatpush.bf16.msrb.mxu0 %v12760_v12 }
 0x640   : > { %v8318_v33 = vadd.f32 %v8302_v47, %v8153_v28  ;;  %v8368_v38 = vshrl.u32 %v8345_v58, 16  ;;  %v8371_v63 = vshll.u32 %v8345_v58, 16  ;;  %v8528_v22 = vunpack.c.l.b16 %v8345_v58 }
 0x641   : > { %v7393_v28 = vadd.f32 %v15859_v29, %v7268_v15  ;;  %v7919_v20 = vadd.f32 %v7908_v44, %v7794_v52 }
 0x642   : > { %v8330_v23 = vadd.f32 %v15897_v27, %v8318_v33  ;;  %v8370_v49 = vrot.slane %v8368_v38, 7  ;;  %v8145_v25 = vpop.f32.mrf.mxu3 }
 0x643   : > { %v7630_v47 = vadd.f32 %v15879_v17, %v7393_v28  ;;  %v12767_v17 = vld [vmem:[%s16811_s11 + $0x68] sm:$0xff]  ;;  %8971 = vmatpush.bf16.msrb.mxu0 %v12759_v42 }
 0x644   : > { %v8338_v59 = vmax.f32 %v8330_v23, 0.0  ;;  %v8374_v34 = vrot.slane %v8370_v49, 4  ;;  %v8373_v16 = vor.u32 %v8371_v63, %v8370_v49  ;;  %8870 = vmatpush.bf16.msrb.mxu3 %v12767_v17  ;;  %v12775_v42 = vld [vmem:[%s16811_s11 + $0xa8] sm:$0xff]  ;;  %v12764_v17 = vld [vmem:[%s16811_s11 + $0x50] sm:$0xff] }
 0x645   : > { %v7795_v1 = vadd.f32 %v7785_v2, %v7630_v47  ;;  %v12789_v2 = vld [vmem:[%s16811_s11 + $0xf8] sm:$0xff] }
 0x646   : > { %v8346_v61 = vpack.c.bf16 %v8338_v59, %v8338_v59  ;;  %8425 = vrot.lane.b32.xlu1 %v8374_v34, %s12969_s24  ;;  %8423 = vrot.lane.b32.xlu2 %v8373_v16, %s12969_s24  ;;  %v8156_v59 = vadd.f32 %v8145_v25, %v7919_v20  ;;  %v7910_v8 = vpop.f32.mrf.mxu1  ;;  %v12756_v20 = vld [vmem:[%s16811_s11 + $0x10] sm:$0xff]  ;;  %v12754_v25 = vld [vmem:[%s16811_s11] sm:$0xff] }
 0x647   : > { %v8305_v53 = vpop.f32.mrf.mxu0  ;;  %9267 = vmatpush.bf16.msra.mxu1 %v12789_v2 }
 0x648   : > { %v8529_v5 = vunpack.c.l.b16 %v8346_v61  ;;  %v8319_v48 = vadd.f32 %v8305_v53, %v8154_v7  ;;  %v8376_v54 = vshrl.u32 %v8346_v61, 16  ;;  %v8379_v21 = vshll.u32 %v8346_v61, 16 }
 0x649   : > { %v7920_v53 = vadd.f32 %v7910_v8, %v7795_v1  ;;  %v12787_v1 = vld [vmem:[%s16811_s11 + $0xe8] sm:$0xff] }
 0x64a   : > { %v8331_v37 = vadd.f32 %v15897_v27, %v8319_v48  ;;  %v8535_v50 = vpack.c.b16 %v8529_v5, %v8528_v22  ;;  %v8378_v10 = vrot.slane %v8376_v54, 7  ;;  %v12758_v22 = vld [vmem:[%s16811_s11 + $0x20] sm:$0xff]  ;;  %v12763_v8 = vld [vmem:[%s16811_s11 + $0x48] sm:$0xff] }
 0x64b   : > { %8972 = vmatpush.bf16.msrb.mxu0 %v12758_v22 }
 0x64c   : > { %v8339_v18 = vmax.f32 %v8331_v37, 0.0  ;;  %12077 = vmatmul.msk.bf16.gmra.mxu2 %vm1181_vm1, %v8535_v50  ;;  %12081 = vmatmul.msk.bf16.gmra.mxu1 %vm1181_vm1, %v8535_v50  ;;  %v8382_v60 = vrot.slane %v8378_v10, 4  ;;  %v8381_v0 = vor.u32 %v8379_v21, %v8378_v10  ;;  %v8147_v37 = vpop.f32.mrf.mxu3  ;;  %v12757_v50 = vld [vmem:[%s16811_s11 + $0x18] sm:$0xff] }
 0x64d   : > { %v8157_v10 = vadd.f32 %v8147_v37, %v7920_v53  ;;  %v12901_v53 = vld [vmem:[#allocation3 + $0x8] sm:$0xf] }
 0x64e   : > { %v8347_v36 = vpack.c.bf16 %v8339_v18, %v8339_v18  ;;  %8429 = vrot.lane.b32.xlu1 %v8382_v60, %s12969_s24  ;;  %8427 = vrot.lane.b32.xlu2 %v8381_v0, %s12969_s24 }
 0x64f   : > { %v8307_v56 = vpop.f32.mrf.mxu0  ;;  %8973 = vmatpush.bf16.msrb.mxu0 %v12757_v50  ;;  %v12782_v50 = vld [vmem:[%s16811_s11 + $0xc0] sm:$0xff] }
 0x650   : > { %v8320_v58 = vadd.f32 %v8307_v56, %v8155_v32  ;;  %v8384_v62 = vshrl.u32 %v8347_v36, 16  ;;  %v8387_v29 = vshll.u32 %v8347_v36, 16  ;;  %v8530_v7 = vunpack.c.l.b16 %v8347_v36 }
 0x652   : > { %v8332_v33 = vadd.f32 %v15897_v27, %v8320_v58  ;;  %v8386_v38 = vrot.slane %v8384_v62, 7 }
 0x653   : > { %8974 = vmatpush.bf16.msrb.mxu0 %v12756_v20 }
 0x654   : > { %v8340_v23 = vmax.f32 %v8332_v33, 0.0  ;;  %v8390_v49 = vrot.slane %v8386_v38, 4  ;;  %v8389_v63 = vor.u32 %v8387_v29, %v8386_v38  ;;  %v12766_v33 = vld [vmem:[%s16811_s11 + $0x60] sm:$0xff]  ;;  %v12777_v38 = vld [vmem:[%s16811_s11 + $0xb8] sm:$0xff]  ;;  %v12755_v29 = vld [vmem:[%s16811_s11 + $0x8] sm:$0xff] }
 0x655   : > { %8871 = vmatpush.bf16.msrb.mxu3 %v12766_v33  ;;  %9134 = vmatpush.bf16.msrb.mxu2 %v12777_v38  ;;  %v8998_v33 = vld [vmem:[#allocation3] sm:$0xe] }
 0x656   : > { %v8348_v34 = vpack.c.bf16 %v8340_v23, %v8340_v23  ;;  %8433 = vrot.lane.b32.xlu2 %v8390_v49, %s12969_s24  ;;  %8431 = vrot.lane.b32.xlu0 %v8389_v63, %s12969_s24  ;;  %v12776_v23 = vld [vmem:[%s16811_s11 + $0xb0] sm:$0xff]  ;;  %v12765_v49 = vld [vmem:[%s16811_s11 + $0x58] sm:$0xff] }
 0x657   : > { %v8310_v16 = vpop.f32.mrf.mxu0  ;;  %8975 = vmatpush.bf16.msrb.mxu0 %v12755_v29  ;;  %v12788_v63 = vld [vmem:[%s16811_s11 + $0xf0] sm:$0xff] }
 0x658   : > { %v8531_v61 = vunpack.c.l.b16 %v8348_v34  ;;  %v8321_v55 = vadd.f32 %v8310_v16, %v8156_v59  ;;  %v8392_v41 = vshrl.u32 %v8348_v34, 16  ;;  %v8395_v51 = vshll.u32 %v8348_v34, 16  ;;  %9268 = vmatpush.bf16.msra.mxu1 %v12788_v63  ;;  %v12774_v59 = vld [vmem:[%s16811_s11 + $0xa0] sm:$0xff]  ;;  %v12773_v16 = vld [vmem:[%s16811_s11 + $0x98] sm:$0xff] }
 0x659   : > { %9135 = vmatpush.bf16.msrb.mxu2 %v12776_v23  ;;  %8872 = vmatpush.bf16.msrb.mxu3 %v12765_v49  ;;  %v12786_v34 = vld [vmem:[%s16811_s11 + $0xe0] sm:$0xff] }
 0x65a   : > { %v8333_v5 = vadd.f32 %v15897_v27, %v8321_v55  ;;  %v8536_v48 = vpack.c.b16 %v8531_v61, %v8530_v7  ;;  %v8394_v54 = vrot.slane %v8392_v41, 7  ;;  %v12785_v7 = vld [vmem:[%s16811_s11 + $0xd8] sm:$0xff]  ;;  %v12772_v61 = vld [vmem:[%s16811_s11 + $0x90] sm:$0xff] }
 0x65b   : > { %8976 = vmatpush.bf16.msrb.mxu0 %v12754_v25  ;;  %v12164_v25 = vrot.slane %v8998_v33, 9 }
 0x65c   : > { %v8341_v35 = vmax.f32 %v8333_v5, 0.0  ;;  %12078 = vmatmul.msk.bf16.gmra.mxu2 %vm1181_vm1, %v8536_v48  ;;  %12082 = vmatmul.msk.bf16.gmra.mxu1 %vm1181_vm1, %v8536_v48  ;;  %v8398_v39 = vrot.slane %v8394_v54, 4  ;;  %v8397_v6 = vor.u32 %v8395_v51, %v8394_v54  ;;  %v12784_v5 = vld [vmem:[%s16811_s11 + $0xd0] sm:$0xff]  ;;  %v12771_v48 = vld [vmem:[%s16811_s11 + $0x88] sm:$0xff]  ;;  %v12762_v54 = vld [vmem:[%s16811_s11 + $0x40] sm:$0xff] }
 0x65d   : > { %9136 = vmatpush.bf16.msrb.mxu2 %v12775_v42  ;;  %8873 = vmatpush.bf16.msrb.mxu3 %v12764_v17  ;;  %v12783_v51 = vld [vmem:[%s16811_s11 + $0xc8] sm:$0xff] }
 0x65e   : > { %v8349_v21 = vpack.c.bf16 %v8341_v35, %v8341_v35  ;;  %8437 = vrot.lane.b32.xlu2 %v8398_v39, %s12969_s24  ;;  %8435 = vrot.lane.b32.xlu0 %v8397_v6, %s12969_s24  ;;  %v12770_v35 = vld [vmem:[%s16811_s11 + $0x80] sm:$0xff] }
 0x65f   : > { %v8312_v15 = vpop.f32.mrf.mxu0  ;;  %9269 = vmatpush.bf16.msra.mxu1 %v12787_v1  ;;  %v12118_v39 = vld [vmem:[#allocation3] sm:$0xf]  ;;  %v8475_v1 = vld [vmem:[#allocation3 + $0x14] sm:$0x1] }
 0x660   : > { %v8322_v18 = vadd.f32 %v8312_v15, %v8157_v10  ;;  %v8400_v60 = vshrl.u32 %v8349_v21, 16  ;;  %v8403_v32 = vshll.u32 %v8349_v21, 16  ;;  %v8532_v28 = vunpack.c.l.b16 %v8349_v21  ;;  %v8644_v10 = vld [vmem:[#allocation3] sm:$0xf]  ;;  %v8478_v21 = vld [vmem:[#allocation3 + $0x18] sm:$0xf] }
 0x661   : > { %9137 = vmatpush.bf16.msrb.mxu2 %v12774_v59  ;;  %8874 = vmatpush.bf16.msrb.mxu3 %v12763_v8 }
 0x662   : > { %v8334_v0 = vadd.f32 %v15897_v27, %v8322_v18  ;;  %v8402_v44 = vrot.slane %v8400_v60, 7  ;;  %v12797_v18 = vld [vmem:[%s16811_s11 + $0x138] sm:$0xff] }
 0x663   : > { %9270 = vmatpush.bf16.msra.mxu1 %v12786_v34  ;;  %v8472_v34 = vld [vmem:[#allocation3 + $0x10] sm:$0xf] }
 0x664   : > { %v8342_v52 = vmax.f32 %v8334_v0, 0.0  ;;  %v8406_v36 = vrot.slane %v8402_v44, 4  ;;  %v8405_v14 = vor.u32 %v8403_v32, %v8402_v44  ;;  %v8677_v0 = vshrl.u32 %v8644_v10, 16 }
 0x665   : > { %9138 = vmatpush.bf16.msrb.mxu2 %v12773_v16  ;;  %8875 = vmatpush.bf16.msrb.mxu3 %v12762_v54  ;;  %v8680_v44 = vshll.u32 %v8644_v10, 16 }
 0x666   : > { %v8350_v46 = vpack.c.bf16 %v8342_v52, %v8342_v52  ;;  %8441 = vrot.lane.b32.xlu0 %v8406_v36, %s12969_s24  ;;  %8439 = vrot.lane.b32.xlu1 %v8405_v14, %s12969_s24  ;;  %v8679_v36 = vrot.slane %v8677_v0, 4 }
 0x667   : > { %9271 = vmatpush.bf16.msra.mxu1 %v12785_v7  ;;  %v8682_v14 = vrot.slane %v8680_v44, 5 }
 0x668   : > { %v8533_v56 = vunpack.c.l.b16 %v8350_v46  ;;  %v8408_v58 = vshrl.u32 %v8350_v46, 16  ;;  %v8411_v19 = vshll.u32 %v8350_v46, 16  ;;  %v8469_v46 = vld [vmem:[#allocation3 + $0xc] sm:$0x1] }
 0x669   : > { %9139 = vmatpush.bf16.msrb.mxu2 %v12772_v61  ;;  %9512 = vmatpush.bf16.msra.mxu3 %v12797_v18  ;;  %v8683_v38 = vor.u32 %v8682_v14, %v8679_v36  ;;  %v12795_v61 = vld [vmem:[%s16811_s11 + $0x128] sm:$0xff]  ;;  %v8481_v14 = vld [vmem:[#allocation3 + $0x1c] sm:$0x1] }
 0x66a   : > { %v8537_v62 = vpack.c.b16 %v8533_v56, %v8532_v28  ;;  %v8410_v12 = vrot.slane %v8408_v58, 7  ;;  %v8668_v28 = vld [vmem:[#allocation3 + $0x4] sm:$0x1]  ;;  %v8484_v58 = vld [vmem:[#allocation3 + $0x20] sm:$0xf] }
 0x66b   : > { %9272 = vmatpush.bf16.msra.mxu1 %v12784_v5  ;;  %v8686_v29 = vshll.u32 %v8668_v28, 16  ;;  %v9024_v2 = vrot.slane %v8668_v28, 5  ;;  %v8684_v42 = vrot.slane %v8683_v38, 4 }
 0x66c   : > { %12079 = vmatmul.msk.bf16.gmra.mxu2 %vm1181_vm1, %v8537_v62  ;;  %12083 = vmatmul.msk.bf16.gmra.mxu1 %vm1181_vm1, %v8537_v62  ;;  %v8414_v27 = vrot.slane %v8410_v12, 4  ;;  %v8413_v47 = vor.u32 %v8411_v19, %v8410_v12 }
 0x66d   : > { %9140 = vmatpush.bf16.msrb.mxu2 %v12771_v48  ;;  %v8688_v17 = vrot.slane %v8686_v29, 5  ;;  %v9025_v8 = vsel %vm13529_vm13, %v12164_v25, %v9024_v2 }
 0x66e   : > { %8445 = vrot.lane.b32.xlu2 %v8414_v27, %s12969_s24  ;;  %8443 = vrot.lane.b32.xlu1 %v8413_v47, %s12969_s24  ;;  %v12796_v27 = vld [vmem:[%s16811_s11 + $0x130] sm:$0xff]  ;;  %s10643_s24 = scalar_lea.hbm %s16818_s18, %s12838_s1  ;;  %s12922_s1 = scalar_lea.hbm %s16818_s18, 256 }
 0x66f   : > { %9273 = vmatpush.bf16.msra.mxu1 %v12783_v51  ;;  %9513 = vmatpush.bf16.msra.mxu3 %v12796_v27  ;;  %s10646_s29 = sshll.u32 %s10643_s24, 4  ;;  %s10647_s29 = int_to_ptr.hbm [resolvable:$true] %s10646_s29 }
 0x670   : > { %s12916_s22 = sshra.s32 %s10647_s29, 4  ;;  %s12917_s22 = int_to_ptr.hbm [resolvable:$true] %s12916_s22 }
 0x671   : > { %9141 = vmatpush.bf16.msrb.mxu2 %v12770_v35  ;;  %s12918_s20 = scalar_lea.hbm %s12917_s22, 128  ;;  %p12923_p0 = scmp.lt.s32.totalorder %s12917_s22, %s16818_s18 }
 0x672   : > { %p12919_p11 = scmp.ne.s32.totalorder %s12917_s22, %s12918_s20  ;;  %p12924_p1 = scmp.lt.s32.totalorder %s12922_s1, %s12918_s20 }
 0x673   : > { %9274 = vmatpush.bf16.msra.mxu1 %v12782_v50  ;;  %9514 = vmatpush.bf16.msra.mxu3 %v12795_v61  ;;  %v12817_v61 = vld [vmem:[%s16811_s11 + $0x1b8] sm:$0xff] }
 0x674   : > { %p12920_p12 = pnand %p12919_p11, %p13105_p5  ;;  %p12925_p2 = por %p12924_p1, %p12923_p0 }
 0x675   : > { %9818 = vmatpush.bf16.msra.mxu2 %v12817_v61 }
 0x676   : > { %p12921_p13 = pneg %p12920_p12 }
 0x678   : > { %p12926_p3 = pnand %p12925_p2, %p12921_p13 }
 0x690   : > { %v8416_v41 = vpop.permute.xlu2 %8415 }
 0x691   : > { %v8465_v22 = vsel %vm16036_vm8, %v8416_v41, %v12901_v53 }
 0x692   : > { %8466 = vst [vmem:[#allocation3 + $0x8] sm:$0xf] %v8465_v22  ;;  %v8493_v22 = vld [vmem:[#allocation3 + $0x2c] sm:$0x1] }
 0x699   : > { %v12750_v6 = vld [vmem:[#allocation3 + $0x4] sm:$0xf0] }
 0x69a   : > { %v12119_v37 = vor.u32 %v12750_v6, %v12118_v39  ;;  %v8645_v32 = vld [vmem:[#allocation3 + $0x8] sm:$0xf]  ;;  %v8689_v39 = vsel %vm13367_vm6, %v8684_v42, %v8688_v17 }
 0x69b   : > { %v8691_v12 = vshrl.u32 %v8645_v32, 16  ;;  %v8694_v19 = vshll.u32 %v8645_v32, 16  ;;  %v8999_v63 = vld [vmem:[#allocation3 + $0x8] sm:$0xe] }
 0x69c   : > { %8977 = vmatmul.bf16.vlgmr.msrb.gmra.mxu0 %v12119_v37  ;;  %v12165_v54 = vrot.slane %v8999_v63, 9  ;;  %v9070_v37 = vunpack.c.l.b16 %v9025_v8  ;;  %v12206_v33 = vld [vmem:[#allocation3 + $0x8] sm:$0xf] }
 0x69d   : > { %v8693_v23 = vrot.slane %v8691_v12, 4  ;;  %v8696_v49 = vrot.slane %v8694_v19, 5  ;;  %v8499_v12 = vld [vmem:[#allocation3 + $0x34] sm:$0x1] }
 0x69f   : > { %v8697_v7 = vor.u32 %v8696_v49, %v8693_v23 }
 0x6a0   : > { %v8424_v15 = vpop.permute.xlu2 %8423 }
 0x6a1   : > { %v8479_v60 = vsel %vm16036_vm8, %v8424_v15, %v8478_v21  ;;  %v8698_v10 = vrot.slane %v8697_v7, 4  ;;  %v12805_v15 = vld [vmem:[%s16811_s11 + $0x178] sm:$0xff] }
 0x6a2   : > { %8480 = vst [vmem:[#allocation3 + $0x18] sm:$0xf] %v8479_v60  ;;  %v8804_v60 = vunpack.c.l.b16 %v8689_v39  ;;  %9685 = vmatpush.bf16.msra.mxu0 %v12805_v15  ;;  %v8487_v39 = vld [vmem:[#allocation3 + $0x24] sm:$0x1] }
 0x6a8   : > { %v8418_v56 = vpop.permute.xlu0 %8417  ;;  %v8428_v62 = vpop.permute.xlu2 %8427 }
 0x6a9   : > { %v8470_v47 = vsel %vm16066_vm12, %v8418_v56, %v8469_v46  ;;  %v8485_v20 = vsel %vm16036_vm8, %v8428_v62, %v8484_v58  ;;  %v8647_v0 = vld [vmem:[#allocation3 + $0x18] sm:$0xf]  ;;  %v12794_v58 = vld [vmem:[%s16811_s11 + $0x120] sm:$0xff] }
 0x6aa   : > { %8471 = vst [vmem:[#allocation3 + $0xc] sm:$0x1] %v8470_v47  ;;  %v8719_v28 = vshrl.u32 %v8647_v0, 16  ;;  %v8722_v56 = vshll.u32 %v8647_v0, 16  ;;  %9515 = vmatpush.bf16.msra.mxu3 %v12794_v58 }
 0x6ab   : > { %8486 = vst [vmem:[#allocation3 + $0x20] sm:$0xf] %v8485_v20  ;;  %v12751_v20 = vld [vmem:[#allocation3 + $0x14] sm:$0xf0] }
 0x6b0   : > { %v8422_v59 = vpop.permute.xlu0 %8421  ;;  %v8420_v16 = vpop.permute.xlu1 %8419 }
 0x6b1   : > { %v8476_v41 = vsel %vm16066_vm12, %v8422_v59, %v8475_v1  ;;  %v8473_v53 = vsel %vm16036_vm8, %v8420_v16, %v8472_v34  ;;  %v8434_v5 = vpop.permute.xlu2 %8433  ;;  %v8669_v48 = vld [vmem:[#allocation3 + $0xc] sm:$0x1]  ;;  %v8721_v1 = vrot.slane %v8719_v28, 4  ;;  %v8724_v59 = vrot.slane %v8722_v56, 5  ;;  %v12804_v34 = vld [vmem:[%s16811_s11 + $0x170] sm:$0xff] }
 0x6b2   : > { %8477 = vst [vmem:[#allocation3 + $0x14] sm:$0x1] %v8476_v41  ;;  %v8494_v51 = vsel %vm16066_vm12, %v8434_v5, %v8493_v22  ;;  %v9028_v35 = vrot.slane %v8669_v48, 5  ;;  %v8700_v6 = vshll.u32 %v8669_v48, 16  ;;  %9686 = vmatpush.bf16.msra.mxu0 %v12804_v34  ;;  %v12803_v41 = vld [vmem:[%s16811_s11 + $0x168] sm:$0xff]  ;;  %v12824_v28 = vld [vmem:[%s16811_s11 + $0x1f0] sm:$0xff] }
 0x6b3   : > { %8474 = vst [vmem:[#allocation3 + $0x10] sm:$0xf] %v8473_v53  ;;  %v12825_v53 = vld [vmem:[%s16811_s11 + $0x1f8] sm:$0xff]  ;;  %v12779_v34 = vld [vmem:[#allocation3 + $0x1c] sm:$0xf0] }
 0x6b4   : > { %8495 = vst [vmem:[#allocation3 + $0x2c] sm:$0x1] %v8494_v51  ;;  %v9029_v50 = vsel %vm13529_vm13, %v12165_v54, %v9028_v35  ;;  %v8702_v21 = vrot.slane %v8700_v6, 5  ;;  %v9001_v5 = vld [vmem:[#allocation3 + $0x18] sm:$0xe]  ;;  %10063 = vmatpush.bf16.msrb.mxu1 %v12825_v53 }
 0x6b5   : > { %v9071_v18 = vunpack.c.l.b16 %v9029_v50  ;;  %v12816_v50 = vld [vmem:[%s16811_s11 + $0x1b0] sm:$0xff]  ;;  %v12167_v0 = vrot.slane %v9001_v5, 9 }
 0x6b6   : > { %v8703_v44 = vsel %vm13367_vm6, %v8698_v10, %v8702_v21  ;;  %v12793_v10 = vld [vmem:[%s16811_s11 + $0x118] sm:$0xff]  ;;  %9687 = vmatpush.bf16.msra.mxu0 %v12803_v41  ;;  %9819 = vmatpush.bf16.msra.mxu2 %v12816_v50 }
 0x6b7   : > { %v9078_v32 = vpack.c.b16 %v9071_v18, %v9070_v37  ;;  %v8805_v36 = vunpack.c.l.b16 %v8703_v44  ;;  %v8725_v37 = vor.u32 %v8724_v59, %v8721_v1  ;;  %9516 = vmatpush.bf16.msra.mxu3 %v12793_v10  ;;  %v12799_v10 = vld [vmem:[%s16811_s11 + $0x148] sm:$0xff] }
 0x6b8   : > { %v8426_v46 = vpop.permute.xlu1 %8425  ;;  %10064 = vmatpush.bf16.msrb.mxu1 %v12824_v28  ;;  %v12812_v28 = vld [vmem:[%s16811_s11 + $0x190] sm:$0xff] }
 0x6b9   : > { %v8482_v62 = vsel %vm16066_vm12, %v8426_v46, %v8481_v14  ;;  %v8438_v19 = vpop.permute.xlu2 %8437  ;;  %v8608_v27 = vpop.f32.mrf.mxu1  ;;  %9142 = vmatmul.bf16.vlgmr.msrb.gmra.mxu2 %v9078_v32  ;;  %v8812_v47 = vpack.c.b16 %v8805_v36, %v8804_v60  ;;  %v8670_v63 = vld [vmem:[#allocation3 + $0x14] sm:$0x1]  ;;  %v12802_v36 = vld [vmem:[%s16811_s11 + $0x160] sm:$0xff]  ;;  %v8726_v58 = vrot.slane %v8725_v37, 4 }
 0x6ba   : > { %8483 = vst [vmem:[#allocation3 + $0x1c] sm:$0x1] %v8482_v62  ;;  %v8500_v38 = vsel %vm16066_vm12, %v8438_v19, %v8499_v12  ;;  %v16105_v29 = vadd.f32 %v8608_v27, %v15480_v30  ;;  %v12122_v25 = vld [vmem:[#allocation3 + $0x10] sm:$0xf]  ;;  %v9032_v7 = vrot.slane %v8670_v63, 5  ;;  %v8714_v51 = vshll.u32 %v8670_v63, 16  ;;  %9688 = vmatpush.bf16.msra.mxu0 %v12802_v36 }
 0x6bb   : > { %v12778_v2 = vld [vmem:[#allocation3 + $0xc] sm:$0xf0]  ;;  %8501 = vst [vmem:[#allocation3 + $0x34] sm:$0x1] %v8500_v38  ;;  %8876 = vmatmul.bf16.vlgmr.msrb.gmra.mxu3 %v8812_v47  ;;  %v12123_v23 = vor.u32 %v12751_v20, %v12122_v25  ;;  %v12815_v12 = vld [vmem:[%s16811_s11 + $0x1a8] sm:$0xff]  ;;  %v12801_v38 = vld [vmem:[%s16811_s11 + $0x158] sm:$0xff] }
 0x6bc   : > { %v12207_v49 = vor.u32 %v12778_v2, %v12206_v33  ;;  %v9000_v42 = vld [vmem:[#allocation3 + $0x10] sm:$0xe]  ;;  %v8716_v46 = vrot.slane %v8714_v51, 5  ;;  %v12823_v20 = vld [vmem:[%s16811_s11 + $0x1e8] sm:$0xff]  ;;  %9820 = vmatpush.bf16.msra.mxu2 %v12815_v12  ;;  %v9002_v37 = vld [vmem:[#allocation3 + $0x20] sm:$0xe] }
 0x6bd   : > { %v8646_v17 = vld [vmem:[#allocation3 + $0x10] sm:$0xf]  ;;  %8982 = vmatmul.bf16.gmra.mxu0 %v12123_v23  ;;  %v12166_v8 = vrot.slane %v9000_v42, 9  ;;  %v8490_v2 = vld [vmem:[#allocation3 + $0x28] sm:$0xf]  ;;  %10065 = vmatpush.bf16.msrb.mxu1 %v12823_v20 }
 0x6be   : > { %9275 = vmatmul.bf16.vlgmr.msra.gmra.mxu1 %v12207_v49  ;;  %v8705_v30 = vshrl.u32 %v8646_v17, 16  ;;  %v8708_v16 = vshll.u32 %v8646_v17, 16  ;;  %v8511_v23 = vld [vmem:[#allocation3 + $0x44] sm:$0x1]  ;;  %v8648_v17 = vld [vmem:[#allocation3 + $0x20] sm:$0xf]  ;;  %9689 = vmatpush.bf16.msra.mxu0 %v12801_v38 }
 0x6bf   : > { %v8579_v22 = vpop.f32.mrf.mxu2  ;;  %v9033_v60 = vsel %vm13529_vm13, %v12166_v8, %v9032_v7  ;;  %v8733_v5 = vshrl.u32 %v8648_v17, 16 }
 0x6c0   : > { %v8707_v48 = vrot.slane %v8705_v30, 4  ;;  %v8710_v54 = vrot.slane %v8708_v16, 5  ;;  %v16120_v35 = vadd.f32 %v8579_v22, %v15470_v40  ;;  %v8430_v6 = vpop.permute.xlu1 %8429  ;;  %v9072_v19 = vunpack.c.l.b16 %v9033_v60  ;;  %v12814_v30 = vld [vmem:[%s16811_s11 + $0x1a0] sm:$0xff]  ;;  %v12792_v16 = vld [vmem:[%s16811_s11 + $0x110] sm:$0xff]  ;;  %v12210_v22 = vld [vmem:[#allocation3 + $0x18] sm:$0xf] }
 0x6c1   : > { %v8488_v21 = vsel %vm16066_vm12, %v8430_v6, %v8487_v39  ;;  %v16130_v15 = vpop.f32.mrf.mxu1  ;;  %v8671_v40 = vld [vmem:[#allocation3 + $0x1c] sm:$0x1]  ;;  %9517 = vmatpush.bf16.msra.mxu3 %v12792_v16  ;;  %v12800_v39 = vld [vmem:[%s16811_s11 + $0x150] sm:$0xff]  ;;  %v12822_v6 = vld [vmem:[%s16811_s11 + $0x1e0] sm:$0xff]  ;;  %9821 = vmatpush.bf16.msra.mxu2 %v12814_v30  ;;  %v8735_v60 = vrot.slane %v8733_v5, 4 }
 0x6c2   : > { %v8711_v18 = vor.u32 %v8710_v54, %v8707_v48  ;;  %8489 = vst [vmem:[#allocation3 + $0x24] sm:$0x1] %v8488_v21  ;;  %v9036_v44 = vrot.slane %v8671_v40, 5  ;;  %v8728_v32 = vshll.u32 %v8671_v40, 16  ;;  %v8736_v48 = vshll.u32 %v8648_v17, 16  ;;  %9690 = vmatpush.bf16.msra.mxu0 %v12800_v39  ;;  %10066 = vmatpush.bf16.msrb.mxu1 %v12822_v6  ;;  %v12821_v21 = vld [vmem:[%s16811_s11 + $0x1d8] sm:$0xff] }
 0x6c3   : > { %v12211_v54 = vor.u32 %v12779_v34, %v12210_v22  ;;  %v12811_v34 = vld [vmem:[%s16811_s11 + $0x188] sm:$0xff]  ;;  %v8505_v22 = vld [vmem:[#allocation3 + $0x3c] sm:$0x1]  ;;  %v8502_v5 = vld [vmem:[#allocation3 + $0x38] sm:$0xf] }
 0x6c4   : > { %v8712_v14 = vrot.slane %v8711_v18, 4  ;;  %v9037_v56 = vsel %vm13529_vm13, %v12167_v0, %v9036_v44  ;;  %v8730_v62 = vrot.slane %v8728_v32, 5  ;;  %v8673_v18 = vld [vmem:[#allocation3 + $0x2c] sm:$0x1]  ;;  %v8738_v0 = vrot.slane %v8736_v48, 5 }
 0x6c5   : > { %v9073_v27 = vunpack.c.l.b16 %v9037_v56  ;;  %v8496_v32 = vld [vmem:[#allocation3 + $0x30] sm:$0xf]  ;;  %v9044_v20 = vrot.slane %v8673_v18, 5 }
 0x6c6   : > { %v8717_v47 = vsel %vm13367_vm6, %v8712_v14, %v8716_v46  ;;  %v8731_v33 = vsel %vm13367_vm6, %v8726_v58, %v8730_v62  ;;  %v12168_v14 = vrot.slane %v9002_v37, 9  ;;  %v12126_v62 = vld [vmem:[#allocation3 + $0x20] sm:$0xf]  ;;  %9691 = vmatpush.bf16.msra.mxu0 %v12799_v10  ;;  %10067 = vmatpush.bf16.msrb.mxu1 %v12821_v21  ;;  %v8739_v38 = vor.u32 %v8738_v0, %v8735_v60  ;;  %v8674_v37 = vld [vmem:[#allocation3 + $0x34] sm:$0x1] }
 0x6c7   : > { %v16155_v25 = vpop.f32.mrf.mxu2  ;;  %v9079_v49 = vpack.c.b16 %v9073_v27, %v9072_v19  ;;  %v8806_v63 = vunpack.c.l.b16 %v8717_v47  ;;  %v8807_v42 = vunpack.c.l.b16 %v8731_v33  ;;  %v12790_v10 = vld [vmem:[%s16811_s11 + $0x100] sm:$0xff] }
 0x6c8   : > { %v8432_v1 = vpop.permute.xlu0 %8431  ;;  %v8446_v59 = vpop.permute.xlu2 %8445 }
 0x6c9   : > { %v8491_v8 = vsel %vm16036_vm8, %v8432_v1, %v8490_v2  ;;  %v8512_v7 = vsel %vm16066_vm12, %v8446_v59, %v8511_v23  ;;  %v8613_v61 = vpop.f32.mrf.mxu1  ;;  %9147 = vmatmul.bf16.gmra.mxu2 %v9079_v49  ;;  %v8813_v41 = vpack.c.b16 %v8807_v42, %v8806_v63  ;;  %v8672_v51 = vld [vmem:[#allocation3 + $0x24] sm:$0x1]  ;;  %v12791_v49 = vld [vmem:[%s16811_s11 + $0x108] sm:$0xff]  ;;  %v12820_v42 = vld [vmem:[%s16811_s11 + $0x1d0] sm:$0xff]  ;;  %v8756_v59 = vshll.u32 %v8673_v18, 16 }
 0x6ca   : > { %8492 = vst [vmem:[#allocation3 + $0x28] sm:$0xf] %v8491_v8  ;;  %v16168_v53 = vadd.f32 %v8613_v61, %v15548_v9  ;;  %v12813_v9 = vld [vmem:[%s16811_s11 + $0x198] sm:$0xff]  ;;  %v9040_v50 = vrot.slane %v8672_v51, 5  ;;  %v8742_v46 = vshll.u32 %v8672_v51, 16  ;;  %v12798_v63 = vld [vmem:[%s16811_s11 + $0x140] sm:$0xff]  ;;  %9518 = vmatpush.bf16.msra.mxu3 %v12791_v49  ;;  %10068 = vmatpush.bf16.msrb.mxu1 %v12820_v42 }
 0x6cb   : > { %8513 = vst [vmem:[#allocation3 + $0x44] sm:$0x1] %v8512_v7  ;;  %8881 = vmatmul.bf16.gmra.mxu3 %v8813_v41  ;;  %9822 = vmatpush.bf16.msra.mxu2 %v12813_v9  ;;  %v12819_v61 = vld [vmem:[%s16811_s11 + $0x1c8] sm:$0xff]  ;;  %v8758_v9 = vrot.slane %v8756_v59, 5  ;;  %v8508_v49 = vld [vmem:[#allocation3 + $0x40] sm:$0xf] }
 0x6cc   : > { %v9041_v27 = vsel %vm13529_vm13, %v12168_v14, %v9040_v50  ;;  %v8744_v1 = vrot.slane %v8742_v46, 5  ;;  %9692 = vmatpush.bf16.msra.mxu0 %v12798_v63  ;;  %v12810_v50 = vld [vmem:[%s16811_s11 + $0x180] sm:$0xff] }
 0x6cd   : > { %v9074_v30 = vunpack.c.l.b16 %v9041_v27 }
 0x6ce   : > { %9280 = vmatmul.bf16.gmra.mxu1 %v12211_v54  ;;  %v8740_v54 = vrot.slane %v8739_v38, 4  ;;  %9519 = vmatpush.bf16.msra.mxu3 %v12790_v10 }
 0x6cf   : > { %v8584_v40 = vpop.f32.mrf.mxu2  ;;  %9823 = vmatpush.bf16.msra.mxu2 %v12812_v28  ;;  %10069 = vmatpush.bf16.msrb.mxu1 %v12819_v61  ;;  %v9857_v61 = vld [vmem:[#allocation3 + $0x18] sm:$0xf] }
 0x6d0   : > { %v16186_v44 = vadd.f32 %v8584_v40, %v15520_v57  ;;  %v8436_v36 = vpop.permute.xlu0 %8435 }
 0x6d1   : > { %v8497_v56 = vsel %vm16036_vm8, %v8436_v36, %v8496_v32  ;;  %v16193_v58 = vpop.f32.mrf.mxu1  ;;  %v12752_v12 = vld [vmem:[#allocation3 + $0x24] sm:$0xf0]  ;;  %v8745_v32 = vsel %vm13367_vm6, %v8740_v54, %v8744_v1  ;;  %v9048_v1 = vrot.slane %v8674_v37, 5 }
 0x6d2   : > { %v9003_v19 = vld [vmem:[#allocation3 + $0x28] sm:$0xe]  ;;  %8498 = vst [vmem:[#allocation3 + $0x30] sm:$0xf] %v8497_v56  ;;  %v12127_v57 = vor.u32 %v12752_v12, %v12126_v62 }
 0x6d3   : > { %v12169_v47 = vrot.slane %v9003_v19, 9  ;;  %v8649_v33 = vld [vmem:[#allocation3 + $0x28] sm:$0xf]  ;;  %9824 = vmatpush.bf16.msra.mxu2 %v12811_v34  ;;  %v12818_v19 = vld [vmem:[%s16811_s11 + $0x1c0] sm:$0xff] }
 0x6d4   : > { %v8747_v2 = vshrl.u32 %v8649_v33, 16  ;;  %v8750_v23 = vshll.u32 %v8649_v33, 16  ;;  %8987 = vmatmul.bf16.gmra.mxu0 %v12127_v57  ;;  %v12214_v60 = vld [vmem:[#allocation3 + $0x28] sm:$0xf]  ;;  %v8808_v57 = vunpack.c.l.b16 %v8745_v32  ;;  %10070 = vmatpush.bf16.msrb.mxu1 %v12818_v19  ;;  %v12832_v19 = vld [vmem:[%s16811_s11 + $0x230] sm:$0xff] }
 0x6d5   : > { %v9045_v17 = vsel %vm13529_vm13, %v12169_v47, %v9044_v20  ;;  %v8770_v47 = vshll.u32 %v8674_v37, 16  ;;  %v16241_v34 = vld [vmem:[#allocation3 + $0x8] sm:$0xe] }
 0x6d6   : > { %v9075_v16 = vunpack.c.l.b16 %v9045_v17  ;;  %v8749_v8 = vrot.slane %v8747_v2, 4  ;;  %v8752_v7 = vrot.slane %v8750_v23, 5  ;;  %v9855_v2 = vld [vmem:[#allocation3 + $0x10] sm:$0xf] }
 0x6d7   : > { %v16214_v41 = vpop.f32.mrf.mxu2  ;;  %9825 = vmatpush.bf16.msra.mxu2 %v12810_v50  ;;  %v16239_v59 = vrot.slane %v8770_v47, 5  ;;  %v9875_v37 = vshll.u32 %v9855_v2, 16 }
 0x6d8   : > { %v9080_v48 = vpack.c.b16 %v9075_v16, %v9074_v30  ;;  %v8753_v51 = vor.u32 %v8752_v7, %v8749_v8  ;;  %v8442_v39 = vpop.permute.xlu0 %8441  ;;  %v8440_v6 = vpop.permute.xlu1 %8439 }
 0x6d9   : > { %v8506_v21 = vsel %vm16066_vm12, %v8442_v39, %v8505_v22  ;;  %v8503_v40 = vsel %vm16036_vm8, %v8440_v6, %v8502_v5  ;;  %v8618_v18 = vpop.f32.mrf.mxu1  ;;  %v12780_v0 = vld [vmem:[#allocation3 + $0x2c] sm:$0xf0]  ;;  %v9872_v22 = vshrl.u32 %v9855_v2, 16 }
 0x6da   : > { %9152 = vmatmul.bf16.gmra.mxu2 %v9080_v48  ;;  %v8754_v36 = vrot.slane %v8753_v51, 4  ;;  %8507 = vst [vmem:[#allocation3 + $0x3c] sm:$0x1] %v8506_v21  ;;  %v16229_v14 = vadd.f32 %v8618_v18, %v15607_v26  ;;  %v12215_v46 = vor.u32 %v12780_v0, %v12214_v60  ;;  %v9004_v28 = vld [vmem:[#allocation3 + $0x30] sm:$0xe]  ;;  %v9889_v18 = vshll.u32 %v9857_v61, 16 }
 0x6db   : > { %v8650_v56 = vld [vmem:[#allocation3 + $0x30] sm:$0xf]  ;;  %8504 = vst [vmem:[#allocation3 + $0x38] sm:$0xf] %v8503_v40  ;;  %v12170_v38 = vrot.slane %v9004_v28, 9  ;;  %v9886_v40 = vshrl.u32 %v9857_v61, 16 }
 0x6dc   : > { %v8759_v52 = vsel %vm13367_vm6, %v8754_v36, %v8758_v9  ;;  %v8761_v62 = vshrl.u32 %v8650_v56, 16  ;;  %v8764_v12 = vshll.u32 %v8650_v56, 16  ;;  %v12130_v17 = vld [vmem:[#allocation3 + $0x30] sm:$0xf]  ;;  %v16252_v51 = vld [vmem:[#allocation3 + $0x14] sm:$0x1] }
 0x6dd   : > { %v8809_v27 = vunpack.c.l.b16 %v8759_v52  ;;  %v9049_v54 = vsel %vm13529_vm13, %v12170_v38, %v9048_v1  ;;  %v9550_v21 = vld [vmem:[#allocation3 + $0x10] sm:$0xe]  ;;  %v16256_v36 = vld [vmem:[#allocation3 + $0xc] sm:$0x1]  ;;  %v9579_v47 = vrot.slane %v16252_v51, 5  ;;  %v9888_v2 = vrot.slane %v9886_v40, 4 }
 0x6de   : > { %9285 = vmatmul.bf16.gmra.mxu1 %v12215_v46  ;;  %v8763_v26 = vrot.slane %v8761_v62, 4  ;;  %v8766_v20 = vrot.slane %v8764_v12, 5  ;;  %v9076_v0 = vunpack.c.l.b16 %v9049_v54  ;;  %v12284_v46 = vrot.slane %v16241_v34, 9  ;;  %v16259_v12 = vld [vmem:[#allocation3 + $0x1c] sm:$0x1] }
 0x6df   : > { %v8814_v33 = vpack.c.b16 %v8809_v27, %v8808_v57  ;;  %v8589_v23 = vpop.f32.mrf.mxu2  ;;  %v12285_v27 = vrot.slane %v9550_v21, 9 }
 0x6e0   : > { %v16237_v63 = vadd.f32 %v8589_v23, %v15593_v31  ;;  %v8444_v42 = vpop.permute.xlu1 %8443  ;;  %v8767_v7 = vor.u32 %v8766_v20, %v8763_v26  ;;  %v12833_v31 = vld [vmem:[%s16811_s11 + $0x238] sm:$0xff]  ;;  %v9874_v26 = vrot.slane %v9872_v22, 4  ;;  %v9877_v20 = vrot.slane %v9875_v37, 5 }
 0x6e1   : > { %8886 = vmatmul.bf16.gmra.mxu3 %v8814_v33  ;;  %v8509_v30 = vsel %vm16036_vm8, %v8444_v42, %v8508_v49  ;;  %v16245_v16 = vpop.f32.mrf.mxu1  ;;  %v8675_v8 = vld [vmem:[#allocation3 + $0x3c] sm:$0x1]  ;;  %v9891_v23 = vrot.slane %v9889_v18, 5  ;;  %v9304_v49 = vld [vmem:[#allocation3 + $0x8] sm:$0xf] }
 0x6e2   : > { %8510 = vst [vmem:[#allocation3 + $0x40] sm:$0xf] %v8509_v30  ;;  %v12753_v5 = vld [vmem:[#allocation3 + $0x34] sm:$0xf0]  ;;  %v9052_v6 = vrot.slane %v8675_v8, 5  ;;  %10236 = vmatpush.bf16.msrb.mxu3 %v12833_v31  ;;  %v8768_v32 = vrot.slane %v8767_v7, 4  ;;  %v9878_v37 = vor.u32 %v9877_v20, %v9874_v26 }
 0x6e3   : > { %v9005_v48 = vld [vmem:[#allocation3 + $0x38] sm:$0xe]  ;;  %v12131_v55 = vor.u32 %v12753_v5, %v12130_v17  ;;  %v8784_v62 = vshll.u32 %v8675_v8, 16  ;;  %v9306_v42 = vld [vmem:[#allocation3 + $0x10] sm:$0xf]  ;;  %v9575_v8 = vrot.slane %v16256_v36, 5 }
 0x6e4   : > { %v12171_v39 = vrot.slane %v9005_v48, 9  ;;  %v8651_v9 = vld [vmem:[#allocation3 + $0x38] sm:$0xf]  ;;  %v8773_v30 = vsel %vm13367_vm6, %v8768_v32, %v16239_v59  ;;  %v9895_v7 = vshll.u32 %v16259_v12, 16  ;;  %v16275_v48 = vld [vmem:[#allocation3 + $0x14] sm:$0x1] }
 0x6e5   : > { %v8775_v50 = vshrl.u32 %v8651_v9, 16  ;;  %v8778_v10 = vshll.u32 %v8651_v9, 16  ;;  %8992 = vmatmul.bf16.gmra.mxu0 %v12131_v55  ;;  %v12218_v1 = vld [vmem:[#allocation3 + $0x38] sm:$0xf]  ;;  %v8786_v5 = vrot.slane %v8784_v62, 5  ;;  %v9321_v54 = vshrl.u32 %v9304_v49, 16 }
 0x6e6   : > { %v9053_v60 = vsel %vm13529_vm13, %v12171_v39, %v9052_v6  ;;  %10237 = vmatpush.bf16.msrb.mxu3 %v12832_v19  ;;  %v9324_v55 = vshll.u32 %v9304_v49, 16  ;;  %v9335_v39 = vshrl.u32 %v9306_v42, 16  ;;  %v9338_v6 = vshll.u32 %v9306_v42, 16  ;;  %v12326_v42 = vld [vmem:[#allocation3 + $0x10] sm:$0xf] }
 0x6e7   : > { %v9077_v28 = vunpack.c.l.b16 %v9053_v60  ;;  %v8777_v56 = vrot.slane %v8775_v50, 4  ;;  %v8780_v52 = vrot.slane %v8778_v10, 5  ;;  %v16264_v57 = vpop.f32.mrf.mxu2  ;;  %v9580_v9 = vsel %vm13529_vm13, %v12285_v27, %v9579_v47 }
 0x6e8   : > { %v9892_v50 = vor.u32 %v9891_v23, %v9888_v2  ;;  %v9337_v21 = vrot.slane %v9335_v39, 4  ;;  %v9340_v40 = vrot.slane %v9338_v6, 5  ;;  %v9576_v18 = vsel %vm13529_vm13, %v12284_v46, %v9575_v8  ;;  %v12831_v46 = vld [vmem:[%s16811_s11 + $0x228] sm:$0xff]  ;;  %v9551_v6 = vld [vmem:[#allocation3 + $0x18] sm:$0xe] }
 0x6e9   : > { %v9081_v33 = vpack.c.b16 %v9077_v28, %v9076_v0  ;;  %v8781_v38 = vor.u32 %v8780_v52, %v8777_v56  ;;  %v8623_v17 = vpop.f32.mrf.mxu1  ;;  %v12781_v34 = vld [vmem:[#allocation3 + $0x3c] sm:$0xf0]  ;;  %v9881_v60 = vshll.u32 %v16275_v48, 16  ;;  %v9897_v0 = vrot.slane %v9895_v7, 5 }
 0x6ea   : > { %v16273_v61 = vadd.f32 %v8623_v17, %v15658_v3  ;;  %v12219_v22 = vor.u32 %v12781_v34, %v12218_v1  ;;  %v8810_v3 = vunpack.c.l.b16 %v8773_v30  ;;  %v9622_v56 = vunpack.c.l.b16 %v9580_v9  ;;  %v16294_v1 = vld [vmem:[#allocation3 + $0x24] sm:$0x1]  ;;  %v9859_v34 = vld [vmem:[#allocation3 + $0x20] sm:$0xf]  ;;  %10238 = vmatpush.bf16.msrb.mxu3 %v12831_v46  ;;  %v12806_v30 = vld [vmem:[#allocation3 + $0x14] sm:$0xf0] }
 0x6eb   : > { %9157 = vmatmul.bf16.gmra.mxu2 %v9081_v33  ;;  %v8782_v31 = vrot.slane %v8781_v38, 4  ;;  %v9323_v52 = vrot.slane %v9321_v54, 4  ;;  %v9326_v62 = vrot.slane %v9324_v55, 5  ;;  %v9879_v27 = vrot.slane %v9878_v37, 4  ;;  %v9861_v38 = vld [vmem:[#allocation3 + $0x28] sm:$0xf] }
 0x6ec   : > { %v9893_v47 = vrot.slane %v9892_v50, 4  ;;  %v9341_v26 = vor.u32 %v9340_v40, %v9337_v21  ;;  %v9621_v20 = vunpack.c.l.b16 %v9576_v18  ;;  %v9330_v33 = vshll.u32 %v16256_v36, 16  ;;  %v16298_v54 = vld [vmem:[#allocation3 + $0x1c] sm:$0x1]  ;;  %v12830_v55 = vld [vmem:[%s16811_s11 + $0x220] sm:$0xff] }
 0x6ed   : > { %v8787_v59 = vsel %vm13367_vm6, %v8782_v31, %v8786_v5  ;;  %v9883_v2 = vrot.slane %v9881_v60, 5  ;;  %v9344_v49 = vshll.u32 %v16252_v51, 16  ;;  %v9327_v17 = vor.u32 %v9326_v62, %v9323_v52  ;;  %v9552_v51 = vld [vmem:[#allocation3 + $0x20] sm:$0xe]  ;;  %v16313_v46 = vld [vmem:[#allocation3 + $0x2c] sm:$0x1] }
 0x6ee   : > { %9290 = vmatmul.bf16.gmra.mxu1 %v12219_v22  ;;  %v8811_v10 = vunpack.c.l.b16 %v8787_v59  ;;  %v9898_v23 = vsel %vm13367_vm6, %v9893_v47, %v9897_v0  ;;  %v9342_v8 = vrot.slane %v9341_v26, 4  ;;  %v9914_v7 = vshrl.u32 %v9861_v38, 16  ;;  %v9310_v21 = vld [vmem:[#allocation3 + $0x20] sm:$0xf]  ;;  %10239 = vmatpush.bf16.msrb.mxu3 %v12830_v55  ;;  %v16311_v47 = vld [vmem:[#allocation3 + $0x24] sm:$0x1] }
 0x6ef   : > { %v8594_v32 = vpop.f32.mrf.mxu2  ;;  %v9884_v36 = vsel %vm13367_vm6, %v9879_v27, %v9883_v2  ;;  %v9917_v22 = vshll.u32 %v9861_v38, 16  ;;  %v10000_v31 = vunpack.c.l.b16 %v9898_v23  ;;  %v9332_v5 = vrot.slane %v9330_v33, 5 }
 0x6f0   : > { %v8815_v28 = vpack.c.b16 %v8811_v10, %v8810_v3  ;;  %v16285_v19 = vadd.f32 %v8594_v32, %v15643_v45  ;;  %v9629_v45 = vpack.c.b16 %v9622_v56, %v9621_v20  ;;  %v9346_v39 = vrot.slane %v9344_v49, 5  ;;  %v9308_v32 = vld [vmem:[#allocation3 + $0x18] sm:$0xf] }
 0x6f1   : > { %v9587_v59 = vrot.slane %v16294_v1, 5  ;;  %v9900_v9 = vshrl.u32 %v9859_v34, 16  ;;  %v12327_v37 = vor.u32 %v12806_v30, %v12326_v42  ;;  %v9999_v50 = vunpack.c.l.b16 %v9884_v36 }
 0x6f2   : > { %8891 = vmatmul.bf16.gmra.mxu3 %v8815_v28  ;;  %v9328_v3 = vrot.slane %v9327_v17, 4  ;;  %v9903_v10 = vshll.u32 %v9859_v34, 16  ;;  %v9347_v40 = vsel %vm13367_vm6, %v9342_v8, %v9346_v39  ;;  %v12287_v18 = vrot.slane %v9552_v51, 9 }
 0x6f3   : > { %v9916_v60 = vrot.slane %v9914_v7, 4  ;;  %v9919_v0 = vrot.slane %v9917_v22, 5  ;;  %v10007_v28 = vpack.c.b16 %v10000_v31, %v9999_v50  ;;  %v12286_v52 = vrot.slane %v9551_v6, 9  ;;  %v9865_v22 = vld [vmem:[#allocation3 + $0x38] sm:$0xf] }
 0x6f4   : > { %v9333_v56 = vsel %vm13367_vm6, %v9328_v3, %v9332_v5  ;;  %v9583_v62 = vrot.slane %v16298_v54, 5  ;;  %v9588_v27 = vsel %vm13529_vm13, %v12287_v18, %v9587_v59  ;;  %v9902_v26 = vrot.slane %v9900_v9, 4 }
 0x6f5   : > { %9693 = vmatmul.bf16.vlgmr.msra.gmra.mxu0 %v9629_v45  ;;  %v9363_v20 = vshrl.u32 %v9310_v21, 16  ;;  %v9366_v33 = vshll.u32 %v9310_v21, 16  ;;  %v9449_v38 = vunpack.c.l.b16 %v9347_v40  ;;  %v9905_v2 = vrot.slane %v9903_v10, 5  ;;  %v12829_v10 = vld [vmem:[%s16811_s11 + $0x218] sm:$0xff]  ;;  %v12807_v21 = vld [vmem:[#allocation3 + $0x24] sm:$0xf0] }
 0x6f6   : > { %v9349_v23 = vshrl.u32 %v9308_v32, 16  ;;  %v9352_v49 = vshll.u32 %v9308_v32, 16  ;;  %v9920_v45 = vor.u32 %v9919_v0, %v9916_v60  ;;  %v9448_v42 = vunpack.c.l.b16 %v9333_v56  ;;  %v9553_v56 = vld [vmem:[#allocation3 + $0x28] sm:$0xe]  ;;  %10240 = vmatpush.bf16.msrb.mxu3 %v12829_v10 }
 0x6f7   : > { %v9584_v17 = vsel %vm13529_vm13, %v12286_v52, %v9583_v62  ;;  %v9624_v34 = vunpack.c.l.b16 %v9588_v27  ;;  %v9909_v30 = vshll.u32 %v16311_v47, 16  ;;  %v9923_v36 = vshll.u32 %v16313_v46, 16  ;;  %v9554_v62 = vld [vmem:[#allocation3 + $0x30] sm:$0xe] }
 0x6f8   : > { %v9365_v8 = vrot.slane %v9363_v20, 4  ;;  %v9368_v7 = vrot.slane %v9366_v33, 5  ;;  %v9456_v31 = vpack.c.b16 %v9449_v38, %v9448_v42  ;;  %v9906_v5 = vor.u32 %v9905_v2, %v9902_v26  ;;  %v12330_v20 = vld [vmem:[#allocation3 + $0x20] sm:$0xf]  ;;  %v9312_v42 = vld [vmem:[#allocation3 + $0x28] sm:$0xf] }
 0x6f9   : > { %v9351_v51 = vrot.slane %v9349_v23, 4  ;;  %v9354_v55 = vrot.slane %v9352_v49, 5  ;;  %v9921_v39 = vrot.slane %v9920_v45, 4  ;;  %v9372_v6 = vshll.u32 %v16294_v1, 16  ;;  %v9314_v1 = vld [vmem:[#allocation3 + $0x30] sm:$0xf] }
 0x6fa   : > { %v9623_v59 = vunpack.c.l.b16 %v9584_v17  ;;  %v9358_v9 = vshll.u32 %v16298_v54, 16  ;;  %v9942_v50 = vshrl.u32 %v9865_v22, 16  ;;  %v9945_v3 = vshll.u32 %v9865_v22, 16  ;;  %v12828_v23 = vld [vmem:[%s16811_s11 + $0x210] sm:$0xff] }
 0x6fb   : > { %9826 = vmatmul.bf16.vlgmr.msra.gmra.mxu2 %v12327_v37  ;;  %v9863_v37 = vld [vmem:[#allocation3 + $0x30] sm:$0xf]  ;;  %v9911_v40 = vrot.slane %v9909_v30, 5  ;;  %v9925_v18 = vrot.slane %v9923_v36, 5  ;;  %v9369_v60 = vor.u32 %v9368_v7, %v9365_v8  ;;  %v9907_v32 = vrot.slane %v9906_v5, 4  ;;  %10241 = vmatpush.bf16.msrb.mxu3 %v12828_v23 }
 0x6fc   : > { %v9630_v0 = vpack.c.b16 %v9624_v34, %v9623_v59  ;;  %v9374_v52 = vrot.slane %v9372_v6, 5  ;;  %v9928_v27 = vshrl.u32 %v9863_v37, 16  ;;  %v9931_v26 = vshll.u32 %v9863_v37, 16  ;;  %v16331_v8 = vld [vmem:[#allocation3 + $0x34] sm:$0x1] }
 0x6fd   : > { %v9926_v54 = vsel %vm13367_vm6, %v9921_v39, %v9925_v18  ;;  %v9360_v33 = vrot.slane %v9358_v9, 5  ;;  %v9944_v38 = vrot.slane %v9942_v50, 4  ;;  %v9947_v2 = vrot.slane %v9945_v3, 5  ;;  %v9313_v59 = vld [vmem:[#allocation3 + $0x2c] sm:$0x1] }
 0x6fe   : > { %10071 = vmatmul.bf16.vlgmr.msrb.gmra.mxu1 %v10007_v28  ;;  %v9355_v28 = vor.u32 %v9354_v55, %v9351_v51  ;;  %v9912_v49 = vsel %vm13367_vm6, %v9907_v32, %v9911_v40  ;;  %v9370_v45 = vrot.slane %v9369_v60, 4  ;;  %v9391_v17 = vshrl.u32 %v9314_v1, 16  ;;  %v16335_v51 = vld [vmem:[#allocation3 + $0x3c] sm:$0x1] }
 0x6ff   : > { %v9394_v34 = vshll.u32 %v9314_v1, 16  ;;  %v12331_v30 = vor.u32 %v12807_v21, %v12330_v20  ;;  %v10002_v36 = vunpack.c.l.b16 %v9926_v54  ;;  %v12288_v7 = vrot.slane %v9553_v56, 9  ;;  %v12808_v20 = vld [vmem:[#allocation3 + $0x34] sm:$0xf0] }
 0x700   : > { %v12289_v22 = vrot.slane %v9554_v62, 9  ;;  %v9375_v5 = vsel %vm13367_vm6, %v9370_v45, %v9374_v52  ;;  %v9930_v55 = vrot.slane %v9928_v27, 4  ;;  %v9933_v39 = vrot.slane %v9931_v26, 5 }
 0x701   : > { %v10001_v6 = vunpack.c.l.b16 %v9912_v49  ;;  %v9948_v9 = vor.u32 %v9947_v2, %v9944_v38  ;;  %v9377_v37 = vshrl.u32 %v9312_v42, 16  ;;  %v9380_v50 = vshll.u32 %v9312_v42, 16  ;;  %v12334_v49 = vld [vmem:[#allocation3 + $0x30] sm:$0xf] }
 0x702   : > { %9520 = vmatmul.bf16.vlgmr.msra.gmra.mxu3 %v9456_v31  ;;  %v9356_v31 = vrot.slane %v9355_v28, 4  ;;  %v9595_v10 = vrot.slane %v16331_v8, 5  ;;  %v9393_v21 = vrot.slane %v9391_v17, 4  ;;  %v9396_v40 = vrot.slane %v9394_v34, 5  ;;  %v9867_v17 = vld [vmem:[#allocation3 + $0x40] sm:$0xf] }
 0x703   : > { %v10008_v18 = vpack.c.b16 %v10002_v36, %v10001_v6  ;;  %v9451_v60 = vunpack.c.l.b16 %v9375_v5  ;;  %v9951_v32 = vshll.u32 %v16335_v51, 16  ;;  %v9591_v28 = vrot.slane %v9313_v59, 5  ;;  %v9869_v36 = vld [vmem:[#allocation3 + $0x48] sm:$0xf] }
 0x704   : > { %v9361_v3 = vsel %vm13367_vm6, %v9356_v31, %v9360_v33  ;;  %v9596_v56 = vsel %vm13529_vm13, %v12289_v22, %v9595_v10  ;;  %v9934_v1 = vor.u32 %v9933_v39, %v9930_v55  ;;  %v9949_v52 = vrot.slane %v9948_v9, 4  ;;  %v10100_v22 = vld [vmem:[#allocation3 + $0x10] sm:$0xe]  ;;  %v12827_v39 = vld [vmem:[%s16811_s11 + $0x208] sm:$0xff] }
 0x705   : > { %9698 = vmatmul.bf16.gmra.mxu0 %v9630_v0  ;;  %v16340_v0 = vld [vmem:[#allocation3 + $0x34] sm:$0x1]  ;;  %v9450_v54 = vunpack.c.l.b16 %v9361_v3  ;;  %v9379_v62 = vrot.slane %v9377_v37, 4  ;;  %v9382_v27 = vrot.slane %v9380_v50, 5  ;;  %v9592_v26 = vsel %vm13529_vm13, %v12288_v7, %v9591_v28  ;;  %v10101_v50 = vld [vmem:[#allocation3 + $0x18] sm:$0xe]  ;;  %10242 = vmatpush.bf16.msrb.mxu3 %v12827_v39 }
 0x706   : > { %v9937_v33 = vshll.u32 %v16340_v0, 16  ;;  %v9397_v38 = vor.u32 %v9396_v40, %v9393_v21  ;;  %v9626_v23 = vunpack.c.l.b16 %v9596_v56  ;;  %v9953_v45 = vrot.slane %v9951_v32, 5  ;;  %v12826_v40 = vld [vmem:[%s16811_s11 + $0x200] sm:$0xff] }
 0x707   : > { %v9457_v2 = vpack.c.b16 %v9451_v60, %v9450_v54  ;;  %v9386_v42 = vshll.u32 %v9313_v59, 16  ;;  %v9935_v34 = vrot.slane %v9934_v1, 4  ;;  %v9625_v31 = vunpack.c.l.b16 %v9592_v26  ;;  %v16359_v1 = vld [vmem:[#allocation3 + $0x3c] sm:$0x1]  ;;  %v16361_v54 = vld [vmem:[#allocation3 + $0x44] sm:$0x1] }
 0x708   : > { %v12335_v5 = vor.u32 %v12808_v20, %v12334_v49  ;;  %v9954_v7 = vsel %vm13367_vm6, %v9949_v52, %v9953_v45  ;;  %v9383_v55 = vor.u32 %v9382_v27, %v9379_v62  ;;  %v9939_v6 = vrot.slane %v9937_v33, 5  ;;  %v9318_v62 = vld [vmem:[#allocation3 + $0x40] sm:$0xf] }
 0x709   : > { %v9398_v9 = vrot.slane %v9397_v38, 4  ;;  %v9956_v59 = vshrl.u32 %v9867_v17, 16  ;;  %v9959_v37 = vshll.u32 %v9867_v17, 16  ;;  %v9631_v3 = vpack.c.b16 %v9626_v23, %v9625_v31  ;;  %v9555_v38 = vld [vmem:[#allocation3 + $0x38] sm:$0xe]  ;;  %10243 = vmatpush.bf16.msrb.mxu3 %v12826_v40 }
 0x70a   : > { %v9970_v10 = vshrl.u32 %v9869_v36, 16  ;;  %v9973_v21 = vshll.u32 %v9869_v36, 16  ;;  %v9940_v60 = vsel %vm13367_vm6, %v9935_v34, %v9939_v6  ;;  %v10004_v32 = vunpack.c.l.b16 %v9954_v7  ;;  %v9316_v17 = vld [vmem:[#allocation3 + $0x38] sm:$0xf] }
 0x70b   : > { %9831 = vmatmul.bf16.gmra.mxu2 %v12331_v30  ;;  %v9400_v30 = vshll.u32 %v16331_v8, 16  ;;  %v9556_v8 = vld [vmem:[#allocation3 + $0x40] sm:$0xe]  ;;  %v9388_v28 = vrot.slane %v9386_v42, 5  ;;  %v9384_v52 = vrot.slane %v9383_v55, 4  ;;  %v10126_v27 = vrot.slane %v16275_v48, 5 }
 0x70c   : > { %v12405_v26 = vrot.slane %v10101_v50, 9  ;;  %v10130_v20 = vrot.slane %v16259_v12, 5  ;;  %v9958_v23 = vrot.slane %v9956_v59, 4  ;;  %v9961_v49 = vrot.slane %v9959_v37, 5 }
 0x70d   : > { %v9402_v56 = vrot.slane %v9400_v30, 5  ;;  %v9972_v45 = vrot.slane %v9970_v10, 4  ;;  %v9975_v42 = vrot.slane %v9973_v21, 5  ;;  %v9419_v30 = vshrl.u32 %v9318_v62, 16  ;;  %v16381_v21 = vld [vmem:[#allocation3 + $0x44] sm:$0x1] }
 0x70e   : > { %10076 = vmatmul.bf16.gmra.mxu1 %v10008_v18  ;;  %v12404_v18 = vrot.slane %v10100_v22, 9  ;;  %v10131_v48 = vsel %vm13529_vm13, %v12405_v26, %v10130_v20  ;;  %v9422_v36 = vshll.u32 %v9318_v62, 16  ;;  %v10003_v31 = vunpack.c.l.b16 %v9940_v60  ;;  %v10102_v26 = vld [vmem:[#allocation3 + $0x20] sm:$0xe] }
 0x70f   : > { %v9403_v33 = vsel %vm13367_vm6, %v9398_v9, %v9402_v56  ;;  %v10173_v22 = vunpack.c.l.b16 %v10131_v48  ;;  %v12290_v7 = vrot.slane %v9555_v38, 9  ;;  %v9599_v55 = vrot.slane %v16359_v1, 5  ;;  %v16375_v9 = vld [vmem:[#allocation3 + $0x4c] sm:$0x1] }
 0x710   : > { %v10127_v34 = vsel %vm13529_vm13, %v12404_v18, %v10126_v27  ;;  %v9603_v39 = vrot.slane %v16361_v54, 5  ;;  %v9389_v6 = vsel %vm13367_vm6, %v9384_v52, %v9388_v28  ;;  %v9405_v59 = vshrl.u32 %v9316_v17, 16 }
 0x711   : > { %v10172_v12 = vunpack.c.l.b16 %v10127_v34  ;;  %v9408_v37 = vshll.u32 %v9316_v17, 16  ;;  %v9979_v40 = vshll.u32 %v16375_v9, 16  ;;  %v9962_v18 = vor.u32 %v9961_v49, %v9958_v23 }
 0x712   : > { %9525 = vmatmul.bf16.gmra.mxu3 %v9457_v2  ;;  %v12291_v2 = vrot.slane %v9556_v8, 9  ;;  %v9453_v8 = vunpack.c.l.b16 %v9403_v33  ;;  %v9421_v60 = vrot.slane %v9419_v30, 4  ;;  %v9424_v56 = vrot.slane %v9422_v36, 5  ;;  %v10103_v36 = vld [vmem:[#allocation3 + $0x28] sm:$0xe] }
 0x713   : > { %v16377_v50 = vpack.c.b16 %v10173_v22, %v10172_v12  ;;  %v9452_v28 = vunpack.c.l.b16 %v9389_v6  ;;  %v9600_v52 = vsel %vm13529_vm13, %v12290_v7, %v9599_v55  ;;  %v9965_v62 = vshll.u32 %v16381_v21, 16 }
 0x714   : > { %v9604_v10 = vsel %vm13529_vm13, %v12291_v2, %v9603_v39  ;;  %v9410_v27 = vrot.slane %v9408_v37, 5  ;;  %v10134_v38 = vrot.slane %v16311_v47, 5  ;;  %v9963_v2 = vrot.slane %v9962_v18, 4 }
 0x715   : > { %9703 = vmatmul.bf16.gmra.mxu0 %v9631_v3  ;;  %v10009_v3 = vpack.c.b16 %v10004_v32, %v10003_v31  ;;  %v9407_v32 = vrot.slane %v9405_v59, 4  ;;  %v9458_v20 = vpack.c.b16 %v9453_v8, %v9452_v28  ;;  %v9628_v33 = vunpack.c.l.b16 %v9604_v10  ;;  %v12338_v59 = vld [vmem:[#allocation3 + $0x40] sm:$0xf] }
 0x716   : > { %v9981_v23 = vrot.slane %v9979_v40, 5  ;;  %v9425_v49 = vor.u32 %v9424_v56, %v9421_v60  ;;  %v9967_v34 = vrot.slane %v9965_v62, 5  ;;  %v9428_v30 = vshll.u32 %v16361_v54, 16  ;;  %v12809_v54 = vld [vmem:[#allocation3 + $0x44] sm:$0xf0] }
 0x717   : > { %v9411_v48 = vor.u32 %v9410_v27, %v9407_v32  ;;  %v12407_v31 = vrot.slane %v10103_v36, 9  ;;  %v10138_v7 = vrot.slane %v16313_v46, 5  ;;  %v9414_v39 = vshll.u32 %v16359_v1, 16  ;;  %v10104_v32 = vld [vmem:[#allocation3 + $0x30] sm:$0xe] }
 0x718   : > { %v9968_v47 = vsel %vm13367_vm6, %v9963_v2, %v9967_v34  ;;  %v9426_v6 = vrot.slane %v9425_v49, 4  ;;  %v9430_v8 = vrot.slane %v9428_v30, 5  ;;  %v16407_v49 = vpop.f32.mrf.mxu2  ;;  %v10107_v30 = vld [vmem:[#allocation3 + $0x48] sm:$0xe] }
 0x719   : > { %v10139_v37 = vsel %vm13529_vm13, %v12407_v31, %v10138_v7  ;;  %v10005_v46 = vunpack.c.l.b16 %v9968_v47  ;;  %v9416_v60 = vrot.slane %v9414_v39, 5  ;;  %v8978_v36 = vpop.f32.mrf.mxu0  ;;  %v10154_v31 = vrot.slane %v16375_v9, 5 }
 0x71a   : > { %v10175_v40 = vunpack.c.l.b16 %v10139_v37  ;;  %v9431_v56 = vsel %vm13367_vm6, %v9426_v6, %v9430_v8  ;;  %v16424_v8 = vpop.f32.mrf.mxu1 }
 0x71b   : > { %9836 = vmatmul.bf16.gmra.mxu2 %v12335_v5  ;;  %v9976_v5 = vor.u32 %v9975_v42, %v9972_v45  ;;  %v9627_v45 = vunpack.c.l.b16 %v9600_v52  ;;  %v12406_v42 = vrot.slane %v10102_v26, 9  ;;  %v9455_v62 = vunpack.c.l.b16 %v9431_v56 }
 0x71d   : > { %v9977_v17 = vrot.slane %v9976_v5, 4  ;;  %v9632_v12 = vpack.c.b16 %v9628_v33, %v9627_v45  ;;  %v10135_v22 = vsel %vm13529_vm13, %v12406_v42, %v10134_v38  ;;  %v12339_v5 = vor.u32 %v12809_v54, %v12338_v59  ;;  %v10105_v38 = vld [vmem:[#allocation3 + $0x38] sm:$0xe] }
 0x71e   : > { %10081 = vmatmul.bf16.gmra.mxu1 %v10009_v3  ;;  %v9412_v3 = vrot.slane %v9411_v48, 4  ;;  %v10174_v10 = vunpack.c.l.b16 %v10135_v22  ;;  %v10142_v33 = vrot.slane %v16340_v0, 5  ;;  %v10106_v48 = vld [vmem:[#allocation3 + $0x40] sm:$0xe]  ;;  %v10150_v0 = vrot.slane %v16381_v21, 5 }
 0x71f   : > { %v9982_v55 = vsel %vm13367_vm6, %v9977_v17, %v9981_v23  ;;  %v12409_v17 = vrot.slane %v10105_v38, 9  ;;  %v10146_v23 = vrot.slane %v16335_v51, 5  ;;  %v12411_v22 = vrot.slane %v10107_v30, 9  ;;  %v12836_v30 = vld [vmem:[%s16813_s13 + $0x94] sm:$0xf] }
 0x720   : > { %v10006_v18 = vunpack.c.l.b16 %v9982_v55  ;;  %v10181_v28 = vpack.c.b16 %v10175_v40, %v10174_v10  ;;  %v9417_v1 = vsel %vm13367_vm6, %v9412_v3, %v9416_v60  ;;  %vm10473_vm6 = vcmask 254976  }
 0x721   : > { %v9454_v27 = vunpack.c.l.b16 %v9417_v1  ;;  %v10147_v11 = vsel %vm13529_vm13, %v12409_v17, %v10146_v23  ;;  %v10155_v47 = vsel %vm13529_vm13, %v12411_v22, %v10154_v31  ;;  %v16420_v21 = vpop.f32.mrf.mxu0  ;;  %v12454_v31 = vld [vmem:[%s16813_s13 + $0x90] sm:$0xf] }
 0x722   : > { %9530 = vmatmul.bf16.gmra.mxu3 %v9458_v20  ;;  %v10010_v52 = vpack.c.b16 %v10006_v18, %v10005_v46  ;;  %v12408_v20 = vrot.slane %v10104_v32, 9  ;;  %v10177_v42 = vunpack.c.l.b16 %v10147_v11  ;;  %v10179_v6 = vunpack.c.l.b16 %v10155_v47 }
 0x723   : > { %v9459_v26 = vpack.c.b16 %v9455_v62, %v9454_v27 }
 0x724   : > { %v10143_v2 = vsel %vm13529_vm13, %v12408_v20, %v10142_v33 }
 0x725   : > { %9708 = vmatmul.bf16.gmra.mxu0 %v9632_v12  ;;  %v10176_v45 = vunpack.c.l.b16 %v10143_v2  ;;  %v12410_v12 = vrot.slane %v10106_v48, 9 }
 0x727   : > { %v10182_v34 = vpack.c.b16 %v10177_v42, %v10176_v45  ;;  %v10151_v51 = vsel %vm13529_vm13, %v12410_v12, %v10150_v0 }
 0x728   : > { %v10178_v39 = vunpack.c.l.b16 %v10151_v51 }
 0x72a   : > { %v10183_v54 = vpack.c.b16 %v10179_v6, %v10178_v39 }
 0x72b   : > { %9841 = vmatmul.bf16.gmra.mxu2 %v12339_v5 }
 0x72e   : > { %10086 = vmatmul.bf16.gmra.mxu1 %v10010_v52 }
 0x732   : > { %9535 = vmatmul.bf16.gmra.mxu3 %v9459_v26 }
 0x73a   : > { %v8983_v10 = vpop.f32.mrf.mxu0 }
 0x73b   : > { %v9276_v5 = vpop.f32.mrf.mxu1 }
 0x73c   : > { %v9143_v7 = vpop.f32.mrf.mxu2 }
 0x73e   : > { %v8877_v55 = vpop.f32.mrf.mxu3 }
 0x73f   : > { %v8979_v59 = vadd.f32 %v8978_v36, %v8877_v55  ;;  %v12456_v36 = vld [vmem:[%s16813_s13 + $0x98] sm:$0xf0] }
 0x740   : > { %v12459_v12 = vor.u32 %v12836_v30, %v12456_v36 }
 0x741   : > { %v9163_v37 = vadd.f32 %v9143_v7, %v8979_v59  ;;  %v12837_v7 = vld [vmem:[%s16813_s13 + $0x94] sm:$0xf0] }
 0x742   : > { %10244 = vmatmul.bf16.vlgmr.msrb.gmra.mxu3 %v16377_v50  ;;  %v16426_v60 = vpop.f32.mrf.mxu0  ;;  %10368 = vmatpush.bf16.msrb.mxu2 %v12459_v12  ;;  %v12455_v51 = vor.u32 %v12837_v7, %v12454_v31 }
 0x743   : > { %v16432_v1 = vpop.f32.mrf.mxu1  ;;  %v9296_v32 = vadd.f32 %v9276_v5, %v9163_v37 }
 0x744   : > { %v16418_v3 = vpop.f32.mrf.mxu2  ;;  %10339 = vmatpush.bf16.msrb.mxu0 %v12455_v51 }
 0x746   : > { %v16422_v9 = vpop.f32.mrf.mxu3 }
 0x747   : > { %v8981_v30 = vadd.f32 %v16420_v21, %v16422_v9 }
 0x74b   : > { %v9281_v33 = vpop.f32.mrf.mxu1 }
 0x74c   : > { %v9148_v40 = vpop.f32.mrf.mxu2 }
 0x74e   : > { %v8882_v13 = vpop.f32.mrf.mxu3 }
 0x74f   : > { %v8984_v46 = vadd.f32 %v8983_v10, %v8882_v13  ;;  %v12834_v13 = vld [vmem:[%s16813_s13 + $0x84] sm:$0xf] }
 0x751   : > { %v9165_v18 = vadd.f32 %v9148_v40, %v8984_v46  ;;  %v8988_v52 = vpop.f32.mrf.mxu0  ;;  %v12448_v46 = vld [vmem:[%s16813_s13 + $0x88] sm:$0xf0] }
 0x752   : > { %10249 = vmatmul.bf16.gmra.mxu3 %v10181_v28 }
 0x753   : > { %v9298_v17 = vadd.f32 %v9281_v33, %v9165_v18  ;;  %v16440_v23 = vpop.f32.mrf.mxu1  ;;  %v12451_v18 = vor.u32 %v12834_v13, %v12448_v46 }
 0x754   : > { %v16428_v56 = vpop.f32.mrf.mxu2 }
 0x755   : > { %10369 = vmatpush.bf16.msrb.mxu2 %v12451_v18 }
 0x756   : > { %v16430_v50 = vpop.f32.mrf.mxu3 }
 0x757   : > { %v8986_v21 = vadd.f32 %v16426_v60, %v16430_v50 }
 0x759   : > { %v16434_v38 = vpop.f32.mrf.mxu0 }
 0x75b   : > { %v9286_v22 = vpop.f32.mrf.mxu1 }
 0x75d   : > { %v9153_v62 = vpop.f32.mrf.mxu2 }
 0x762   : > { %10254 = vmatmul.bf16.gmra.mxu3 %v10182_v34  ;;  %v8993_v11 = vpop.f32.mrf.mxu0 }
 0x763   : > { %v16456_v6 = vpop.f32.mrf.mxu1 }
 0x764   : > { %v8887_v27 = vpop.f32.mrf.mxu3 }
 0x765   : > { %v8989_v26 = vadd.f32 %v8988_v52, %v8887_v27  ;;  %v16438_v2 = vpop.f32.mrf.mxu2  ;;  %v12446_v52 = vld [vmem:[%s16813_s13 + $0x80] sm:$0xf] }
 0x767   : > { %v9167_v20 = vadd.f32 %v9153_v62, %v8989_v26  ;;  %v12835_v62 = vld [vmem:[%s16813_s13 + $0x84] sm:$0xf0] }
 0x769   : > { %v9300_v47 = vadd.f32 %v9286_v22, %v9167_v20  ;;  %v9164_v22 = vadd.f32 %v16418_v3, %v8981_v30  ;;  %v9166_v3 = vadd.f32 %v16428_v56, %v8986_v21 }
 0x76a   : > { %v16470_v27 = vpop.f32.mrf.mxu0 }
 0x76b   : > { %v9297_v51 = vadd.f32 %v16432_v1, %v9164_v22  ;;  %v16492_v1 = vld [vmem:[%s16812_s12] ss:$0 sm:$0xff] }
 0x76c   : > { %v16436_v28 = vpop.f32.mrf.mxu3 }
 0x76e   : > { %v9158_v34 = vpop.f32.mrf.mxu2 }
 0x772   : > { %10259 = vmatmul.bf16.gmra.mxu3 %v10183_v54  ;;  %v9291_v54 = vpop.f32.mrf.mxu1 }
 0x775   : > { %v8892_v45 = vpop.f32.mrf.mxu3 }
 0x776   : > { %v8994_v42 = vadd.f32 %v8993_v11, %v8892_v45  ;;  %v16474_v33 = vpop.f32.mrf.mxu2  ;;  %v9694_v11 = vpop.f32.mrf.mxu0 }
 0x778   : > { %v9169_v48 = vadd.f32 %v9158_v34, %v8994_v42 }
 0x77a   : > { %v9302_v37 = vadd.f32 %v9291_v54, %v9169_v48 }
 0x77d   : > { %v16448_v0 = vpop.f32.mrf.mxu3 }
 0x77e   : > { %v9827_v42 = vpop.f32.mrf.mxu2  ;;  %v9696_v12 = vpop.f32.mrf.mxu0 }
 0x785   : > { %v9521_v55 = vpop.f32.mrf.mxu3 }
 0x786   : > { %v9541_v39 = vadd.f32 %v9521_v55, %v9296_v32  ;;  %v12447_v32 = vor.u32 %v12835_v62, %v12446_v52  ;;  %v9829_v31 = vpop.f32.mrf.mxu2 }
 0x788   : > { %10340 = vmatpush.bf16.msrb.mxu0 %v12447_v32  ;;  %v9714_v55 = vadd.f32 %v9694_v11, %v9541_v39  ;;  %v9299_v11 = vadd.f32 %v16440_v23, %v9166_v3 }
 0x78a   : > { %v9847_v46 = vadd.f32 %v9827_v42, %v9714_v55 }
 0x78d   : > { %v9523_v59 = vpop.f32.mrf.mxu3 }
 0x78e   : > { %v9542_v54 = vadd.f32 %v9523_v59, %v9297_v51  ;;  %v9832_v18 = vpop.f32.mrf.mxu2 }
 0x790   : > { %v9715_v13 = vadd.f32 %v9696_v12, %v9542_v54 }
 0x795   : > { %v9526_v10 = vpop.f32.mrf.mxu3 }
 0x796   : > { %v9543_v40 = vadd.f32 %v9526_v10, %v9298_v17  ;;  %v16476_v17 = vpop.f32.mrf.mxu1  ;;  %v9699_v10 = vpop.f32.mrf.mxu0 }
 0x797   : > { %v9834_v60 = vpop.f32.mrf.mxu2 }
 0x798   : > { %v9716_v50 = vadd.f32 %v9699_v10, %v9543_v40 }
 0x79a   : > { %v9849_v55 = vadd.f32 %v9832_v18, %v9716_v50 }
 0x79d   : > { %v9528_v5 = vpop.f32.mrf.mxu3 }
 0x79e   : > { %v10072_v34 = vpop.f32.mrf.mxu1  ;;  %v9701_v39 = vpop.f32.mrf.mxu0 }
 0x79f   : > { %v10092_v9 = vadd.f32 %v10072_v34, %v9847_v46  ;;  %v9544_v34 = vadd.f32 %v9528_v5, %v9299_v11  ;;  %v9837_v5 = vpop.f32.mrf.mxu2 }
 0x7a5   : > { %v9531_v26 = vpop.f32.mrf.mxu3 }
 0x7a6   : > { %v16472_v20 = vadd.f32 %v9531_v26, %v9300_v47  ;;  %v10074_v47 = vpop.f32.mrf.mxu1  ;;  %v9704_v54 = vpop.f32.mrf.mxu0 }
 0x7ad   : > { %v9533_v45 = vpop.f32.mrf.mxu3 }
 0x7ae   : > { %v10077_v62 = vpop.f32.mrf.mxu1 }
 0x7af   : > { %v10094_v23 = vadd.f32 %v10077_v62, %v9849_v55 }
 0x7b5   : > { %v9536_v48 = vpop.f32.mrf.mxu3 }
 0x7b6   : > { %v16480_v36 = vadd.f32 %v9536_v48, %v9302_v37  ;;  %v9848_v37 = vadd.f32 %v9829_v31, %v9715_v13  ;;  %v10079_v22 = vpop.f32.mrf.mxu1  ;;  %v9717_v31 = vadd.f32 %v9701_v39, %v9544_v34 }
 0x7b8   : > { %v10093_v59 = vadd.f32 %v10074_v47, %v9848_v37  ;;  %v8991_v47 = vadd.f32 %v16434_v38, %v16436_v28  ;;  %v9850_v40 = vadd.f32 %v9834_v60, %v9717_v31  ;;  %v9718_v38 = vadd.f32 %v9704_v54, %v16472_v20 }
 0x7b9   : > { %v8996_v60 = vadd.f32 %v16470_v27, %v16448_v0 }
 0x7ba   : > { %v9168_v10 = vadd.f32 %v16438_v2, %v8991_v47 }
 0x7bb   : > { %v9170_v34 = vadd.f32 %v16474_v33, %v8996_v60 }
 0x7bc   : > { %v9301_v18 = vadd.f32 %v16456_v6, %v9168_v10 }
 0x7bd   : > { %v16483_v7 = vpop.f32.mrf.mxu3  ;;  %v9303_v31 = vadd.f32 %v16476_v17, %v9170_v34  ;;  %v16942_v34 = vld [vmem:[#allocation16_spill] sm:$0xff] }
 0x7be   : > { %v10082_v21 = vpop.f32.mrf.mxu1  ;;  %v9546_v28 = vadd.f32 %v9533_v45, %v9301_v18 }
 0x7bf   : > { %v9548_v27 = vadd.f32 %v16483_v7, %v9303_v31  ;;  %v16945_v31 = vld [vmem:[#allocation13_spill] sm:$0xff] }
 0x7c5   : > { %v10245_v52 = vpop.f32.mrf.mxu3 }
 0x7c6   : > { %v10265_v32 = vadd.f32 %v10245_v52, %v10092_v9  ;;  %v10095_v52 = vadd.f32 %v10079_v22, %v9850_v40  ;;  %v10084_v6 = vpop.f32.mrf.mxu1 }
 0x7c8   : > { %v10277_v42 = vadd.f32 %v16492_v1, %v10265_v32  ;;  %v9706_v32 = vpop.f32.mrf.mxu0 }
 0x7c9   : > { %v9719_v11 = vadd.f32 %v9706_v32, %v9546_v28 }
 0x7ca   : > { %v10285_v56 = vmax.f32 %v10277_v42, 0.0  ;;  %v9851_v42 = vadd.f32 %v9837_v5, %v9718_v38 }
 0x7cc   : > { %v10096_v50 = vadd.f32 %v10082_v21, %v9851_v42 }
 0x7cd   : > { %v10247_v26 = vpop.f32.mrf.mxu3 }
 0x7ce   : > { %v10266_v48 = vadd.f32 %v10247_v26, %v10093_v59  ;;  %v9839_v26 = vpop.f32.mrf.mxu2 }
 0x7cf   : > { %v9852_v20 = vadd.f32 %v9839_v26, %v9719_v11 }
 0x7d0   : > { %v10278_v30 = vadd.f32 %v16492_v1, %v10266_v48  ;;  %v9709_v45 = vpop.f32.mrf.mxu0 }
 0x7d1   : > { %v9720_v0 = vadd.f32 %v9709_v45, %v16480_v36 }
 0x7d2   : > { %v10286_v12 = vmax.f32 %v10278_v30, 0.0 }
 0x7d4   : > { %v10293_v51 = vpack.c.bf16 %v10286_v12, %v10285_v56  ;;  %v10097_v56 = vadd.f32 %v10084_v6, %v9852_v20  ;;  %v16941_v20 = vld [vmem:[#allocation15_spill] sm:$0xff] }
 0x7d5   : > { %v10250_v13 = vpop.f32.mrf.mxu3 }
 0x7d6   : > { %12460 = vmatmul.msk.bf16.vlgmr.msrb.gmra.mxu0 %vm1181_vm1, %v10293_v51  ;;  %12464 = vmatmul.msk.bf16.vlgmr.msrb.gmra.mxu2 %vm1181_vm1, %v10293_v51  ;;  %v10267_v46 = vadd.f32 %v10250_v13, %v10094_v23  ;;  %v9842_v12 = vpop.f32.mrf.mxu2  ;;  %v10087_v13 = vpop.f32.mrf.mxu1 }
 0x7d7   : > { %v9853_v10 = vadd.f32 %v9842_v12, %v9720_v0 }
 0x7d8   : > { %v10279_v37 = vadd.f32 %v16492_v1, %v10267_v46  ;;  %v9711_v40 = vpop.f32.mrf.mxu0 }
 0x7d9   : > { %v9721_v33 = vadd.f32 %v9711_v40, %v9548_v27 }
 0x7da   : > { %v10287_v62 = vmax.f32 %v10279_v37, 0.0 }
 0x7dd   : > { %v10252_v9 = vpop.f32.mrf.mxu3 }
 0x7de   : > { %v10268_v3 = vadd.f32 %v10252_v9, %v10095_v52  ;;  %v9844_v17 = vpop.f32.mrf.mxu2  ;;  %v10098_v52 = vadd.f32 %v10087_v13, %v9853_v10  ;;  %v10089_v9 = vpop.f32.mrf.mxu1 }
 0x7df   : > { %v9854_v21 = vadd.f32 %v9844_v17, %v9721_v33  ;;  %v16948_v33 = vld [vmem:[#allocation19_spill] sm:$0xff] }
 0x7e0   : > { %v10280_v39 = vadd.f32 %v16492_v1, %v10268_v3 }
 0x7e1   : > { %v10099_v7 = vadd.f32 %v10089_v9, %v9854_v21  ;;  %v16951_v21 = vld [vmem:[#allocation24_spill] sm:$0xff] }
 0x7e2   : > { %v10288_v59 = vmax.f32 %v10280_v39, 0.0 }
 0x7e4   : > { %v10294_v2 = vpack.c.bf16 %v10288_v59, %v10287_v62 }
 0x7e5   : > { %v10255_v48 = vpop.f32.mrf.mxu3 }
 0x7e6   : > { %12461 = vmatmul.msk.bf16.gmra.mxu0 %vm1181_vm1, %v10294_v2  ;;  %12465 = vmatmul.msk.bf16.gmra.mxu2 %vm1181_vm1, %v10294_v2  ;;  %v10269_v30 = vadd.f32 %v10255_v48, %v10096_v50  ;;  %v16940_v50 = vld [vmem:[#allocation18_spill] sm:$0xff] }
 0x7e7   : > { %v4984_v45 = vadd.f32 %v16941_v20, %v16940_v50 }
 0x7e8   : > { %v10281_v51 = vadd.f32 %v16492_v1, %v10269_v30  ;;  %v16943_v30 = vld [vmem:[#allocation20_spill] sm:$0xff] }
 0x7ea   : > { %v10289_v47 = vmax.f32 %v10281_v51, 0.0 }
 0x7ed   : > { %v10257_v22 = vpop.f32.mrf.mxu3 }
 0x7ee   : > { %v10270_v55 = vadd.f32 %v10257_v22, %v10097_v56  ;;  %v5013_v56 = vadd.f32 %v16943_v30, %v16942_v34  ;;  %v16944_v22 = vld [vmem:[#allocation17_spill] sm:$0xff]  ;;  %v16957_v34 = vld [vmem:[#allocation22_spill] sm:$0xff] }
 0x7ef   : > { %v4989_v51 = vadd.f32 %v16945_v31, %v16944_v22 }
 0x7f0   : > { %v10282_v54 = vadd.f32 %v16492_v1, %v10270_v55  ;;  %v6752_v0 = vadd.f32 %v15505_v24, %v5013_v56 }
 0x7f2   : > { %v10290_v23 = vmax.f32 %v10282_v54, 0.0  ;;  %v6755_v54 = vadd.f32 %v15555_v4, %v4989_v51 }
 0x7f4   : > { %v10295_v5 = vpack.c.bf16 %v10290_v23, %v10289_v47  ;;  %v16946_v47 = vld [vmem:[#allocation14_spill] sm:$0xff]  ;;  %v16947_v23 = vld [vmem:[#allocation21_spill] sm:$0xff] }
 0x7f5   : > { %v10260_v46 = vpop.f32.mrf.mxu3  ;;  %v5018_v40 = vadd.f32 %v16947_v23, %v16946_v47  ;;  %v16959_v23 = vld [vmem:[#allocation34_spill] sm:$0xff] }
 0x7f6   : > { %12462 = vmatmul.msk.bf16.gmra.mxu0 %vm1181_vm1, %v10295_v5  ;;  %12466 = vmatmul.msk.bf16.gmra.mxu2 %vm1181_vm1, %v10295_v5  ;;  %v10271_v36 = vadd.f32 %v10260_v46, %v10098_v52  ;;  %v16949_v5 = vld [vmem:[#allocation27_spill] sm:$0xff]  ;;  %v8634_v46 = vadd.f32 %v16214_v41, %v6755_v54 }
 0x7f7   : > { %v4994_v10 = vadd.f32 %v16949_v5, %v16948_v33 }
 0x7f8   : > { %v10283_v37 = vadd.f32 %v16492_v1, %v10271_v36 }
 0x7f9   : > { %v6759_v36 = vadd.f32 %v16951_v21, %v4994_v10 }
 0x7fa   : > { %v10291_v38 = vmax.f32 %v10283_v37, 0.0 }
 0x7fd   : > { %v10262_v18 = vpop.f32.mrf.mxu3 }
 0x7fe   : > { %v10272_v3 = vadd.f32 %v10262_v18, %v10099_v7  ;;  %v16952_v7 = vld [vmem:[#allocation26_spill] sm:$0xff]  ;;  %v16953_v18 = vld [vmem:[#allocation28_spill] sm:$0xff] }
 0x7ff   : > { %v5023_v37 = vadd.f32 %v16953_v18, %v16952_v7 }
 0x800   : > { %v10284_v32 = vadd.f32 %v16492_v1, %v10272_v3  ;;  %v6751_v1 = vadd.f32 %v15487_v43, %v4984_v45  ;;  %v8631_v43 = vadd.f32 %v16130_v15, %v6752_v0 }
 0x802   : > { %v10292_v28 = vmax.f32 %v10284_v32, 0.0  ;;  %v8630_v55 = vadd.f32 %v16155_v25, %v6751_v1  ;;  %v16950_v25 = vld [vmem:[#allocation35_spill] sm:$0xff]  ;;  %v8638_v32 = vadd.f32 %v16264_v57, %v6759_v36 }
 0x803   : > { %v6756_v4 = vadd.f32 %v16950_v25, %v5018_v40 }
 0x804   : > { %v10296_v39 = vpack.c.bf16 %v10292_v28, %v10291_v38 }
 0x805   : > { %v8635_v41 = vadd.f32 %v16193_v58, %v6756_v4  ;;  %v16960_v4 = vld [vmem:[#allocation30_spill] sm:$0xff] }
 0x806   : > { %12463 = vmatmul.msk.bf16.gmra.mxu0 %vm1181_vm1, %v10296_v39  ;;  %12467 = vmatmul.msk.bf16.gmra.mxu2 %vm1181_vm1, %v10296_v39 }
 0x853   : > { %v10342_v62 = vpop.f32.mrf.mxu0 }
 0x854   : > { %v16541_v17 = vadd.f32 %v10342_v62, %v16120_v35  ;;  %v16954_v62 = vld [vmem:[#allocation25_spill] sm:$0xff] }
 0x856   : > { %v10407_v38 = vmax.f32 %v16541_v17, 0.0  ;;  %v10587_v17 = vld [vmem:[%s13146_s30 + $0x20] sm:$0xff] }
 0x859   : > { %v10371_v59 = vpop.f32.mrf.mxu2 }
 0x85a   : > { %v16557_v35 = vadd.f32 %v10371_v59, %v16105_v29 }
 0x85b   : > { %v10344_v26 = vpop.f32.mrf.mxu0 }
 0x85c   : > { %v16532_v13 = vadd.f32 %v10344_v26, %v8630_v55  ;;  %v6760_v26 = vadd.f32 %v16954_v62, %v5023_v37 }
 0x85e   : > { %v10409_v9 = vmax.f32 %v16532_v13, 0.0 }
 0x860   : > { %v10423_v29 = vadd.f32 %v10409_v9, %v10407_v38 }
 0x861   : > { %v10373_v11 = vpop.f32.mrf.mxu2 }
 0x862   : > { %v16547_v52 = vadd.f32 %v10373_v11, %v8631_v43 }
 0x863   : > { %v10347_v2 = vpop.f32.mrf.mxu0 }
 0x864   : > { %v16544_v24 = vadd.f32 %v10347_v2, %v16186_v44  ;;  %v10410_v58 = vmax.f32 %v16547_v52, 0.0  ;;  %v16955_v2 = vld [vmem:[#allocation23_spill] sm:$0xff] }
 0x866   : > { %v10411_v28 = vmax.f32 %v16544_v24, 0.0 }
 0x868   : > { %v10424_v20 = vadd.f32 %v10423_v29, %v10411_v28 }
 0x869   : > { %v10376_v42 = vpop.f32.mrf.mxu2 }
 0x86a   : > { %v16560_v44 = vadd.f32 %v10376_v42, %v16168_v53  ;;  %v16956_v42 = vld [vmem:[#allocation33_spill] sm:$0xff] }
 0x86b   : > { %v10349_v48 = vpop.f32.mrf.mxu0 }
 0x86c   : > { %v16551_v15 = vadd.f32 %v10349_v48, %v8634_v46  ;;  %v8639_v48 = vadd.f32 %v16245_v16, %v6760_v26  ;;  %v10412_v50 = vmax.f32 %v16560_v44, 0.0  ;;  %v10437_v16 = vsel %vm1181_vm1, %v10410_v58, 0.0 }
 0x86e   : > { %v10413_v53 = vmax.f32 %v16551_v15, 0.0  ;;  %v10591_v15 = vld [vmem:[%s13146_s30 + $0x40] sm:$0xff] }
 0x870   : > { %v10425_v56 = vadd.f32 %v10424_v20, %v10413_v53 }
 0x871   : > { %v10378_v60 = vpop.f32.mrf.mxu2 }
 0x872   : > { %v16575_v57 = vadd.f32 %v10378_v60, %v8635_v41 }
 0x873   : > { %v10352_v6 = vpop.f32.mrf.mxu0 }
 0x874   : > { %v16566_v39 = vadd.f32 %v10352_v6, %v16237_v63  ;;  %v4999_v63 = vadd.f32 %v16956_v42, %v16955_v2  ;;  %v10408_v6 = vmax.f32 %v16557_v35, 0.0  ;;  %v10414_v22 = vmax.f32 %v16575_v57, 0.0 }
 0x876   : > { %v10415_v45 = vmax.f32 %v16566_v39, 0.0  ;;  %v6763_v30 = vadd.f32 %v16957_v34, %v4999_v63  ;;  %v10441_v5 = vsel %vm1181_vm1, %v10414_v22, 0.0  ;;  %v10592_v39 = vld [vmem:[%s13146_s30 + $0x48] sm:$0xff] }
 0x878   : > { %v10426_v0 = vadd.f32 %v10425_v56, %v10415_v45 }
 0x879   : > { %v10381_v12 = vpop.f32.mrf.mxu2 }
 0x87a   : > { %v16588_v1 = vadd.f32 %v10381_v12, %v16229_v14  ;;  %v8642_v14 = vadd.f32 %v16407_v49, %v6763_v30  ;;  %v10439_v12 = vsel %vm1181_vm1, %v10412_v50, 0.0  ;;  %v16958_v49 = vld [vmem:[#allocation32_spill] sm:$0xff] }
 0x87b   : > { %v10354_v27 = vpop.f32.mrf.mxu0  ;;  %v5028_v40 = vadd.f32 %v16959_v23, %v16958_v49 }
 0x87c   : > { %v16577_v59 = vadd.f32 %v10354_v27, %v8638_v32  ;;  %v10416_v27 = vmax.f32 %v16588_v1, 0.0 }
 0x87d   : > { %v6764_v21 = vadd.f32 %v16960_v4, %v5028_v40 }
 0x87e   : > { %v10417_v31 = vmax.f32 %v16577_v59, 0.0  ;;  %v10443_v36 = vsel %vm1181_vm1, %v10416_v27, 0.0 }
 0x880   : > { %v10427_v10 = vadd.f32 %v10426_v0, %v10417_v31 }
 0x881   : > { %v10383_v3 = vpop.f32.mrf.mxu2 }
 0x882   : > { %v16601_v51 = vadd.f32 %v10383_v3, %v8639_v48  ;;  %v8643_v3 = vadd.f32 %v16424_v8, %v6764_v21 }
 0x883   : > { %v10357_v11 = vpop.f32.mrf.mxu0 }
 0x884   : > { %v16591_v60 = vadd.f32 %v10357_v11, %v16285_v19  ;;  %v10436_v19 = vsel %vm1181_vm1, %v10408_v6, 0.0  ;;  %v10418_v46 = vmax.f32 %v16601_v51, 0.0 }
 0x885   : > { %v10438_v43 = vadd.f32 %v10437_v16, %v10436_v19 }
 0x886   : > { %v10419_v54 = vmax.f32 %v16591_v60, 0.0  ;;  %v10445_v32 = vsel %vm1181_vm1, %v10418_v46, 0.0 }
 0x888   : > { %v10428_v7 = vadd.f32 %v10427_v10, %v10419_v54  ;;  %v10460_v10 = vld [vmem:[%s16814_s14 + $0x8] sm:$0xff] }
 0x889   : > { %v10386_v55 = vpop.f32.mrf.mxu2 }
 0x88a   : > { %v16615_v47 = vadd.f32 %v10386_v55, %v16273_v61  ;;  %v10440_v61 = vadd.f32 %v10439_v12, %v10438_v43  ;;  %v10461_v43 = vld [vmem:[%s16814_s14 + $0x10] sm:$0x3] }
 0x88b   : > { %v10359_v33 = vpop.f32.mrf.mxu0 }
 0x88c   : > { %v16625_v25 = vadd.f32 %v10359_v33, %v8642_v14  ;;  %v10420_v18 = vmax.f32 %v16615_v47, 0.0  ;;  %v10442_v41 = vadd.f32 %v10441_v5, %v10440_v61  ;;  %v10462_v5 = vld [vmem:[%s16814_s14 + $0x18] sm:$0x3]  ;;  %v10459_v61 = vld [vmem:[%s16814_s14] sm:$0xff] }
 0x88e   : > { %v10421_v37 = vmax.f32 %v16625_v25, 0.0  ;;  %v10444_v26 = vadd.f32 %v10443_v36, %v10442_v41  ;;  %v10447_v29 = vsel %vm1181_vm1, %v10420_v18, 0.0  ;;  %v10598_v25 = vld [vmem:[%s13146_s30 + $0x78] sm:$0xff] }
 0x890   : > { %v10429_v62 = vadd.f32 %v10428_v7, %v10421_v37  ;;  %v10446_v63 = vadd.f32 %v10445_v32, %v10444_v26 }
 0x891   : > { %v10388_v11 = vpop.f32.mrf.mxu2 }
 0x892   : > { %v10430_v2 = vrot.slane %v10429_v62, 4  ;;  %v16644_v42 = vadd.f32 %v10388_v11, %v8643_v3  ;;  %v10448_v20 = vadd.f32 %v10447_v29, %v10446_v63  ;;  %v10478_v29 = vld [vmem:[%s16815_s15] sm:$0xff] }
 0x894   : > { %v10431_v48 = vadd.f32 %v10430_v2, %v10429_v62  ;;  %v10422_v8 = vmax.f32 %v16644_v42, 0.0 }
 0x896   : > { %v10432_v34 = vrot.slane %v10431_v48, 2  ;;  %v10449_v30 = vsel %vm1181_vm1, %v10422_v8, 0.0 }
 0x897   : > { %v10450_v16 = vadd.f32 %v10449_v30, %v10448_v20  ;;  %v10479_v20 = vld [vmem:[%s16815_s15 + $0x8] sm:$0x3] }
 0x898   : > { %v10433_v56 = vadd.f32 %v10432_v34, %v10431_v48 }
 0x899   : > { %v10451_v14 = vrot.slane %v10450_v16, 4 }
 0x89a   : > { %v10434_v19 = vrot.slane %v10433_v56, 1 }
 0x89b   : > { %v10452_v12 = vadd.f32 %v10451_v14, %v10450_v16  ;;  %v10485_v14 = vld [vmem:[%s16816_s16 + $0x8] sm:$0xff] }
 0x89c   : > { %v10435_v0 = vadd.f32 %v10434_v19, %v10433_v56  ;;  %v10486_v19 = vld [vmem:[%s16816_s16 + $0x10] sm:$0x3] }
 0x89d   : > { %v10453_v55 = vrot.slane %v10452_v12, 2 }
 0x89e   : > { %v10457_v40 = vmul.f32 0.015625, %v10435_v0 }
 0x89f   : > { %v10454_v49 = vadd.f32 %v10453_v55, %v10452_v12  ;;  %v10487_v12 = vld [vmem:[%s16816_s16 + $0x18] sm:$0x3]  ;;  %v10484_v55 = vld [vmem:[%s16816_s16] sm:$0xff] }
 0x8a0   : > { %v10465_v21 = vmul.f32 %v10461_v43, %v10457_v40  ;;  %v10463_v41 = vmul.f32 %v10459_v61, %v10457_v40 }
 0x8a1   : > { %v10455_v23 = vrot.slane %v10454_v49, 1 }
 0x8a2   : > { %v10472_v3 = vsel %vm10471_vm3, %v10465_v21, 0.0 }
 0x8a3   : > { %v10456_v33 = vadd.f32 %v10455_v23, %v10454_v49 }
 0x8a5   : > { %v10458_v4 = vmul.f32 0.015625, %v10456_v33 }
 0x8a7   : > { %v10466_v36 = vmul.f32 %v10462_v5, %v10458_v4  ;;  %v10464_v7 = vmul.f32 %v10460_v10, %v10458_v4 }
 0x8a9   : > { %v10474_v32 = vsel %vm10473_vm6, %v10466_v36, 0.0  ;;  %v10467_v62 = vsel %vm1181_vm1, %v10464_v7, 0.0 }
 0x8aa   : > { %v10475_v26 = vadd.f32 %v10474_v32, %v10472_v3  ;;  %v10468_v11 = vadd.f32 %v10467_v62, %v10463_v41  ;;  %v10519_v62 = vld [vmem:[%s16817_s17] sm:$0x3] }
 0x8ac   : > { %10476 = vadd.xlane.f32.xlu1 %v10475_v26  ;;  %10469 = vadd.xlane.f32.xlu0 %v10468_v11 }
 0x91f   : > { %v10470_v2 = vpop.xlane.xlu0 %10469  ;;  %v10477_v34 = vpop.xlane.xlu1 %10476 }
 0x920   : > { %v10480_v63 = vadd.f32 %v10478_v29, %v10470_v2  ;;  %v10481_v30 = vadd.f32 %v10479_v20, %v10477_v34  ;;  %v10521_v29 = vperm.slane %v10519_v62, 0  ;;  %v10522_v2 = vperm.slane %v10519_v62, 1 }
 0x922   : > { %v10482_v48 = vmax.f32 %v10480_v63, 0.0  ;;  %v10483_v16 = vmax.f32 %v10481_v30, 0.0 }
 0x924   : > { %10490 = vperm.xlu2 %12884, %v10482_v48  }
 0x92c   : > { %10495 = vperm.xlu2 %12884, %v10483_v16  }
 0x97e   : > { %v10491_v56 = vpop.permute.xlu2 %10490 }
 0x97f   : > { %v10499_v0 = vmul.f32 %v10491_v56, %v10485_v14  ;;  %v10498_v43 = vmul.f32 %v10491_v56, %v10484_v55 }
 0x981   : > { %v10510_v33 = vsel %vm1181_vm1, %v10499_v0, 0.0 }
 0x986   : > { %v10496_v49 = vpop.permute.xlu2 %10495 }
 0x987   : > { %v10500_v23 = vmul.f32 %v10496_v49, %v10486_v19  ;;  %v10501_v40 = vmul.f32 %v10496_v49, %v10487_v12 }
 0x989   : > { %v10502_v5 = vsel %vm10471_vm3, %v10500_v23, 0.0  ;;  %v10511_v10 = vsel %vm10473_vm6, %v10501_v40, 0.0 }
 0x98a   : > { %v10503_v4 = vadd.f32 %v10502_v5, %v10498_v43  ;;  %v10512_v21 = vadd.f32 %v10511_v10, %v10510_v33 }
 0x98c   : > { %v10504_v61 = vrot.slane %v10503_v4, 4  ;;  %v10513_v36 = vrot.slane %v10512_v21, 4 }
 0x98e   : > { %v10505_v7 = vadd.f32 %v10504_v61, %v10503_v4  ;;  %v10514_v41 = vadd.f32 %v10513_v36, %v10512_v21 }
 0x990   : > { %v10506_v3 = vrot.slane %v10505_v7, 2  ;;  %v10515_v32 = vrot.slane %v10514_v41, 2 }
 0x992   : > { %v10507_v26 = vadd.f32 %v10506_v3, %v10505_v7  ;;  %v10516_v11 = vadd.f32 %v10515_v32, %v10514_v41 }
 0x994   : > { %v10508_v63 = vrot.slane %v10507_v26, 1  ;;  %v10517_v48 = vrot.slane %v10516_v11, 1 }
 0x996   : > { %v10509_v20 = vadd.f32 %v10508_v63, %v10507_v26  ;;  %v10518_v34 = vadd.f32 %v10517_v48, %v10516_v11 }
 0x998   : > { %v10525_v30 = vadd.f32 %v10521_v29, %v10509_v20  ;;  %v10526_v16 = vadd.f32 %v10522_v2, %v10518_v34 }
 0x99a   : > { %v12468_v56 = vmul.f32 -1.442695, %v10525_v30  ;;  %v12469_v14 = vmul.f32 -1.442695, %v10526_v16  ;;  %v10583_v30 = vld [vmem:[%s13146_s30] sm:$0xff]  ;;  %v10584_v16 = vld [vmem:[%s13146_s30 + $0x8] sm:$0xff] }
 0x99c   : > { %12891 = vpow2.f32 %v12468_v56  ;;  %v10585_v56 = vld [vmem:[%s13146_s30 + $0x10] sm:$0xff] }
 0x99d   : > { %12893 = vpow2.f32 %v12469_v14 }
 0x9a2   : > { %v12892_v19 = vpop.eup %12891 }
 0x9a3   : > { %v12894_v12 = vpop.eup %12893  ;;  %v10533_v55 = vadd.f32 1.0, %v12892_v19 }
 0x9a4   : > { %v10534_v0 = vadd.f32 1.0, %v12894_v12  ;;  %v10586_v12 = vld [vmem:[%s13146_s30 + $0x18] sm:$0xff] }
 0x9a5   : > { %12895 = vrcp.f32 %v10533_v55  ;;  %v10546_v5 = vand.u32 2147483648, %v10533_v55  ;;  %v10544_v21 = vand.u32 2147483647, %v10533_v55  ;;  %vm10540_vm4 = vweird.f32 %v10533_v55 }
 0x9a6   : > { %12897 = vrcp.f32 %v10534_v0  ;;  %v10561_v61 = vand.u32 2147483648, %v10534_v0  ;;  %v10559_v7 = vand.u32 2147483647, %v10534_v0  ;;  %vm10555_vm9 = vweird.f32 %v10534_v0 }
 0x9a7   : > { %v10547_v3 = vor.u32 1.1754944e-38, %v10546_v5  ;;  %vm10545_vm10 = vcmp.eq.f32.partialorder %v10544_v21, 8.507059e+37 }
 0x9a8   : > { %v10562_v26 = vor.u32 1.1754944e-38, %v10561_v61  ;;  %vm10560_vm14 = vcmp.eq.f32.partialorder %v10559_v7, 8.507059e+37 }
 0x9ab   : > { %v12896_v49 = vpop.eup %12895 }
 0x9ac   : > { %v12898_v23 = vpop.eup %12897  ;;  %v10536_v40 = vmul.f32 %v12896_v49, %v10533_v55  ;;  %vm10541_vm13 = vweird.f32 %v12896_v49 }
 0x9ad   : > { %v10551_v43 = vmul.f32 %v12898_v23, %v10534_v0  ;;  %vm10556_vm0 = vweird.f32 %v12898_v23  ;;  %vm10542_vm5 = vmor %vm10540_vm4, %vm10541_vm13 }
 0x9ae   : > { %v10537_v33 = vsub.f32 1.0, %v10536_v40  ;;  %vm10557_vm11 = vmor %vm10555_vm9, %vm10556_vm0  ;;  %v10595_v40 = vld [vmem:[%s13146_s30 + $0x60] sm:$0xff] }
 0x9af   : > { %v10552_v10 = vsub.f32 1.0, %v10551_v43  ;;  %v10596_v43 = vld [vmem:[%s13146_s30 + $0x68] sm:$0xff] }
 0x9b0   : > { %v10538_v4 = vmul.f32 %v12896_v49, %v10537_v33 }
 0x9b1   : > { %v10553_v36 = vmul.f32 %v12898_v23, %v10552_v10 }
 0x9b2   : > { %v10539_v41 = vadd.f32 %v12896_v49, %v10538_v4 }
 0x9b3   : > { %v10554_v32 = vadd.f32 %v12898_v23, %v10553_v36 }
 0x9b4   : > { %v10543_v62 = vsel %vm10542_vm5, %v12896_v49, %v10539_v41  ;;  %v10589_v49 = vld [vmem:[%s13146_s30 + $0x30] sm:$0xff] }
 0x9b5   : > { %v10548_v11 = vsel %vm10545_vm10, %v10547_v3, %v10543_v62  ;;  %v10558_v29 = vsel %vm10557_vm11, %v12898_v23, %v10554_v32 }
 0x9b6   : > { %v10563_v2 = vsel %vm10560_vm14, %v10562_v26, %v10558_v29  ;;  %v10565_v63 = vperm.slane %v10548_v11, 0 }
 0x9b7   : > { %v10566_v48 = vperm.slane %v10563_v2, 0 }
 0x9b8   : > { %v10567_v20 = vmul.f32 %v10565_v63, %v10407_v38  ;;  %v10569_v34 = vmul.f32 %v10565_v63, %v10409_v9  ;;  %v10571_v55 = vmul.f32 %v10565_v63, %v10411_v28  ;;  %v10588_v9 = vld [vmem:[%s13146_s30 + $0x28] sm:$0xff]  ;;  %v10573_v38 = vmul.f32 %v10565_v63, %v10413_v53  ;;  %v10590_v28 = vld [vmem:[%s13146_s30 + $0x38] sm:$0xff] }
 0x9b9   : > { %v10568_v14 = vmul.f32 %v10566_v48, %v10408_v6  ;;  %v10570_v19 = vmul.f32 %v10566_v48, %v10410_v58  ;;  %v10572_v13 = vmul.f32 %v10566_v48, %v10412_v50  ;;  %v10574_v52 = vmul.f32 %v10566_v48, %v10414_v22  ;;  %v10593_v22 = vld [vmem:[%s13146_s30 + $0x50] sm:$0xff] }
 0x9ba   : > { %v10599_v0 = vadd.f32 %v10583_v30, %v10567_v20  ;;  %v10601_v6 = vadd.f32 %v10585_v56, %v10569_v34  ;;  %v10575_v58 = vmul.f32 %v10565_v63, %v10415_v45  ;;  %v10603_v44 = vadd.f32 %v10587_v17, %v10571_v55 }
 0x9bb   : > { %v10600_v35 = vadd.f32 %v10584_v16, %v10568_v14  ;;  %v10602_v24 = vadd.f32 %v10586_v12, %v10570_v19  ;;  %v10576_v53 = vmul.f32 %v10566_v48, %v10416_v27  ;;  %v10604_v57 = vadd.f32 %v10588_v9, %v10572_v13  ;;  %v10594_v27 = vld [vmem:[%s13146_s30 + $0x58] sm:$0xff] }
 0x9bc   : > { %10615 = vst [vmem:[%s16718_s26] sm:$0xff] %v10599_v0  ;;  %v10577_v50 = vmul.f32 %v10565_v63, %v10417_v31  ;;  %v10605_v45 = vadd.f32 %v10589_v49, %v10573_v38  ;;  %v10578_v23 = vmul.f32 %v10566_v48, %v10418_v46  ;;  %v10606_v1 = vadd.f32 %v10590_v28, %v10574_v52 }
 0x9bd   : > { %10616 = vst.msk [vmem:[%s16718_s26 + $0x8] sm:$0xff] %vm1181_vm1, %v10600_v35  ;;  %v10579_v59 = vmul.f32 %v10565_v63, %v10419_v54  ;;  %v10607_v31 = vadd.f32 %v10591_v15, %v10575_v58  ;;  %v10580_v51 = vmul.f32 %v10566_v48, %v10420_v18  ;;  %v10608_v46 = vadd.f32 %v10592_v39, %v10576_v53  ;;  %v10597_v54 = vld [vmem:[%s13146_s30 + $0x70] sm:$0xff]  ;;  %s10632_s30 = scalar_lea.sflag [#allocation5], %s566_s21 }
 0x9be   : > { %10617 = vst [vmem:[%s16718_s26 + $0x10] sm:$0xff] %v10601_v6  ;;  %v10581_v33 = vmul.f32 %v10565_v63, %v10421_v37  ;;  %v10609_v60 = vadd.f32 %v10593_v22, %v10577_v50  ;;  %v10582_v47 = vmul.f32 %v10566_v48, %v10422_v8  ;;  %v10610_v18 = vadd.f32 %v10594_v27, %v10578_v23 }
 0x9bf   : > { %10618 = vst.msk [vmem:[%s16718_s26 + $0x18] sm:$0xff] %vm1181_vm1, %v10602_v24  ;;  %v10611_v37 = vadd.f32 %v10595_v40, %v10579_v59  ;;  %v10612_v5 = vadd.f32 %v10596_v43, %v10580_v51 }
 0x9c0   : > { %10619 = vst [vmem:[%s16718_s26 + $0x20] sm:$0xff] %v10603_v44  ;;  %v10613_v10 = vadd.f32 %v10597_v54, %v10581_v33  ;;  %v10614_v42 = vadd.f32 %v10598_v25, %v10582_v47 }
 0x9c1   : > { %10620 = vst.msk [vmem:[%s16718_s26 + $0x28] sm:$0xff] %vm1181_vm1, %v10604_v57 }
 0x9c2   : > { %10621 = vst [vmem:[%s16718_s26 + $0x30] sm:$0xff] %v10605_v45 }
 0x9c3   : > { %10622 = vst.msk [vmem:[%s16718_s26 + $0x38] sm:$0xff] %vm1181_vm1, %v10606_v1 }
 0x9c4   : > { %10623 = vst [vmem:[%s16718_s26 + $0x40] sm:$0xff] %v10607_v31 }
 0x9c5   : > { %10624 = vst.msk [vmem:[%s16718_s26 + $0x48] sm:$0xff] %vm1181_vm1, %v10608_v46 }
 0x9c6   : > { %10625 = vst [vmem:[%s16718_s26 + $0x50] sm:$0xff] %v10609_v60 }
 0x9c7   : > { %10626 = vst.msk [vmem:[%s16718_s26 + $0x58] sm:$0xff] %vm1181_vm1, %v10610_v18 }
 0x9c8   : > { %10627 = vst [vmem:[%s16718_s26 + $0x60] sm:$0xff] %v10611_v37 }
 0x9c9   : > { %10628 = vst.msk [vmem:[%s16718_s26 + $0x68] sm:$0xff] %vm1181_vm1, %v10612_v5 }
 0x9ca   : > { %10629 = vst [vmem:[%s16718_s26 + $0x70] sm:$0xff] %v10613_v10 }
 0x9cb   : > { %10630 = vst.msk [vmem:[%s16718_s26 + $0x78] sm:$0xff] %vm1181_vm1, %v10614_v42 }
 0x9cc   : > { %12929 = shalt.err (!%p12926_p3)
}
 0x9cd   : > { %s12970_s21 = smov 256   ;;  %s12971_s26 = smov 16  }
 0x9ce   : > { %12839 = dma.vmem_to_hbm [thread:$0]  (%p13105_p5), %s10645_s23, 2048, %s10647_s29, %s10632_s30, %s12970_s21, %s12970_s21, %s12971_s26  }
 0x9cf PF: > { %s16961_s24 = sld [smem:[#allocation9_spill]] }
 0x9d0   : > { %s16962_s3 = sld [smem:[#allocation7_spill]] }
 0x9d5   : > { %p12845_p4 = scmp.ge.s32.totalorder %s16961_s24, 2 }
 0x9d6   : > { %s10661_s27 = sand.u32 1, %s16962_s3  }
 0x9d7   : > { %p12842_p7 = pnand %p12845_p4, %p13109_p6  ;;  %s10662_s25 = scalar_lea.sflag [#allocation5], %s10661_s27 }
 0x9d9   : > { %p12843_p8 = pneg %p12842_p7 }
 0x9db   : > { %12947 = dma.done.wait (%p12843_p8), %s10662_s25, 2048  }
 0x9dc   : > { %12949 = vsyncadd (%p12843_p8), %s10662_s25, 4294965248  ;;  %s16964_s30 = sld [smem:[#allocation10_spill]]  ;;  %s16967_s27 = smov %s12956_s28 }
 0x9dd   : > { %s16965_s22 = sld [smem:[#allocation8_spill]] }
 0x9de   : > { %s16966_s29 = sld [smem:[#allocation11_spill]] }
 0x9e2   : > { %p28_p9 = scmp.ge.s32.totalorder %s16964_s30, 4  }
 0x9e3   : > { %s16968_s28 = smov %s16965_s22 }
 0x9e4   :  { %30 = sbr.rel (!%p28_p9) target bundleno = 9 (0x9), region = 133 }
 0x9e9   :  { %10668 = vsyncpa [#allocation5], 1 }
 0x9ea   :  { %10670 = vsyncpa [#allocation5 + $0x1], 1 }

</bundles_post_ra>
